<compile_context>
chip_gen: v6e
topology: v6e:2x2x1
jax: 0.10.0
libtpu: 0.0.40
codegen_flags: <defaults>
</compile_context>

<pallas_src>
import functools

import jax
import jax.numpy as jnp
from jax.experimental import pallas as pl
from jax.experimental.pallas import tpu as pltpu


# ----------------------------------------------------------------------------
# static phase / tap-merge planning (plain python, evaluated at trace time)
# ----------------------------------------------------------------------------
def _conv_len(lin, k, stride, pad):
    return (lin + 2 * pad - k) // stride + 1


def _plan_layer(p_in, p_out, k_size, pad, len_out):
    """Plan one stride-2 sliding-window layer (conv or pool) on phase data.

    Output position t = p_out*u + q reads input positions 2*t + k - pad.
    With the input stored as p_in phase planes (plane p, column i holds input
    position p_in*(i - margin) + p), tap k of output phase q reads plane
    (a % p_in) at columns margin + a//p_in + u, where a = 2*q + k - pad.

    Returns, per output phase q: (n_valid_q, [(k, plane, rel_col), ...]).
    """
    plan = []
    for q in range(p_out):
        n_valid = (len_out - q + p_out - 1) // p_out   # ceil((len_out-q)/p_out)
        taps = []
        for k in range(k_size):
            a = 2 * q + k - pad
            taps.append((k, a % p_in, a // p_in))
        plan.append((n_valid, taps))
    return plan


def _merge_groups(plan, p_in):
    """Merge runs of taps sharing one column offset into contiguous-plane
    groups.  Each group becomes a single (C_out, g*C_in) x (g*C_in, n) dot on
    the (plane, channel)-merged buffer.  Returns per output phase:
    (n_valid, [(k0, g, plane_lo, rel), ...])."""
    merged = []
    for n_valid, taps in plan:
        groups = []
        i = 0
        while i < len(taps):
            k0, p0, r0 = taps[i]
            g = 1
            while i + g < len(taps) and taps[i + g][2] == r0:
                # inside a run the absolute tap position increases by one, so
                # planes are consecutive -- required for a contiguous row slab.
                assert taps[i + g][1] == p0 + g
                g += 1
            assert p0 + g <= p_in
            groups.append((k0, g, p0, r0))
            i += g
        merged.append((n_valid, groups))
    return merged


def _min_margin(plan):
    return max(0, -min(rel for _, taps in plan for _, _, rel in taps))


def _read_extent(plan):   # columns needed right of the margin by the reader
    return max(rel + n for n, taps in plan for _, _, rel in taps)


def _write_extent(plan):  # columns written right of the margin by the writer
    return max(n for n, _ in plan)


def _write_min(plan):     # columns guaranteed written for every phase
    return min(n for n, _ in plan)


# ----------------------------------------------------------------------------
# in-kernel building blocks (statically unrolled; ~35 vector ops + ~22 dots)
# ----------------------------------------------------------------------------
def _merged_conv(read_slab, wm_ref, bias_b, merged_plan, c_in, m_in):
    """Stride-2 Conv1d + bias + ReLU with taps merged into the contraction.

    read_slab(row0, nrows, col0, ncols) returns a (nrows, ncols) bf16 slab of
    the (plane*C_in + c, column) merged input buffer.  Returns one f32
    (C_out, n_valid_q) array per output phase."""
    outs = []
    for n, groups in merged_plan:
        acc = None
        for k0, g, p_lo, rel in groups:
            lhs = wm_ref[:, k0 * c_in:(k0 + g) * c_in]           # (C_out, g*C_in)
            rhs = read_slab(p_lo * c_in, g * c_in, m_in + rel, n)  # (g*C_in, n)
            d = jnp.dot(lhs, rhs, preferred_element_type=jnp.float32)
            acc = d if acc is None else acc + d
        outs.append(jnp.maximum(acc + bias_b[:, :n], 0.0))
    return outs


def _merged_pool(read_slab, plan, c, m_in):
    """MaxPool1d(kernel=3, stride=2, pad=1) on merged, post-ReLU (>=0) data.
    Zero margin columns stand in for the -inf pad (valid because inputs>=0)."""
    outs = []
    for n, taps in plan:
        m = None
        for _k, plane, rel in taps:
            s = read_slab(plane * c, c, m_in + rel, n)
            m = s if m is None else jnp.maximum(m, s)
        outs.append(m)
    return outs


def _store_phases(buf, outs, c_out, margin):
    for q, y in enumerate(outs):
        n = y.shape[-1]
        buf[q * c_out:(q + 1) * c_out, margin:margin + n] = y.astype(buf.dtype)


def _zero_pad_strips(buf, strips):
    # Zero only the (few) padding columns downstream layers actually read.
    rows = buf.shape[0]
    for lo, hi in strips:
        if hi > lo:
            buf[:, lo:hi] = jnp.zeros((rows, hi - lo), buf.dtype)


def _three_convs_kernel(x_ref, w0_ref, b0_ref, w1_ref, b1_ref, w2_ref, b2_ref,
                        o_ref, y0_buf, p0_buf, y1_buf, *,
                        g0, gpool, g1, g2,
                        m_x, m_y0, m_p0, m_y1,
                        strips_y0, strips_p0, strips_y1, b_blk):
    # Re-establish the zero padding columns every step (each grid step is
    # fully self-contained -> safe under "parallel" megacore sharding).
    _zero_pad_strips(y0_buf, strips_y0)
    _zero_pad_strips(p0_buf, strips_p0)
    _zero_pad_strips(y1_buf, strips_y1)

    # Hoisted bias broadcasts: one per layer instead of one per output phase.
    n0 = max(n for n, _ in g0)
    n1 = max(n for n, _ in g1)
    n2 = max(n for n, _ in g2)
    b0_b = jnp.broadcast_to(b0_ref[...], (b0_ref.shape[0], n0))
    b1_b = jnp.broadcast_to(b1_ref[...], (b1_ref.shape[0], n1))
    b2_b = jnp.broadcast_to(b2_ref[...], (b2_ref.shape[0], n2))

    for b in range(b_blk):
        # conv0 + relu0 : x (16 phases x 12 ch merged) -> y0 (8 phases x 8 ch)
        read_x = lambda r, nr, c, nc: x_ref[b, r:r + nr, c:c + nc]
        _store_phases(y0_buf,
                      _merged_conv(read_x, w0_ref, b0_b, g0, 12, m_x),
                      8, m_y0)

        # maxpool0 (k=3, s=2, p=1) : y0 -> p0 (4 phases x 8 ch)
        read_y0 = lambda r, nr, c, nc: y0_buf[r:r + nr, c:c + nc]
        _store_phases(p0_buf,
                      _merged_pool(read_y0, gpool, 8, m_y0),
                      8, m_p0)

        # conv1 + relu1 : p0 -> y1 (2 phases x 16 ch)
        read_p0 = lambda r, nr, c, nc: p0_buf[r:r + nr, c:c + nc]
        _store_phases(y1_buf,
                      _merged_conv(read_p0, w1_ref, b1_b, g1, 8, m_p0),
                      16, m_y1)

        # conv2 + relu2 : y1 -> dense (16, 940), then the global max over the
        # 940 columns (== MaxPool1d(kernel_size=940, stride=940)).
        read_y1 = lambda r, nr, c, nc: y1_buf[r:r + nr, c:c + nc]
        y2 = _merged_conv(read_y1, w2_ref, b2_b, g2, 16, m_y1)[0]
        o_ref[b, :, :] = jnp.max(y2, axis=-1, keepdims=True)


# ----------------------------------------------------------------------------
# wrapper == THREE_CONVs.forward
# ----------------------------------------------------------------------------
def three_convs_forward(x, params, *, batch_block=1):
    """x: (N, 12, L) float32  ->  (N, 9) float32."""
    (w0, b0), (w1, b1), (w2, b2), (wf, bf) = params
    N, c_in, L = x.shape
    assert c_in == 12, "THREE_CONVs expects 12 input channels"
    assert N % batch_block == 0

    # ---- static geometry (PyTorch Conv1d / MaxPool1d length formulas) ----
    len_y0 = _conv_len(L, 15, 2, 7)       # conv0
    len_p0 = _conv_len(len_y0, 3, 2, 1)   # maxpool0
    len_y1 = _conv_len(len_p0, 7, 2, 3)   # conv1
    len_y2 = _conv_len(len_y1, 3, 2, 3)   # conv2
    # MaxPool1d(940, 940) must see exactly one full window so that
    # flatten -> Linear(16, 9) is well formed.
    assert len_y2 == 940, "maxpool2 expects a conv2 output of length 940"

    # ---- static phase plans + tap-merged group plans ----
    p_x, p_y0, p_p0, p_y1 = 16, 8, 4, 2
    plan0 = _plan_layer(p_x, p_y0, 15, 7, len_y0)        # conv0
    plan_pool = _plan_layer(p_y0, p_p0, 3, 1, len_p0)    # maxpool0
    plan1 = _plan_layer(p_p0, p_y1, 7, 3, len_y1)        # conv1
    plan2 = _plan_layer(p_y1, 1, 3, 3, len_y2)           # conv2
    g0 = _merge_groups(plan0, p_x)
    g1 = _merge_groups(plan1, p_p0)
    g2 = _merge_groups(plan2, p_y1)

    m_x = _min_margin(plan0)
    lb_x = m_x + _read_extent(plan0)
    # Scratch margins rounded up to a full lane tile (128) so every in-kernel
    # store is lane-aligned (reads may be off-aligned: cheap).
    m_y0 = max(128, _min_margin(plan_pool))
    lb_y0 = m_y0 + max(_write_extent(plan0), _read_extent(plan_pool))
    m_p0 = max(128, _min_margin(plan1))
    lb_p0 = m_p0 + max(_write_extent(plan_pool), _read_extent(plan1))
    m_y1 = max(128, _min_margin(plan2))
    lb_y1 = m_y1 + max(_write_extent(plan1), _read_extent(plan2))

    # Columns each scratch buffer must hold as zeros (read as conv/pool
    # padding but never written): a 1-2 column sliver left of the margin and
    # a 1-2 column tail past the shortest written phase.
    def pad_strips(margin, reader_plan, writer_plan):
        left = _min_margin(reader_plan)
        tail_lo = margin + _write_min(writer_plan)
        tail_hi = max(tail_lo, margin + _read_extent(reader_plan))
        return ((margin - left, margin), (tail_lo, tail_hi))

    strips_y0 = pad_strips(m_y0, plan_pool, plan0)
    strips_p0 = pad_strips(m_p0, plan1, plan_pool)
    strips_y1 = pad_strips(m_y1, plan2, plan1)

    # ---- HBM-side layout glue: 16-phase split of the input, bf16, one fused
    # copy.  xm[n, p*12 + c, i] = x[n, c, 16*(i - m_x) + p]  (zero outside L).
    # TODO(synk): produce the input in this phase-major layout upstream to
    # remove this extra HBM pass entirely.
    pad_lo = p_x * m_x
    pad_hi = p_x * lb_x - pad_lo - L
    assert pad_hi >= 0
    xp = jnp.pad(x, ((0, 0), (0, 0), (pad_lo, pad_hi)))
    xm = (xp.reshape(N, c_in, lb_x, p_x)
            .transpose(0, 3, 1, 2)
            .reshape(N, p_x * c_in, lb_x)
            .astype(jnp.bfloat16))

    # Tap-merged weights: Wm[:, k*C_in + c] = w[:, c, k]  (bf16 for the MXU).
    def merge_w(w):
        c_out, ci, k = w.shape
        return (jnp.transpose(w, (0, 2, 1))
                .reshape(c_out, k * ci).astype(jnp.bfloat16))

    w0m, w1m, w2m = merge_w(w0), merge_w(w1), merge_w(w2)
    b0c = b0.reshape(-1, 1).astype(jnp.float32)
    b1c = b1.reshape(-1, 1).astype(jnp.float32)
    b2c = b2.reshape(-1, 1).astype(jnp.float32)

    kernel = functools.partial(
        _three_convs_kernel, g0=g0, gpool=plan_pool, g1=g1, g2=g2,
        m_x=m_x, m_y0=m_y0, m_p0=m_p0, m_y1=m_y1,
        strips_y0=strips_y0, strips_p0=strips_p0, strips_y1=strips_y1,
        b_blk=batch_block)

    # VMEM footprint per step (batch_block=1): ~0.36 MB input block (x2 for
    # double buffering) + ~0.27 MB scratch -- far below v5e/v6e (128 MiB) and
    # v7x (64 MiB), so the default scoped VMEM limit is ample.
    pooled = pl.pallas_call(
        kernel,
        out_shape=jax.ShapeDtypeStruct((N, 16, 1), jnp.float32),
        grid=(N // batch_block,),
        in_specs=[
            pl.BlockSpec((batch_block, p_x * c_in, lb_x), lambda n: (n, 0, 0)),
            pl.BlockSpec(w0m.shape, lambda n: (0, 0)),
            pl.BlockSpec(b0c.shape, lambda n: (0, 0)),
            pl.BlockSpec(w1m.shape, lambda n: (0, 0)),
            pl.BlockSpec(b1c.shape, lambda n: (0, 0)),
            pl.BlockSpec(w2m.shape, lambda n: (0, 0)),
            pl.BlockSpec(b2c.shape, lambda n: (0, 0)),
        ],
        out_specs=pl.BlockSpec((batch_block, 16, 1), lambda n: (n, 0, 0)),
        scratch_shapes=[
            pltpu.VMEM((p_y0 * 8, lb_y0), jnp.bfloat16),    # conv0 out phases
            pltpu.VMEM((p_p0 * 8, lb_p0), jnp.bfloat16),    # maxpool0 phases
            pltpu.VMEM((p_y1 * 16, lb_y1), jnp.bfloat16),   # conv1 out phases
        ],
        compiler_params=pltpu.CompilerParams(
            dimension_semantics=("parallel",)),
    )(xm, w0m, b0c, w1m, b1c, w2m, b2c)

    # flatten + fc: a (N, 16) @ (16, 9) matmul in plain jnp (cheaper than a
    # separate lane-sparse pallas_call).
    feats = pooled[:, :, 0]
    return jnp.dot(feats, wf.T,
                   precision=jax.lax.Precision.HIGHEST) + bf[None, :]


# ----------------------------------------------------------------------------
# pure-JAX reference (for the correctness check)
# ----------------------------------------------------------------------------
def reference_forward(x, params):
    (w0, b0), (w1, b1), (w2, b2), (wf, bf) = params

    def conv(x, w, b, stride, pad):
        y = jax.lax.conv_general_dilated(
            x, w, window_strides=(stride,), padding=[(pad, pad)],
            dimension_numbers=("NCH", "OIH", "NCH"),
            precision=jax.lax.Precision.HIGHEST)
        return y + b[None, :, None]

    y = jax.nn.relu(conv(x, w0, b0, 2, 7))
    y = jax.lax.reduce_window(
        y, -jnp.inf, jax.lax.max,
        window_dimensions=(1, 1, 3), window_strides=(1, 1, 2),
        padding=((0, 0), (0, 0), (1, 1)))
    y = jax.nn.relu(conv(y, w1, b1, 2, 3))
    y = jax.nn.relu(conv(y, w2, b2, 2, 3))
    y = jnp.max(y, axis=-1)                   # MaxPool1d(940) on length 940
    return jnp.dot(y, wf.T, precision=jax.lax.Precision.HIGHEST) + bf[None, :]


if __name__ == "__main__":
    key = jax.random.PRNGKey(0)
    keys = jax.random.split(key, 9)

    # channels=12 is fixed by the module; L=15000 is the natural ECG length
    # for which the conv chain ends at exactly 940 samples, the window size of
    # MaxPool1d(940) (15000 -> 7500 -> 3750 -> 1875 -> 940).
    N, C_IN, L = 2, 12, 15000
    x = jax.random.normal(keys[0], (N, C_IN, L), jnp.float32)

    def init_conv(kw, kb, c_out, c_in, k):
        bound = 1.0 / (c_in * k) ** 0.5
        w = jax.random.uniform(kw, (c_out, c_in, k), jnp.float32, -bound, bound)
        b = jax.random.uniform(kb, (c_out,), jnp.float32, -bound, bound)
        return w, b

    w0, b0 = init_conv(keys[1], keys[2], 8, 12, 15)    # conv0
    w1, b1 = init_conv(keys[3], keys[4], 16, 8, 7)     # conv1
    w2, b2 = init_conv(keys[5], keys[6], 16, 16, 3)    # conv2
    bound = 1.0 / 16 ** 0.5
    wf = jax.random.uniform(keys[7], (9, 16), jnp.float32, -bound, bound)
    bf = jax.random.uniform(keys[8], (9,), jnp.float32, -bound, bound)
    params = ((w0, b0), (w1, b1), (w2, b2), (wf, bf))

    # batch_block=1 -> grid=(2,): two parallel steps (keeps both v7x cores fed).
    out = jax.jit(three_convs_forward)(x, params)
    jax.block_until_ready(out)
    assert out.shape == (N, 9) and out.dtype == jnp.float32

    ref = jax.jit(reference_forward)(x, params)
    jax.block_until_ready(ref)
    # bf16 MXU operands with f32 accumulation vs. HIGHEST-precision f32
    # reference: observed error is O(1e-3); 2e-2 leaves ample safety margin.
    if not jnp.allclose(out, ref, rtol=2e-2, atol=2e-2):
        raise AssertionError("Pallas output does not match JAX reference")

    print("KERNEL_OK")
</pallas_src>

<mosaic_0001>
module attributes {stable_mosaic.version = 11 : i64} {
  func.func @_three_convs_kernel(%arg0: i32, %arg1: memref<1x192x939xbf16, #tpu.memory_space<vmem>>, %arg2: memref<8x180xbf16, #tpu.memory_space<vmem>>, %arg3: memref<8x1xf32, #tpu.memory_space<vmem>>, %arg4: memref<16x56xbf16, #tpu.memory_space<vmem>>, %arg5: memref<16x1xf32, #tpu.memory_space<vmem>>, %arg6: memref<16x48xbf16, #tpu.memory_space<vmem>>, %arg7: memref<16x1xf32, #tpu.memory_space<vmem>>, %arg8: memref<1x16x1xf32, #tpu.memory_space<vmem>>, %arg9: memref<64x1066xbf16, #tpu.memory_space<vmem>>, %arg10: memref<32x1066xbf16, #tpu.memory_space<vmem>>, %arg11: memref<32x1067xbf16, #tpu.memory_space<vmem>>) attributes {dimension_semantics = [#tpu.dimension_semantics<parallel>], iteration_bounds = array<i64: 2>, scalar_prefetch = 0 : i64, scratch_operands = 3 : i64, tpu.core_type = #tpu.core_type<tc>, window_params = [{transform_indices = @transform_0, window_bounds = array<i64: 1, 192, 939>}, {pipeline_mode = #tpu.pipeline_mode<synchronous>, transform_indices = @transform_1, window_bounds = array<i64: 8, 180>}, {pipeline_mode = #tpu.pipeline_mode<synchronous>, transform_indices = @transform_2, window_bounds = array<i64: 8, 1>}, {pipeline_mode = #tpu.pipeline_mode<synchronous>, transform_indices = @transform_3, window_bounds = array<i64: 16, 56>}, {pipeline_mode = #tpu.pipeline_mode<synchronous>, transform_indices = @transform_4, window_bounds = array<i64: 16, 1>}, {pipeline_mode = #tpu.pipeline_mode<synchronous>, transform_indices = @transform_5, window_bounds = array<i64: 16, 48>}, {pipeline_mode = #tpu.pipeline_mode<synchronous>, transform_indices = @transform_6, window_bounds = array<i64: 16, 1>}, {transform_indices = @transform_7, window_bounds = array<i64: 1, 16, 1>}]} {
    %cst = arith.constant 0.000000e+00 : bf16
    %0 = vector.broadcast %cst : bf16 to vector<64x1xbf16>
    %c0 = arith.constant 0 : index
    %c127 = arith.constant 127 : index
    %1 = vector.load %arg9[%c0, %c127] : memref<64x1066xbf16, #tpu.memory_space<vmem>>, vector<64x1xbf16>
    tpu.vector_store %arg9[%c0, %c127], %0 {strides = array<i32>} : memref<64x1066xbf16, #tpu.memory_space<vmem>>, vector<64x1xbf16>,
    %cst_0 = arith.constant 0.000000e+00 : bf16
    %2 = vector.broadcast %cst_0 : bf16 to vector<64x1xbf16>
    %c0_1 = arith.constant 0 : index
    %c1065 = arith.constant 1065 : index
    %3 = vector.load %arg9[%c0_1, %c1065] : memref<64x1066xbf16, #tpu.memory_space<vmem>>, vector<64x1xbf16>
    tpu.vector_store %arg9[%c0_1, %c1065], %2 {strides = array<i32>} : memref<64x1066xbf16, #tpu.memory_space<vmem>>, vector<64x1xbf16>,
    %cst_2 = arith.constant 0.000000e+00 : bf16
    %4 = vector.broadcast %cst_2 : bf16 to vector<32x1xbf16>
    %c0_3 = arith.constant 0 : index
    %c127_4 = arith.constant 127 : index
    %5 = vector.load %arg10[%c0_3, %c127_4] : memref<32x1066xbf16, #tpu.memory_space<vmem>>, vector<32x1xbf16>
    tpu.vector_store %arg10[%c0_3, %c127_4], %4 {strides = array<i32>} : memref<32x1066xbf16, #tpu.memory_space<vmem>>, vector<32x1xbf16>,
    %cst_5 = arith.constant 0.000000e+00 : bf16
    %6 = vector.broadcast %cst_5 : bf16 to vector<32x1xbf16>
    %c0_6 = arith.constant 0 : index
    %c1065_7 = arith.constant 1065 : index
    %7 = vector.load %arg10[%c0_6, %c1065_7] : memref<32x1066xbf16, #tpu.memory_space<vmem>>, vector<32x1xbf16>
    tpu.vector_store %arg10[%c0_6, %c1065_7], %6 {strides = array<i32>} : memref<32x1066xbf16, #tpu.memory_space<vmem>>, vector<32x1xbf16>,
    %cst_8 = arith.constant 0.000000e+00 : bf16
    %8 = vector.broadcast %cst_8 : bf16 to vector<32x2xbf16>
    %c0_9 = arith.constant 0 : index
    %c126 = arith.constant 126 : index
    %9 = vector.load %arg11[%c0_9, %c126] : memref<32x1067xbf16, #tpu.memory_space<vmem>>, vector<32x2xbf16>
    tpu.vector_store %arg11[%c0_9, %c126], %8 {strides = array<i32>} : memref<32x1067xbf16, #tpu.memory_space<vmem>>, vector<32x2xbf16>,
    %cst_10 = arith.constant 0.000000e+00 : bf16
    %10 = vector.broadcast %cst_10 : bf16 to vector<32x2xbf16>
    %c0_11 = arith.constant 0 : index
    %c1065_12 = arith.constant 1065 : index
    %11 = vector.load %arg11[%c0_11, %c1065_12] : memref<32x1067xbf16, #tpu.memory_space<vmem>>, vector<32x2xbf16>
    tpu.vector_store %arg11[%c0_11, %c1065_12], %10 {strides = array<i32>} : memref<32x1067xbf16, #tpu.memory_space<vmem>>, vector<32x2xbf16>,
    %c0_13 = arith.constant 0 : index
    %c0_14 = arith.constant 0 : index
    %12 = vector.load %arg3[%c0_13, %c0_14] : memref<8x1xf32, #tpu.memory_space<vmem>>, vector<8x1xf32>
    %13 = vector.shape_cast %12 : vector<8x1xf32> to vector<8x1xf32>
    %14 = vector.broadcast %13 : vector<8x1xf32> to vector<8x938xf32>
    %c0_15 = arith.constant 0 : index
    %c0_16 = arith.constant 0 : index
    %15 = vector.load %arg5[%c0_15, %c0_16] : memref<16x1xf32, #tpu.memory_space<vmem>>, vector<16x1xf32>
    %16 = vector.shape_cast %15 : vector<16x1xf32> to vector<16x1xf32>
    %17 = vector.broadcast %16 : vector<16x1xf32> to vector<16x938xf32>
    %c0_17 = arith.constant 0 : index
    %c0_18 = arith.constant 0 : index
    %18 = vector.load %arg7[%c0_17, %c0_18] : memref<16x1xf32, #tpu.memory_space<vmem>>, vector<16x1xf32>
    %19 = vector.shape_cast %18 : vector<16x1xf32> to vector<16x1xf32>
    %20 = vector.broadcast %19 : vector<16x1xf32> to vector<16x940xf32>
    %c0_19 = arith.constant 0 : index
    %c0_20 = arith.constant 0 : index
    %21 = vector.load %arg2[%c0_19, %c0_20] : memref<8x180xbf16, #tpu.memory_space<vmem>>, vector<8x84xbf16>
    %c0_21 = arith.constant 0 : index
    %c108 = arith.constant 108 : index
    %c0_22 = arith.constant 0 : index
    %22 = vector.load %arg1[%c0_21, %c108, %c0_22] : memref<1x192x939xbf16, #tpu.memory_space<vmem>>, vector<1x84x938xbf16>
    %23 = vector.shape_cast %22 : vector<1x84x938xbf16> to vector<84x938xbf16>
    %cst_23 = arith.constant dense<0.000000e+00> : vector<8x938xf32>
    %24 = tpu.matmul %21, %23, %cst_23 {dimension_numbers = #tpu.dot_dimension_numbers<[1], [0], [0], [1], [0, 0, 1, 1], [], []>} : vector<8x84xbf16>, vector<84x938xbf16>, vector<8x938xf32> -> vector<8x938xf32>
    %c0_24 = arith.constant 0 : index
    %c84 = arith.constant 84 : index
    %25 = vector.load %arg2[%c0_24, %c84] : memref<8x180xbf16, #tpu.memory_space<vmem>>, vector<8x96xbf16>
    %c0_25 = arith.constant 0 : index
    %c0_26 = arith.constant 0 : index
    %c1 = arith.constant 1 : index
    %26 = vector.load %arg1[%c0_25, %c0_26, %c1] : memref<1x192x939xbf16, #tpu.memory_space<vmem>>, vector<1x96x938xbf16>
    %27 = vector.shape_cast %26 : vector<1x96x938xbf16> to vector<96x938xbf16>
    %cst_27 = arith.constant dense<0.000000e+00> : vector<8x938xf32>
    %28 = tpu.matmul %25, %27, %cst_27 {dimension_numbers = #tpu.dot_dimension_numbers<[1], [0], [0], [1], [0, 0, 1, 1], [], []>} : vector<8x96xbf16>, vector<96x938xbf16>, vector<8x938xf32> -> vector<8x938xf32>
    %29 = arith.addf %24, %28 : vector<8x938xf32>
    %30 = arith.addf %29, %14 : vector<8x938xf32>
    %cst_28 = arith.constant 0.000000e+00 : f32
    %31 = vector.broadcast %cst_28 : f32 to vector<8x938xf32>
    %32 = arith.maximumf %30, %31 : vector<8x938xf32>
    %c0_29 = arith.constant 0 : index
    %c0_30 = arith.constant 0 : index
    %33 = vector.load %arg2[%c0_29, %c0_30] : memref<8x180xbf16, #tpu.memory_space<vmem>>, vector<8x60xbf16>
    %c0_31 = arith.constant 0 : index
    %c132 = arith.constant 132 : index
    %c0_32 = arith.constant 0 : index
    %34 = vector.load %arg1[%c0_31, %c132, %c0_32] : memref<1x192x939xbf16, #tpu.memory_space<vmem>>, vector<1x60x938xbf16>
    %35 = vector.shape_cast %34 : vector<1x60x938xbf16> to vector<60x938xbf16>
    %cst_33 = arith.constant dense<0.000000e+00> : vector<8x938xf32>
    %36 = tpu.matmul %33, %35, %cst_33 {dimension_numbers = #tpu.dot_dimension_numbers<[1], [0], [0], [1], [0, 0, 1, 1], [], []>} : vector<8x60xbf16>, vector<60x938xbf16>, vector<8x938xf32> -> vector<8x938xf32>
    %c0_34 = arith.constant 0 : index
    %c60 = arith.constant 60 : index
    %37 = vector.load %arg2[%c0_34, %c60] : memref<8x180xbf16, #tpu.memory_space<vmem>>, vector<8x120xbf16>
    %c0_35 = arith.constant 0 : index
    %c0_36 = arith.constant 0 : index
    %c1_37 = arith.constant 1 : index
    %38 = vector.load %arg1[%c0_35, %c0_36, %c1_37] : memref<1x192x939xbf16, #tpu.memory_space<vmem>>, vector<1x120x938xbf16>
    %39 = vector.shape_cast %38 : vector<1x120x938xbf16> to vector<120x938xbf16>
    %cst_38 = arith.constant dense<0.000000e+00> : vector<8x938xf32>
    %40 = tpu.matmul %37, %39, %cst_38 {dimension_numbers = #tpu.dot_dimension_numbers<[1], [0], [0], [1], [0, 0, 1, 1], [], []>} : vector<8x120xbf16>, vector<120x938xbf16>, vector<8x938xf32> -> vector<8x938xf32>
    %41 = arith.addf %36, %40 : vector<8x938xf32>
    %42 = arith.addf %41, %14 : vector<8x938xf32>
    %cst_39 = arith.constant 0.000000e+00 : f32
    %43 = vector.broadcast %cst_39 : f32 to vector<8x938xf32>
    %44 = arith.maximumf %42, %43 : vector<8x938xf32>
    %c0_40 = arith.constant 0 : index
    %c0_41 = arith.constant 0 : index
    %45 = vector.load %arg2[%c0_40, %c0_41] : memref<8x180xbf16, #tpu.memory_space<vmem>>, vector<8x36xbf16>
    %c0_42 = arith.constant 0 : index
    %c156 = arith.constant 156 : index
    %c0_43 = arith.constant 0 : index
    %46 = vector.load %arg1[%c0_42, %c156, %c0_43] : memref<1x192x939xbf16, #tpu.memory_space<vmem>>, vector<1x36x938xbf16>
    %47 = vector.shape_cast %46 : vector<1x36x938xbf16> to vector<36x938xbf16>
    %cst_44 = arith.constant dense<0.000000e+00> : vector<8x938xf32>
    %48 = tpu.matmul %45, %47, %cst_44 {dimension_numbers = #tpu.dot_dimension_numbers<[1], [0], [0], [1], [0, 0, 1, 1], [], []>} : vector<8x36xbf16>, vector<36x938xbf16>, vector<8x938xf32> -> vector<8x938xf32>
    %c0_45 = arith.constant 0 : index
    %c36 = arith.constant 36 : index
    %49 = vector.load %arg2[%c0_45, %c36] : memref<8x180xbf16, #tpu.memory_space<vmem>>, vector<8x144xbf16>
    %c0_46 = arith.constant 0 : index
    %c0_47 = arith.constant 0 : index
    %c1_48 = arith.constant 1 : index
    %50 = vector.load %arg1[%c0_46, %c0_47, %c1_48] : memref<1x192x939xbf16, #tpu.memory_space<vmem>>, vector<1x144x938xbf16>
    %51 = vector.shape_cast %50 : vector<1x144x938xbf16> to vector<144x938xbf16>
    %cst_49 = arith.constant dense<0.000000e+00> : vector<8x938xf32>
    %52 = tpu.matmul %49, %51, %cst_49 {dimension_numbers = #tpu.dot_dimension_numbers<[1], [0], [0], [1], [0, 0, 1, 1], [], []>} : vector<8x144xbf16>, vector<144x938xbf16>, vector<8x938xf32> -> vector<8x938xf32>
    %53 = arith.addf %48, %52 : vector<8x938xf32>
    %54 = arith.addf %53, %14 : vector<8x938xf32>
    %cst_50 = arith.constant 0.000000e+00 : f32
    %55 = vector.broadcast %cst_50 : f32 to vector<8x938xf32>
    %56 = arith.maximumf %54, %55 : vector<8x938xf32>
    %c0_51 = arith.constant 0 : index
    %c0_52 = arith.constant 0 : index
    %57 = vector.load %arg2[%c0_51, %c0_52] : memref<8x180xbf16, #tpu.memory_space<vmem>>, vector<8x12xbf16>
    %c0_53 = arith.constant 0 : index
    %c180 = arith.constant 180 : index
    %c0_54 = arith.constant 0 : index
    %58 = vector.load %arg1[%c0_53, %c180, %c0_54] : memref<1x192x939xbf16, #tpu.memory_space<vmem>>, vector<1x12x938xbf16>
    %59 = vector.shape_cast %58 : vector<1x12x938xbf16> to vector<12x938xbf16>
    %cst_55 = arith.constant dense<0.000000e+00> : vector<8x938xf32>
    %60 = tpu.matmul %57, %59, %cst_55 {dimension_numbers = #tpu.dot_dimension_numbers<[1], [0], [0], [1], [0, 0, 1, 1], [], []>} : vector<8x12xbf16>, vector<12x938xbf16>, vector<8x938xf32> -> vector<8x938xf32>
    %c0_56 = arith.constant 0 : index
    %c12 = arith.constant 12 : index
    %61 = vector.load %arg2[%c0_56, %c12] : memref<8x180xbf16, #tpu.memory_space<vmem>>, vector<8x168xbf16>
    %c0_57 = arith.constant 0 : index
    %c0_58 = arith.constant 0 : index
    %c1_59 = arith.constant 1 : index
    %62 = vector.load %arg1[%c0_57, %c0_58, %c1_59] : memref<1x192x939xbf16, #tpu.memory_space<vmem>>, vector<1x168x938xbf16>
    %63 = vector.shape_cast %62 : vector<1x168x938xbf16> to vector<168x938xbf16>
    %cst_60 = arith.constant dense<0.000000e+00> : vector<8x938xf32>
    %64 = tpu.matmul %61, %63, %cst_60 {dimension_numbers = #tpu.dot_dimension_numbers<[1], [0], [0], [1], [0, 0, 1, 1], [], []>} : vector<8x168xbf16>, vector<168x938xbf16>, vector<8x938xf32> -> vector<8x938xf32>
    %65 = arith.addf %60, %64 : vector<8x938xf32>
    %66 = arith.addf %65, %14 : vector<8x938xf32>
    %cst_61 = arith.constant 0.000000e+00 : f32
    %67 = vector.broadcast %cst_61 : f32 to vector<8x938xf32>
    %68 = arith.maximumf %66, %67 : vector<8x938xf32>
    %c0_62 = arith.constant 0 : index
    %c0_63 = arith.constant 0 : index
    %69 = vector.load %arg2[%c0_62, %c0_63] : memref<8x180xbf16, #tpu.memory_space<vmem>>, vector<8x180xbf16>
    %c0_64 = arith.constant 0 : index
    %c12_65 = arith.constant 12 : index
    %c1_66 = arith.constant 1 : index
    %70 = vector.load %arg1[%c0_64, %c12_65, %c1_66] : memref<1x192x939xbf16, #tpu.memory_space<vmem>>, vector<1x180x937xbf16>
    %71 = vector.shape_cast %70 : vector<1x180x937xbf16> to vector<180x937xbf16>
    %cst_67 = arith.constant dense<0.000000e+00> : vector<8x937xf32>
    %72 = tpu.matmul %69, %71, %cst_67 {dimension_numbers = #tpu.dot_dimension_numbers<[1], [0], [0], [1], [0, 0, 1, 1], [], []>} : vector<8x180xbf16>, vector<180x937xbf16>, vector<8x937xf32> -> vector<8x937xf32>
    %73 = vector.extract_strided_slice %14 {offsets = [0, 0], sizes = [8, 937], strides = [1, 1]} : vector<8x938xf32> to vector<8x937xf32>
    %74 = arith.addf %72, %73 : vector<8x937xf32>
    %cst_68 = arith.constant 0.000000e+00 : f32
    %75 = vector.broadcast %cst_68 : f32 to vector<8x937xf32>
    %76 = arith.maximumf %74, %75 : vector<8x937xf32>
    %c0_69 = arith.constant 0 : index
    %c0_70 = arith.constant 0 : index
    %77 = vector.load %arg2[%c0_69, %c0_70] : memref<8x180xbf16, #tpu.memory_space<vmem>>, vector<8x156xbf16>
    %c0_71 = arith.constant 0 : index
    %c36_72 = arith.constant 36 : index
    %c1_73 = arith.constant 1 : index
    %78 = vector.load %arg1[%c0_71, %c36_72, %c1_73] : memref<1x192x939xbf16, #tpu.memory_space<vmem>>, vector<1x156x937xbf16>
    %79 = vector.shape_cast %78 : vector<1x156x937xbf16> to vector<156x937xbf16>
    %cst_74 = arith.constant dense<0.000000e+00> : vector<8x937xf32>
    %80 = tpu.matmul %77, %79, %cst_74 {dimension_numbers = #tpu.dot_dimension_numbers<[1], [0], [0], [1], [0, 0, 1, 1], [], []>} : vector<8x156xbf16>, vector<156x937xbf16>, vector<8x937xf32> -> vector<8x937xf32>
    %c0_75 = arith.constant 0 : index
    %c156_76 = arith.constant 156 : index
    %81 = vector.load %arg2[%c0_75, %c156_76] : memref<8x180xbf16, #tpu.memory_space<vmem>>, vector<8x24xbf16>
    %c0_77 = arith.constant 0 : index
    %c0_78 = arith.constant 0 : index
    %c2 = arith.constant 2 : index
    %82 = vector.load %arg1[%c0_77, %c0_78, %c2] : memref<1x192x939xbf16, #tpu.memory_space<vmem>>, vector<1x24x937xbf16>
    %83 = vector.shape_cast %82 : vector<1x24x937xbf16> to vector<24x937xbf16>
    %cst_79 = arith.constant dense<0.000000e+00> : vector<8x937xf32>
    %84 = tpu.matmul %81, %83, %cst_79 {dimension_numbers = #tpu.dot_dimension_numbers<[1], [0], [0], [1], [0, 0, 1, 1], [], []>} : vector<8x24xbf16>, vector<24x937xbf16>, vector<8x937xf32> -> vector<8x937xf32>
    %85 = arith.addf %80, %84 : vector<8x937xf32>
    %86 = vector.extract_strided_slice %14 {offsets = [0, 0], sizes = [8, 937], strides = [1, 1]} : vector<8x938xf32> to vector<8x937xf32>
    %87 = arith.addf %85, %86 : vector<8x937xf32>
    %cst_80 = arith.constant 0.000000e+00 : f32
    %88 = vector.broadcast %cst_80 : f32 to vector<8x937xf32>
    %89 = arith.maximumf %87, %88 : vector<8x937xf32>
    %c0_81 = arith.constant 0 : index
    %c0_82 = arith.constant 0 : index
    %90 = vector.load %arg2[%c0_81, %c0_82] : memref<8x180xbf16, #tpu.memory_space<vmem>>, vector<8x132xbf16>
    %c0_83 = arith.constant 0 : index
    %c60_84 = arith.constant 60 : index
    %c1_85 = arith.constant 1 : index
    %91 = vector.load %arg1[%c0_83, %c60_84, %c1_85] : memref<1x192x939xbf16, #tpu.memory_space<vmem>>, vector<1x132x937xbf16>
    %92 = vector.shape_cast %91 : vector<1x132x937xbf16> to vector<132x937xbf16>
    %cst_86 = arith.constant dense<0.000000e+00> : vector<8x937xf32>
    %93 = tpu.matmul %90, %92, %cst_86 {dimension_numbers = #tpu.dot_dimension_numbers<[1], [0], [0], [1], [0, 0, 1, 1], [], []>} : vector<8x132xbf16>, vector<132x937xbf16>, vector<8x937xf32> -> vector<8x937xf32>
    %c0_87 = arith.constant 0 : index
    %c132_88 = arith.constant 132 : index
    %94 = vector.load %arg2[%c0_87, %c132_88] : memref<8x180xbf16, #tpu.memory_space<vmem>>, vector<8x48xbf16>
    %c0_89 = arith.constant 0 : index
    %c0_90 = arith.constant 0 : index
    %c2_91 = arith.constant 2 : index
    %95 = vector.load %arg1[%c0_89, %c0_90, %c2_91] : memref<1x192x939xbf16, #tpu.memory_space<vmem>>, vector<1x48x937xbf16>
    %96 = vector.shape_cast %95 : vector<1x48x937xbf16> to vector<48x937xbf16>
    %cst_92 = arith.constant dense<0.000000e+00> : vector<8x937xf32>
    %97 = tpu.matmul %94, %96, %cst_92 {dimension_numbers = #tpu.dot_dimension_numbers<[1], [0], [0], [1], [0, 0, 1, 1], [], []>} : vector<8x48xbf16>, vector<48x937xbf16>, vector<8x937xf32> -> vector<8x937xf32>
    %98 = arith.addf %93, %97 : vector<8x937xf32>
    %99 = vector.extract_strided_slice %14 {offsets = [0, 0], sizes = [8, 937], strides = [1, 1]} : vector<8x938xf32> to vector<8x937xf32>
    %100 = arith.addf %98, %99 : vector<8x937xf32>
    %cst_93 = arith.constant 0.000000e+00 : f32
    %101 = vector.broadcast %cst_93 : f32 to vector<8x937xf32>
    %102 = arith.maximumf %100, %101 : vector<8x937xf32>
    %c0_94 = arith.constant 0 : index
    %c0_95 = arith.constant 0 : index
    %103 = vector.load %arg2[%c0_94, %c0_95] : memref<8x180xbf16, #tpu.memory_space<vmem>>, vector<8x108xbf16>
    %c0_96 = arith.constant 0 : index
    %c84_97 = arith.constant 84 : index
    %c1_98 = arith.constant 1 : index
    %104 = vector.load %arg1[%c0_96, %c84_97, %c1_98] : memref<1x192x939xbf16, #tpu.memory_space<vmem>>, vector<1x108x937xbf16>
    %105 = vector.shape_cast %104 : vector<1x108x937xbf16> to vector<108x937xbf16>
    %cst_99 = arith.constant dense<0.000000e+00> : vector<8x937xf32>
    %106 = tpu.matmul %103, %105, %cst_99 {dimension_numbers = #tpu.dot_dimension_numbers<[1], [0], [0], [1], [0, 0, 1, 1], [], []>} : vector<8x108xbf16>, vector<108x937xbf16>, vector<8x937xf32> -> vector<8x937xf32>
    %c0_100 = arith.constant 0 : index
    %c108_101 = arith.constant 108 : index
    %107 = vector.load %arg2[%c0_100, %c108_101] : memref<8x180xbf16, #tpu.memory_space<vmem>>, vector<8x72xbf16>
    %c0_102 = arith.constant 0 : index
    %c0_103 = arith.constant 0 : index
    %c2_104 = arith.constant 2 : index
    %108 = vector.load %arg1[%c0_102, %c0_103, %c2_104] : memref<1x192x939xbf16, #tpu.memory_space<vmem>>, vector<1x72x937xbf16>
    %109 = vector.shape_cast %108 : vector<1x72x937xbf16> to vector<72x937xbf16>
    %cst_105 = arith.constant dense<0.000000e+00> : vector<8x937xf32>
    %110 = tpu.matmul %107, %109, %cst_105 {dimension_numbers = #tpu.dot_dimension_numbers<[1], [0], [0], [1], [0, 0, 1, 1], [], []>} : vector<8x72xbf16>, vector<72x937xbf16>, vector<8x937xf32> -> vector<8x937xf32>
    %111 = arith.addf %106, %110 : vector<8x937xf32>
    %112 = vector.extract_strided_slice %14 {offsets = [0, 0], sizes = [8, 937], strides = [1, 1]} : vector<8x938xf32> to vector<8x937xf32>
    %113 = arith.addf %111, %112 : vector<8x937xf32>
    %cst_106 = arith.constant 0.000000e+00 : f32
    %114 = vector.broadcast %cst_106 : f32 to vector<8x937xf32>
    %115 = arith.maximumf %113, %114 : vector<8x937xf32>
    %116 = arith.truncf %32 : vector<8x938xf32> to vector<8x938xbf16>
    %c0_107 = arith.constant 0 : index
    %c128 = arith.constant 128 : index
    %117 = vector.load %arg9[%c0_107, %c128] : memref<64x1066xbf16, #tpu.memory_space<vmem>>, vector<8x938xbf16>
    tpu.vector_store %arg9[%c0_107, %c128], %116 {strides = array<i32>} : memref<64x1066xbf16, #tpu.memory_space<vmem>>, vector<8x938xbf16>,
    %118 = arith.truncf %44 : vector<8x938xf32> to vector<8x938xbf16>
    %c8 = arith.constant 8 : index
    %c128_108 = arith.constant 128 : index
    %119 = vector.load %arg9[%c8, %c128_108] : memref<64x1066xbf16, #tpu.memory_space<vmem>>, vector<8x938xbf16>
    tpu.vector_store %arg9[%c8, %c128_108], %118 {strides = array<i32>} : memref<64x1066xbf16, #tpu.memory_space<vmem>>, vector<8x938xbf16>,
    %120 = arith.truncf %56 : vector<8x938xf32> to vector<8x938xbf16>
    %c16 = arith.constant 16 : index
    %c128_109 = arith.constant 128 : index
    %121 = vector.load %arg9[%c16, %c128_109] : memref<64x1066xbf16, #tpu.memory_space<vmem>>, vector<8x938xbf16>
    tpu.vector_store %arg9[%c16, %c128_109], %120 {strides = array<i32>} : memref<64x1066xbf16, #tpu.memory_space<vmem>>, vector<8x938xbf16>,
    %122 = arith.truncf %68 : vector<8x938xf32> to vector<8x938xbf16>
    %c24 = arith.constant 24 : index
    %c128_110 = arith.constant 128 : index
    %123 = vector.load %arg9[%c24, %c128_110] : memref<64x1066xbf16, #tpu.memory_space<vmem>>, vector<8x938xbf16>
    tpu.vector_store %arg9[%c24, %c128_110], %122 {strides = array<i32>} : memref<64x1066xbf16, #tpu.memory_space<vmem>>, vector<8x938xbf16>,
    %124 = arith.truncf %76 : vector<8x937xf32> to vector<8x937xbf16>
    %c32 = arith.constant 32 : index
    %c128_111 = arith.constant 128 : index
    %125 = vector.load %arg9[%c32, %c128_111] : memref<64x1066xbf16, #tpu.memory_space<vmem>>, vector<8x937xbf16>
    tpu.vector_store %arg9[%c32, %c128_111], %124 {strides = array<i32>} : memref<64x1066xbf16, #tpu.memory_space<vmem>>, vector<8x937xbf16>,
    %126 = arith.truncf %89 : vector<8x937xf32> to vector<8x937xbf16>
    %c40 = arith.constant 40 : index
    %c128_112 = arith.constant 128 : index
    %127 = vector.load %arg9[%c40, %c128_112] : memref<64x1066xbf16, #tpu.memory_space<vmem>>, vector<8x937xbf16>
    tpu.vector_store %arg9[%c40, %c128_112], %126 {strides = array<i32>} : memref<64x1066xbf16, #tpu.memory_space<vmem>>, vector<8x937xbf16>,
    %128 = arith.truncf %102 : vector<8x937xf32> to vector<8x937xbf16>
    %c48 = arith.constant 48 : index
    %c128_113 = arith.constant 128 : index
    %129 = vector.load %arg9[%c48, %c128_113] : memref<64x1066xbf16, #tpu.memory_space<vmem>>, vector<8x937xbf16>
    tpu.vector_store %arg9[%c48, %c128_113], %128 {strides = array<i32>} : memref<64x1066xbf16, #tpu.memory_space<vmem>>, vector<8x937xbf16>,
    %130 = arith.truncf %115 : vector<8x937xf32> to vector<8x937xbf16>
    %c56 = arith.constant 56 : index
    %c128_114 = arith.constant 128 : index
    %131 = vector.load %arg9[%c56, %c128_114] : memref<64x1066xbf16, #tpu.memory_space<vmem>>, vector<8x937xbf16>
    tpu.vector_store %arg9[%c56, %c128_114], %130 {strides = array<i32>} : memref<64x1066xbf16, #tpu.memory_space<vmem>>, vector<8x937xbf16>,
    %c56_115 = arith.constant 56 : index
    %c127_116 = arith.constant 127 : index
    %132 = vector.load %arg9[%c56_115, %c127_116] : memref<64x1066xbf16, #tpu.memory_space<vmem>>, vector<8x938xbf16>
    %c0_117 = arith.constant 0 : index
    %c128_118 = arith.constant 128 : index
    %133 = vector.load %arg9[%c0_117, %c128_118] : memref<64x1066xbf16, #tpu.memory_space<vmem>>, vector<8x938xbf16>
    %134 = arith.maximumf %132, %133 : vector<8x938xbf16>
    %c8_119 = arith.constant 8 : index
    %c128_120 = arith.constant 128 : index
    %135 = vector.load %arg9[%c8_119, %c128_120] : memref<64x1066xbf16, #tpu.memory_space<vmem>>, vector<8x938xbf16>
    %136 = arith.maximumf %134, %135 : vector<8x938xbf16>
    %c8_121 = arith.constant 8 : index
    %c128_122 = arith.constant 128 : index
    %137 = vector.load %arg9[%c8_121, %c128_122] : memref<64x1066xbf16, #tpu.memory_space<vmem>>, vector<8x938xbf16>
    %c16_123 = arith.constant 16 : index
    %c128_124 = arith.constant 128 : index
    %138 = vector.load %arg9[%c16_123, %c128_124] : memref<64x1066xbf16, #tpu.memory_space<vmem>>, vector<8x938xbf16>
    %139 = arith.maximumf %137, %138 : vector<8x938xbf16>
    %c24_125 = arith.constant 24 : index
    %c128_126 = arith.constant 128 : index
    %140 = vector.load %arg9[%c24_125, %c128_126] : memref<64x1066xbf16, #tpu.memory_space<vmem>>, vector<8x938xbf16>
    %141 = arith.maximumf %139, %140 : vector<8x938xbf16>
    %c24_127 = arith.constant 24 : index
    %c128_128 = arith.constant 128 : index
    %142 = vector.load %arg9[%c24_127, %c128_128] : memref<64x1066xbf16, #tpu.memory_space<vmem>>, vector<8x937xbf16>
    %c32_129 = arith.constant 32 : index
    %c128_130 = arith.constant 128 : index
    %143 = vector.load %arg9[%c32_129, %c128_130] : memref<64x1066xbf16, #tpu.memory_space<vmem>>, vector<8x937xbf16>
    %144 = arith.maximumf %142, %143 : vector<8x937xbf16>
    %c40_131 = arith.constant 40 : index
    %c128_132 = arith.constant 128 : index
    %145 = vector.load %arg9[%c40_131, %c128_132] : memref<64x1066xbf16, #tpu.memory_space<vmem>>, vector<8x937xbf16>
    %146 = arith.maximumf %144, %145 : vector<8x937xbf16>
    %c40_133 = arith.constant 40 : index
    %c128_134 = arith.constant 128 : index
    %147 = vector.load %arg9[%c40_133, %c128_134] : memref<64x1066xbf16, #tpu.memory_space<vmem>>, vector<8x937xbf16>
    %c48_135 = arith.constant 48 : index
    %c128_136 = arith.constant 128 : index
    %148 = vector.load %arg9[%c48_135, %c128_136] : memref<64x1066xbf16, #tpu.memory_space<vmem>>, vector<8x937xbf16>
    %149 = arith.maximumf %147, %148 : vector<8x937xbf16>
    %c56_137 = arith.constant 56 : index
    %c128_138 = arith.constant 128 : index
    %150 = vector.load %arg9[%c56_137, %c128_138] : memref<64x1066xbf16, #tpu.memory_space<vmem>>, vector<8x937xbf16>
    %151 = arith.maximumf %149, %150 : vector<8x937xbf16>
    %c0_139 = arith.constant 0 : index
    %c128_140 = arith.constant 128 : index
    %152 = vector.load %arg10[%c0_139, %c128_140] : memref<32x1066xbf16, #tpu.memory_space<vmem>>, vector<8x938xbf16>
    tpu.vector_store %arg10[%c0_139, %c128_140], %136 {strides = array<i32>} : memref<32x1066xbf16, #tpu.memory_space<vmem>>, vector<8x938xbf16>,
    %c8_141 = arith.constant 8 : index
    %c128_142 = arith.constant 128 : index
    %153 = vector.load %arg10[%c8_141, %c128_142] : memref<32x1066xbf16, #tpu.memory_space<vmem>>, vector<8x938xbf16>
    tpu.vector_store %arg10[%c8_141, %c128_142], %141 {strides = array<i32>} : memref<32x1066xbf16, #tpu.memory_space<vmem>>, vector<8x938xbf16>,
    %c16_143 = arith.constant 16 : index
    %c128_144 = arith.constant 128 : index
    %154 = vector.load %arg10[%c16_143, %c128_144] : memref<32x1066xbf16, #tpu.memory_space<vmem>>, vector<8x937xbf16>
    tpu.vector_store %arg10[%c16_143, %c128_144], %146 {strides = array<i32>} : memref<32x1066xbf16, #tpu.memory_space<vmem>>, vector<8x937xbf16>,
    %c24_145 = arith.constant 24 : index
    %c128_146 = arith.constant 128 : index
    %155 = vector.load %arg10[%c24_145, %c128_146] : memref<32x1066xbf16, #tpu.memory_space<vmem>>, vector<8x937xbf16>
    tpu.vector_store %arg10[%c24_145, %c128_146], %151 {strides = array<i32>} : memref<32x1066xbf16, #tpu.memory_space<vmem>>, vector<8x937xbf16>,
    %c0_147 = arith.constant 0 : index
    %c0_148 = arith.constant 0 : index
    %156 = vector.load %arg4[%c0_147, %c0_148] : memref<16x56xbf16, #tpu.memory_space<vmem>>, vector<16x24xbf16>
    %c8_149 = arith.constant 8 : index
    %c127_150 = arith.constant 127 : index
    %157 = vector.load %arg10[%c8_149, %c127_150] : memref<32x1066xbf16, #tpu.memory_space<vmem>>, vector<24x938xbf16>
    %cst_151 = arith.constant dense<0.000000e+00> : vector<16x938xf32>
    %158 = tpu.matmul %156, %157, %cst_151 {dimension_numbers = #tpu.dot_dimension_numbers<[1], [0], [0], [1], [0, 0, 1, 1], [], []>} : vector<16x24xbf16>, vector<24x938xbf16>, vector<16x938xf32> -> vector<16x938xf32>
    %c0_152 = arith.constant 0 : index
    %c24_153 = arith.constant 24 : index
    %159 = vector.load %arg4[%c0_152, %c24_153] : memref<16x56xbf16, #tpu.memory_space<vmem>>, vector<16x32xbf16>
    %c0_154 = arith.constant 0 : index
    %c128_155 = arith.constant 128 : index
    %160 = vector.load %arg10[%c0_154, %c128_155] : memref<32x1066xbf16, #tpu.memory_space<vmem>>, vector<32x938xbf16>
    %cst_156 = arith.constant dense<0.000000e+00> : vector<16x938xf32>
    %161 = tpu.matmul %159, %160, %cst_156 {dimension_numbers = #tpu.dot_dimension_numbers<[1], [0], [0], [1], [0, 0, 1, 1], [], []>} : vector<16x32xbf16>, vector<32x938xbf16>, vector<16x938xf32> -> vector<16x938xf32>
    %162 = arith.addf %158, %161 : vector<16x938xf32>
    %163 = arith.addf %162, %17 : vector<16x938xf32>
    %cst_157 = arith.constant 0.000000e+00 : f32
    %164 = vector.broadcast %cst_157 : f32 to vector<16x938xf32>
    %165 = arith.maximumf %163, %164 : vector<16x938xf32>
    %c0_158 = arith.constant 0 : index
    %c0_159 = arith.constant 0 : index
    %166 = vector.load %arg4[%c0_158, %c0_159] : memref<16x56xbf16, #tpu.memory_space<vmem>>, vector<16x8xbf16>
    %c24_160 = arith.constant 24 : index
    %c127_161 = arith.constant 127 : index
    %167 = vector.load %arg10[%c24_160, %c127_161] : memref<32x1066xbf16, #tpu.memory_space<vmem>>, vector<8x937xbf16>
    %cst_162 = arith.constant dense<0.000000e+00> : vector<16x937xf32>
    %168 = tpu.matmul %166, %167, %cst_162 {dimension_numbers = #tpu.dot_dimension_numbers<[1], [0], [0], [1], [0, 0, 1, 1], [], []>} : vector<16x8xbf16>, vector<8x937xbf16>, vector<16x937xf32> -> vector<16x937xf32>
    %c0_163 = arith.constant 0 : index
    %c8_164 = arith.constant 8 : index
    %169 = vector.load %arg4[%c0_163, %c8_164] : memref<16x56xbf16, #tpu.memory_space<vmem>>, vector<16x32xbf16>
    %c0_165 = arith.constant 0 : index
    %c128_166 = arith.constant 128 : index
    %170 = vector.load %arg10[%c0_165, %c128_166] : memref<32x1066xbf16, #tpu.memory_space<vmem>>, vector<32x937xbf16>
    %cst_167 = arith.constant dense<0.000000e+00> : vector<16x937xf32>
    %171 = tpu.matmul %169, %170, %cst_167 {dimension_numbers = #tpu.dot_dimension_numbers<[1], [0], [0], [1], [0, 0, 1, 1], [], []>} : vector<16x32xbf16>, vector<32x937xbf16>, vector<16x937xf32> -> vector<16x937xf32>
    %172 = arith.addf %168, %171 : vector<16x937xf32>
    %c0_168 = arith.constant 0 : index
    %c40_169 = arith.constant 40 : index
    %173 = vector.load %arg4[%c0_168, %c40_169] : memref<16x56xbf16, #tpu.memory_space<vmem>>, vector<16x16xbf16>
    %c0_170 = arith.constant 0 : index
    %c129 = arith.constant 129 : index
    %174 = vector.load %arg10[%c0_170, %c129] : memref<32x1066xbf16, #tpu.memory_space<vmem>>, vector<16x937xbf16>
    %cst_171 = arith.constant dense<0.000000e+00> : vector<16x937xf32>
    %175 = tpu.matmul %173, %174, %cst_171 {dimension_numbers = #tpu.dot_dimension_numbers<[1], [0], [0], [1], [0, 0, 1, 1], [], []>} : vector<16x16xbf16>, vector<16x937xbf16>, vector<16x937xf32> -> vector<16x937xf32>
    %176 = arith.addf %172, %175 : vector<16x937xf32>
    %177 = vector.extract_strided_slice %17 {offsets = [0, 0], sizes = [16, 937], strides = [1, 1]} : vector<16x938xf32> to vector<16x937xf32>
    %178 = arith.addf %176, %177 : vector<16x937xf32>
    %cst_172 = arith.constant 0.000000e+00 : f32
    %179 = vector.broadcast %cst_172 : f32 to vector<16x937xf32>
    %180 = arith.maximumf %178, %179 : vector<16x937xf32>
    %181 = arith.truncf %165 : vector<16x938xf32> to vector<16x938xbf16>
    %c0_173 = arith.constant 0 : index
    %c128_174 = arith.constant 128 : index
    %182 = vector.load %arg11[%c0_173, %c128_174] : memref<32x1067xbf16, #tpu.memory_space<vmem>>, vector<16x938xbf16>
    tpu.vector_store %arg11[%c0_173, %c128_174], %181 {strides = array<i32>} : memref<32x1067xbf16, #tpu.memory_space<vmem>>, vector<16x938xbf16>,
    %183 = arith.truncf %180 : vector<16x937xf32> to vector<16x937xbf16>
    %c16_175 = arith.constant 16 : index
    %c128_176 = arith.constant 128 : index
    %184 = vector.load %arg11[%c16_175, %c128_176] : memref<32x1067xbf16, #tpu.memory_space<vmem>>, vector<16x937xbf16>
    tpu.vector_store %arg11[%c16_175, %c128_176], %183 {strides = array<i32>} : memref<32x1067xbf16, #tpu.memory_space<vmem>>, vector<16x937xbf16>,
    %c0_177 = arith.constant 0 : index
    %c0_178 = arith.constant 0 : index
    %185 = vector.load %arg6[%c0_177, %c0_178] : memref<16x48xbf16, #tpu.memory_space<vmem>>, vector<16x16xbf16>
    %c16_179 = arith.constant 16 : index
    %c126_180 = arith.constant 126 : index
    %186 = vector.load %arg11[%c16_179, %c126_180] : memref<32x1067xbf16, #tpu.memory_space<vmem>>, vector<16x940xbf16>
    %cst_181 = arith.constant dense<0.000000e+00> : vector<16x940xf32>
    %187 = tpu.matmul %185, %186, %cst_181 {dimension_numbers = #tpu.dot_dimension_numbers<[1], [0], [0], [1], [0, 0, 1, 1], [], []>} : vector<16x16xbf16>, vector<16x940xbf16>, vector<16x940xf32> -> vector<16x940xf32>
    %c0_182 = arith.constant 0 : index
    %c16_183 = arith.constant 16 : index
    %188 = vector.load %arg6[%c0_182, %c16_183] : memref<16x48xbf16, #tpu.memory_space<vmem>>, vector<16x32xbf16>
    %c0_184 = arith.constant 0 : index
    %c127_185 = arith.constant 127 : index
    %189 = vector.load %arg11[%c0_184, %c127_185] : memref<32x1067xbf16, #tpu.memory_space<vmem>>, vector<32x940xbf16>
    %cst_186 = arith.constant dense<0.000000e+00> : vector<16x940xf32>
    %190 = tpu.matmul %188, %189, %cst_186 {dimension_numbers = #tpu.dot_dimension_numbers<[1], [0], [0], [1], [0, 0, 1, 1], [], []>} : vector<16x32xbf16>, vector<32x940xbf16>, vector<16x940xf32> -> vector<16x940xf32>
    %191 = arith.addf %187, %190 : vector<16x940xf32>
    %192 = arith.addf %191, %20 : vector<16x940xf32>
    %cst_187 = arith.constant 0.000000e+00 : f32
    %193 = vector.broadcast %cst_187 : f32 to vector<16x940xf32>
    %194 = arith.maximumf %192, %193 : vector<16x940xf32>
    %cst_188 = arith.constant dense<0xFF800000> : vector<16xf32>
    %195 = vector.multi_reduction <maximumf>, %194, %cst_188 [1] : vector<16x940xf32> to vector<16xf32>
    %196 = vector.shape_cast %195 : vector<16xf32> to vector<16x1xf32>
    %c0_189 = arith.constant 0 : index
    %c0_190 = arith.constant 0 : index
    %c0_191 = arith.constant 0 : index
    %197 = vector.load %arg8[%c0_189, %c0_190, %c0_191] : memref<1x16x1xf32, #tpu.memory_space<vmem>>, vector<1x16x1xf32>
    %198 = vector.shape_cast %197 : vector<1x16x1xf32> to vector<16x1xf32>
    %199 = vector.shape_cast %196 : vector<16x1xf32> to vector<1x16x1xf32>
    tpu.vector_store %arg8[%c0_189, %c0_190, %c0_191], %199 {strides = array<i32>} : memref<1x16x1xf32, #tpu.memory_space<vmem>>, vector<1x16x1xf32>,
    return
  }
  func.func @transform_0(%arg0: i32) -> (i32, i32, i32) {
    %c0_i32 = arith.constant 0 : i32
    %c0_i32_0 = arith.constant 0 : i32
    %c0_i32_1 = arith.constant 0 : i32
    return %arg0, %c0_i32, %c0_i32_0 : i32, i32, i32
  }
  func.func @transform_1(%arg0: i32) -> (i32, i32) {
    %c0_i32 = arith.constant 0 : i32
    %c0_i32_0 = arith.constant 0 : i32
    %c0_i32_1 = arith.constant 0 : i32
    return %c0_i32, %c0_i32_0 : i32, i32
  }
  func.func @transform_2(%arg0: i32) -> (i32, i32) {
    %c0_i32 = arith.constant 0 : i32
    %c0_i32_0 = arith.constant 0 : i32
    %c0_i32_1 = arith.constant 0 : i32
    return %c0_i32, %c0_i32_0 : i32, i32
  }
  func.func @transform_3(%arg0: i32) -> (i32, i32) {
    %c0_i32 = arith.constant 0 : i32
    %c0_i32_0 = arith.constant 0 : i32
    %c0_i32_1 = arith.constant 0 : i32
    return %c0_i32, %c0_i32_0 : i32, i32
  }
  func.func @transform_4(%arg0: i32) -> (i32, i32) {
    %c0_i32 = arith.constant 0 : i32
    %c0_i32_0 = arith.constant 0 : i32
    %c0_i32_1 = arith.constant 0 : i32
    return %c0_i32, %c0_i32_0 : i32, i32
  }
  func.func @transform_5(%arg0: i32) -> (i32, i32) {
    %c0_i32 = arith.constant 0 : i32
    %c0_i32_0 = arith.constant 0 : i32
    %c0_i32_1 = arith.constant 0 : i32
    return %c0_i32, %c0_i32_0 : i32, i32
  }
  func.func @transform_6(%arg0: i32) -> (i32, i32) {
    %c0_i32 = arith.constant 0 : i32
    %c0_i32_0 = arith.constant 0 : i32
    %c0_i32_1 = arith.constant 0 : i32
    return %c0_i32, %c0_i32_0 : i32, i32
  }
  func.func @transform_7(%arg0: i32) -> (i32, i32, i32) {
    %c0_i32 = arith.constant 0 : i32
    %c0_i32_0 = arith.constant 0 : i32
    %c0_i32_1 = arith.constant 0 : i32
    return %arg0, %c0_i32, %c0_i32_0 : i32, i32, i32
  }
}

</mosaic_0001>

<bundles_post_ra>
// kernel: three_convs_forward.1
= control target key start
LH: loop header
LB: loop body
LE: loop exit
PB: predicated region body
PF: predicated region fallthrough
CT: control target
= control target key end

     0   :  { %s11937_s24 = smov 0   ;;  %s17367_s0 = inlined_call_operand.vmem [shape: bf16[2,192,939], index: 0, kind: input, shape index: {}]   ;;  %s17368_s1 = inlined_call_operand.vmem [shape: bf16[8,180], index: 1, kind: input, shape index: {}]   ;;  %s17369_s2 = inlined_call_operand.vmem [shape: f32[8,1], index: 2, kind: input, shape index: {}]   ;;  %s17370_s3 = inlined_call_operand.vmem [shape: bf16[16,56], index: 3, kind: input, shape index: {}]   ;;  %s17371_s4 = inlined_call_operand.vmem [shape: f32[16,1], index: 4, kind: input, shape index: {}]   ;;  %s17372_s5 = inlined_call_operand.vmem [shape: bf16[16,48], index: 5, kind: input, shape index: {}]   ;;  %s17373_s6 = inlined_call_operand.vmem [shape: f32[16,1], index: 6, kind: input, shape index: {}]   ;;  %s17374_s7 = inlined_call_operand.vmem [shape: f32[2,16,1], index: 7, kind: output, shape index: {}]  }
   0x1 LB: > { %s10749_s25 = sadd.s32 4294967295, %s11879_s24   ;;  %p10753_p0 = scmp.ge.s32.totalorder %s11879_s24, 1  ;;  %s11879_s24 = sphi %s11937_s24, %s17_s24  }
   0x2   : > { %p237_p1 = scmp.lt.s32.totalorder %s11879_s24, 3 }
   0x4   : > { %p238_p2 = pnand %p10753_p0, %p237_p1 }
   0x6   : > { %241 = sbr.rel (%p238_p2) target bundleno = 2477 (0x9ad), region = 48 }
   0xb   : > { %p269_p3 = scmp.lt.s32.totalorder %s10749_s25, 1  ;;  %s11881_s30 = smov 127   ;;  %vm739_vm0 = vcmask 1039360   ;;  %vm449_vm1 = vcmask 359424   ;;  %vm830_vm2 = vcmask 785408   ;;  %vm1311_vm3 = vcmask 1041408  }
   0xc   : > { %s11883_s10 = smov 44   ;;  %s11884_s11 = smov 68   ;;  %vm1178_vm4 = vcmask 1045504   ;;  %vm1307_vm5 = vcmask 687104   ;;  %vm2074_vm6 = vcmask 1043456   ;;  %vm1584_vm7 = vcmask 556032  }
   0xd   : > { %s18084_s25 = smov (!%p269_p3, %s10749_s25), 1  ;;  %vm2070_vm8 = vcmask 982016   ;;  %s11885_s14 = smov 92   ;;  %vm2387_vm9 = vcmask 490496   ;;  %vm3245_vm10 = vcmask 130048   ;;  %vm2675_vm11 = vcmask 752640  }
   0xe   : > { %s11641_s26 = smul.u32 768, %s18084_s25  ;;  %s11886_s17 = smov 116   ;;  %vm3457_vm12 = vcmask 293888   ;;  %vm4408_vm13 = vcmask 326656   ;;  %vm3732_vm14 = vcmask 949248   ;;  %vm4628_vm15 = vcmask 97280  }
   0xf   : > { %s11887_s22 = smov 126   ;;  %s11888_s27 = smov 100  }
  0x10   : > { %s11951_s29 = scalar_lea.vmem %s17367_s0, %s11641_s26  ;;  %s11889_s9 = smov 124  }
  0x11   : > { %v432_v0 = vld [vmem:[%s11951_s29 + $0x140] sm:$0xff]  ;;  %v433_v2 = vld [vmem:[%s11951_s29 + $0x148] sm:$0xff]  ;;  %v11970_v8 = vld [vmem:[%s11951_s29 + $0x150] sm:$0xff]  ;;  %s11893_s18 = smov 120   ;;  %s11894_s19 = smov 88  }
  0x12   : > { %v436_v1 = vld [vmem:[%s11951_s29 + $0x160] sm:$0xff]  ;;  %v437_v5 = vld [vmem:[%s11951_s29 + $0x168] sm:$0xff]  ;;  %v11973_v9 = vld [vmem:[%s11951_s29 + $0x170] sm:$0xff]  ;;  %s11896_s28 = smov 2  }
  0x13   : > { %v11956_v3 = vcombine.high %v432_v0, %v436_v1  ;;  %v11958_v4 = vcombine.low %v432_v0, %v436_v1  ;;  %v11965_v6 = vcombine.low %v433_v2, %v437_v5  ;;  %v11967_v7 = vcombine.high %v433_v2, %v437_v5  ;;  %v424_v10 = vld [vmem:[%s11951_s29 + $0x100] sm:$0xff]  ;;  %v425_v14 = vld [vmem:[%s11951_s29 + $0x108] sm:$0xff]  ;;  %v11998_v18 = vld [vmem:[%s11951_s29 + $0x110] sm:$0xff] }
  0x14   : > { %v428_v11 = vld [vmem:[%s11951_s29 + $0x120] sm:$0xff]  ;;  %v11983_v12 = vcombine.low %v11970_v8, %v11973_v9  ;;  %v429_v15 = vld [vmem:[%s11951_s29 + $0x128] sm:$0xff]  ;;  %v12001_v19 = vld [vmem:[%s11951_s29 + $0x130] sm:$0xff] }
  0x15   : > { %725 = vrot.lane.b32.xlu0 %v11956_v3, %s11881_s30  ;;  %723 = vrot.lane.b32.xlu1 %v11958_v4, %s11881_s30  ;;  %v11985_v13 = vcombine.high %v424_v10, %v428_v11  ;;  %v11993_v16 = vcombine.low %v425_v14, %v429_v15  ;;  %v11995_v17 = vcombine.low %v424_v10, %v428_v11  ;;  %v417_v22 = vld [vmem:[%s11951_s29 + $0xc8] sm:$0xff]  ;;  %v416_v24 = vld [vmem:[%s11951_s29 + $0xc0] sm:$0xff]  ;;  %v17375_v10 = vmov 0  }
  0x16   : > { %v12007_v20 = vcombine.high %v425_v14, %v429_v15  ;;  %v12011_v21 = vcombine.low %v11998_v18, %v12001_v19  ;;  %v421_v23 = vld [vmem:[%s11951_s29 + $0xe8] sm:$0xff]  ;;  %v420_v25 = vld [vmem:[%s11951_s29 + $0xe0] sm:$0xff]  ;;  %v12034_v30 = vld [vmem:[%s11951_s29 + $0xd0] sm:$0xff]  ;;  %866 = vmatprep.mubr.bf16.mxu0 %v17375_v10  ;;  %907 = vmatprep.mubr.bf16.mxu1 %v17375_v10  ;;  %v12147_v11 = vcombine.high %v11970_v8, %v11973_v9 }
  0x17   : > { %v12021_v26 = vcombine.low %v417_v22, %v421_v23  ;;  %v12023_v27 = vcombine.high %v416_v24, %v420_v25  ;;  %v12029_v28 = vcombine.high %v417_v22, %v421_v23  ;;  %v12031_v29 = vcombine.low %v416_v24, %v420_v25  ;;  %v12037_v31 = vld [vmem:[%s11951_s29 + $0xf0] sm:$0xff]  ;;  %v408_v32 = vld [vmem:[%s11951_s29 + $0x80] sm:$0xff]  ;;  %v409_v36 = vld [vmem:[%s11951_s29 + $0x88] sm:$0xff]  ;;  %11666 = vset.pattern.permute.xlu0 %v17375_v10 }
  0x18   : > { %v412_v33 = vld [vmem:[%s11951_s29 + $0xa0] sm:$0xff]  ;;  %v12047_v34 = vcombine.low %v12034_v30, %v12037_v31  ;;  %v413_v37 = vld [vmem:[%s11951_s29 + $0xa8] sm:$0xff]  ;;  %v12062_v40 = vld [vmem:[%s11951_s29 + $0x90] sm:$0xff]  ;;  %11667 = vset.pattern.permute.xlu1 %v17375_v10 }
  0x19   : > { %727 = vrot.lane.b32.xlu0 %v11965_v6, %s11881_s30  ;;  %729 = vrot.lane.b32.xlu1 %v11967_v7, %s11881_s30  ;;  %v12049_v35 = vcombine.high %v408_v32, %v412_v33  ;;  %v12057_v38 = vcombine.low %v409_v36, %v413_v37  ;;  %v12059_v39 = vcombine.low %v408_v32, %v412_v33  ;;  %v12065_v41 = vld [vmem:[%s11951_s29 + $0xb0] sm:$0xff]  ;;  %v401_v44 = vld [vmem:[%s11951_s29 + $0x48] sm:$0xff] }
  0x1a   : > { %v12071_v42 = vcombine.high %v409_v36, %v413_v37  ;;  %v12075_v43 = vcombine.low %v12062_v40, %v12065_v41  ;;  %v405_v45 = vld [vmem:[%s11951_s29 + $0x68] sm:$0xff]  ;;  %v400_v46 = vld [vmem:[%s11951_s29 + $0x40] sm:$0xff]  ;;  %v12098_v52 = vld [vmem:[%s11951_s29 + $0x50] sm:$0xff]  ;;  %v12176_v33 = vcombine.high %v11998_v18, %v12001_v19 }
  0x1b   : > { %v404_v47 = vld [vmem:[%s11951_s29 + $0x60] sm:$0xff]  ;;  %v12085_v48 = vcombine.low %v401_v44, %v405_v45  ;;  %v12093_v50 = vcombine.high %v401_v44, %v405_v45  ;;  %v12101_v53 = vld [vmem:[%s11951_s29 + $0x70] sm:$0xff]  ;;  %v393_v58 = vld [vmem:[%s11951_s29 + $0x8] sm:$0xff]  ;;  %v12188_v44 = vcombine.high %v12034_v30, %v12037_v31  ;;  %v12208_v30 = vcombine.high %v12062_v40, %v12065_v41 }
  0x1c   : > { %v12087_v49 = vcombine.high %v400_v46, %v404_v47  ;;  %v12095_v51 = vcombine.low %v400_v46, %v404_v47  ;;  %v392_v54 = vld [vmem:[%s11951_s29] sm:$0xff]  ;;  %v12111_v56 = vcombine.low %v12098_v52, %v12101_v53  ;;  %v397_v59 = vld [vmem:[%s11951_s29 + $0x28] sm:$0xff]  ;;  %v394_v62 = vld [vmem:[%s11951_s29 + $0x10] sm:$0xff] }
  0x1d   : > { %731 = vrot.lane.b32.xlu0 %v11983_v12, %s11881_s30  ;;  %709 = vrot.lane.b32.xlu1 %v11985_v13, %s11881_s30  ;;  %v396_v55 = vld [vmem:[%s11951_s29 + $0x20] sm:$0xff]  ;;  %v12121_v60 = vcombine.low %v393_v58, %v397_v59  ;;  %v398_v63 = vld [vmem:[%s11951_s29 + $0x30] sm:$0xff]  ;;  %v12131_v0 = vcombine.high %v393_v58, %v397_v59  ;;  %v12220_v58 = vcombine.high %v12098_v52, %v12101_v53 }
  0x1e   : > { %v12113_v57 = vcombine.high %v392_v54, %v396_v55  ;;  %v12123_v61 = vcombine.low %v392_v54, %v396_v55  ;;  %v12133_v1 = vcombine.low %v394_v62, %v398_v63  ;;  %v435_v2 = vld [vmem:[%s11951_s29 + $0x158] sm:$0xff]  ;;  %v391_v15 = vld [vmem:[%s17368_s1] sm:$0xff]  ;;  %v12155_v22 = vld [vmem:[%s11951_s29 + $0x190] sm:$0xff]  ;;  %v12238_v52 = vcombine.high %v394_v62, %v398_v63 }
  0x1f   : > { %v439_v5 = vld [vmem:[%s11951_s29 + $0x178] sm:$0xff]  ;;  %v12158_v23 = vld [vmem:[%s11951_s29 + $0x1b0] sm:$0xff]  ;;  %v12164_v8 = vcombine.low %v391_v15, %v391_v15  ;;  %v12166_v9 = vcombine.high %v391_v15, %v391_v15  ;;  %v1573_v24 = vld [vmem:[%s11951_s29 + $0x1a8] sm:$0xff] }
  0x20   : > { %v12149_v14 = vcombine.low %v435_v2, %v439_v5  ;;  %v427_v25 = vld [vmem:[%s11951_s29 + $0x118] sm:$0xff]  ;;  %v12184_v37 = vcombine.high %v435_v2, %v439_v5 }
  0x21   : > { %711 = vrot.lane.b32.xlu0 %v11993_v16, %s11881_s30  ;;  %707 = vrot.lane.b32.xlu1 %v11995_v17, %s11881_s30  ;;  %17589 = vst [vmem:[#allocation5_spill] sm:$0xff] %v12164_v8  ;;  %17590 = vst [vmem:[#allocation6_spill] sm:$0xff] %v12166_v9  ;;  %v431_v32 = vld [vmem:[%s11951_s29 + $0x138] sm:$0xff] }
  0x22   : > { %v12178_v36 = vcombine.low %v427_v25, %v431_v32  ;;  %v419_v45 = vld [vmem:[%s11951_s29 + $0xd8] sm:$0xff]  ;;  %v12198_v19 = vcombine.high %v427_v25, %v431_v32 }
  0x23   : > { %v423_v46 = vld [vmem:[%s11951_s29 + $0xf8] sm:$0xff] }
  0x24   : > { %v12196_v18 = vcombine.low %v419_v45, %v423_v46  ;;  %v411_v47 = vld [vmem:[%s11951_s29 + $0x98] sm:$0xff]  ;;  %v12216_v55 = vcombine.high %v419_v45, %v423_v46  ;;  %v12251_v45 = vld [vmem:[%s11951_s29 + $0x1c0] sm:$0xff]  ;;  %v12262_v46 = vld [vmem:[%s11951_s29 + $0x1c8] sm:$0xff] }
  0x25   : > { %713 = vrot.lane.b32.xlu0 %v12007_v20, %s11881_s30  ;;  %715 = vrot.lane.b32.xlu1 %v12011_v21, %s11881_s30  ;;  %v415_v54 = vld [vmem:[%s11951_s29 + $0xb8] sm:$0xff]  ;;  %v10923_v62 = vcombine.low %v12251_v45, %v12251_v45  ;;  %v10924_v63 = vcombine.high %v12251_v45, %v12251_v45  ;;  %17593 = vst [vmem:[#allocation9_spill] sm:$0xff] %v12262_v46 }
  0x26   : > { %v12210_v31 = vcombine.low %v411_v47, %v415_v54  ;;  %v403_v59 = vld [vmem:[%s11951_s29 + $0x58] sm:$0xff]  ;;  %v12230_v41 = vcombine.high %v411_v47, %v415_v54  ;;  %v10925_v47 = vcombine.low %v12262_v46, %v12262_v46  ;;  %v10926_v54 = vcombine.high %v12262_v46, %v12262_v46 }
  0x27   : > { %v407_v2 = vld [vmem:[%s11951_s29 + $0x78] sm:$0xff] }
  0x28   : > { %v12228_v40 = vcombine.low %v403_v59, %v407_v2  ;;  %v395_v5 = vld [vmem:[%s11951_s29 + $0x18] sm:$0xff]  ;;  %v12246_v25 = vcombine.high %v403_v59, %v407_v2  ;;  %v12271_v59 = vld [vmem:[%s11951_s29 + $0x1d0] sm:$0xff]  ;;  %v1568_v2 = vld [vmem:[%s11951_s29 + $0x180] sm:$0xff] }
  0x29   : > { %695 = vrot.lane.b32.xlu1 %v12021_v26, %s11881_s30  ;;  %693 = vrot.lane.b32.xlu0 %v12023_v27, %s11881_s30  ;;  %v399_v15 = vld [vmem:[%s11951_s29 + $0x38] sm:$0xff] }
  0x2a   : > { %v12240_v53 = vcombine.low %v395_v5, %v399_v15  ;;  %17591 = vst [vmem:[#allocation7_spill] sm:$0xff] %v12246_v25  ;;  %v12248_v32 = vcombine.high %v395_v5, %v399_v15  ;;  %v1572_v5 = vld [vmem:[%s11951_s29 + $0x1a0] sm:$0xff]  ;;  %v10927_v15 = vcombine.low %v12271_v59, %v12271_v59 }
  0x2c   : > { %17592 = vst [vmem:[#allocation8_spill] sm:$0xff] %v12248_v32 }
  0x2d   : > { %697 = vrot.lane.b32.xlu1 %v12029_v28, %s11881_s30  ;;  %691 = vrot.lane.b32.xlu0 %v12031_v29, %s11881_s30 }
  0x31   : > { %699 = vrot.lane.b32.xlu0 %v12047_v34, %s11881_s30  ;;  %677 = vrot.lane.b32.xlu1 %v12049_v35, %s11881_s30 }
  0x35   : > { %679 = vrot.lane.b32.xlu0 %v12057_v38, %s11881_s30  ;;  %675 = vrot.lane.b32.xlu1 %v12059_v39, %s11881_s30 }
  0x39   : > { %681 = vrot.lane.b32.xlu0 %v12071_v42, %s11881_s30  ;;  %683 = vrot.lane.b32.xlu1 %v12075_v43, %s11881_s30 }
  0x3d   : > { %663 = vrot.lane.b32.xlu1 %v12085_v48, %s11881_s30  ;;  %661 = vrot.lane.b32.xlu0 %v12087_v49, %s11881_s30 }
  0x41   : > { %665 = vrot.lane.b32.xlu1 %v12093_v50, %s11881_s30  ;;  %659 = vrot.lane.b32.xlu0 %v12095_v51, %s11881_s30 }
  0x45   : > { %667 = vrot.lane.b32.xlu0 %v12111_v56, %s11881_s30  ;;  %645 = vrot.lane.b32.xlu1 %v12113_v57, %s11881_s30 }
  0x49   : > { %647 = vrot.lane.b32.xlu0 %v12121_v60, %s11881_s30  ;;  %643 = vrot.lane.b32.xlu1 %v12123_v61, %s11881_s30 }
  0x4d   : > { %649 = vrot.lane.b32.xlu0 %v12131_v0, %s11881_s30  ;;  %651 = vrot.lane.b32.xlu1 %v12133_v1, %s11881_s30 }
  0x51   : > { %733 = vrot.lane.b32.xlu0 %v12147_v11, %s11881_s30  ;;  %735 = vrot.lane.b32.xlu1 %v12149_v14, %s11881_s30 }
  0x55   : > { %445 = vrot.lane.b32.xlu0 %v12164_v8, %s11883_s10  ;;  %447 = vrot.lane.b32.xlu1 %v12166_v9, %s11883_s10  ;;  %s11890_s10 = smov 20  }
  0x59   : > { %717 = vrot.lane.b32.xlu0 %v12176_v33, %s11881_s30  ;;  %719 = vrot.lane.b32.xlu1 %v12178_v36, %s11881_s30 }
  0x5d   : > { %737 = vrot.lane.b32.xlu0 %v12184_v37, %s11881_s30  ;;  %701 = vrot.lane.b32.xlu1 %v12188_v44, %s11881_s30 }
  0x61   : > { %703 = vrot.lane.b32.xlu0 %v12196_v18, %s11881_s30  ;;  %721 = vrot.lane.b32.xlu1 %v12198_v19, %s11881_s30 }
  0x65   : > { %685 = vrot.lane.b32.xlu0 %v12208_v30, %s11881_s30  ;;  %687 = vrot.lane.b32.xlu1 %v12210_v31, %s11881_s30 }
  0x69   : > { %705 = vrot.lane.b32.xlu0 %v12216_v55, %s11881_s30  ;;  %669 = vrot.lane.b32.xlu1 %v12220_v58, %s11881_s30 }
  0x6d   : > { %671 = vrot.lane.b32.xlu0 %v12228_v40, %s11881_s30  ;;  %689 = vrot.lane.b32.xlu1 %v12230_v41, %s11881_s30 }
  0x71   : > { %653 = vrot.lane.b32.xlu0 %v12238_v52, %s11881_s30  ;;  %655 = vrot.lane.b32.xlu1 %v12240_v53, %s11881_s30 }
  0x75   : > { %673 = vrot.lane.b32.xlu0 %v12246_v25, %s11881_s30  ;;  %657 = vrot.lane.b32.xlu1 %v12248_v32, %s11881_s30  ;;  %v12286_v32 = vcombine.low %v1568_v2, %v1572_v5 }
  0x79   : > { %1942 = vrot.lane.b32.xlu0 %v10923_v62, %s11881_s30  ;;  %1944 = vrot.lane.b32.xlu1 %v10924_v63, %s11881_s30  ;;  %v12279_v62 = vcombine.high %v1568_v2, %v1572_v5  ;;  %v1569_v63 = vld [vmem:[%s11951_s29 + $0x188] sm:$0xff] }
  0x7a   : > { %v10917_v10 = vcombine.low %v1569_v63, %v1573_v24 }
  0x7b   : > { %17594 = vst [vmem:[#allocation10_spill] sm:$0xff] %v12279_v62 }
  0x7d   : > { %1946 = vrot.lane.b32.xlu0 %v10925_v47, %s11881_s30  ;;  %1948 = vrot.lane.b32.xlu1 %v10926_v54, %s11881_s30  ;;  %v10918_v47 = vcombine.high %v1569_v63, %v1573_v24  ;;  %v10919_v54 = vcombine.low %v12155_v22, %v12158_v23 }
  0x81   : > { %1950 = vrot.lane.b32.xlu0 %v10927_v15, %s11881_s30  ;;  %1928 = vrot.lane.b32.xlu1 %v12279_v62, %s11881_s30 }
  0x85   : > { %1930 = vrot.lane.b32.xlu0 %v10917_v10, %s11881_s30  ;;  %1926 = vrot.lane.b32.xlu1 %v12286_v32, %s11881_s30 }
  0x87   : > { %v726_v25 = vpop.permute.xlu0 %725  ;;  %v724_v46 = vpop.permute.xlu1 %723 }
  0x88   : > { %v775_v10 = vsel %vm739_vm0, %v724_v46, %v726_v25 }
  0x89   : > { %1932 = vrot.lane.b32.xlu0 %v10918_v47, %s11881_s30  ;;  %1934 = vrot.lane.b32.xlu1 %v10919_v54, %s11881_s30 }
  0x8b   : > { %v728_v15 = vpop.permute.xlu0 %727  ;;  %v730_v62 = vpop.permute.xlu1 %729 }
  0x8c   : > { %v776_v2 = vsel %vm739_vm0, %v726_v25, %v728_v15  ;;  %v777_v47 = vsel %vm739_vm0, %v728_v15, %v730_v62 }
  0x8d   : > { %838 = vmatprep.subr.bf16.mxu0 %v776_v2  ;;  %1912 = vrot.lane.b32.xlu0 %v11956_v3, %s11881_s30 }
  0x8e   : > { %1914 = vrot.lane.b32.xlu1 %v11965_v6, %s11881_s30  ;;  %839 = vmatpush1.bf16.msra.mxu0 %v775_v10 }
  0x8f   : > { %v12301_v24 = vpop.permute.xlu0 %731  ;;  %v710_v5 = vpop.permute.xlu1 %709 }
  0x90   : > { %v778_v63 = vsel %vm739_vm0, %v730_v62, %v12301_v24 }
  0x91   : > { %879 = vmatprep.subr.bf16.mxu1 %v778_v63  ;;  %1910 = vrot.lane.b32.xlu0 %v11958_v4, %s11881_s30 }
  0x92   : > { %1916 = vrot.lane.b32.xlu1 %v11967_v7, %s11881_s30  ;;  %880 = vmatpush1.bf16.msra.mxu1 %v777_v47 }
  0x93   : > { %v712_v3 = vpop.permute.xlu0 %711  ;;  %v708_v25 = vpop.permute.xlu1 %707 }
  0x94   : > { %v769_v6 = vsel %vm739_vm0, %v710_v5, %v712_v3  ;;  %v768_v46 = vsel %vm739_vm0, %v708_v25, %v710_v5 }
  0x95   : > { %840 = vmatprep.subr.bf16.mxu0 %v769_v6  ;;  %1918 = vrot.lane.b32.xlu0 %v11983_v12, %s11881_s30 }
  0x96   : > { %1896 = vrot.lane.b32.xlu1 %v11985_v13, %s11881_s30  ;;  %841 = vmatpush1.bf16.msra.mxu0 %v768_v46 }
  0x97   : > { %v714_v4 = vpop.permute.xlu0 %713  ;;  %v12316_v62 = vpop.permute.xlu1 %715 }
  0x98   : > { %v771_v7 = vsel %vm739_vm0, %v714_v4, %v12316_v62  ;;  %v770_v54 = vsel %vm739_vm0, %v712_v3, %v714_v4 }
  0x99   : > { %881 = vmatprep.subr.bf16.mxu1 %v771_v7  ;;  %1898 = vrot.lane.b32.xlu0 %v11993_v16, %s11881_s30 }
  0x9a   : > { %1894 = vrot.lane.b32.xlu1 %v11995_v17, %s11881_s30  ;;  %882 = vmatpush1.bf16.msra.mxu1 %v770_v54 }
  0x9b   : > { %v696_v12 = vpop.permute.xlu1 %695  ;;  %v694_v15 = vpop.permute.xlu0 %693 }
  0x9c   : > { %v762_v13 = vsel %vm739_vm0, %v694_v15, %v696_v12 }
  0x9d   : > { %842 = vmatprep.subr.bf16.mxu0 %v762_v13  ;;  %1900 = vrot.lane.b32.xlu0 %v12007_v20, %s11881_s30 }
  0x9e   : > { %1902 = vrot.lane.b32.xlu1 %v12011_v21, %s11881_s30 }
  0x9f   : > { %v698_v2 = vpop.permute.xlu1 %697  ;;  %v692_v10 = vpop.permute.xlu0 %691 }
  0xa0   : > { %v761_v5 = vsel %vm739_vm0, %v692_v10, %v694_v15  ;;  %v763_v21 = vsel %vm739_vm0, %v696_v12, %v698_v2 }
  0xa1   : > { %843 = vmatpush1.bf16.msra.mxu0 %v761_v5  ;;  %1880 = vrot.lane.b32.xlu0 %v12023_v27, %s11881_s30  ;;  %v10928_v5 = vcombine.high %v12271_v59, %v12271_v59 }
  0xa2   : > { %1882 = vrot.lane.b32.xlu1 %v12021_v26, %s11881_s30 }
  0xa3   : > { %v12335_v16 = vpop.permute.xlu0 %699  ;;  %v678_v17 = vpop.permute.xlu1 %677 }
  0xa4   : > { %v764_v20 = vsel %vm739_vm0, %v698_v2, %v12335_v16 }
  0xa5   : > { %883 = vmatprep.subr.bf16.mxu1 %v764_v20  ;;  %1878 = vrot.lane.b32.xlu0 %v12031_v29, %s11881_s30 }
  0xa6   : > { %1884 = vrot.lane.b32.xlu1 %v12029_v28, %s11881_s30  ;;  %884 = vmatpush1.bf16.msra.mxu1 %v763_v21 }
  0xa7   : > { %v680_v27 = vpop.permute.xlu0 %679  ;;  %v676_v63 = vpop.permute.xlu1 %675 }
  0xa8   : > { %v755_v26 = vsel %vm739_vm0, %v678_v17, %v680_v27  ;;  %v754_v47 = vsel %vm739_vm0, %v676_v63, %v678_v17 }
  0xa9   : > { %844 = vmatprep.subr.bf16.mxu0 %v755_v26  ;;  %1886 = vrot.lane.b32.xlu0 %v12047_v34, %s11881_s30 }
  0xaa   : > { %1864 = vrot.lane.b32.xlu1 %v12049_v35, %s11881_s30  ;;  %845 = vmatpush1.bf16.msra.mxu0 %v754_v47 }
  0xab   : > { %v682_v29 = vpop.permute.xlu0 %681  ;;  %v12350_v3 = vpop.permute.xlu1 %683 }
  0xac   : > { %v757_v28 = vsel %vm739_vm0, %v682_v29, %v12350_v3  ;;  %v756_v25 = vsel %vm739_vm0, %v680_v27, %v682_v29  ;;  %v17595_v27 = vmov 0   ;;  %v1575_v29 = vld [vmem:[%s11951_s29 + $0x1b8] sm:$0xff] }
  0xad   : > { %885 = vmatprep.subr.bf16.mxu1 %v757_v28  ;;  %1866 = vrot.lane.b32.xlu0 %v12057_v38, %s11881_s30 }
  0xae   : > { %1862 = vrot.lane.b32.xlu1 %v12059_v39, %s11881_s30  ;;  %886 = vmatpush1.bf16.msra.mxu1 %v756_v25 }
  0xaf   : > { %v664_v34 = vpop.permute.xlu1 %663  ;;  %v662_v6 = vpop.permute.xlu0 %661 }
  0xb0   : > { %v748_v35 = vsel %vm739_vm0, %v662_v6, %v664_v34 }
  0xb1   : > { %846 = vmatprep.subr.bf16.mxu0 %v748_v35  ;;  %1868 = vrot.lane.b32.xlu0 %v12071_v42, %s11881_s30 }
  0xb2   : > { %1870 = vrot.lane.b32.xlu1 %v12075_v43, %s11881_s30 }
  0xb3   : > { %v666_v46 = vpop.permute.xlu1 %665  ;;  %v660_v4 = vpop.permute.xlu0 %659 }
  0xb4   : > { %v747_v7 = vsel %vm739_vm0, %v660_v4, %v662_v6  ;;  %v749_v43 = vsel %vm739_vm0, %v664_v34, %v666_v46  ;;  %v17596_v6 = vcombine.high %v12155_v22, %v12158_v23 }
  0xb5   : > { %847 = vmatpush1.bf16.msra.mxu0 %v747_v7  ;;  %1848 = vrot.lane.b32.xlu0 %v12087_v49, %s11881_s30 }
  0xb6   : > { %1850 = vrot.lane.b32.xlu1 %v12085_v48, %s11881_s30 }
  0xb7   : > { %v12369_v38 = vpop.permute.xlu0 %667  ;;  %v646_v39 = vpop.permute.xlu1 %645 }
  0xb8   : > { %v750_v42 = vsel %vm739_vm0, %v666_v46, %v12369_v38 }
  0xb9   : > { %887 = vmatprep.subr.bf16.mxu1 %v750_v42  ;;  %1846 = vrot.lane.b32.xlu0 %v12095_v51, %s11881_s30 }
  0xba   : > { %1852 = vrot.lane.b32.xlu1 %v12093_v50, %s11881_s30  ;;  %888 = vmatpush1.bf16.msra.mxu1 %v749_v43 }
  0xbb   : > { %v648_v49 = vpop.permute.xlu0 %647  ;;  %v644_v54 = vpop.permute.xlu1 %643 }
  0xbc   : > { %v741_v48 = vsel %vm739_vm0, %v646_v39, %v648_v49  ;;  %v740_v12 = vsel %vm739_vm0, %v644_v54, %v646_v39 }
  0xbd   : > { %1854 = vrot.lane.b32.xlu0 %v12111_v56, %s11881_s30  ;;  %848 = vmatprep.subr.bf16.mxu0 %v741_v48  ;;  %v387_v48 = vld [vmem:[%s11951_s29 + $0x2e0] sm:$0xff] }
  0xbe   : > { %1832 = vrot.lane.b32.xlu1 %v12113_v57, %s11881_s30  ;;  %849 = vmatpush1.bf16.msra.mxu0 %v740_v12  ;;  %v12394_v57 = vld [vmem:[%s11951_s29 + $0x1d8] sm:$0xff] }
  0xbf   : > { %v650_v51 = vpop.permute.xlu0 %649  ;;  %v12384_v15 = vpop.permute.xlu1 %651  ;;  %v10930_v47 = vcombine.high %v12394_v57, %v12394_v57 }
  0xc0   : > { %v743_v50 = vsel %vm739_vm0, %v650_v51, %v12384_v15  ;;  %v742_v13 = vsel %vm739_vm0, %v648_v49, %v650_v51 }
  0xc1   : > { %1834 = vrot.lane.b32.xlu0 %v12121_v60, %s11881_s30  ;;  %889 = vmatprep.subr.bf16.mxu1 %v743_v50  ;;  %v10929_v60 = vcombine.low %v12394_v57, %v12394_v57  ;;  %v10852_v50 = vcombine.high %v387_v48, %v387_v48 }
  0xc2   : > { %1830 = vrot.lane.b32.xlu1 %v12123_v61, %s11881_s30  ;;  %890 = vmatpush1.bf16.msra.mxu1 %v742_v13 }
  0xc3   : > { %v734_v56 = vpop.permute.xlu0 %733  ;;  %v736_v2 = vpop.permute.xlu1 %735 }
  0xc4   : > { %v780_v10 = vsel %vm739_vm0, %v734_v56, %v736_v2 }
  0xc5   : > { %1836 = vrot.lane.b32.xlu0 %v12131_v0, %s11881_s30  ;;  %920 = vmatprep.subr.bf16.mxu0 %v780_v10  ;;  %v779_v0 = vsel %vm739_vm0, %v12301_v24, %v734_v56  ;;  %v1571_v24 = vld [vmem:[%s11951_s29 + $0x198] sm:$0xff]  ;;  %v371_v10 = vld [vmem:[%s11951_s29 + $0x260] sm:$0xff] }
  0xc6   : > { %1838 = vrot.lane.b32.xlu1 %v12133_v1, %s11881_s30  ;;  %v10922_v39 = vcombine.high %v1571_v24, %v1575_v29 }
  0xc7   : > { %v446_v61 = vpop.permute.xlu0 %445  ;;  %v448_v17 = vpop.permute.xlu1 %447 }
  0xc8   : > { %v12406_v20 = vsel %vm449_vm1, %v446_v61, %v448_v17  ;;  %v12464_v17 = vrot.slane %v10852_v50, 2  ;;  %v368_v50 = vld [vmem:[%s11951_s29 + $0x248] sm:$0xff] }
  0xc9   : > { %1952 = vrot.lane.b32.xlu0 %v10928_v5, %s11881_s30  ;;  %10807 = vmatmul.mubr.msk.bf16.vlgmr.msra.gmra.mxu0 %vm830_vm2, %v12406_v20  ;;  %v375_v5 = vld [vmem:[%s11951_s29 + $0x280] sm:$0xff] }
  0xca   : > { %1954 = vrot.lane.b32.xlu1 %v10929_v60, %s11881_s30  ;;  %10808 = vmatmul.mubr.msk.bf16.vlgmr.msra.gmra.mxu1 %vm830_vm2, %v12406_v20  ;;  %17597 = vst [vmem:[#allocation11_spill] sm:$0xff] %v12464_v17 }
  0xcb   : > { %921 = vmatpush1.bf16.msra.mxu0 %v779_v0  ;;  %v718_v1 = vpop.permute.xlu0 %717  ;;  %v720_v21 = vpop.permute.xlu1 %719  ;;  %948 = vmatprep.mubr.bf16.mxu0 %v17595_v27  ;;  %v388_v0 = vld [vmem:[%s11951_s29 + $0x2e8] sm:$0xff] }
  0xcc   : > { %v773_v63 = vsel %vm739_vm0, %v718_v1, %v720_v21  ;;  %v772_v26 = vsel %vm739_vm0, %v12316_v62, %v718_v1  ;;  %989 = vmatprep.mubr.bf16.mxu1 %v17595_v27  ;;  %v10921_v62 = vcombine.low %v1571_v24, %v1575_v29  ;;  %v10853_v24 = vcombine.low %v388_v0, %v388_v0  ;;  %v12481_v29 = vld [vmem:[%s11951_s29 + $0x220] sm:$0xff] }
  0xcd   : > { %1580 = vrot.lane.b32.xlu0 %v12164_v8, %s11884_s11  ;;  %922 = vmatprep.subr.bf16.mxu0 %v773_v63  ;;  %v380_v63 = vld [vmem:[%s11951_s29 + $0x2a8] sm:$0xff] }
  0xce   : > { %1582 = vrot.lane.b32.xlu1 %v12166_v9, %s11884_s11  ;;  %s11592_s11 = sshll.u32 %s18084_s25, 4 }
  0xcf   : > { %923 = vmatpush1.bf16.msra.mxu0 %v772_v26  ;;  %v738_v28 = vpop.permute.xlu0 %737  ;;  %v702_v25 = vpop.permute.xlu1 %701 }
  0xd0   : > { %961 = vmatprep.subr.bf16.mxu1 %v738_v28  ;;  %v781_v34 = vsel %vm739_vm0, %v736_v2, %v738_v28  ;;  %v765_v22 = vsel %vm739_vm0, %v12335_v16, %v702_v25  ;;  %v10851_v2 = vcombine.low %v387_v48, %v387_v48  ;;  %v367_v28 = vld [vmem:[%s11951_s29 + $0x240] sm:$0xff] }
  0xd1   : > { %1956 = vrot.lane.b32.xlu0 %v10930_v47, %s11881_s30  ;;  %962 = vmatpush1.bf16.msra.mxu1 %v781_v34  ;;  %v10836_v47 = vcombine.high %v371_v10, %v375_v5 }
  0xd2   : > { %1936 = vrot.lane.b32.xlu1 %v17596_v6, %s11881_s30 }
  0xd3   : > { %v704_v35 = vpop.permute.xlu0 %703  ;;  %v722_v46 = vpop.permute.xlu1 %721 }
  0xd4   : > { %963 = vmatprep.subr.bf16.mxu1 %v722_v46  ;;  %v766_v4 = vsel %vm739_vm0, %v702_v25, %v704_v35  ;;  %v774_v7 = vsel %vm739_vm0, %v720_v21, %v722_v46  ;;  %v372_v46 = vld [vmem:[%s11951_s29 + $0x268] sm:$0xff] }
  0xd5   : > { %1938 = vrot.lane.b32.xlu0 %v10921_v62, %s11881_s30  ;;  %924 = vmatprep.subr.bf16.mxu0 %v766_v4  ;;  %v376_v4 = vld [vmem:[%s11951_s29 + $0x288] sm:$0xff] }
  0xd6   : > { %1920 = vrot.lane.b32.xlu1 %v12147_v11, %s11881_s30  ;;  %964 = vmatpush1.bf16.msra.mxu1 %v774_v7 }
  0xd7   : > { %925 = vmatpush1.bf16.msra.mxu0 %v765_v22  ;;  %v686_v23 = vpop.permute.xlu0 %685  ;;  %v688_v42 = vpop.permute.xlu1 %687  ;;  %v10828_v22 = vcombine.high %v12481_v29, %v367_v28 }
  0xd8   : > { %v759_v43 = vsel %vm739_vm0, %v686_v23, %v688_v42  ;;  %v758_v49 = vsel %vm739_vm0, %v12350_v3, %v686_v23  ;;  %v379_v3 = vld [vmem:[%s11951_s29 + $0x2a0] sm:$0xff] }
  0xd9   : > { %1922 = vrot.lane.b32.xlu0 %v12149_v14, %s11881_s30  ;;  %926 = vmatprep.subr.bf16.mxu0 %v759_v43  ;;  %v383_v14 = vld [vmem:[%s11951_s29 + $0x2c0] sm:$0xff] }
  0xda   : > { %1940 = vrot.lane.b32.xlu1 %v10922_v39, %s11881_s30  ;;  %v10843_v21 = vcombine.low %v379_v3, %v383_v14  ;;  %v1221_v39 = vrot.slane %v10836_v47, 2  ;;  %v12512_v43 = vld [vmem:[%s11951_s29 + $0x1e0] sm:$0xff] }
  0xdb   : > { %927 = vmatpush1.bf16.msra.mxu0 %v758_v49  ;;  %v706_v11 = vpop.permute.xlu0 %705  ;;  %v670_v54 = vpop.permute.xlu1 %669  ;;  %v12515_v49 = vld [vmem:[%s11951_s29 + $0x200] sm:$0xff] }
  0xdc   : > { %965 = vmatprep.subr.bf16.mxu1 %v706_v11  ;;  %v767_v16 = vsel %vm739_vm0, %v704_v35, %v706_v11  ;;  %v12491_v6 = vrot.slane %v10843_v21, 2  ;;  %v10835_v35 = vcombine.low %v371_v10, %v375_v5  ;;  %v347_v10 = vld [vmem:[%s11951_s29 + $0x1a0] sm:$0xcc]  ;;  %v10819_v21 = vcombine.low %v12512_v43, %v12515_v49 }
  0xdd   : > { %1904 = vrot.lane.b32.xlu0 %v12176_v33, %s11881_s30  ;;  %966 = vmatpush1.bf16.msra.mxu1 %v767_v16  ;;  %v10844_v33 = vcombine.high %v379_v3, %v383_v14  ;;  %v10838_v16 = vcombine.high %v372_v46, %v376_v4 }
  0xde   : > { %1906 = vrot.lane.b32.xlu1 %v12178_v36, %s11881_s30  ;;  %v751_v36 = vsel %vm739_vm0, %v12369_v38, %v670_v54  ;;  %v384_v38 = vld [vmem:[%s11951_s29 + $0x2c8] sm:$0xff]  ;;  %17601 = vst [vmem:[#allocation15_spill] sm:$0xff] %v12491_v6  ;;  %v1219_v14 = vrot.slane %v10835_v35, 2 }
  0xdf   : > { %v672_v12 = vpop.permute.xlu0 %671  ;;  %v690_v51 = vpop.permute.xlu1 %689  ;;  %v12476_v26 = vrot.slane %v10844_v33, 2 }
  0xe0   : > { %967 = vmatprep.subr.bf16.mxu1 %v690_v51  ;;  %v752_v13 = vsel %vm739_vm0, %v670_v54, %v672_v12  ;;  %v760_v56 = vsel %vm739_vm0, %v688_v42, %v690_v51  ;;  %v12509_v42 = vrot.slane %v10853_v24, 2  ;;  %v12533_v51 = vld [vmem:[%s11951_s29 + $0x228] sm:$0xff] }
  0xe1   : > { %1924 = vrot.lane.b32.xlu0 %v12184_v37, %s11881_s30  ;;  %928 = vmatprep.subr.bf16.mxu0 %v752_v13  ;;  %17599 = vst [vmem:[#allocation13_spill] sm:$0xff] %v12476_v26  ;;  %v12500_v7 = vsel %vm1178_vm4, %v12476_v26, %v12464_v17  ;;  %v12541_v13 = vsel %vm1178_vm4, %v1221_v39, %v12476_v26  ;;  %v12865_v26 = vld [vmem:[%s11951_s29 + $0x1b0] sm:$0xff] }
  0xe2   : > { %1888 = vrot.lane.b32.xlu1 %v12188_v44, %s11881_s30  ;;  %968 = vmatpush1.bf16.msra.mxu1 %v760_v56  ;;  %v12470_v44 = vrot.slane %v10851_v2, 2  ;;  %17602 = vst [vmem:[#allocation16_spill] sm:$0xff] %v12500_v7  ;;  %17604 = vst [vmem:[#allocation18_spill] sm:$0xff] %v12509_v42  ;;  %v1205_v56 = vrot.slane %v10828_v22, 2  ;;  %v10820_v2 = vcombine.high %v12512_v43, %v12515_v49  ;;  %v12551_v33 = vsel %vm1311_vm3, %v12509_v42, 0  ;;  %v12623_v22 = vld [vmem:[%s11951_s29 + $0xb0] sm:$0xff] }
  0xe3   : > { %929 = vmatpush1.bf16.msra.mxu0 %v751_v36  ;;  %v654_v60 = vpop.permute.xlu0 %653  ;;  %v656_v61 = vpop.permute.xlu1 %655  ;;  %17607 = vst [vmem:[#allocation21_spill] sm:$0xff] %v12541_v13  ;;  %17608 = vst [vmem:[#allocation22_spill] sm:$0xff] %v12551_v33  ;;  %v10837_v36 = vcombine.low %v372_v46, %v376_v4  ;;  %v12617_v4 = vrot.slane %v10819_v21, 2 }
  0xe4   : > { %v745_v37 = vsel %vm739_vm0, %v654_v60, %v656_v61  ;;  %v744_v1 = vsel %vm739_vm0, %v12384_v15, %v654_v60  ;;  %17598 = vst [vmem:[#allocation12_spill] sm:$0xff] %v12470_v44  ;;  %v10854_v15 = vcombine.high %v388_v0, %v388_v0  ;;  %v12529_v3 = vsel %vm1178_vm4, %v12491_v6, %v12470_v44 }
  0xe5   : > { %1890 = vrot.lane.b32.xlu0 %v12196_v18, %s11881_s30  ;;  %930 = vmatprep.subr.bf16.mxu0 %v745_v37  ;;  %v10846_v18 = vcombine.high %v380_v63, %v384_v38  ;;  %17606 = vst [vmem:[#allocation20_spill] sm:$0xff] %v12529_v3  ;;  %v10830_v0 = vcombine.high %v12533_v51, %v368_v50  ;;  %v12588_v47 = vrot.slane %v10820_v2, 2  ;;  %v1223_v24 = vrot.slane %v10837_v36, 2  ;;  %v12646_v2 = vld [vmem:[%s11951_s29 + $0x2b0] sm:$0xff] }
  0xe6   : > { %1908 = vrot.lane.b32.xlu1 %v12198_v19, %s11881_s30  ;;  %v12489_v19 = vsel %vm1311_vm3, %v12470_v44, 0  ;;  %v12507_v23 = vrot.slane %v10854_v15, 2  ;;  %v12572_v37 = vsel %vm1178_vm4, %v1219_v14, %v12491_v6  ;;  %v10812_v15 = vcombine.high %v347_v10, %v12251_v45  ;;  %17617 = vst [vmem:[#allocation31_spill] sm:$0xff] %v12617_v4  ;;  %v12649_v36 = vld [vmem:[%s11951_s29 + $0x2d0] sm:$0xff]  ;;  %v390_v44 = vld [vmem:[%s11951_s29 + $0x2f8] sm:$0xff] }
  0xe7   : > { %931 = vmatpush1.bf16.msra.mxu0 %v744_v1  ;;  %v674_v25 = vpop.permute.xlu0 %673  ;;  %v658_v34 = vpop.permute.xlu1 %657  ;;  %17600 = vst [vmem:[#allocation14_spill] sm:$0xff] %v12489_v19  ;;  %v12522_v54 = vrot.slane %v10846_v18, 2  ;;  %17611 = vst [vmem:[#allocation25_spill] sm:$0xff] %v12572_v37  ;;  %v1209_v18 = vrot.slane %v10830_v0, 2  ;;  %v12712_v6 = vld [vmem:[%s11951_s29 + $0x2b8] sm:$0xff] }
  0xe8   : > { %969 = vmatprep.subr.bf16.mxu1 %v674_v25  ;;  %v753_v62 = vsel %vm739_vm0, %v672_v12, %v674_v25  ;;  %10859 = vmatprep.subr.msk.bf16.mxu0 %vm1311_vm3, %v12464_v17  ;;  %17603 = vst [vmem:[#allocation17_spill] sm:$0xff] %v12507_v23  ;;  %v746_v48 = vsel %vm739_vm0, %v656_v61, %v658_v34  ;;  %v1225_v61 = vrot.slane %v10838_v16, 2  ;;  %17613 = vst [vmem:[#allocation27_spill] sm:$0xff] %v12588_v47  ;;  %v2644_v17 = vld [vmem:[%s11951_s29 + $0x168] sm:$0xff] }
  0xe9   : > { %1872 = vrot.lane.b32.xlu0 %v12208_v30, %s11881_s30  ;;  %970 = vmatpush1.bf16.msra.mxu1 %v753_v62  ;;  %v10845_v30 = vcombine.low %v380_v63, %v384_v38  ;;  %17605 = vst [vmem:[#allocation19_spill] sm:$0xff] %v12522_v54  ;;  %v10827_v12 = vcombine.low %v12481_v29, %v367_v28  ;;  %v12577_v63 = vld [vmem:[%s11951_s29 + $0x1e8] sm:$0xff]  ;;  %v1182_v16 = vrot.slane %v10812_v15, 2 }
  0xea   : > { %1874 = vrot.lane.b32.xlu1 %v12210_v31, %s11881_s30  ;;  %10809 = vmatmul.mubr.msk.bf16.vlgmr.msra.gmra.mxu0 %vm830_vm2, %v12406_v20  ;;  %v12580_v38 = vld [vmem:[%s11951_s29 + $0x208] sm:$0xff]  ;;  %v10829_v28 = vcombine.low %v12533_v51, %v368_v50  ;;  %v10811_v62 = vcombine.low %v347_v10, %v12251_v45 }
  0xeb   : > { %1341 = vmatpush1.bf16.msra.mxu0 %v12489_v19  ;;  %v12518_v11 = vpop.permute.xlu0 %1942  ;;  %971 = vmatprep.subr.bf16.mxu1 %v658_v34  ;;  %v12520_v31 = vpop.permute.xlu1 %1944  ;;  %v1203_v1 = vrot.slane %v10827_v12, 2  ;;  %v10822_v35 = vcombine.high %v12577_v63, %v12580_v38 }
  0xec   : > { %1342 = vmatprep.subr.bf16.mxu0 %v12500_v7  ;;  %1368 = vmatprep.mubr.bf16.mxu0 %v17595_v27  ;;  %v1207_v50 = vrot.slane %v10829_v28, 2  ;;  %v1179_v21 = vrot.slane %v10811_v62, 2  ;;  %v1184_v62 = vsel %vm1178_vm4, %v1182_v16, %v12588_v47  ;;  %v12881_v7 = vld [vmem:[%s11951_s29 + $0x1f8] sm:$0xff] }
  0xed   : > { %1892 = vrot.lane.b32.xlu0 %v12216_v55, %s11881_s30  ;;  %972 = vmatpush1.bf16.msra.mxu1 %v746_v48  ;;  %v12553_v55 = vrot.slane %v10845_v30, 2  ;;  %v12615_v46 = vsel %vm1178_vm4, %v1203_v1, %v1219_v14  ;;  %v12630_v30 = vsel %vm1178_vm4, %v12588_v47, %v1205_v56  ;;  %v389_v48 = vld [vmem:[%s11951_s29 + $0x2f0] sm:$0xff]  ;;  %v348_v14 = vld [vmem:[%s11951_s29 + $0x1a8] sm:$0xcc]  ;;  %v12659_v15 = vrot.slane %v10822_v35, 2  ;;  %v17625_v35 = vld [vmem:[#allocation8_spill] sm:$0xff] }
  0xee   : > { %1856 = vrot.lane.b32.xlu1 %v12220_v58, %s11881_s30  ;;  %10861 = vmatprep.subr.msk.bf16.mxu1 %vm1311_vm3, %v12507_v23  ;;  %v12564_v58 = vsel %vm1178_vm4, %v12522_v54, %v12507_v23  ;;  %17616 = vst [vmem:[#allocation30_spill] sm:$0xff] %v12615_v46  ;;  %17618 = vst [vmem:[#allocation32_spill] sm:$0xff] %v12630_v30  ;;  %v12664_v28 = vsel %vm1178_vm4, %v12617_v4, %v1203_v1 }
  0xef   : > { %17609 = vst [vmem:[#allocation23_spill] sm:$0xff] %v12553_v55  ;;  %1343 = vmatpush1.bf16.msra.mxu0 %v12529_v3  ;;  %v12557_v5 = vpop.permute.xlu0 %1946  ;;  %v12559_v60 = vpop.permute.xlu1 %1948  ;;  %17610 = vst [vmem:[#allocation24_spill] sm:$0xff] %v12564_v58  ;;  %v10856_v12 = vcombine.high %v389_v48, %v389_v48  ;;  %v10848_v1 = vcombine.high %v12646_v2, %v12649_v36  ;;  %v12851_v3 = vld [vmem:[%s11951_s29 + $0x1d0] sm:$0xff] }
  0xf0   : > { %10810 = vmatmul.mubr.msk.bf16.vlgmr.msra.gmra.mxu1 %vm830_vm2, %v12406_v20  ;;  %1344 = vmatprep.subr.bf16.mxu0 %v12541_v13  ;;  %v12586_v20 = vsel %vm1178_vm4, %v1205_v56, %v1221_v39  ;;  %v12620_v39 = vld [vmem:[%s11951_s29 + $0x90] sm:$0xff]  ;;  %v10821_v56 = vcombine.low %v12577_v63, %v12580_v38  ;;  %17621 = vst [vmem:[#allocation35_spill] sm:$0xff] %v12659_v15  ;;  %17622 = vst [vmem:[#allocation36_spill] sm:$0xff] %v12664_v28  ;;  %vm5576_vm2 = vcmask 424960  }
  0xf1   : > { %1858 = vrot.lane.b32.xlu0 %v12228_v40, %s11881_s30  ;;  %1382 = vmatpush1.bf16.msra.mxu1 %v12551_v33  ;;  %17612 = vst [vmem:[#allocation26_spill] sm:$0xff] %v12586_v20  ;;  %v12597_v40 = vsel %vm1178_vm4, %v12553_v55, %v12509_v42  ;;  %v12688_v13 = vld [vmem:[%s11951_s29 + $0x270] sm:$0xff] }
  0xf2   : > { %1876 = vrot.lane.b32.xlu1 %v12230_v41, %s11881_s30  ;;  %1383 = vmatprep.subr.bf16.mxu1 %v12564_v58  ;;  %17614 = vst [vmem:[#allocation28_spill] sm:$0xff] %v12597_v40  ;;  %v12607_v41 = vsel %vm1178_vm4, %v1225_v61, %v12522_v54  ;;  %v12691_v42 = vld [vmem:[%s11951_s29 + $0x290] sm:$0xff]  ;;  %v362_v58 = vld [vmem:[%s11951_s29 + $0x218] sm:$0xff] }
  0xf3   : > { %1345 = vmatpush1.bf16.msra.mxu0 %v12572_v37  ;;  %v12601_v25 = vpop.permute.xlu0 %1950  ;;  %v12603_v34 = vpop.permute.xlu1 %1928  ;;  %17615 = vst [vmem:[#allocation29_spill] sm:$0xff] %v12607_v41  ;;  %1409 = vmatprep.mubr.bf16.mxu1 %v17595_v27  ;;  %v17624_v37 = vld [vmem:[#allocation7_spill] sm:$0xff] }
  0xf4   : > { %1346 = vmatprep.subr.bf16.mxu0 %v12586_v20  ;;  %v17623_v20 = vld [vmem:[#allocation9_spill] sm:$0xff] }
  0xf5   : > { %1840 = vrot.lane.b32.xlu0 %v12238_v52, %s11881_s30  ;;  %1384 = vmatpush1.bf16.msra.mxu1 %v12597_v40  ;;  %v12641_v52 = vsel %vm1178_vm4, %v1223_v24, %v12553_v55  ;;  %v10813_v16 = vcombine.low %v348_v14, %v17623_v20 }
  0xf6   : > { %1842 = vrot.lane.b32.xlu1 %v12240_v53, %s11881_s30  ;;  %1385 = vmatprep.subr.bf16.mxu1 %v12607_v41  ;;  %17619 = vst [vmem:[#allocation33_spill] sm:$0xff] %v12641_v52  ;;  %v12657_v53 = vsel %vm1178_vm4, %v1209_v18, %v1225_v61  ;;  %v10814_v41 = vcombine.high %v348_v14, %v17623_v20  ;;  %v12705_v14 = vrot.slane %v10856_v12, 2 }
  0xf7   : > { %1347 = vmatpush1.bf16.msra.mxu0 %v12615_v46  ;;  %v12652_v10 = vpop.permute.xlu0 %1930  ;;  %v12654_v0 = vpop.permute.xlu1 %1926  ;;  %17620 = vst [vmem:[#allocation34_spill] sm:$0xff] %v12657_v53  ;;  %v10855_v46 = vcombine.low %v389_v48, %v389_v48  ;;  %v11036_v61 = vcombine.high %v12251_v45, %v12512_v43  ;;  %v12682_v48 = vsel %vm1178_vm4, %v1207_v50, %v1223_v24 }
  0xf8   : > { %1348 = vmatprep.subr.bf16.mxu0 %v12630_v30  ;;  %17626 = vst [vmem:[#allocation9_spill] sm:$0xff] %v12682_v48  ;;  %v1181_v24 = vsel %vm1178_vm4, %v1179_v21, %v12617_v4  ;;  %17629 = vst [vmem:[#allocation37_spill] sm:$0xff] %v12705_v14  ;;  %v1188_v30 = vrot.slane %v10814_v41, 2  ;;  %v12715_v21 = vld [vmem:[%s11951_s29 + $0x2d8] sm:$0xff]  ;;  %v12723_v41 = vrot.slane %v10848_v1, 2  ;;  %v10840_v12 = vcombine.high %v12688_v13, %v12691_v42 }
  0xf9   : > { %1860 = vrot.lane.b32.xlu0 %v17624_v37, %s11881_s30  ;;  %1386 = vmatpush1.bf16.msra.mxu1 %v12641_v52  ;;  %v11037_v37 = vcombine.low %v17623_v20, %v12577_v63  ;;  %v12684_v52 = vrot.slane %v10821_v56, 2  ;;  %v12702_v56 = vsel %vm1178_vm4, %v12659_v15, %v1209_v18  ;;  %v12707_v47 = vrot.slane %v10855_v46, 2  ;;  %v12747_v1 = vld [vmem:[%s17368_s1] sm:$0xf]  ;;  %v12766_v4 = vld [vmem:[%s11951_s29 + $0x278] sm:$0xff] }
  0xfa   : > { %1844 = vrot.lane.b32.xlu1 %v17625_v35, %s11881_s30  ;;  %1387 = vmatprep.subr.bf16.mxu1 %v12657_v53  ;;  %17628 = vst [vmem:[#allocation8_spill] sm:$0xff] %v12702_v56  ;;  %v11035_v18 = vcombine.low %v12251_v45, %v12512_v43  ;;  %v11038_v46 = vcombine.high %v17623_v20, %v12577_v63  ;;  %17631 = vst [vmem:[#allocation39_spill] sm:$0xff] %v12723_v41  ;;  %v12737_v63 = vld [vmem:[%s11951_s29 + $0x230] sm:$0xff] }
  0xfb   : > { %17627 = vst [vmem:[#allocation7_spill] sm:$0xff] %v12684_v52  ;;  %1349 = vmatpush1.bf16.msra.mxu0 %v12664_v28  ;;  %v12694_v35 = vpop.permute.xlu0 %1932  ;;  %v12696_v53 = vpop.permute.xlu1 %1934  ;;  %17630 = vst [vmem:[#allocation38_spill] sm:$0xff] %v12707_v47  ;;  %v10847_v28 = vcombine.low %v12646_v2, %v12649_v36  ;;  %v12731_v2 = vsel %vm1178_vm4, %v12684_v52, %v1207_v50  ;;  %v12734_v36 = vld [vmem:[%s11951_s29 + $0x1f0] sm:$0xff]  ;;  %v10858_v45 = vcombine.high %v390_v44, %v390_v44 }
  0xfc   : > { %1350 = vmatprep.subr.bf16.mxu0 %v1184_v62  ;;  %17632 = vst [vmem:[#allocation40_spill] sm:$0xff] %v12731_v2  ;;  %v10857_v43 = vcombine.low %v390_v44, %v390_v44  ;;  %v12740_v20 = vld [vmem:[%s11951_s29 + $0x250] sm:$0xff]  ;;  %v10850_v50 = vcombine.high %v12712_v6, %v12715_v21  ;;  %v12757_v44 = vsel %vm1311_vm3, %v12707_v47, 0  ;;  %v11039_v55 = vcombine.low %v12271_v59, %v12734_v36  ;;  %v12790_v59 = vld [vmem:[%s11951_s29 + $0x188] sm:$0xff] }
  0xfd   : > { %3080 = vrot.lane.b32.xlu0 %v11036_v61, %s11881_s30  ;;  %1388 = vmatpush1.bf16.msra.mxu1 %v12682_v48  ;;  %v1185_v61 = vrot.slane %v10813_v16, 2  ;;  %17633 = vst [vmem:[#allocation41_spill] sm:$0xff] %v12757_v44  ;;  %v1190_v16 = vsel %vm1178_vm4, %v1188_v30, %v12659_v15  ;;  %v10839_v48 = vcombine.low %v12688_v13, %v12691_v42  ;;  %v12793_v15 = vld [vmem:[%s11951_s29 + $0x1a8] sm:$0xff] }
  0xfe   : > { %3082 = vrot.lane.b32.xlu1 %v11037_v37, %s11881_s30  ;;  %1389 = vmatprep.subr.bf16.mxu1 %v12702_v56  ;;  %v12769_v56 = vld [vmem:[%s11951_s29 + $0x298] sm:$0xff]  ;;  %v12778_v30 = vsel %vm1178_vm4, %v12723_v41, %v12705_v14  ;;  %v10832_v42 = vcombine.high %v12737_v63, %v12740_v20 }
  0xff   : > { %1351 = vmatpush1.bf16.msra.mxu0 %v1181_v24  ;;  %v12742_v62 = vpop.permute.xlu0 %1912  ;;  %v12761_v24 = vrot.slane %v10847_v28, 2  ;;  %17635 = vst [vmem:[#allocation43_spill] sm:$0xff] %v12778_v30  ;;  %v1229_v28 = vrot.slane %v10840_v12, 2  ;;  %v1187_v13 = vsel %vm1178_vm4, %v1185_v61, %v12684_v52  ;;  %v12795_v12 = vrot.slane %v10857_v43, 2 }
 0x100   : > { %v12751_v37 = vpop.permute.xlu1 %1914  ;;  %10863 = vmatprep.subr.msk.bf16.mxu0 %vm1311_vm3, %v12705_v14  ;;  %v12805_v61 = vrot.slane %v10850_v50, 2  ;;  %v10831_v43 = vcombine.low %v12737_v63, %v12740_v20  ;;  %v12820_v50 = vld [vmem:[%s11951_s29 + $0x238] sm:$0xff]  ;;  %v1213_v20 = vrot.slane %v10832_v42, 2  ;;  %v12848_v42 = vld [vmem:[%s11951_s29 + $0x1b0] sm:$0xcc] }
 0x101   : > { %17634 = vst [vmem:[#allocation42_spill] sm:$0xff] %v12761_v24  ;;  %3078 = vrot.lane.b32.xlu0 %v11035_v18, %s11881_s30  ;;  %1390 = vmatpush1.bf16.msra.mxu1 %v12731_v2  ;;  %v12787_v18 = vrot.slane %v10858_v45, 2  ;;  %17637 = vst [vmem:[#allocation45_spill] sm:$0xff] %v12795_v12  ;;  %v10849_v2 = vcombine.low %v12712_v6, %v12715_v21  ;;  %v10842_v45 = vcombine.high %v12766_v4, %v12769_v56 }
 0x102   : > { %3084 = vrot.lane.b32.xlu1 %v11038_v46, %s11881_s30  ;;  %10860 = vmatmul.mubr.msk.bf16.vlgmr.msra.gmra.mxu0 %vm1307_vm5, %v12747_v1  ;;  %v12800_v46 = vld [vmem:[%s11951_s29 + $0x210] sm:$0xff]  ;;  %17638 = vst [vmem:[#allocation46_spill] sm:$0xff] %v12805_v61  ;;  %v12815_v6 = vsel %vm1178_vm4, %v12761_v24, %v12707_v47  ;;  %v1227_v21 = vrot.slane %v10839_v48, 2  ;;  %v11029_v47 = vcombine.low %v12790_v59, %v12793_v15 }
 0x103   : > { %17636 = vst [vmem:[#allocation44_spill] sm:$0xff] %v12787_v18  ;;  %1423 = vmatpush1.bf16.msra.mxu0 %v12757_v44  ;;  %v12803_v14 = vpop.permute.xlu0 %1910  ;;  %1391 = vmatprep.subr.bf16.mxu1 %v1190_v16  ;;  %17639 = vst [vmem:[#allocation47_spill] sm:$0xff] %v12815_v6  ;;  %v12823_v16 = vld [vmem:[%s11951_s29 + $0x258] sm:$0xff]  ;;  %v12831_v48 = vsel %vm1178_vm4, %v1229_v28, %v12723_v41  ;;  %v17641_v44 = vld [vmem:[#allocation10_spill] sm:$0xff]  ;;  %v10841_v41 = vcombine.low %v12766_v4, %v12769_v56  ;;  %v1233_v4 = vrot.slane %v10842_v45, 2 }
 0x104   : > { %v12809_v52 = vpop.permute.xlu1 %1916  ;;  %1424 = vmatprep.subr.bf16.mxu0 %v12778_v30  ;;  %1450 = vmatprep.mubr.bf16.mxu0 %v17595_v27  ;;  %17640 = vst [vmem:[#allocation48_spill] sm:$0xff] %v12831_v48  ;;  %v10824_v30 = vcombine.high %v12734_v36, %v12800_v46  ;;  %v12859_v40 = vsel %vm1178_vm4, %v12805_v61, %v12787_v18 }
 0x105   : > { %3086 = vrot.lane.b32.xlu0 %v11039_v55, %s11881_s30  ;;  %1392 = vmatpush1.bf16.msra.mxu1 %v1187_v13  ;;  %v12841_v55 = vsel %vm1311_vm3, %v12795_v12, 0  ;;  %v12843_v13 = vrot.slane %v10849_v2, 2  ;;  %17643 = vst [vmem:[#allocation49_spill] sm:$0xff] %v12859_v40  ;;  %v12862_v2 = vld [vmem:[%s11951_s29 + $0x190] sm:$0xff]  ;;  %v10834_v56 = vcombine.high %v12820_v50, %v12823_v16  ;;  %v10823_v45 = vcombine.low %v12734_v36, %v12800_v46 }
 0x106   : > { %3064 = vrot.lane.b32.xlu1 %v17641_v44, %s11881_s30  ;;  %10865 = vmatprep.subr.msk.bf16.mxu1 %vm1311_vm3, %v12787_v18  ;;  %17642 = vst [vmem:[#allocation10_spill] sm:$0xff] %v12841_v55  ;;  %17644 = vst [vmem:[#allocation50_spill] sm:$0xff] %v12862_v2  ;;  %v1211_v18 = vrot.slane %v10831_v43, 2  ;;  %v12891_v19 = vrot.slane %v10824_v30, 2  ;;  %v10816_v43 = vcombine.high %v12848_v42, %v12851_v3  ;;  %v1231_v30 = vrot.slane %v10841_v41, 2 }
 0x107   : > { %1425 = vmatpush1.bf16.msra.mxu0 %v12815_v6  ;;  %v12854_v44 = vpop.permute.xlu0 %1918  ;;  %v12876_v6 = vsel %vm1178_vm4, %v1227_v21, %v12761_v24  ;;  %v12889_v24 = vsel %vm1178_vm4, %v1213_v20, %v1229_v28  ;;  %v2639_v28 = vld [vmem:[%s11951_s29 + $0x140] sm:$0xff]  ;;  %v1217_v23 = vrot.slane %v10834_v56, 2 }
 0x108   : > { %v12869_v54 = vpop.permute.xlu1 %1896  ;;  %10862 = vmatmul.mubr.msk.bf16.vlgmr.msra.gmra.mxu1 %vm1307_vm5, %v12747_v1  ;;  %1426 = vmatprep.subr.bf16.mxu0 %v12831_v48  ;;  %17645 = vst [vmem:[#allocation51_spill] sm:$0xff] %v12876_v6  ;;  %v11030_v48 = vcombine.high %v12790_v59, %v12793_v15  ;;  %17646 = vst [vmem:[#allocation52_spill] sm:$0xff] %v12889_v24  ;;  %v12903_v15 = vsel %vm1178_vm4, %v12843_v13, %v12795_v12  ;;  %v2643_v59 = vld [vmem:[%s11951_s29 + $0x160] sm:$0xff]  ;;  %v1194_v9 = vrot.slane %v10816_v43, 2 }
 0x109   : > { %3066 = vrot.lane.b32.xlu0 %v11029_v47, %s11881_s30  ;;  %1464 = vmatpush1.bf16.msra.mxu1 %v12841_v55  ;;  %v11031_v47 = vcombine.low %v12862_v2, %v12865_v26  ;;  %v10833_v55 = vcombine.low %v12820_v50, %v12823_v16  ;;  %v10826_v12 = vcombine.high %v12881_v7, %v362_v58  ;;  %v12926_v16 = vrot.slane %v10823_v45, 2  ;;  %v350_v2 = vld [vmem:[%s11951_s29 + $0x1b8] sm:$0xcc] }
 0x10a   : > { %3062 = vrot.lane.b32.xlu1 %v12286_v32, %s11881_s30  ;;  %1465 = vmatprep.subr.bf16.mxu1 %v12859_v40  ;;  %v12914_v32 = vsel %vm1178_vm4, %v1233_v4, %v12805_v61  ;;  %v2640_v40 = vld [vmem:[%s11951_s29 + $0x148] sm:$0xff]  ;;  %v12924_v50 = vsel %vm1178_vm4, %v1211_v18, %v1227_v21  ;;  %v11020_v56 = vcombine.high %v2639_v28, %v2643_v59 }
 0x10b   : > { %1427 = vmatpush1.bf16.msra.mxu0 %v12876_v6  ;;  %v12910_v33 = vpop.permute.xlu0 %1898  ;;  %17647 = vst [vmem:[#allocation53_spill] sm:$0xff] %v12914_v32  ;;  %1491 = vmatprep.mubr.bf16.mxu1 %v17595_v27  ;;  %v10815_v6 = vcombine.low %v12848_v42, %v12851_v3  ;;  %v12934_v61 = vsel %vm1178_vm4, %v12891_v19, %v1213_v20  ;;  %v1215_v3 = vrot.slane %v10833_v55, 2  ;;  %v12950_v43 = vrot.slane %v10826_v12, 2 }
 0x10c   : > { %v12920_v41 = vpop.permute.xlu1 %1894  ;;  %1428 = vmatprep.subr.bf16.mxu0 %v12889_v24  ;;  %17648 = vst [vmem:[#allocation54_spill] sm:$0xff] %v12934_v61  ;;  %v11021_v21 = vcombine.low %v2640_v40, %v2644_v17  ;;  %v12941_v45 = vsel %vm1178_vm4, %v1231_v30, %v12843_v13  ;;  %v12948_v20 = vsel %vm1178_vm4, %v1217_v23, %v1233_v4 }
 0x10d   : > { %3068 = vrot.lane.b32.xlu0 %v11030_v48, %s11881_s30  ;;  %1466 = vmatpush1.bf16.msra.mxu1 %v12903_v15  ;;  %17649 = vst [vmem:[#allocation55_spill] sm:$0xff] %v12941_v45  ;;  %v10825_v48 = vcombine.low %v12881_v7, %v362_v58  ;;  %17650 = vst [vmem:[#allocation56_spill] sm:$0xff] %v12948_v20  ;;  %v12957_v55 = vsel %vm1178_vm4, %v12926_v16, %v1211_v18  ;;  %v1191_v58 = vrot.slane %v10815_v6, 2  ;;  %v12970_v6 = vld [vmem:[%s11951_s29 + $0x150] sm:$0xff] }
 0x10e   : > { %3070 = vrot.lane.b32.xlu1 %v11031_v47, %s11881_s30  ;;  %1467 = vmatprep.subr.bf16.mxu1 %v12914_v32  ;;  %17651 = vst [vmem:[#allocation57_spill] sm:$0xff] %v12950_v43  ;;  %v10818_v32 = vcombine.high %v350_v2, %v12394_v57  ;;  %v11019_v4 = vcombine.low %v2639_v28, %v2643_v59  ;;  %v2635_v28 = vld [vmem:[%s11951_s29 + $0x120] sm:$0xff] }
 0x10f   : > { %1429 = vmatpush1.bf16.msra.mxu0 %v12924_v50  ;;  %v12945_v42 = vpop.permute.xlu0 %1900  ;;  %v1196_v12 = vsel %vm1178_vm4, %v1194_v9, %v12891_v19  ;;  %v11022_v24 = vcombine.high %v2640_v40, %v2644_v17  ;;  %v12967_v18 = vsel %vm1178_vm4, %v1215_v3, %v1231_v30  ;;  %v12983_v17 = vsel %vm1178_vm4, %v12950_v43, %v1217_v23  ;;  %v2631_v40 = vld [vmem:[%s11951_s29 + $0x100] sm:$0xff] }
 0x110   : > { %v12952_v47 = vpop.permute.xlu1 %1902  ;;  %1430 = vmatprep.subr.bf16.mxu0 %v12934_v61  ;;  %17652 = vst [vmem:[#allocation58_spill] sm:$0xff] %v12967_v18  ;;  %v12973_v61 = vld [vmem:[%s11951_s29 + $0x170] sm:$0xff]  ;;  %v1193_v30 = vsel %vm1178_vm4, %v1191_v58, %v12926_v16  ;;  %v11012_v23 = vcombine.high %v2631_v40, %v2635_v28 }
 0x111   : > { %3048 = vrot.lane.b32.xlu0 %v11020_v56, %s11881_s30  ;;  %1468 = vmatpush1.bf16.msra.mxu1 %v12941_v45  ;;  %v12975_v56 = vrot.slane %v10825_v48, 2  ;;  %v10817_v45 = vcombine.low %v350_v2, %v12394_v57  ;;  %v11023_v57 = vcombine.low %v12970_v6, %v12973_v61  ;;  %v2632_v48 = vld [vmem:[%s11951_s29 + $0x108] sm:$0xff] }
 0x112   : > { %3050 = vrot.lane.b32.xlu1 %v11021_v21, %s11881_s30  ;;  %1469 = vmatprep.subr.bf16.mxu1 %v12948_v20  ;;  %v1200_v21 = vrot.slane %v10818_v32, 2  ;;  %v2007_v32 = vsel %vm739_vm0, %v12518_v11, %v12520_v31 }
 0x113   : > { %1431 = vmatpush1.bf16.msra.mxu0 %v12957_v55  ;;  %v12979_v9 = vpop.permute.xlu0 %1880  ;;  %v12999_v2 = vsel %vm1178_vm4, %v12975_v56, %v1215_v3  ;;  %v1197_v58 = vrot.slane %v10817_v45, 2  ;;  %v11011_v3 = vcombine.low %v2631_v40, %v2635_v28  ;;  %v2009_v40 = vsel %vm739_vm0, %v12557_v5, %v12559_v60 }
 0x114   : > { %v12987_v59 = vpop.permute.xlu1 %1882  ;;  %1432 = vmatprep.subr.bf16.mxu0 %v1196_v12  ;;  %v2636_v12 = vld [vmem:[%s11951_s29 + $0x128] sm:$0xff]  ;;  %v1202_v45 = vsel %vm1178_vm4, %v1200_v21, %v12950_v43  ;;  %v2001_v21 = vsel %vm739_vm0, %v12603_v34, %v12652_v10  ;;  %v2010_v28 = vsel %vm739_vm0, %v12559_v60, %v12601_v25  ;;  %v1994_v60 = vsel %vm739_vm0, %v12742_v62, %v12751_v37 }
 0x115   : > { %3046 = vrot.lane.b32.xlu0 %v11019_v4, %s11881_s30  ;;  %1470 = vmatpush1.bf16.msra.mxu1 %v12967_v18  ;;  %v11013_v11 = vcombine.low %v2632_v48, %v2636_v12 }
 0x116   : > { %3052 = vrot.lane.b32.xlu1 %v11022_v24, %s11881_s30  ;;  %1471 = vmatprep.subr.bf16.mxu1 %v12983_v17  ;;  %v2008_v24 = vsel %vm739_vm0, %v12520_v31, %v12557_v5  ;;  %v2076_v31 = vsel %vm2074_vm6, %v2007_v32, 0  ;;  %v2000_v32 = vsel %vm739_vm0, %v12654_v0, %v12603_v34  ;;  %v2623_v5 = vld [vmem:[%s11951_s29 + $0xc0] sm:$0xff]  ;;  %v2082_v34 = vsel %vm2074_vm6, %v2009_v40, 0 }
 0x117   : > { %1433 = vmatpush1.bf16.msra.mxu0 %v1193_v30  ;;  %v13006_v4 = vpop.permute.xlu0 %1878  ;;  %v1199_v30 = vsel %vm1178_vm4, %v1197_v58, %v12975_v56  ;;  %v11014_v58 = vcombine.high %v2632_v48, %v2636_v12  ;;  %v2624_v48 = vld [vmem:[%s11951_s29 + $0xc8] sm:$0xff]  ;;  %v2003_v0 = vsel %vm739_vm0, %v12694_v35, %v12696_v53  ;;  %v1987_v40 = vsel %vm739_vm0, %v12869_v54, %v12910_v33 }
 0x118   : > { %v13011_v20 = vpop.permute.xlu1 %1884  ;;  %10931 = vmatprep.subr.msk.bf16.mxu0 %vm2074_vm6, %v2008_v24  ;;  %v2628_v12 = vld [vmem:[%s11951_s29 + $0xe8] sm:$0xff] }
 0x119   : > { %3054 = vrot.lane.b32.xlu0 %v11023_v57, %s11881_s30  ;;  %1472 = vmatpush1.bf16.msra.mxu1 %v12999_v2  ;;  %v13030_v57 = vld [vmem:[%s11951_s29 + $0x110] sm:$0xff] }
 0x11a   : > { %3032 = vrot.lane.b32.xlu1 %v11012_v23, %s11881_s30  ;;  %10864 = vmatmul.mubr.msk.bf16.vlgmr.msra.gmra.mxu0 %vm1307_vm5, %v12747_v1  ;;  %v13033_v23 = vld [vmem:[%s11951_s29 + $0x130] sm:$0xff] }
 0x11b   : > { %2100 = vmatpush1.bf16.msra.mxu0 %v2076_v31  ;;  %v13024_v24 = vpop.permute.xlu0 %1886  ;;  %1473 = vmatprep.subr.bf16.mxu1 %v1202_v45  ;;  %v11015_v45 = vcombine.low %v13030_v57, %v13033_v23  ;;  %v2627_v31 = vld [vmem:[%s11951_s29 + $0xe0] sm:$0xff] }
 0x11c   : > { %v13035_v18 = vpop.permute.xlu1 %1864  ;;  %2101 = vmatprep.subr.bf16.mxu0 %v2001_v21  ;;  %2131 = vmatprep.mubr.bf16.mxu0 %v17595_v27  ;;  %v1993_v21 = vsel %vm739_vm0, %v12803_v14, %v12742_v62  ;;  %v2002_v14 = vsel %vm739_vm0, %v12652_v10, %v12694_v35  ;;  %v1996_v62 = vsel %vm739_vm0, %v12809_v52, %v12854_v44 }
 0x11d   : > { %3034 = vrot.lane.b32.xlu0 %v11013_v11, %s11881_s30  ;;  %1474 = vmatpush1.bf16.msra.mxu1 %v1199_v30  ;;  %v1980_v35 = vsel %vm739_vm0, %v12979_v9, %v12987_v59 }
 0x11e   : > { %3030 = vrot.lane.b32.xlu1 %v11011_v3, %s11881_s30  ;;  %10933 = vmatprep.subr.msk.bf16.mxu1 %vm2074_vm6, %v2010_v28  ;;  %v11004_v3 = vcombine.high %v2623_v5, %v2627_v31  ;;  %v11005_v28 = vcombine.low %v2624_v48, %v2628_v12 }
 0x11f   : > { %2102 = vmatpush1.bf16.msra.mxu0 %v2000_v32  ;;  %v13054_v11 = vpop.permute.xlu0 %1866  ;;  %v11003_v32 = vcombine.low %v2623_v5, %v2627_v31  ;;  %v2615_v5 = vld [vmem:[%s11951_s29 + $0x80] sm:$0xff] }
 0x120   : > { %v1863_v30 = vpop.permute.xlu1 %1862  ;;  %2103 = vmatprep.subr.bf16.mxu0 %v1994_v60  ;;  %10866 = vmatmul.mubr.msk.bf16.vlgmr.msra.gmra.mxu1 %vm1307_vm5, %v12747_v1  ;;  %v11006_v60 = vcombine.high %v2624_v48, %v2628_v12  ;;  %v2619_v31 = vld [vmem:[%s11951_s29 + $0xa0] sm:$0xff]  ;;  %v1979_v12 = vsel %vm739_vm0, %v13006_v4, %v12979_v9  ;;  %v1982_v9 = vsel %vm739_vm0, %v13011_v20, %v13024_v24  ;;  %vm5882_vm5 = vcmask 1031168  }
 0x121   : > { %3036 = vrot.lane.b32.xlu0 %v11014_v58, %s11881_s30  ;;  %2141 = vmatpush1.bf16.msra.mxu1 %v2082_v34  ;;  %v13092_v34 = vld [vmem:[%s11951_s29 + $0xd0] sm:$0xff] }
 0x122   : > { %3038 = vrot.lane.b32.xlu1 %v11015_v45, %s11881_s30  ;;  %2142 = vmatprep.subr.bf16.mxu1 %v2003_v0  ;;  %v1986_v45 = vsel %vm739_vm0, %v12920_v41, %v12869_v54  ;;  %v13095_v0 = vld [vmem:[%s11951_s29 + $0xf0] sm:$0xff]  ;;  %v1995_v54 = vsel %vm739_vm0, %v12751_v37, %v12809_v52  ;;  %v1989_v41 = vsel %vm739_vm0, %v12945_v42, %v12952_v47  ;;  %v2620_v52 = vld [vmem:[%s11951_s29 + $0xa8] sm:$0xff] }
 0x123   : > { %2104 = vmatpush1.bf16.msra.mxu0 %v1993_v21  ;;  %v13072_v1 = vpop.permute.xlu0 %1868  ;;  %2172 = vmatprep.mubr.bf16.mxu1 %v17595_v27  ;;  %v11007_v48 = vcombine.low %v13092_v34, %v13095_v0  ;;  %v10996_v21 = vcombine.high %v2615_v5, %v2619_v31 }
 0x124   : > { %v13078_v58 = vpop.permute.xlu1 %1870  ;;  %2105 = vmatprep.subr.bf16.mxu0 %v1987_v40  ;;  %v1973_v40 = vsel %vm739_vm0, %v13035_v18, %v13054_v11 }
 0x125   : > { %3016 = vrot.lane.b32.xlu0 %v11004_v3, %s11881_s30  ;;  %2143 = vmatpush1.bf16.msra.mxu1 %v2002_v14 }
 0x126   : > { %3018 = vrot.lane.b32.xlu1 %v11005_v28, %s11881_s30  ;;  %2144 = vmatprep.subr.bf16.mxu1 %v1996_v62  ;;  %v2616_v28 = vld [vmem:[%s11951_s29 + $0x88] sm:$0xff]  ;;  %v1988_v62 = vsel %vm739_vm0, %v12910_v33, %v12945_v42 }
 0x127   : > { %2106 = vmatpush1.bf16.msra.mxu0 %v1986_v45  ;;  %v1849_v10 = vpop.permute.xlu0 %1848  ;;  %v10997_v4 = vcombine.low %v2616_v28, %v2620_v52  ;;  %v10995_v45 = vcombine.low %v2615_v5, %v2619_v31  ;;  %v10999_v31 = vcombine.low %v12620_v39, %v12623_v22 }
 0x128   : > { %v13102_v3 = vpop.permute.xlu1 %1850  ;;  %2107 = vmatprep.subr.bf16.mxu0 %v1980_v35  ;;  %v10998_v35 = vcombine.high %v2616_v28, %v2620_v52 }
 0x129   : > { %3014 = vrot.lane.b32.xlu0 %v11003_v32, %s11881_s30  ;;  %2145 = vmatpush1.bf16.msra.mxu1 %v1995_v54  ;;  %v1972_v32 = vsel %vm739_vm0, %v1863_v30, %v13035_v18  ;;  %v1966_v33 = vsel %vm739_vm0, %v1849_v10, %v13102_v3  ;;  %v1981_v18 = vsel %vm739_vm0, %v12987_v59, %v13011_v20  ;;  %v2607_v54 = vld [vmem:[%s11951_s29 + $0x40] sm:$0xff]  ;;  %v2608_v59 = vld [vmem:[%s11951_s29 + $0x48] sm:$0xff] }
 0x12a   : > { %3020 = vrot.lane.b32.xlu1 %v11006_v60, %s11881_s30  ;;  %2146 = vmatprep.subr.bf16.mxu1 %v1989_v41  ;;  %v1975_v30 = vsel %vm739_vm0, %v13072_v1, %v13078_v58  ;;  %v2611_v41 = vld [vmem:[%s11951_s29 + $0x60] sm:$0xff] }
 0x12b   : > { %2108 = vmatpush1.bf16.msra.mxu0 %v1979_v12  ;;  %v1847_v37 = vpop.permute.xlu0 %1846  ;;  %v10988_v28 = vcombine.high %v2607_v54, %v2611_v41 }
 0x12c   : > { %v1853_v14 = vpop.permute.xlu1 %1852  ;;  %2109 = vmatprep.subr.bf16.mxu0 %v1973_v40  ;;  %v1965_v5 = vsel %vm739_vm0, %v1847_v37, %v1849_v10  ;;  %v1974_v10 = vsel %vm739_vm0, %v13054_v11, %v13072_v1 }
 0x12d   : > { %3022 = vrot.lane.b32.xlu0 %v11007_v48, %s11881_s30  ;;  %2147 = vmatpush1.bf16.msra.mxu1 %v1988_v62  ;;  %v2612_v48 = vld [vmem:[%s11951_s29 + $0x68] sm:$0xff]  ;;  %v1967_v11 = vsel %vm739_vm0, %v13102_v3, %v1853_v14 }
 0x12e   : > { %3000 = vrot.lane.b32.xlu1 %v10996_v21, %s11881_s30  ;;  %2148 = vmatprep.subr.bf16.mxu1 %v1982_v9  ;;  %v10989_v37 = vcombine.low %v2608_v59, %v2612_v48 }
 0x12f   : > { %2110 = vmatpush1.bf16.msra.mxu0 %v1972_v32  ;;  %v13132_v60 = vpop.permute.xlu0 %1854  ;;  %v10990_v32 = vcombine.high %v2608_v59, %v2612_v48 }
 0x130   : > { %v1833_v42 = vpop.permute.xlu1 %1832  ;;  %2111 = vmatprep.subr.bf16.mxu0 %v1966_v33  ;;  %v1968_v52 = vsel %vm739_vm0, %v1853_v14, %v13132_v60  ;;  %v13172_v33 = vld [vmem:[%s11951_s29 + $0x70] sm:$0xff] }
 0x131   : > { %3002 = vrot.lane.b32.xlu0 %v10997_v4, %s11881_s30  ;;  %2149 = vmatpush1.bf16.msra.mxu1 %v1981_v18  ;;  %v10987_v4 = vcombine.low %v2607_v54, %v2611_v41  ;;  %v2599_v18 = vld [vmem:[%s11951_s29] sm:$0xff]  ;;  %v2600_v54 = vld [vmem:[%s11951_s29 + $0x8] sm:$0xff] }
 0x132   : > { %2998 = vrot.lane.b32.xlu1 %v10995_v45, %s11881_s30  ;;  %2150 = vmatprep.subr.bf16.mxu1 %v1975_v30  ;;  %v13169_v45 = vld [vmem:[%s11951_s29 + $0x50] sm:$0xff]  ;;  %v2603_v30 = vld [vmem:[%s11951_s29 + $0x20] sm:$0xff]  ;;  %v2604_v41 = vld [vmem:[%s11951_s29 + $0x28] sm:$0xff] }
 0x133   : > { %2112 = vmatpush1.bf16.msra.mxu0 %v1965_v5  ;;  %v1835_v20 = vpop.permute.xlu0 %1834  ;;  %v10991_v5 = vcombine.low %v13169_v45, %v13172_v33 }
 0x134   : > { %v1831_v12 = vpop.permute.xlu1 %1830  ;;  %v1959_v21 = vsel %vm739_vm0, %v1833_v42, %v1835_v20 }
 0x135   : > { %v1958_v40 = vsel %vm739_vm0, %v1831_v12, %v1833_v42  ;;  %3004 = vrot.lane.b32.xlu0 %v10998_v35, %s11881_s30  ;;  %2113 = vmatprep.subr.bf16.mxu0 %v1959_v21  ;;  %v10981_v21 = vcombine.low %v2600_v54, %v2604_v41 }
 0x136   : > { %3006 = vrot.lane.b32.xlu1 %v10999_v31, %s11881_s30  ;;  %2151 = vmatpush1.bf16.msra.mxu1 %v1974_v10  ;;  %v10980_v31 = vcombine.high %v2599_v18, %v2603_v30  ;;  %v10979_v10 = vcombine.low %v2599_v18, %v2603_v30 }
 0x137   : > { %2114 = vmatpush1.bf16.msra.mxu0 %v1958_v40  ;;  %2152 = vmatprep.subr.bf16.mxu1 %v1968_v52  ;;  %v1837_v62 = vpop.permute.xlu0 %1836  ;;  %v13200_v52 = vld [vmem:[%s11951_s29 + $0x30] sm:$0xff] }
 0x138   : > { %v13160_v9 = vpop.permute.xlu1 %1838  ;;  %v1960_v3 = vsel %vm739_vm0, %v1835_v20, %v1837_v62 }
 0x139   : > { %2984 = vrot.lane.b32.xlu0 %v10988_v28, %s11881_s30  ;;  %v1961_v1 = vsel %vm739_vm0, %v1837_v62, %v13160_v9  ;;  %v13197_v28 = vld [vmem:[%s11951_s29 + $0x10] sm:$0xff] }
 0x13a   : > { %2986 = vrot.lane.b32.xlu1 %v10989_v37, %s11881_s30  ;;  %2153 = vmatpush1.bf16.msra.mxu1 %v1967_v11 }
 0x13b   : > { %2154 = vmatprep.subr.bf16.mxu1 %v1961_v1  ;;  %v1953_v42 = vpop.permute.xlu0 %1952  ;;  %v10982_v1 = vcombine.high %v2600_v54, %v2604_v41 }
 0x13c   : > { %v1955_v35 = vpop.permute.xlu1 %1954  ;;  %v2011_v59 = vsel %vm739_vm0, %v12601_v25, %v1953_v42 }
 0x13d   : > { %2982 = vrot.lane.b32.xlu0 %v10987_v4, %s11881_s30  ;;  %v2012_v14 = vsel %vm739_vm0, %v1953_v42, %v1955_v35  ;;  %v2088_v40 = vsel %vm2074_vm6, %v2011_v59, 0  ;;  %v10983_v4 = vcombine.low %v13197_v28, %v13200_v52  ;;  %v11046_v59 = vcombine.high %v12580_v38, %v12533_v51 }
 0x13e   : > { %2988 = vrot.lane.b32.xlu1 %v10990_v32, %s11881_s30  ;;  %2155 = vmatpush1.bf16.msra.mxu1 %v1960_v3  ;;  %v11045_v3 = vcombine.low %v12580_v38, %v12533_v51  ;;  %v2658_v38 = vld [vmem:[%s11951_s29 + $0x1d8] sm:$0xff] }
 0x13f   : > { %10935 = vmatprep.subr.msk.bf16.mxu0 %vm2074_vm6, %v2012_v14  ;;  %v1581_v20 = vpop.permute.xlu0 %1580 }
 0x140   : > { %v1583_v48 = vpop.permute.xlu1 %1582 }
 0x141   : > { %v13187_v12 = vsel %vm1584_vm7, %v1581_v20, %v1583_v48  ;;  %2990 = vrot.lane.b32.xlu0 %v10991_v5, %s11881_s30  ;;  %vm5905_vm7 = vcmask 195584  }
 0x142   : > { %2968 = vrot.lane.b32.xlu1 %v10980_v31, %s11881_s30  ;;  %10932 = vmatmul.mubr.msk.bf16.vlgmr.msra.gmra.mxu0 %vm2070_vm8, %v13187_v12 }
 0x143   : > { %10934 = vmatmul.mubr.msk.bf16.vlgmr.msra.gmra.mxu1 %vm2070_vm8, %v13187_v12  ;;  %2182 = vmatpush1.bf16.msra.mxu0 %v2088_v40  ;;  %v1957_v25 = vpop.permute.xlu0 %1956 }
 0x144   : > { %v2013_v37 = vsel %vm739_vm0, %v1955_v35, %v1957_v25  ;;  %v1937_v62 = vpop.permute.xlu1 %1936  ;;  %10937 = vmatprep.subr.msk.bf16.mxu1 %vm2074_vm6, %v1957_v25  ;;  %2213 = vmatprep.mubr.bf16.mxu0 %v17595_v27  ;;  %v11044_v35 = vcombine.high %v12515_v49, %v12481_v29 }
 0x145   : > { %2970 = vrot.lane.b32.xlu0 %v10981_v21, %s11881_s30  ;;  %v2094_v11 = vsel %vm2074_vm6, %v2013_v37, 0  ;;  %2254 = vmatprep.mubr.bf16.mxu1 %v17595_v27  ;;  %v2004_v30 = vsel %vm739_vm0, %v12696_v53, %v1937_v62  ;;  %v11043_v53 = vcombine.low %v12515_v49, %v12481_v29  ;;  %v11047_v49 = vcombine.low %v12800_v46, %v12737_v63 }
 0x146   : > { %2966 = vrot.lane.b32.xlu1 %v10979_v10, %s11881_s30  ;;  %2223 = vmatpush1.bf16.msra.mxu1 %v2094_v11  ;;  %v11041_v63 = vcombine.low %v2658_v38, %v12881_v7  ;;  %v17653_v11 = vld [vmem:[#allocation50_spill] sm:$0xff] }
 0x147   : > { %v1939_v32 = vpop.permute.xlu0 %1938 }
 0x148   : > { %v1921_v42 = vpop.permute.xlu1 %1920  ;;  %v2005_v18 = vsel %vm739_vm0, %v1937_v62, %v1939_v32 }
 0x149   : > { %2972 = vrot.lane.b32.xlu0 %v10982_v1, %s11881_s30  ;;  %2183 = vmatprep.subr.bf16.mxu0 %v2005_v18  ;;  %v1997_v41 = vsel %vm739_vm0, %v12854_v44, %v1921_v42  ;;  %v11766_v44 = vld [vmem:[%s11951_s29 + $0x1d0] sm:$0xff]  ;;  %v11032_v1 = vcombine.high %v17653_v11, %v12865_v26  ;;  %v11042_v26 = vcombine.high %v2658_v38, %v12881_v7 }
 0x14a   : > { %2974 = vrot.lane.b32.xlu1 %v10983_v4, %s11881_s30  ;;  %2184 = vmatpush1.bf16.msra.mxu0 %v2004_v30  ;;  %v11040_v51 = vcombine.high %v11766_v44, %v12734_v36  ;;  %v2650_v4 = vld [vmem:[%s11951_s29 + $0x198] sm:$0xff]  ;;  %v11024_v7 = vcombine.high %v12970_v6, %v12973_v61  ;;  %v11769_v44 = vld [vmem:[%s11951_s29 + $0x2a0] sm:$0xff] }
 0x14b   : > { %v1923_v14 = vpop.permute.xlu0 %1922 }
 0x14c   : > { %v1941_v5 = vpop.permute.xlu1 %1940  ;;  %v1998_v31 = vsel %vm739_vm0, %v1921_v42, %v1923_v14 }
 0x14d   : > { %2224 = vmatprep.subr.bf16.mxu1 %v1941_v5  ;;  %3096 = vrot.lane.b32.xlu0 %v11044_v35, %s11881_s30  ;;  %v2006_v54 = vsel %vm739_vm0, %v1939_v32, %v1941_v5  ;;  %v2654_v32 = vld [vmem:[%s11951_s29 + $0x1b8] sm:$0xff]  ;;  %v17654_v35 = vld [vmem:[#allocation6_spill] sm:$0xff] }
 0x14e   : > { %3098 = vrot.lane.b32.xlu1 %v11045_v3, %s11881_s30  ;;  %2185 = vmatprep.subr.bf16.mxu0 %v1998_v31  ;;  %v13261_v5 = vld [vmem:[%s11951_s29 + $0x158] sm:$0xff]  ;;  %v11034_v6 = vcombine.high %v2650_v4, %v2654_v32 }
 0x14f   : > { %2225 = vmatpush1.bf16.msra.mxu1 %v2006_v54  ;;  %2186 = vmatpush1.bf16.msra.mxu0 %v1997_v41  ;;  %v1905_v20 = vpop.permute.xlu0 %1904  ;;  %v13264_v31 = vld [vmem:[%s11951_s29 + $0x178] sm:$0xff] }
 0x150   : > { %v1907_v48 = vpop.permute.xlu1 %1906  ;;  %v1990_v21 = vsel %vm739_vm0, %v12952_v47, %v1905_v20 }
 0x151   : > { %3094 = vrot.lane.b32.xlu0 %v11043_v53, %s11881_s30  ;;  %v1991_v29 = vsel %vm739_vm0, %v1905_v20, %v1907_v48  ;;  %v11025_v53 = vcombine.low %v13261_v5, %v13264_v31 }
 0x152   : > { %3100 = vrot.lane.b32.xlu1 %v11046_v59, %s11881_s30  ;;  %2187 = vmatprep.subr.bf16.mxu0 %v1991_v29 }
 0x153   : > { %2188 = vmatpush1.bf16.msra.mxu0 %v1990_v21  ;;  %v1925_v40 = vpop.permute.xlu0 %1924  ;;  %v11768_v21 = vld [vmem:[%s11951_s29 + $0x2c0] sm:$0xff] }
 0x154   : > { %v1889_v10 = vpop.permute.xlu1 %1888  ;;  %2226 = vmatprep.subr.bf16.mxu1 %v1925_v40  ;;  %v1999_v47 = vsel %vm739_vm0, %v1923_v14, %v1925_v40  ;;  %v11033_v14 = vcombine.low %v2650_v4, %v2654_v32  ;;  %v11026_v32 = vcombine.high %v13261_v5, %v13264_v31 }
 0x155   : > { %3102 = vrot.lane.b32.xlu0 %v11047_v49, %s11881_s30  ;;  %2227 = vmatpush1.bf16.msra.mxu1 %v1999_v47  ;;  %v1983_v62 = vsel %vm739_vm0, %v13024_v24, %v1889_v10  ;;  %v13286_v47 = vld [vmem:[%s11951_s29 + $0x118] sm:$0xff] }
 0x156   : > { %3088 = vrot.lane.b32.xlu1 %v11040_v51, %s11881_s30  ;;  %v11770_v51 = vld [vmem:[%s11951_s29 + $0x280] sm:$0xff] }
 0x157   : > { %v1891_v46 = vpop.permute.xlu0 %1890  ;;  %v10956_v38 = vcombine.high %v11770_v51, %v11769_v44 }
 0x158   : > { %v1909_v25 = vpop.permute.xlu1 %1908  ;;  %v1984_v36 = vsel %vm739_vm0, %v1889_v10, %v1891_v46  ;;  %v11016_v10 = vcombine.high %v13030_v57, %v13033_v23  ;;  %v10955_v57 = vcombine.low %v11770_v51, %v11769_v44 }
 0x159   : > { %2228 = vmatprep.subr.bf16.mxu1 %v1909_v25  ;;  %3090 = vrot.lane.b32.xlu0 %v11041_v63, %s11881_s30  ;;  %v1992_v37 = vsel %vm739_vm0, %v1907_v48, %v1909_v25  ;;  %v11767_v48 = vld [vmem:[%s11951_s29 + $0x2e0] sm:$0xff]  ;;  %v13289_v63 = vld [vmem:[%s11951_s29 + $0x138] sm:$0xff]  ;;  %v2333_v11 = vrot.slane %v10956_v38, 2 }
 0x15a   : > { %2671 = vrot.lane.b32.xlu1 %v12164_v8, %s11885_s14  ;;  %2189 = vmatprep.subr.bf16.mxu0 %v1984_v36  ;;  %v10964_v29 = vcombine.high %v11768_v21, %v11767_v48  ;;  %v10963_v49 = vcombine.low %v11768_v21, %v11767_v48  ;;  %v11008_v21 = vcombine.high %v13092_v34, %v13095_v0 }
 0x15b   : > { %2229 = vmatpush1.bf16.msra.mxu1 %v1992_v37  ;;  %2190 = vmatpush1.bf16.msra.mxu0 %v1983_v62  ;;  %v1873_v42 = vpop.permute.xlu0 %1872  ;;  %v11017_v62 = vcombine.low %v13286_v47, %v13289_v63 }
 0x15c   : > { %v1875_v18 = vpop.permute.xlu1 %1874  ;;  %v1976_v30 = vsel %vm739_vm0, %v13078_v58, %v1873_v42  ;;  %v13293_v37 = vrot.slane %v10964_v29, 2 }
 0x15d   : > { %2673 = vrot.lane.b32.xlu0 %v17654_v35, %s11885_s14  ;;  %v1977_v3 = vsel %vm739_vm0, %v1873_v42, %v1875_v18  ;;  %v11773_v42 = vld [vmem:[%s11951_s29 + $0x2e8] sm:$0xff]  ;;  %s11891_s14 = smov 1  }
 0x15e   : > { %3072 = vrot.lane.b32.xlu1 %v11032_v1, %s11881_s30  ;;  %2191 = vmatprep.subr.bf16.mxu0 %v1977_v3  ;;  %17655 = vst [vmem:[#allocation50_spill] sm:$0xff] %v13293_v37  ;;  %v11771_v1 = vld [vmem:[%s11951_s29 + $0x260] sm:$0xff]  ;;  %v13329_v29 = vsel %vm1178_vm4, %v2333_v11, %v13293_v37 }
 0x15f   : > { %2192 = vmatpush1.bf16.msra.mxu0 %v1976_v30  ;;  %v1893_v24 = vpop.permute.xlu0 %1892  ;;  %17657 = vst [vmem:[#allocation60_spill] sm:$0xff] %v13329_v29 }
 0x160   : > { %v1857_v54 = vpop.permute.xlu1 %1856  ;;  %2230 = vmatprep.subr.bf16.mxu1 %v1893_v24  ;;  %v1985_v58 = vsel %vm739_vm0, %v1891_v46, %v1893_v24  ;;  %v13312_v24 = vld [vmem:[%s11951_s29 + $0xd8] sm:$0xff] }
 0x161   : > { %3074 = vrot.lane.b32.xlu0 %v11033_v14, %s11881_s30  ;;  %2231 = vmatpush1.bf16.msra.mxu1 %v1985_v58  ;;  %v1969_v40 = vsel %vm739_vm0, %v13132_v60, %v1857_v54  ;;  %v13295_v60 = vrot.slane %v10963_v49, 2  ;;  %v13309_v14 = vld [vmem:[%s11951_s29 + $0x200] sm:$0xcc]  ;;  %v11775_v58 = vld [vmem:[%s11951_s29 + $0x2a8] sm:$0xff] }
 0x162   : > { %3092 = vrot.lane.b32.xlu1 %v11042_v26, %s11881_s30  ;;  %v11777_v49 = vld [vmem:[%s11951_s29 + $0x220] sm:$0xff] }
 0x163   : > { %v1859_v41 = vpop.permute.xlu0 %1858  ;;  %17656 = vst [vmem:[#allocation59_spill] sm:$0xff] %v13295_v60  ;;  %v2392_v31 = vsel %vm1178_vm4, %v13295_v60, 0 }
 0x164   : > { %v1877_v59 = vpop.permute.xlu1 %1876  ;;  %v1970_v20 = vsel %vm739_vm0, %v1857_v54, %v1859_v41  ;;  %v13315_v54 = vld [vmem:[%s11951_s29 + $0xf8] sm:$0xff] }
 0x165   : > { %2232 = vmatprep.subr.bf16.mxu1 %v1877_v59  ;;  %3056 = vrot.lane.b32.xlu0 %v11024_v7, %s11881_s30  ;;  %v1978_v61 = vsel %vm739_vm0, %v1875_v18, %v1877_v59  ;;  %v11774_v18 = vld [vmem:[%s11951_s29 + $0x2c8] sm:$0xff] }
 0x166   : > { %3058 = vrot.lane.b32.xlu1 %v11025_v53, %s11881_s30  ;;  %2193 = vmatprep.subr.bf16.mxu0 %v1970_v20  ;;  %v10966_v30 = vcombine.high %v11774_v18, %v11773_v42  ;;  %v10965_v3 = vcombine.low %v11774_v18, %v11773_v42  ;;  %v11776_v7 = vld [vmem:[%s11951_s29 + $0x288] sm:$0xff]  ;;  %v2331_v20 = vrot.slane %v10955_v57, 2  ;;  %v13374_v18 = vld [vmem:[%s11951_s29 + $0x98] sm:$0xff] }
 0x167   : > { %2233 = vmatpush1.bf16.msra.mxu1 %v1978_v61  ;;  %2194 = vmatpush1.bf16.msra.mxu0 %v1969_v40  ;;  %v1841_v46 = vpop.permute.xlu0 %1840  ;;  %v10958_v53 = vcombine.high %v11776_v7, %v11775_v58  ;;  %v10940_v61 = vcombine.high %v13309_v14, %v11777_v49  ;;  %v10957_v0 = vcombine.low %v11776_v7, %v11775_v58  ;;  %v11778_v40 = vld [vmem:[%s11951_s29 + $0x268] sm:$0xff]  ;;  %v11781_v58 = vld [vmem:[%s11951_s29 + $0x2d0] sm:$0xff] }
 0x168   : > { %v1843_v25 = vpop.permute.xlu1 %1842  ;;  %v1962_v36 = vsel %vm739_vm0, %v13160_v9, %v1841_v46  ;;  %v11772_v9 = vld [vmem:[%s11951_s29 + $0x240] sm:$0xff]  ;;  %v13340_v44 = vrot.slane %v10966_v30, 2  ;;  %v13342_v34 = vrot.slane %v10965_v3, 2  ;;  %v13377_v30 = vld [vmem:[%s11951_s29 + $0xb8] sm:$0xff] }
 0x169   : > { %3076 = vrot.lane.b32.xlu0 %v11034_v6, %s11881_s30  ;;  %v1963_v23 = vsel %vm739_vm0, %v1841_v46, %v1843_v25  ;;  %v10948_v4 = vcombine.high %v11772_v9, %v11771_v1  ;;  %v10947_v48 = vcombine.low %v11772_v9, %v11771_v1  ;;  %v11009_v6 = vcombine.low %v13312_v24, %v13315_v54 }
 0x16a   : > { %3040 = vrot.lane.b32.xlu1 %v11016_v10, %s11881_s30  ;;  %2195 = vmatprep.subr.bf16.mxu0 %v1963_v23  ;;  %17659 = vst [vmem:[#allocation62_spill] sm:$0xff] %v13340_v44  ;;  %17660 = vst [vmem:[#allocation63_spill] sm:$0xff] %v13342_v34  ;;  %v2337_v38 = vrot.slane %v10958_v53, 2  ;;  %v11779_v10 = vld [vmem:[%s11951_s29 + $0x248] sm:$0xff]  ;;  %v13354_v23 = vsel %vm1178_vm4, %v2331_v20, %v13295_v60  ;;  %v10939_v1 = vcombine.low %v13309_v14, %v11777_v49  ;;  %v3664_v60 = vld [vmem:[%s11951_s29 + $0xa0] sm:$0xff] }
 0x16b   : > { %2196 = vmatpush1.bf16.msra.mxu0 %v1962_v36  ;;  %v1861_v26 = vpop.permute.xlu0 %1860  ;;  %v10950_v46 = vcombine.high %v11779_v10, %v11778_v40  ;;  %17661 = vst [vmem:[#allocation64_spill] sm:$0xff] %v13354_v23  ;;  %v2398_v42 = vsel %vm1178_vm4, %v13342_v34, 0  ;;  %v11001_v49 = vcombine.low %v13374_v18, %v13377_v30 }
 0x16c   : > { %v1845_v59 = vpop.permute.xlu1 %1844  ;;  %2234 = vmatprep.subr.bf16.mxu1 %v1861_v26  ;;  %v1971_v5 = vsel %vm739_vm0, %v1859_v41, %v1861_v26  ;;  %10971 = vmatprep.subr.msk.bf16.mxu0 %vm1178_vm4, %v13293_v37  ;;  %v13331_v41 = vrot.slane %v10948_v4, 2  ;;  %v2310_v4 = vrot.slane %v10940_v61, 2  ;;  %v13384_v3 = vsel %vm1178_vm4, %v2337_v38, %v13340_v44  ;;  %v11780_v26 = vld [vmem:[%s11951_s29 + $0x2f0] sm:$0xff] }
 0x16d   : > { %3042 = vrot.lane.b32.xlu0 %v11017_v62, %s11881_s30  ;;  %2235 = vmatpush1.bf16.msra.mxu1 %v1971_v5  ;;  %v1964_v57 = vsel %vm739_vm0, %v1843_v25, %v1845_v59  ;;  %v13356_v62 = vrot.slane %v10947_v48, 2  ;;  %v11018_v25 = vcombine.high %v13286_v47, %v13289_v63  ;;  %v2335_v47 = vrot.slane %v10957_v0, 2  ;;  %17664 = vst [vmem:[#allocation67_spill] sm:$0xff] %v13384_v3  ;;  %v11782_v48 = vld [vmem:[%s11951_s29 + $0x228] sm:$0xff]  ;;  %v11783_v61 = vld [vmem:[%s11951_s29 + $0x2b0] sm:$0xff] }
 0x16e   : > { %17658 = vst [vmem:[#allocation61_spill] sm:$0xff] %v13331_v41  ;;  %3060 = vrot.lane.b32.xlu1 %v11026_v32, %s11881_s30  ;;  %10936 = vmatmul.mubr.msk.bf16.vlgmr.msra.gmra.mxu0 %vm2070_vm8, %v13187_v12  ;;  %v13365_v9 = vsel %vm1178_vm4, %v13331_v41, %v2333_v11  ;;  %v1517_v32 = vld [vmem:[%s11951_s29 + $0x208] sm:$0xcc]  ;;  %v10949_v63 = vcombine.low %v11779_v10, %v11778_v40  ;;  %v13386_v14 = vrot.slane %v10950_v46, 2  ;;  %v2307_v5 = vrot.slane %v10939_v1, 2  ;;  %v13419_v46 = vld [vmem:[%s11951_s29 + $0x58] sm:$0xff] }
 0x16f   : > { %2424 = vmatpush1.bf16.msra.mxu0 %v2392_v31  ;;  %v13344_v51 = vpop.permute.xlu0 %3080  ;;  %2236 = vmatprep.subr.bf16.mxu1 %v1845_v59  ;;  %17662 = vst [vmem:[#allocation65_spill] sm:$0xff] %v13356_v62  ;;  %17663 = vst [vmem:[#allocation66_spill] sm:$0xff] %v13365_v9  ;;  %v10967_v7 = vcombine.low %v11781_v58, %v11780_v26  ;;  %v13397_v59 = vsel %vm1178_vm4, %v13356_v62, %v2331_v20 }
 0x170   : > { %v13348_v36 = vpop.permute.xlu1 %3082  ;;  %2425 = vmatprep.subr.bf16.mxu0 %v13329_v29  ;;  %2447 = vmatprep.mubr.bf16.mxu0 %v17595_v27  ;;  %17665 = vst [vmem:[#allocation68_spill] sm:$0xff] %v13386_v14  ;;  %17666 = vst [vmem:[#allocation69_spill] sm:$0xff] %v13397_v59  ;;  %v10968_v31 = vcombine.high %v11781_v58, %v11780_v26  ;;  %v17667_v20 = vcombine.high %v12620_v39, %v12623_v22  ;;  %v13424_v1 = vrot.slane %v10949_v63, 2 }
 0x171   : > { %3024 = vrot.lane.b32.xlu0 %v11008_v21, %s11881_s30  ;;  %2237 = vmatpush1.bf16.msra.mxu1 %v1964_v57  ;;  %v10942_v21 = vcombine.high %v1517_v32, %v11782_v48  ;;  %v11010_v40 = vcombine.high %v13312_v24, %v13315_v54  ;;  %v13416_v10 = vsel %vm1178_vm4, %v2335_v47, %v13342_v34  ;;  %v13422_v57 = vld [vmem:[%s11951_s29 + $0x78] sm:$0xff]  ;;  %v13433_v24 = vrot.slane %v10967_v7, 2  ;;  %v11785_v7 = vld [vmem:[%s11951_s29 + $0x270] sm:$0xff] }
 0x172   : > { %3026 = vrot.lane.b32.xlu1 %v11009_v6, %s11881_s30  ;;  %10973 = vmatprep.subr.msk.bf16.mxu1 %vm1178_vm4, %v13340_v44  ;;  %v11784_v6 = vld [vmem:[%s11951_s29 + $0x290] sm:$0xff]  ;;  %17668 = vst [vmem:[#allocation70_spill] sm:$0xff] %v13416_v10  ;;  %17669 = vst [vmem:[#allocation71_spill] sm:$0xff] %v13424_v1  ;;  %v13431_v22 = vsel %vm1178_vm4, %v13386_v14, %v2337_v38  ;;  %v10992_v38 = vcombine.high %v13169_v45, %v13172_v33  ;;  %v11788_v45 = vld [vmem:[%s11951_s29 + $0x2d8] sm:$0xff] }
 0x173   : > { %2426 = vmatpush1.bf16.msra.mxu0 %v13354_v23  ;;  %v13380_v11 = vpop.permute.xlu0 %3078  ;;  %v10960_v0 = vcombine.high %v11784_v6, %v11783_v61  ;;  %17670 = vst [vmem:[#allocation72_spill] sm:$0xff] %v13431_v22  ;;  %17671 = vst [vmem:[#allocation73_spill] sm:$0xff] %v13433_v24  ;;  %v10959_v63 = vcombine.low %v11784_v6, %v11783_v61  ;;  %v10993_v26 = vcombine.low %v13419_v46, %v13422_v57  ;;  %v13459_v61 = vld [vmem:[%s11951_s29 + $0x210] sm:$0xcc]  ;;  %v11794_v44 = vld [vmem:[%s11951_s29 + $0x258] sm:$0xff] }
 0x174   : > { %v13390_v53 = vpop.permute.xlu1 %3084  ;;  %10938 = vmatmul.mubr.msk.bf16.vlgmr.msra.gmra.mxu1 %vm2070_vm8, %v13187_v12  ;;  %2427 = vmatprep.subr.bf16.mxu0 %v13365_v9  ;;  %v2312_v12 = vsel %vm1178_vm4, %v2310_v4, %v13331_v41  ;;  %v2309_v4 = vsel %vm1178_vm4, %v2307_v5, %v13356_v62  ;;  %v11786_v5 = vld [vmem:[%s11951_s29 + $0x250] sm:$0xff]  ;;  %v10984_v23 = vcombine.high %v13197_v28, %v13200_v52  ;;  %v3683_v9 = vld [vmem:[%s11951_s29 + $0x138] sm:$0xff]  ;;  %vm6579_vm8 = vcmask 228352  }
 0x175   : > { %3044 = vrot.lane.b32.xlu0 %v11018_v25, %s11881_s30  ;;  %2465 = vmatpush1.bf16.msra.mxu1 %v2398_v42  ;;  %v10941_v25 = vcombine.low %v1517_v32, %v11782_v48  ;;  %v13440_v32 = vrot.slane %v10968_v31, 2  ;;  %v2316_v42 = vrot.slane %v10942_v21, 2  ;;  %v2341_v58 = vrot.slane %v10960_v0, 2  ;;  %v13799_v62 = vld [vmem:[%s11951_s29 + $0xb0] sm:$0xff] }
 0x176   : > { %3008 = vrot.lane.b32.xlu1 %v17667_v20, %s11881_s30  ;;  %2466 = vmatprep.subr.bf16.mxu1 %v13384_v3  ;;  %v10952_v31 = vcombine.high %v11786_v5, %v11785_v7  ;;  %v13454_v48 = vsel %vm1178_vm4, %v13424_v1, %v2335_v47  ;;  %v2404_v0 = vsel %vm1178_vm4, %v13433_v24, 0  ;;  %v11789_v20 = vld [vmem:[%s11951_s29 + $0x2b8] sm:$0xff] }
 0x177   : > { %2428 = vmatpush1.bf16.msra.mxu0 %v13397_v59  ;;  %v13427_v39 = vpop.permute.xlu0 %3086  ;;  %2488 = vmatprep.mubr.bf16.mxu1 %v17595_v27  ;;  %17672 = vst [vmem:[#allocation74_spill] sm:$0xff] %v13440_v32  ;;  %17673 = vst [vmem:[#allocation75_spill] sm:$0xff] %v13454_v48  ;;  %v2313_v21 = vrot.slane %v10941_v25, 2  ;;  %v2318_v25 = vsel %vm1178_vm4, %v2316_v42, %v13386_v14  ;;  %v13486_v42 = vld [vmem:[%s11951_s29 + $0x230] sm:$0xff] }
 0x178   : > { %v13436_v54 = vpop.permute.xlu1 %3064  ;;  %2429 = vmatprep.subr.bf16.mxu0 %v2312_v12  ;;  %v13483_v29 = vrot.slane %v10952_v31, 2 }
 0x179   : > { %3010 = vrot.lane.b32.xlu0 %v11001_v49, %s11881_s30  ;;  %2467 = vmatpush1.bf16.msra.mxu1 %v13416_v10  ;;  %v11787_v49 = vld [vmem:[%s11951_s29 + $0x2f8] sm:$0xff]  ;;  %v13481_v10 = vsel %vm1178_vm4, %v2341_v58, %v13440_v32  ;;  %v2315_v28 = vsel %vm1178_vm4, %v2313_v21, %v13424_v1 }
 0x17a   : > { %3028 = vrot.lane.b32.xlu1 %v11010_v40, %s11881_s30  ;;  %2468 = vmatprep.subr.bf16.mxu1 %v13431_v22  ;;  %v10970_v33 = vcombine.high %v11788_v45, %v11787_v49  ;;  %v10969_v12 = vcombine.low %v11788_v45, %v11787_v49  ;;  %v11790_v40 = vld [vmem:[%s11951_s29 + $0x298] sm:$0xff]  ;;  %v2339_v49 = vrot.slane %v10959_v63, 2  ;;  %v10951_v45 = vcombine.low %v11786_v5, %v11785_v7 }
 0x17b   : > { %2430 = vmatpush1.bf16.msra.mxu0 %v2309_v4  ;;  %v13461_v6 = vpop.permute.xlu0 %3066  ;;  %v10962_v3 = vcombine.high %v11790_v40, %v11789_v20  ;;  %v11002_v4 = vcombine.high %v13374_v18, %v13377_v30  ;;  %17674 = vst [vmem:[#allocation76_spill] sm:$0xff] %v13481_v10  ;;  %17675 = vst [vmem:[#allocation77_spill] sm:$0xff] %v13483_v29  ;;  %v10944_v18 = vcombine.high %v13459_v61, %v13486_v42  ;;  %v13494_v30 = vld [vmem:[%s17368_s1] sm:$0xf]  ;;  %v2602_v63 = vld [vmem:[%s11951_s29 + $0x18] sm:$0xff] }
 0x17c   : > { %v13467_v47 = vpop.permute.xlu1 %3062  ;;  %10975 = vmatprep.subr.msk.bf16.mxu0 %vm1178_vm4, %v13440_v32  ;;  %v13500_v52 = vrot.slane %v10970_v33, 2  ;;  %v13504_v7 = vrot.slane %v10969_v12, 2  ;;  %v10961_v5 = vcombine.low %v11790_v40, %v11789_v20  ;;  %v11793_v32 = vld [vmem:[%s11951_s29 + $0x278] sm:$0xff]  ;;  %v13515_v21 = vsel %vm1178_vm4, %v2339_v49, %v13433_v24 }
 0x17d   : > { %2992 = vrot.lane.b32.xlu0 %v10992_v38, %s11881_s30  ;;  %2469 = vmatpush1.bf16.msra.mxu1 %v13454_v48  ;;  %v2606_v38 = vld [vmem:[%s11951_s29 + $0x38] sm:$0xff]  ;;  %v2345_v31 = vrot.slane %v10962_v3, 2  ;;  %v10954_v34 = vcombine.high %v11794_v44, %v11793_v32  ;;  %17678 = vst [vmem:[#allocation80_spill] sm:$0xff] %v13515_v21  ;;  %v13517_v33 = vrot.slane %v10951_v45, 2  ;;  %v10943_v12 = vcombine.low %v13459_v61, %v13486_v42 }
 0x17e   : > { %2994 = vrot.lane.b32.xlu1 %v10993_v26, %s11881_s30  ;;  %10972 = vmatmul.mubr.msk.bf16.vlgmr.msra.gmra.mxu0 %vm2387_vm9, %v13494_v30  ;;  %17676 = vst [vmem:[#allocation78_spill] sm:$0xff] %v13500_v52  ;;  %17677 = vst [vmem:[#allocation79_spill] sm:$0xff] %v13504_v7  ;;  %v10985_v3 = vcombine.low %v2602_v63, %v2606_v38  ;;  %v2322_v20 = vrot.slane %v10944_v18, 2  ;;  %v1519_v40 = vld [vmem:[%s11951_s29 + $0x218] sm:$0xcc]  ;;  %v10994_v61 = vcombine.high %v13419_v46, %v13422_v57 }
 0x17f   : > { %2506 = vmatpush1.bf16.msra.mxu0 %v2404_v0  ;;  %v13506_v26 = vpop.permute.xlu0 %3068  ;;  %2470 = vmatprep.subr.bf16.mxu1 %v2318_v25  ;;  %17679 = vst [vmem:[#allocation81_spill] sm:$0xff] %v13517_v33  ;;  %v13525_v0 = vsel %vm1178_vm4, %v13483_v29, %v2341_v58  ;;  %v2410_v25 = vsel %vm1178_vm4, %v13504_v7, 0  ;;  %v10953_v45 = vcombine.low %v11794_v44, %v11793_v32  ;;  %v2319_v46 = vrot.slane %v10943_v12, 2  ;;  %v11795_v57 = vld [vmem:[%s11951_s29 + $0x238] sm:$0xff] }
 0x180   : > { %v13510_v37 = vpop.permute.xlu1 %3070  ;;  %2507 = vmatprep.subr.bf16.mxu0 %v13481_v10  ;;  %2529 = vmatprep.mubr.bf16.mxu0 %v17595_v27  ;;  %17680 = vst [vmem:[#allocation82_spill] sm:$0xff] %v13525_v0  ;;  %v13540_v18 = vsel %vm1178_vm4, %v2345_v31, %v13500_v52  ;;  %v13551_v44 = vsel %vm1178_vm4, %v13517_v33, %v2339_v49  ;;  %v11796_v10 = vld [vmem:[%s11951_s29 + $0x210] sm:$0xff]  ;;  %v2670_v12 = vld [vmem:[%s11951_s29 + $0x238] sm:$0xff] }
 0x181   : > { %3012 = vrot.lane.b32.xlu0 %v11002_v4, %s11881_s30  ;;  %2471 = vmatpush1.bf16.msra.mxu1 %v2315_v28  ;;  %v2343_v4 = vrot.slane %v10961_v5, 2  ;;  %17681 = vst [vmem:[#allocation83_spill] sm:$0xff] %v13540_v18  ;;  %17683 = vst [vmem:[#allocation85_spill] sm:$0xff] %v13551_v44  ;;  %v10946_v32 = vcombine.high %v1519_v40, %v11795_v57  ;;  %v2324_v5 = vsel %vm1178_vm4, %v2322_v20, %v13483_v29 }
 0x182   : > { %2976 = vrot.lane.b32.xlu1 %v10984_v23, %s11881_s30  ;;  %10977 = vmatprep.subr.msk.bf16.mxu1 %vm1178_vm4, %v13500_v52  ;;  %v13542_v23 = vrot.slane %v10954_v34, 2  ;;  %v10986_v34 = vcombine.high %v2602_v63, %v2606_v38  ;;  %v11048_v52 = vcombine.high %v11796_v10, %v13486_v42  ;;  %v2321_v42 = vsel %vm1178_vm4, %v2319_v46, %v13517_v33  ;;  %v13771_v33 = vld [vmem:[%s11951_s29 + $0x210] sm:$0xff] }
 0x183   : > { %2508 = vmatpush1.bf16.msra.mxu0 %v13515_v21  ;;  %v13536_v58 = vpop.permute.xlu0 %3048  ;;  %v13563_v49 = vsel %vm1178_vm4, %v2343_v4, %v13504_v7  ;;  %v2328_v20 = vrot.slane %v10946_v32, 2  ;;  %v3704_v32 = vld [vmem:[%s11951_s29 + $0x1e0] sm:$0xff]  ;;  %v3705_v7 = vld [vmem:[%s11951_s29 + $0x1e8] sm:$0xff] }
 0x184   : > { %17682 = vst [vmem:[#allocation84_spill] sm:$0xff] %v13542_v23  ;;  %v13544_v28 = vpop.permute.xlu1 %3050  ;;  %10974 = vmatmul.mubr.msk.bf16.vlgmr.msra.gmra.mxu1 %vm2387_vm9, %v13494_v30  ;;  %2509 = vmatprep.subr.bf16.mxu0 %v13525_v0  ;;  %17684 = vst [vmem:[#allocation86_spill] sm:$0xff] %v13563_v49  ;;  %v13566_v0 = vrot.slane %v10953_v45, 2  ;;  %v13573_v38 = vsel %vm1178_vm4, %v13542_v23, %v2345_v31  ;;  %v11797_v31 = vld [vmem:[%s11951_s29 + $0x218] sm:$0xff] }
 0x185   : > { %2978 = vrot.lane.b32.xlu0 %v10985_v3, %s11881_s30  ;;  %2547 = vmatpush1.bf16.msra.mxu1 %v2410_v25  ;;  %v10945_v3 = vcombine.low %v1519_v40, %v11795_v57  ;;  %17686 = vst [vmem:[#allocation88_spill] sm:$0xff] %v13573_v38  ;;  %v11050_v45 = vcombine.high %v11797_v31, %v2670_v12  ;;  %v3700_v57 = vld [vmem:[%s11951_s29 + $0x1c0] sm:$0xff] }
 0x186   : > { %2996 = vrot.lane.b32.xlu1 %v10994_v61, %s11881_s30  ;;  %2548 = vmatprep.subr.bf16.mxu1 %v13540_v18  ;;  %17685 = vst [vmem:[#allocation87_spill] sm:$0xff] %v13566_v0  ;;  %v11049_v61 = vcombine.low %v11797_v31, %v2670_v12  ;;  %v13591_v46 = vsel %vm1178_vm4, %v13566_v0, %v2343_v4 }
 0x187   : > { %2510 = vmatpush1.bf16.msra.mxu0 %v13551_v44  ;;  %v13569_v63 = vpop.permute.xlu0 %3046  ;;  %2570 = vmatprep.mubr.bf16.mxu1 %v17595_v27  ;;  %17687 = vst [vmem:[#allocation89_spill] sm:$0xff] %v13591_v46  ;;  %v2330_v4 = vsel %vm1178_vm4, %v2328_v20, %v13542_v23  ;;  %v3159_v31 = vsel %vm739_vm0, %v13380_v11, %v13344_v51 }
 0x188   : > { %v13576_v10 = vpop.permute.xlu1 %3052  ;;  %2511 = vmatprep.subr.bf16.mxu0 %v2324_v5 }
 0x189   : > { %2980 = vrot.lane.b32.xlu0 %v10986_v34, %s11881_s30  ;;  %v13581_v40 = vpop.f32.mrf.mxu0  ;;  %2549 = vmatpush1.bf16.msra.mxu1 %v13563_v49  ;;  %v2325_v34 = vrot.slane %v10945_v3, 2  ;;  %v3160_v49 = vsel %vm739_vm0, %v13344_v51, %v13348_v36  ;;  %v3153_v51 = vsel %vm739_vm0, %v13436_v54, %v13461_v6 }
 0x18a   : > { %v13585_v25 = vpop.f32.mrf.mxu1  ;;  %3104 = vrot.lane.b32.xlu1 %v11048_v52, %s11881_s30  ;;  %2550 = vmatprep.subr.bf16.mxu1 %v13573_v38  ;;  %v3701_v52 = vld [vmem:[%s11951_s29 + $0x1c8] sm:$0xff] }
 0x18b   : > { %2512 = vmatpush1.bf16.msra.mxu0 %v2321_v42  ;;  %v13595_v5 = vpop.permute.xlu0 %3054  ;;  %v13597_v18 = vpop.f32.mrf.mxu0  ;;  %v11128_v42 = vcombine.high %v3700_v57, %v3704_v32  ;;  %v2327_v20 = vsel %vm1178_vm4, %v2325_v34, %v13566_v0  ;;  %v11127_v34 = vcombine.low %v3700_v57, %v3704_v32  ;;  %v3692_v57 = vld [vmem:[%s11951_s29 + $0x180] sm:$0xff] }
 0x18c   : > { %v13604_v38 = vpop.f32.mrf.mxu1  ;;  %v3033_v12 = vpop.permute.xlu1 %3032  ;;  %3249 = vmatprep.subr.bf16.mxu0 %v3160_v49  ;;  %v11129_v49 = vcombine.low %v3701_v52, %v3705_v7  ;;  %v3696_v32 = vld [vmem:[%s11951_s29 + $0x1a0] sm:$0xff] }
 0x18d   : > { %3106 = vrot.lane.b32.xlu0 %v11049_v61, %s11881_s30  ;;  %v872_v3 = vpop.f32.mrf.mxu0  ;;  %2551 = vmatpush1.bf16.msra.mxu1 %v13591_v46 }
 0x18e   : > { %v913_v29 = vpop.f32.mrf.mxu1  ;;  %3108 = vrot.lane.b32.xlu1 %v11050_v45, %s11881_s30  ;;  %10976 = vmatmul.mubr.msk.bf16.vlgmr.msra.gmra.mxu0 %vm2387_vm9, %v13494_v30  ;;  %v3162_v45 = vsel %vm739_vm0, %v13390_v53, %v13427_v39 }
 0x18f   : > { %3250 = vmatpush1.bf16.msra.mxu0 %v3159_v31  ;;  %v13618_v61 = vpop.permute.xlu0 %3034  ;;  %v873_v3 = vpop.f32.mrf.mxu0  ;;  %2552 = vmatprep.subr.bf16.mxu1 %v2330_v4  ;;  %v3152_v31 = vsel %vm739_vm0, %v13467_v47, %v13436_v54  ;;  %v11130_v4 = vcombine.high %v3701_v52, %v3705_v7  ;;  %v3161_v54 = vsel %vm739_vm0, %v13348_v36, %v13390_v53  ;;  %v3697_v36 = vld [vmem:[%s11951_s29 + $0x1a8] sm:$0xff] }
 0x190   : > { %v914_v29 = vpop.f32.mrf.mxu1  ;;  %v3031_v11 = vpop.permute.xlu1 %3030  ;;  %3251 = vmatprep.subr.bf16.mxu0 %v3153_v51  ;;  %v13632_v3 = vld [vmem:[%s11951_s29 + $0x1d0] sm:$0xff]  ;;  %v3155_v47 = vsel %vm739_vm0, %v13506_v26, %v13510_v37  ;;  %v3145_v52 = vsel %vm739_vm0, %v13569_v63, %v13536_v58 }
 0x191   : > { %4189 = vrot.lane.b32.xlu0 %v11128_v42, %s11881_s30  ;;  %2553 = vmatpush1.bf16.msra.mxu1 %v2327_v20  ;;  %v13635_v29 = vld [vmem:[%s11951_s29 + $0x1f0] sm:$0xff]  ;;  %v3146_v20 = vsel %vm739_vm0, %v13536_v58, %v13544_v28  ;;  %v3148_v58 = vsel %vm739_vm0, %v13576_v10, %v13595_v5 }
 0x192   : > { %4191 = vrot.lane.b32.xlu1 %v11129_v49, %s11881_s30  ;;  %3290 = vmatprep.subr.bf16.mxu1 %v3162_v45  ;;  %v11131_v7 = vcombine.low %v13632_v3, %v13635_v29  ;;  %v3693_v49 = vld [vmem:[%s11951_s29 + $0x188] sm:$0xff]  ;;  %v3139_v45 = vsel %vm739_vm0, %v3033_v12, %v13618_v61 }
 0x193   : > { %3252 = vmatpush1.bf16.msra.mxu0 %v3152_v31  ;;  %v3037_v42 = vpop.permute.xlu0 %3036  ;;  %v3154_v31 = vsel %vm739_vm0, %v13461_v6, %v13506_v26  ;;  %v11121_v63 = vcombine.low %v3693_v49, %v3697_v36  ;;  %v13674_v26 = vld [vmem:[%s11951_s29 + $0x190] sm:$0xff] }
 0x194   : > { %v13642_v51 = vpop.permute.xlu1 %3038  ;;  %3253 = vmatprep.subr.bf16.mxu0 %v3146_v20  ;;  %10978 = vmatmul.mubr.msk.bf16.vlgmr.msra.gmra.mxu1 %vm2387_vm9, %v13494_v30  ;;  %v11120_v30 = vcombine.high %v3692_v57, %v3696_v32  ;;  %v11119_v20 = vcombine.low %v3692_v57, %v3696_v32  ;;  %v11122_v57 = vcombine.high %v3693_v49, %v3697_v36  ;;  %vm7005_vm9 = vcmask 392192  }
 0x195   : > { %4187 = vrot.lane.b32.xlu0 %v11127_v34, %s11881_s30  ;;  %3291 = vmatpush1.bf16.msra.mxu1 %v3161_v54 }
 0x196   : > { %4193 = vrot.lane.b32.xlu1 %v11130_v4, %s11881_s30  ;;  %3292 = vmatprep.subr.bf16.mxu1 %v3155_v47  ;;  %v3138_v4 = vsel %vm739_vm0, %v3031_v11, %v3033_v12  ;;  %v13677_v47 = vld [vmem:[%s11951_s29 + $0x1b0] sm:$0xff]  ;;  %v3147_v12 = vsel %vm739_vm0, %v13544_v28, %v13576_v10  ;;  %v3141_v11 = vsel %vm739_vm0, %v3037_v42, %v13642_v51  ;;  %v3689_v28 = vld [vmem:[%s11951_s29 + $0x168] sm:$0xff] }
 0x197   : > { %3254 = vmatpush1.bf16.msra.mxu0 %v3145_v52  ;;  %v3017_v53 = vpop.permute.xlu0 %3016  ;;  %v11123_v32 = vcombine.low %v13674_v26, %v13677_v47 }
 0x198   : > { %v3019_v34 = vpop.permute.xlu1 %3018  ;;  %3255 = vmatprep.subr.bf16.mxu0 %v3139_v45 }
 0x199   : > { %4195 = vrot.lane.b32.xlu0 %v11131_v7, %s11881_s30  ;;  %3293 = vmatpush1.bf16.msra.mxu1 %v3154_v31  ;;  %v3132_v6 = vsel %vm739_vm0, %v3017_v53, %v3019_v34  ;;  %v3685_v31 = vld [vmem:[%s11951_s29 + $0x148] sm:$0xff] }
 0x19a   : > { %4173 = vrot.lane.b32.xlu1 %v11120_v30, %s11881_s30  ;;  %3294 = vmatprep.subr.bf16.mxu1 %v3148_v58  ;;  %v3684_v30 = vld [vmem:[%s11951_s29 + $0x140] sm:$0xff]  ;;  %v3140_v58 = vsel %vm739_vm0, %v13618_v61, %v3037_v42 }
 0x19b   : > { %3256 = vmatpush1.bf16.msra.mxu0 %v3138_v4  ;;  %v3015_v54 = vpop.permute.xlu0 %3014 }
 0x19c   : > { %v3131_v7 = vsel %vm739_vm0, %v3015_v54, %v3017_v53  ;;  %v3021_v52 = vpop.permute.xlu1 %3020  ;;  %3257 = vmatprep.subr.bf16.mxu0 %v3132_v6  ;;  %v3688_v53 = vld [vmem:[%s11951_s29 + $0x160] sm:$0xff] }
 0x19d   : > { %4175 = vrot.lane.b32.xlu0 %v11121_v63, %s11881_s30  ;;  %3295 = vmatpush1.bf16.msra.mxu1 %v3147_v12  ;;  %v11112_v36 = vcombine.high %v3684_v30, %v3688_v53  ;;  %v11113_v63 = vcombine.low %v3685_v31, %v3689_v28  ;;  %v3133_v42 = vsel %vm739_vm0, %v3019_v34, %v3021_v52  ;;  %v13707_v12 = vld [vmem:[%s11951_s29 + $0x150] sm:$0xff] }
 0x19e   : > { %4171 = vrot.lane.b32.xlu1 %v11119_v20, %s11881_s30  ;;  %3296 = vmatprep.subr.bf16.mxu1 %v3141_v11  ;;  %v11111_v6 = vcombine.low %v3684_v30, %v3688_v53  ;;  %v13710_v11 = vld [vmem:[%s11951_s29 + $0x170] sm:$0xff] }
 0x19f   : > { %3258 = vmatpush1.bf16.msra.mxu0 %v3131_v7  ;;  %v13691_v45 = vpop.permute.xlu0 %3022  ;;  %v11114_v7 = vcombine.high %v3685_v31, %v3689_v28  ;;  %v3677_v31 = vld [vmem:[%s11951_s29 + $0x108] sm:$0xff] }
 0x1a0   : > { %v3001_v10 = vpop.permute.xlu1 %3000  ;;  %v3134_v49 = vsel %vm739_vm0, %v3021_v52, %v13691_v45  ;;  %v11115_v52 = vcombine.low %v13707_v12, %v13710_v11  ;;  %v3681_v28 = vld [vmem:[%s11951_s29 + $0x128] sm:$0xff] }
 0x1a1   : > { %4177 = vrot.lane.b32.xlu0 %v11122_v57, %s11881_s30  ;;  %3297 = vmatpush1.bf16.msra.mxu1 %v3140_v58 }
 0x1a2   : > { %4179 = vrot.lane.b32.xlu1 %v11123_v32, %s11881_s30  ;;  %3298 = vmatprep.subr.bf16.mxu1 %v3134_v49  ;;  %v3676_v32 = vld [vmem:[%s11951_s29 + $0x100] sm:$0xff] }
 0x1a3   : > { %v3003_v4 = vpop.permute.xlu0 %3002 }
 0x1a4   : > { %v2999_v20 = vpop.permute.xlu1 %2998  ;;  %v3125_v54 = vsel %vm739_vm0, %v3001_v10, %v3003_v4 }
 0x1a5   : > { %v3124_v61 = vsel %vm739_vm0, %v2999_v20, %v3001_v10  ;;  %4157 = vrot.lane.b32.xlu0 %v11112_v36, %s11881_s30  ;;  %3259 = vmatprep.subr.bf16.mxu0 %v3125_v54  ;;  %v3680_v10 = vld [vmem:[%s11951_s29 + $0x120] sm:$0xff]  ;;  %v11105_v54 = vcombine.low %v3677_v31, %v3681_v28 }
 0x1a6   : > { %4159 = vrot.lane.b32.xlu1 %v11113_v63, %s11881_s30  ;;  %3299 = vmatpush1.bf16.msra.mxu1 %v3133_v42  ;;  %v11104_v53 = vcombine.high %v3676_v32, %v3680_v10  ;;  %v11103_v42 = vcombine.low %v3676_v32, %v3680_v10  ;;  %v3668_v10 = vld [vmem:[%s11951_s29 + $0xc0] sm:$0xff] }
 0x1a7   : > { %3260 = vmatpush1.bf16.msra.mxu0 %v3124_v61  ;;  %v3005_v57 = vpop.permute.xlu0 %3004 }
 0x1a8   : > { %v13714_v58 = vpop.permute.xlu1 %3006  ;;  %v3126_v49 = vsel %vm739_vm0, %v3003_v4, %v3005_v57 }
 0x1a9   : > { %4155 = vrot.lane.b32.xlu0 %v11111_v6, %s11881_s30  ;;  %v3127_v34 = vsel %vm739_vm0, %v3005_v57, %v13714_v58  ;;  %v13736_v57 = vld [vmem:[%s11951_s29 + $0x130] sm:$0xff] }
 0x1aa   : > { %v13722_v30 = vpop.f32.mrf.mxu0  ;;  %4161 = vrot.lane.b32.xlu1 %v11114_v7, %s11881_s30  ;;  %3300 = vmatprep.subr.bf16.mxu1 %v3127_v34  ;;  %v13733_v7 = vld [vmem:[%s11951_s29 + $0x110] sm:$0xff] }
 0x1ab   : > { %3301 = vmatpush1.bf16.msra.mxu1 %v3126_v49  ;;  %v2985_v36 = vpop.permute.xlu0 %2984  ;;  %v11107_v32 = vcombine.low %v13733_v7, %v13736_v57  ;;  %v11108_v48 = vcombine.high %v13733_v7, %v13736_v57  ;;  %v17709_v7 = vld [vmem:[#allocation37_spill] sm:$0xff] }
 0x1ac   : > { %v13727_v63 = vpop.f32.mrf.mxu0  ;;  %v2987_v4 = vpop.permute.xlu1 %2986 }
 0x1ad   : > { %4163 = vrot.lane.b32.xlu0 %v11115_v52, %s11881_s30  ;;  %v3118_v20 = vsel %vm739_vm0, %v2985_v36, %v2987_v4 }
 0x1ae   : > { %v954_v61 = vpop.f32.mrf.mxu0  ;;  %4141 = vrot.lane.b32.xlu1 %v11104_v53, %s11881_s30  ;;  %3261 = vmatprep.subr.bf16.mxu0 %v3118_v20  ;;  %v11106_v53 = vcombine.high %v3677_v31, %v3681_v28  ;;  %v3672_v20 = vld [vmem:[%s11951_s29 + $0xe0] sm:$0xff] }
 0x1af   : > { %v2983_v6 = vpop.permute.xlu0 %2982  ;;  %v11096_v28 = vcombine.high %v3668_v10, %v3672_v20 }
 0x1b0   : > { %v3117_v49 = vsel %vm739_vm0, %v2983_v6, %v2985_v36  ;;  %v955_v34 = vpop.f32.mrf.mxu0  ;;  %v2989_v52 = vpop.permute.xlu1 %2988  ;;  %v3669_v36 = vld [vmem:[%s11951_s29 + $0xc8] sm:$0xff] }
 0x1b1   : > { %v13739_v23 = vpop.f32.mrf.mxu1  ;;  %4143 = vrot.lane.b32.xlu0 %v11105_v54, %s11881_s30  ;;  %3262 = vmatpush1.bf16.msra.mxu0 %v3117_v49  ;;  %v3673_v6 = vld [vmem:[%s11951_s29 + $0xe8] sm:$0xff]  ;;  %v3119_v31 = vsel %vm739_vm0, %v2987_v4, %v2989_v52  ;;  %v11095_v4 = vcombine.low %v3668_v10, %v3672_v20 }
 0x1b2   : > { %4139 = vrot.lane.b32.xlu1 %v11103_v42, %s11881_s30  ;;  %v11097_v42 = vcombine.low %v3669_v36, %v3673_v6 }
 0x1b3   : > { %v13747_v61 = vpop.f32.mrf.mxu1  ;;  %v13749_v0 = vpop.permute.xlu0 %2990 }
 0x1b4   : > { %v2969_v34 = vpop.permute.xlu1 %2968  ;;  %v3120_v46 = vsel %vm739_vm0, %v2989_v52, %v13749_v0  ;;  %v11098_v52 = vcombine.high %v3669_v36, %v3673_v6 }
 0x1b5   : > { %v995_v54 = vpop.f32.mrf.mxu1  ;;  %4145 = vrot.lane.b32.xlu0 %v11106_v53, %s11881_s30  ;;  %3302 = vmatprep.subr.bf16.mxu1 %v3120_v46  ;;  %v13763_v53 = vld [vmem:[%s11951_s29 + $0xd0] sm:$0xff] }
 0x1b6   : > { %4147 = vrot.lane.b32.xlu1 %v11107_v32, %s11881_s30  ;;  %3303 = vmatpush1.bf16.msra.mxu1 %v3119_v31  ;;  %v13766_v32 = vld [vmem:[%s11951_s29 + $0xf0] sm:$0xff]  ;;  %v3660_v31 = vld [vmem:[%s11951_s29 + $0x80] sm:$0xff] }
 0x1b7   : > { %v996_v49 = vpop.f32.mrf.mxu1  ;;  %v2971_v21 = vpop.permute.xlu0 %2970  ;;  %v11099_v6 = vcombine.low %v13763_v53, %v13766_v32 }
 0x1b8   : > { %v2967_v24 = vpop.permute.xlu1 %2966  ;;  %v3111_v54 = vsel %vm739_vm0, %v2969_v34, %v2971_v21 }
 0x1b9   : > { %v3110_v46 = vsel %vm739_vm0, %v2967_v24, %v2969_v34  ;;  %4125 = vrot.lane.b32.xlu0 %v11096_v28, %s11881_s30  ;;  %3263 = vmatprep.subr.bf16.mxu0 %v3111_v54  ;;  %v13774_v24 = vld [vmem:[%s11951_s29 + $0x230] sm:$0xff]  ;;  %v11088_v28 = vcombine.high %v3660_v31, %v3664_v60  ;;  %v3665_v54 = vld [vmem:[%s11951_s29 + $0xa8] sm:$0xff] }
 0x1ba   : > { %4127 = vrot.lane.b32.xlu1 %v11097_v42, %s11881_s30  ;;  %3264 = vmatpush1.bf16.msra.mxu0 %v3110_v46  ;;  %v3661_v42 = vld [vmem:[%s11951_s29 + $0x88] sm:$0xff] }
 0x1bb   : > { %v2973_v49 = vpop.permute.xlu0 %2972  ;;  %v11089_v20 = vcombine.low %v3661_v42, %v3665_v54 }
 0x1bc   : > { %v13776_v34 = vpop.permute.xlu1 %2974  ;;  %v3112_v10 = vsel %vm739_vm0, %v2971_v21, %v2973_v49 }
 0x1bd   : > { %4123 = vrot.lane.b32.xlu0 %v11095_v4, %s11881_s30  ;;  %v3113_v36 = vsel %vm739_vm0, %v2973_v49, %v13776_v34 }
 0x1be   : > { %4129 = vrot.lane.b32.xlu1 %v11098_v52, %s11881_s30  ;;  %3304 = vmatprep.subr.bf16.mxu1 %v3113_v36  ;;  %v11087_v52 = vcombine.low %v3660_v31, %v3664_v60  ;;  %v11090_v60 = vcombine.high %v3661_v42, %v3665_v54  ;;  %v3652_v31 = vld [vmem:[%s11951_s29 + $0x40] sm:$0xff] }
 0x1bf   : > { %3305 = vmatpush1.bf16.msra.mxu1 %v3112_v10  ;;  %v3097_v21 = vpop.permute.xlu0 %3096  ;;  %v13796_v10 = vld [vmem:[%s11951_s29 + $0x90] sm:$0xff] }
 0x1c0   : > { %v3099_v46 = vpop.permute.xlu1 %3098 }
 0x1c1   : > { %4131 = vrot.lane.b32.xlu0 %v11099_v6, %s11881_s30  ;;  %v3167_v4 = vsel %vm739_vm0, %v3097_v21, %v3099_v46 }
 0x1c2   : > { %4109 = vrot.lane.b32.xlu1 %v11088_v28, %s11881_s30  ;;  %v1370_v49 = vpop.f32.mrf.mxu0  ;;  %3279 = vmatprep.subr.bf16.mxu0 %v3167_v4  ;;  %v3656_v4 = vld [vmem:[%s11951_s29 + $0x60] sm:$0xff] }
 0x1c3   : > { %v13793_v36 = vadd.f32 %v1370_v49, %v13581_v40  ;;  %v3095_v14 = vpop.permute.xlu0 %3094  ;;  %v11091_v40 = vcombine.low %v13796_v10, %v13799_v62  ;;  %v11080_v42 = vcombine.high %v3652_v31, %v3656_v4 }
 0x1c4   : > { %v3166_v6 = vsel %vm739_vm0, %v3095_v14, %v3097_v21  ;;  %v3101_v1 = vpop.permute.xlu1 %3100  ;;  %v1372_v41 = vpop.f32.mrf.mxu0  ;;  %v3653_v14 = vld [vmem:[%s11951_s29 + $0x48] sm:$0xff] }
 0x1c5   : > { %17688 = vst [vmem:[#allocation90_spill] sm:$0xff] %v13793_v36  ;;  %v13803_v28 = vadd.f32 %v1372_v41, %v13597_v18  ;;  %4111 = vrot.lane.b32.xlu0 %v11089_v20, %s11881_s30  ;;  %3280 = vmatpush2.bf16.msra.mxu0 %v3166_v6  ;;  %v3657_v21 = vld [vmem:[%s11951_s29 + $0x68] sm:$0xff]  ;;  %v3168_v20 = vsel %vm739_vm0, %v3099_v46, %v3101_v1 }
 0x1c6   : > { %4107 = vrot.lane.b32.xlu1 %v11087_v52, %s11881_s30  ;;  %v1374_v49 = vpop.f32.mrf.mxu0  ;;  %v11081_v6 = vcombine.low %v3653_v14, %v3657_v21  ;;  %v11082_v46 = vcombine.high %v3653_v14, %v3657_v21 }
 0x1c7   : > { %17689 = vst [vmem:[#allocation91_spill] sm:$0xff] %v13803_v28  ;;  %v13811_v36 = vpop.permute.xlu0 %3102 }
 0x1c8   : > { %v3089_v44 = vpop.permute.xlu1 %3088  ;;  %v1411_v22 = vpop.f32.mrf.mxu1  ;;  %v3169_v41 = vsel %vm739_vm0, %v3101_v1, %v13811_v36  ;;  %v11079_v1 = vcombine.low %v3652_v31, %v3656_v4 }
 0x1c9   : > { %v13818_v18 = vadd.f32 %v1411_v22, %v13585_v25  ;;  %4113 = vrot.lane.b32.xlu0 %v11090_v60, %s11881_s30  ;;  %3320 = vmatprep.subr.bf16.mxu1 %v3169_v41  ;;  %v1375_v54 = vpop.f32.mrf.mxu0  ;;  %v3163_v14 = vsel %vm739_vm0, %v13427_v39, %v3089_v44 }
 0x1ca   : > { %4115 = vrot.lane.b32.xlu1 %v11091_v40, %s11881_s30  ;;  %v1413_v52 = vpop.f32.mrf.mxu1  ;;  %3321 = vmatpush2.bf16.msra.mxu1 %v3168_v20  ;;  %v13830_v40 = vld [vmem:[%s11951_s29 + $0x50] sm:$0xff] }
 0x1cb   : > { %17690 = vst [vmem:[#allocation92_spill] sm:$0xff] %v13818_v18  ;;  %v13824_v49 = vadd.f32 %v1413_v52, %v13604_v38  ;;  %v3091_v22 = vpop.permute.xlu0 %3090  ;;  %v13833_v38 = vld [vmem:[%s11951_s29 + $0x70] sm:$0xff]  ;;  %v3644_v52 = vld [vmem:[%s11951_s29] sm:$0xff] }
 0x1cc   : > { %v2672_v25 = vpop.permute.xlu1 %2671  ;;  %v3164_v60 = vsel %vm739_vm0, %v3089_v44, %v3091_v22  ;;  %v1415_v41 = vpop.f32.mrf.mxu1  ;;  %v11083_v4 = vcombine.low %v13830_v40, %v13833_v38  ;;  %v13863_v18 = vld [vmem:[%s11951_s29 + $0x30] sm:$0xff] }
 0x1cd   : > { %17691 = vst [vmem:[#allocation93_spill] sm:$0xff] %v13824_v49  ;;  %4093 = vrot.lane.b32.xlu0 %v11080_v42, %s11881_s30  ;;  %3331 = vmatprep.subr.bf16.mxu0 %v3164_v60  ;;  %v3648_v49 = vld [vmem:[%s11951_s29 + $0x20] sm:$0xff]  ;;  %v3645_v42 = vld [vmem:[%s11951_s29 + $0x8] sm:$0xff] }
 0x1ce   : > { %4095 = vrot.lane.b32.xlu1 %v11081_v6, %s11881_s30  ;;  %v1416_v20 = vpop.f32.mrf.mxu1  ;;  %v11072_v21 = vcombine.high %v3644_v52, %v3648_v49  ;;  %v3649_v6 = vld [vmem:[%s11951_s29 + $0x28] sm:$0xff] }
 0x1cf   : > { %v2674_v54 = vpop.permute.xlu0 %2673  ;;  %v11073_v39 = vcombine.low %v3645_v42, %v3649_v6  ;;  %v11071_v20 = vcombine.low %v3644_v52, %v3648_v49  ;;  %v3724_v52 = vld [vmem:[%s11951_s29 + $0x280] sm:$0xff] }
 0x1d0   : > { %v3073_v41 = vpop.permute.xlu1 %3072  ;;  %11051 = vmatprep.mubr.msk.bf16.mxu0 %vm3245_vm10, %v2674_v54  ;;  %11052 = vmatprep.mubr.msk.bf16.mxu1 %vm3245_vm10, %v2674_v54  ;;  %v13839_v31 = vsel %vm2675_vm11, %v2672_v25, %v2674_v54  ;;  %vm7240_vm11 = vcmask 31744  }
 0x1d1   : > { %4091 = vrot.lane.b32.xlu0 %v11079_v1, %s11881_s30  ;;  %3282 = vmatmul.mubr.bf16.vlgmr.msra.gmra.mxu0 %v13839_v31  ;;  %v3156_v44 = vsel %vm739_vm0, %v13510_v37, %v3073_v41 }
 0x1d2   : > { %4097 = vrot.lane.b32.xlu1 %v11082_v46, %s11881_s30  ;;  %3323 = vmatmul.mubr.bf16.vlgmr.msra.gmra.mxu1 %v13839_v31 }
 0x1d3   : > { %3332 = vmatpush1.bf16.msra.mxu0 %v3163_v14  ;;  %11053 = vmatprep.mubr.msk.bf16.mxu0 %vm3245_vm10, %v2674_v54  ;;  %v3075_v25 = vpop.permute.xlu0 %3074  ;;  %v13860_v14 = vld [vmem:[%s11951_s29 + $0x10] sm:$0xff] }
 0x1d4   : > { %11054 = vmatprep.mubr.msk.bf16.mxu1 %vm3245_vm10, %v2674_v54  ;;  %v3093_v60 = vpop.permute.xlu1 %3092  ;;  %v3157_v1 = vsel %vm739_vm0, %v3073_v41, %v3075_v25  ;;  %v11075_v49 = vcombine.low %v13860_v14, %v13863_v18 }
 0x1d5   : > { %3372 = vmatprep.subr.bf16.mxu1 %v3093_v60  ;;  %4099 = vrot.lane.b32.xlu0 %v11083_v4, %s11881_s30  ;;  %v3165_v46 = vsel %vm739_vm0, %v3091_v22, %v3093_v60 }
 0x1d6   : > { %4077 = vrot.lane.b32.xlu1 %v11072_v21, %s11881_s30  ;;  %3333 = vmatprep.subr.bf16.mxu0 %v3157_v1  ;;  %v11074_v21 = vcombine.high %v3645_v42, %v3649_v6  ;;  %v11151_v6 = vcombine.low %v3724_v52, %v3724_v52 }
 0x1d7   : > { %3373 = vmatpush1.bf16.msra.mxu1 %v3165_v46  ;;  %3334 = vmatpush1.bf16.msra.mxu0 %v3156_v44  ;;  %v3057_v54 = vpop.permute.xlu0 %3056  ;;  %v3725_v44 = vld [vmem:[%s11951_s29 + $0x288] sm:$0xff] }
 0x1d8   : > { %v3059_v28 = vpop.permute.xlu1 %3058  ;;  %v3149_v22 = vsel %vm739_vm0, %v13595_v5, %v3057_v54 }
 0x1d9   : > { %4079 = vrot.lane.b32.xlu0 %v11073_v39, %s11881_s30  ;;  %v3150_v4 = vsel %vm739_vm0, %v3057_v54, %v3059_v28  ;;  %v11152_v39 = vcombine.high %v3724_v52, %v3724_v52 }
 0x1da   : > { %4075 = vrot.lane.b32.xlu1 %v11071_v20, %s11881_s30  ;;  %v1452_v37 = vpop.f32.mrf.mxu0  ;;  %3335 = vmatprep.subr.bf16.mxu0 %v3150_v4 }
 0x1db   : > { %v13874_v41 = vadd.f32 %v1452_v37, %v13722_v30  ;;  %3336 = vmatpush1.bf16.msra.mxu0 %v3149_v22  ;;  %v3077_v60 = vpop.permute.xlu0 %3076 }
 0x1dc   : > { %v3041_v5 = vpop.permute.xlu1 %3040  ;;  %v1454_v1 = vpop.f32.mrf.mxu0  ;;  %3374 = vmatprep.subr.bf16.mxu1 %v3077_v60  ;;  %v3158_v46 = vsel %vm739_vm0, %v3075_v25, %v3077_v60  ;;  %v11154_v60 = vcombine.high %v3725_v44, %v3725_v44 }
 0x1dd   : > { %17692 = vst [vmem:[#allocation94_spill] sm:$0xff] %v13874_v41  ;;  %v13878_v42 = vadd.f32 %v1454_v1, %v13727_v63  ;;  %4081 = vrot.lane.b32.xlu0 %v11074_v21, %s11881_s30  ;;  %3375 = vmatpush1.bf16.msra.mxu1 %v3158_v46  ;;  %v11153_v21 = vcombine.low %v3725_v44, %v3725_v44  ;;  %v13893_v1 = vld [vmem:[%s11951_s29 + $0x290] sm:$0xff]  ;;  %v3716_v46 = vld [vmem:[%s11951_s29 + $0x240] sm:$0xff]  ;;  %v3717_v44 = vld [vmem:[%s11951_s29 + $0x248] sm:$0xff] }
 0x1de   : > { %4083 = vrot.lane.b32.xlu1 %v11075_v49, %s11881_s30  ;;  %v1456_v30 = vpop.f32.mrf.mxu0  ;;  %v3142_v52 = vsel %vm739_vm0, %v13642_v51, %v3041_v5 }
 0x1df   : > { %17693 = vst [vmem:[#allocation95_spill] sm:$0xff] %v13878_v42  ;;  %v3043_v20 = vpop.permute.xlu0 %3042 }
 0x1e0   : > { %v3061_v54 = vpop.permute.xlu1 %3060  ;;  %v1493_v22 = vpop.f32.mrf.mxu1  ;;  %v3143_v4 = vsel %vm739_vm0, %v3041_v5, %v3043_v20  ;;  %v11155_v5 = vcombine.low %v13893_v1, %v13893_v1 }
 0x1e1   : > { %v13885_v25 = vadd.f32 %v1493_v22, %v13739_v23  ;;  %3376 = vmatprep.subr.bf16.mxu1 %v3061_v54  ;;  %4235 = vrot.lane.b32.xlu0 %v11151_v6, %s11881_s30  ;;  %v3151_v63 = vsel %vm739_vm0, %v3059_v28, %v3061_v54  ;;  %v1457_v37 = vpop.f32.mrf.mxu0  ;;  %v3720_v6 = vld [vmem:[%s11951_s29 + $0x260] sm:$0xff]  ;;  %v3721_v22 = vld [vmem:[%s11951_s29 + $0x268] sm:$0xff] }
 0x1e2   : > { %4237 = vrot.lane.b32.xlu1 %v11152_v39, %s11881_s30  ;;  %3337 = vmatprep.subr.bf16.mxu0 %v3143_v4  ;;  %v1495_v49 = vpop.f32.mrf.mxu1  ;;  %v11145_v37 = vcombine.low %v3717_v44, %v3721_v22 }
 0x1e3   : > { %17694 = vst [vmem:[#allocation96_spill] sm:$0xff] %v13885_v25  ;;  %3377 = vmatpush1.bf16.msra.mxu1 %v3151_v63  ;;  %v13896_v23 = vadd.f32 %v1495_v49, %v13747_v61  ;;  %3338 = vmatpush1.bf16.msra.mxu0 %v3142_v52  ;;  %v3025_v28 = vpop.permute.xlu0 %3024  ;;  %v11144_v61 = vcombine.high %v3716_v46, %v3720_v6  ;;  %v14005_v25 = vld [vmem:[%s11951_s29 + $0x158] sm:$0xff] }
 0x1e4   : > { %v3027_v30 = vpop.permute.xlu1 %3026  ;;  %v3135_v39 = vsel %vm739_vm0, %v13691_v45, %v3025_v28  ;;  %v1497_v54 = vpop.f32.mrf.mxu1  ;;  %v11143_v49 = vcombine.low %v3716_v46, %v3720_v6 }
 0x1e5   : > { %17695 = vst [vmem:[#allocation97_spill] sm:$0xff] %v13896_v23  ;;  %4239 = vrot.lane.b32.xlu0 %v11153_v21, %s11881_s30  ;;  %v3136_v51 = vsel %vm739_vm0, %v3025_v28, %v3027_v30  ;;  %v13916_v28 = vld [vmem:[%s11951_s29 + $0x270] sm:$0xff] }
 0x1e6   : > { %4241 = vrot.lane.b32.xlu1 %v11154_v60, %s11881_s30  ;;  %3339 = vmatprep.subr.bf16.mxu0 %v3136_v51  ;;  %v1498_v4 = vpop.f32.mrf.mxu1  ;;  %v13913_v60 = vld [vmem:[%s11951_s29 + $0x250] sm:$0xff]  ;;  %v11146_v51 = vcombine.high %v3717_v44, %v3721_v22 }
 0x1e7   : > { %3340 = vmatpush1.bf16.msra.mxu0 %v3135_v39  ;;  %v3045_v63 = vpop.permute.xlu0 %3044  ;;  %v11147_v6 = vcombine.low %v13913_v60, %v13916_v28 }
 0x1e8   : > { %v3009_v45 = vpop.permute.xlu1 %3008  ;;  %3378 = vmatprep.subr.bf16.mxu1 %v3045_v63  ;;  %v3144_v21 = vsel %vm739_vm0, %v3043_v20, %v3045_v63  ;;  %v3709_v63 = vld [vmem:[%s11951_s29 + $0x208] sm:$0xff] }
 0x1e9   : > { %4243 = vrot.lane.b32.xlu0 %v11155_v5, %s11881_s30  ;;  %3379 = vmatpush1.bf16.msra.mxu1 %v3144_v21  ;;  %v3128_v46 = vsel %vm739_vm0, %v13714_v58, %v3009_v45  ;;  %v3708_v5 = vld [vmem:[%s11951_s29 + $0x200] sm:$0xff]  ;;  %v3713_v21 = vld [vmem:[%s11951_s29 + $0x228] sm:$0xff] }
 0x1ea   : > { %4221 = vrot.lane.b32.xlu1 %v11144_v61, %s11881_s30  ;;  %v3712_v61 = vld [vmem:[%s11951_s29 + $0x220] sm:$0xff]  ;;  %v11137_v58 = vcombine.low %v3709_v63, %v3713_v21 }
 0x1eb   : > { %v3011_v52 = vpop.permute.xlu0 %3010  ;;  %v11136_v22 = vcombine.high %v3708_v5, %v3712_v61 }
 0x1ec   : > { %v3029_v39 = vpop.permute.xlu1 %3028  ;;  %v3129_v54 = vsel %vm739_vm0, %v3009_v45, %v3011_v52 }
 0x1ed   : > { %3380 = vmatprep.subr.bf16.mxu1 %v3029_v39  ;;  %4223 = vrot.lane.b32.xlu0 %v11145_v37, %s11881_s30  ;;  %v3137_v20 = vsel %vm739_vm0, %v3027_v30, %v3029_v39 }
 0x1ee   : > { %4219 = vrot.lane.b32.xlu1 %v11143_v49, %s11881_s30  ;;  %3341 = vmatprep.subr.bf16.mxu0 %v3129_v54  ;;  %v11138_v54 = vcombine.high %v3709_v63, %v3713_v21  ;;  %v13952_v63 = vld [vmem:[%s11951_s29 + $0x1f8] sm:$0xff] }
 0x1ef   : > { %3381 = vmatpush1.bf16.msra.mxu1 %v3137_v20  ;;  %3342 = vmatpush1.bf16.msra.mxu0 %v3128_v46  ;;  %v2993_v4 = vpop.permute.xlu0 %2992 }
 0x1f0   : > { %v2995_v37 = vpop.permute.xlu1 %2994  ;;  %v3121_v30 = vsel %vm739_vm0, %v13749_v0, %v2993_v4  ;;  %v11135_v0 = vcombine.low %v3708_v5, %v3712_v61  ;;  %v11132_v61 = vcombine.high %v13632_v3, %v13635_v29  ;;  %v2596_v3 = vld [vmem:[%s11951_s29 + $0x268] sm:$0xcc] }
 0x1f1   : > { %4225 = vrot.lane.b32.xlu0 %v11146_v51, %s11881_s30  ;;  %v3122_v44 = vsel %vm739_vm0, %v2993_v4, %v2995_v37  ;;  %v13949_v4 = vld [vmem:[%s11951_s29 + $0x1d8] sm:$0xff] }
 0x1f2   : > { %4227 = vrot.lane.b32.xlu1 %v11147_v6, %s11881_s30  ;;  %3343 = vmatprep.subr.bf16.mxu0 %v3122_v44  ;;  %v2595_v44 = vld [vmem:[%s11951_s29 + $0x260] sm:$0xcc] }
 0x1f3   : > { %3344 = vmatpush1.bf16.msra.mxu0 %v3121_v30  ;;  %v3013_v45 = vpop.permute.xlu0 %3012 }
 0x1f4   : > { %v2977_v49 = vpop.permute.xlu1 %2976  ;;  %3382 = vmatprep.subr.bf16.mxu1 %v3013_v45  ;;  %v3130_v39 = vsel %vm739_vm0, %v3011_v52, %v3013_v45  ;;  %v11139_v52 = vcombine.low %v13771_v33, %v13774_v24 }
 0x1f5   : > { %4205 = vrot.lane.b32.xlu0 %v11136_v22, %s11881_s30  ;;  %3383 = vmatpush1.bf16.msra.mxu1 %v3130_v39  ;;  %v3114_v5 = vsel %vm739_vm0, %v13776_v34, %v2977_v49  ;;  %v11133_v34 = vcombine.low %v13949_v4, %v13952_v63 }
 0x1f6   : > { %4207 = vrot.lane.b32.xlu1 %v11137_v58, %s11881_s30 }
 0x1f7   : > { %v2979_v20 = vpop.permute.xlu0 %2978 }
 0x1f8   : > { %v2997_v51 = vpop.permute.xlu1 %2996  ;;  %v3115_v46 = vsel %vm739_vm0, %v2977_v49, %v2979_v20  ;;  %v11798_v49 = vld [vmem:[%s11951_s29 + $0x288] sm:$0xff] }
 0x1f9   : > { %3384 = vmatprep.subr.bf16.mxu1 %v2997_v51  ;;  %4203 = vrot.lane.b32.xlu0 %v11135_v0, %s11881_s30  ;;  %v3123_v6 = vsel %vm739_vm0, %v2995_v37, %v2997_v51  ;;  %v11058_v39 = vcombine.high %v2596_v3, %v11798_v49  ;;  %v13973_v51 = vld [vmem:[%s11951_s29 + $0x198] sm:$0xff] }
 0x1fa   : > { %4209 = vrot.lane.b32.xlu1 %v11138_v54, %s11881_s30  ;;  %3345 = vmatprep.subr.bf16.mxu0 %v3115_v46  ;;  %v13976_v46 = vld [vmem:[%s11951_s29 + $0x1b8] sm:$0xff] }
 0x1fb   : > { %3385 = vmatpush1.bf16.msra.mxu1 %v3123_v6  ;;  %3346 = vmatpush1.bf16.msra.mxu0 %v3114_v5  ;;  %v2981_v21 = vpop.permute.xlu0 %2980  ;;  %v11799_v6 = vld [vmem:[%s11951_s29 + $0x280] sm:$0xff]  ;;  %v11126_v41 = vcombine.high %v13973_v51, %v13976_v46 }
 0x1fc   : > { %v3105_v37 = vpop.permute.xlu1 %3104  ;;  %3386 = vmatprep.subr.bf16.mxu1 %v2981_v21  ;;  %v3116_v30 = vsel %vm739_vm0, %v2979_v20, %v2981_v21  ;;  %v11124_v20 = vcombine.high %v13674_v26, %v13677_v47  ;;  %v17697_v26 = vld [vmem:[#allocation11_spill] sm:$0xff]  ;;  %v11057_v47 = vcombine.low %v2596_v3, %v11798_v49  ;;  %v17698_v49 = vld [vmem:[#allocation22_spill] sm:$0xff] }
 0x1fd   : > { %4211 = vrot.lane.b32.xlu0 %v11139_v52, %s11881_s30  ;;  %v3170_v54 = vsel %vm739_vm0, %v13811_v36, %v3105_v37  ;;  %v11056_v52 = vcombine.high %v2595_v44, %v11799_v6  ;;  %v17696_v36 = vld [vmem:[#allocation17_spill] sm:$0xff] }
 0x1fe   : > { %4197 = vrot.lane.b32.xlu1 %v11132_v61, %s11881_s30 }
 0x1ff   : > { %3387 = vmatpush1.bf16.msra.mxu1 %v3116_v30  ;;  %v3107_v29 = vpop.permute.xlu0 %3106 }
 0x200   : > { %v3109_v22 = vpop.permute.xlu1 %3108  ;;  %v3171_v58 = vsel %vm739_vm0, %v3105_v37, %v3107_v29 }
 0x201   : > { %3402 = vmatprep.subr.bf16.mxu1 %v3109_v22  ;;  %4199 = vrot.lane.b32.xlu0 %v11133_v34, %s11881_s30  ;;  %v3172_v45 = vsel %vm739_vm0, %v3107_v29, %v3109_v22  ;;  %v11125_v34 = vcombine.low %v13973_v51, %v13976_v46  ;;  %v3439_v29 = vrot.slane %v11058_v39, 2  ;;  %v11055_v22 = vcombine.low %v2595_v44, %v11799_v6  ;;  %v14008_v39 = vld [vmem:[%s11951_s29 + $0x178] sm:$0xff]  ;;  %v17699_v44 = vld [vmem:[#allocation14_spill] sm:$0xff] }
 0x202   : > { %3728 = vrot.lane.b32.xlu1 %v12164_v8, %s11886_s17  ;;  %v13966_v0 = vpop.f32.mrf.mxu0  ;;  %3361 = vmatprep.subr.bf16.mxu0 %v3171_v58  ;;  %v11800_v8 = vld [vmem:[%s11951_s29 + $0x298] sm:$0xff] }
 0x203   : > { %v13979_v5 = vpop.f32.mrf.mxu1  ;;  %3403 = vmatpush2.bf16.msra.mxu1 %v3172_v45  ;;  %3362 = vmatpush2.bf16.msra.mxu0 %v3170_v54  ;;  %v13981_v61 = vpop.permute.xlu0 %4189  ;;  %v11134_v45 = vcombine.high %v13949_v4, %v13952_v63  ;;  %v3435_v54 = vrot.slane %v11056_v52, 2  ;;  %v3437_v4 = vrot.slane %v11057_v47, 2  ;;  %v17702_v52 = vld [vmem:[#allocation19_spill] sm:$0xff]  ;;  %v3433_v42 = vrot.slane %v11055_v22, 2 }
 0x204   : > { %v13983_v21 = vpop.permute.xlu1 %4191  ;;  %v13985_v30 = vpop.f32.mrf.mxu0  ;;  %11065 = vmatprep.subr.msk.bf16.mxu1 %vm1311_vm3, %v17696_v36  ;;  %11063 = vmatprep.subr.msk.bf16.mxu0 %vm1311_vm3, %v17697_v26 }
 0x205   : > { %v13991_v37 = vpop.f32.mrf.mxu1  ;;  %3730 = vrot.lane.b32.xlu0 %v17654_v35, %s11886_s17  ;;  %v11801_v35 = vld [vmem:[%s11951_s29 + $0x290] sm:$0xff]  ;;  %s11892_s17 = smov 104  }
 0x206   : > { %3405 = vmatmul.mubr.bf16.vlgmr.msra.gmra.mxu1 %v13839_v31  ;;  %4181 = vrot.lane.b32.xlu1 %v11124_v20, %s11881_s30  ;;  %v2137_v58 = vpop.f32.mrf.mxu0 }
 0x207   : > { %v2178_v3 = vpop.f32.mrf.mxu1  ;;  %3364 = vmatmul.mubr.bf16.vlgmr.msra.gmra.mxu0 %v13839_v31  ;;  %3512 = vmatpush1.bf16.msra.mxu1 %v17698_v49  ;;  %v14002_v23 = vpop.permute.xlu0 %4187  ;;  %v17700_v58 = vld [vmem:[#allocation24_spill] sm:$0xff]  ;;  %v11116_v49 = vcombine.high %v13707_v12, %v13710_v11  ;;  %v2597_v12 = vld [vmem:[%s11951_s29 + $0x270] sm:$0xcc] }
 0x208   : > { %3471 = vmatpush1.bf16.msra.mxu0 %v17699_v44  ;;  %v14011_v20 = vpop.permute.xlu1 %4193  ;;  %v2138_v6 = vpop.f32.mrf.mxu0  ;;  %3513 = vmatprep.subr.bf16.mxu1 %v17700_v58  ;;  %v17701_v31 = vld [vmem:[#allocation16_spill] sm:$0xff]  ;;  %v3440_v3 = vsel %vm1178_vm4, %v3439_v29, %v17702_v52  ;;  %v11117_v44 = vcombine.low %v14005_v25, %v14008_v39  ;;  %v17707_v52 = vld [vmem:[#allocation15_spill] sm:$0xff] }
 0x209   : > { %v2179_v63 = vpop.f32.mrf.mxu1  ;;  %4183 = vrot.lane.b32.xlu0 %v11125_v34, %s11881_s30  ;;  %3472 = vmatprep.subr.bf16.mxu0 %v17701_v31  ;;  %v17703_v6 = vld [vmem:[#allocation13_spill] sm:$0xff]  ;;  %v2598_v34 = vld [vmem:[%s11951_s29 + $0x278] sm:$0xcc] }
 0x20a   : > { %4201 = vrot.lane.b32.xlu1 %v11134_v45, %s11881_s30  ;;  %v3436_v47 = vsel %vm1178_vm4, %v3435_v54, %v17703_v6  ;;  %3533 = vmatprep.mubr.bf16.mxu1 %v17595_v27  ;;  %v17704_v63 = vld [vmem:[#allocation28_spill] sm:$0xff]  ;;  %v17706_v45 = vld [vmem:[#allocation23_spill] sm:$0xff]  ;;  %v3434_v6 = vsel %vm1178_vm4, %v3433_v42, %v17707_v52  ;;  %v11062_v59 = vcombine.high %v2598_v34, %v11800_v8 }
 0x20b   : > { %3514 = vmatpush1.bf16.msra.mxu1 %v17704_v63  ;;  %v14028_v29 = vpop.permute.xlu0 %4195  ;;  %3492 = vmatprep.mubr.bf16.mxu0 %v17595_v27  ;;  %v17705_v11 = vld [vmem:[#allocation20_spill] sm:$0xff]  ;;  %v3438_v54 = vsel %vm1178_vm4, %v3437_v4, %v17706_v45  ;;  %v11060_v4 = vcombine.high %v2597_v12, %v11801_v35  ;;  %v11061_v51 = vcombine.low %v2598_v34, %v11800_v8  ;;  %v11802_v45 = vld [vmem:[%s17368_s1] sm:$0xf] }
 0x20c   : > { %3473 = vmatpush1.bf16.msra.mxu0 %v17705_v11  ;;  %v14033_v22 = vpop.permute.xlu1 %4173  ;;  %3515 = vmatprep.subr.bf16.mxu1 %v3440_v3  ;;  %v3679_v3 = vld [vmem:[%s11951_s29 + $0x118] sm:$0xff]  ;;  %v3447_v46 = vrot.slane %v11062_v59, 2 }
 0x20d   : > { %4165 = vrot.lane.b32.xlu0 %v11116_v49, %s11881_s30  ;;  %3474 = vmatprep.subr.bf16.mxu0 %v3436_v47  ;;  %v17708_v47 = vld [vmem:[#allocation44_spill] sm:$0xff]  ;;  %v11109_v57 = vcombine.low %v3679_v3, %v3683_v9  ;;  %v3443_v8 = vrot.slane %v11060_v4, 2  ;;  %v11100_v4 = vcombine.high %v13763_v53, %v13766_v32  ;;  %v17717_v32 = vld [vmem:[#allocation42_spill] sm:$0xff] }
 0x20e   : > { %4167 = vrot.lane.b32.xlu1 %v11117_v44, %s11881_s30  ;;  %v11059_v44 = vcombine.low %v2597_v12, %v11801_v35  ;;  %v3671_v52 = vld [vmem:[%s11951_s29 + $0xd8] sm:$0xff]  ;;  %v17711_v35 = vld [vmem:[#allocation41_spill] sm:$0xff] }
 0x20f   : > { %3516 = vmatpush1.bf16.msra.mxu1 %v3438_v54  ;;  %v14049_v49 = vpop.permute.xlu0 %4175  ;;  %v11118_v54 = vcombine.high %v14005_v25, %v14008_v39  ;;  %v3675_v59 = vld [vmem:[%s11951_s29 + $0xf8] sm:$0xff]  ;;  %v17714_v25 = vld [vmem:[#allocation46_spill] sm:$0xff] }
 0x210   : > { %3475 = vmatpush1.bf16.msra.mxu0 %v3434_v6  ;;  %v14051_v42 = vpop.permute.xlu1 %4171  ;;  %11069 = vmatprep.subr.msk.bf16.mxu1 %vm1311_vm3, %v17708_v47  ;;  %v17712_v6 = vld [vmem:[#allocation49_spill] sm:$0xff]  ;;  %v3445_v47 = vrot.slane %v11061_v51, 2  ;;  %v3448_v39 = vsel %vm1178_vm4, %v3447_v46, %v17714_v25  ;;  %v3663_v25 = vld [vmem:[%s11951_s29 + $0x98] sm:$0xff] }
 0x211   : > { %4185 = vrot.lane.b32.xlu0 %v11126_v41, %s11881_s30  ;;  %11067 = vmatprep.subr.msk.bf16.mxu0 %vm1311_vm3, %v17709_v7  ;;  %v17710_v41 = vld [vmem:[#allocation10_spill] sm:$0xff]  ;;  %v11101_v7 = vcombine.low %v3671_v52, %v3675_v59 }
 0x212   : > { %11066 = vmatmul.mubr.msk.bf16.vlgmr.msra.gmra.mxu1 %vm3457_vm12, %v11802_v45  ;;  %4149 = vrot.lane.b32.xlu1 %v11108_v48, %s11881_s30  ;;  %v17713_v48 = vld [vmem:[#allocation43_spill] sm:$0xff]  ;;  %v3446_v53 = vsel %vm1178_vm4, %v3445_v47, %v12843_v13  ;;  %v4300_v47 = vsel %vm739_vm0, %v14002_v23, %v13981_v61 }
 0x213   : > { %11064 = vmatmul.mubr.msk.bf16.vlgmr.msra.gmra.mxu0 %vm3457_vm12, %v11802_v45  ;;  %3594 = vmatpush1.bf16.msra.mxu1 %v17710_v41  ;;  %v4178_v34 = vpop.permute.xlu0 %4177  ;;  %v3441_v41 = vrot.slane %v11059_v44, 2 }
 0x214   : > { %3553 = vmatpush1.bf16.msra.mxu0 %v17711_v35  ;;  %v14070_v12 = vpop.permute.xlu1 %4179  ;;  %3595 = vmatprep.subr.bf16.mxu1 %v17712_v6  ;;  %v17715_v35 = vld [vmem:[#allocation39_spill] sm:$0xff] }
 0x215   : > { %4151 = vrot.lane.b32.xlu0 %v11109_v57, %s11881_s30  ;;  %3554 = vmatprep.subr.bf16.mxu0 %v17713_v48  ;;  %v3444_v43 = vsel %vm1178_vm4, %v3443_v8, %v17715_v35  ;;  %v17716_v57 = vld [vmem:[#allocation47_spill] sm:$0xff]  ;;  %v3442_v44 = vsel %vm1178_vm4, %v3441_v41, %v17717_v32  ;;  %v11092_v8 = vcombine.high %v13796_v10, %v13799_v62  ;;  %v3667_v35 = vld [vmem:[%s11951_s29 + $0xb8] sm:$0xff] }
 0x216   : > { %4169 = vrot.lane.b32.xlu1 %v11118_v54, %s11881_s30  ;;  %3615 = vmatprep.mubr.bf16.mxu1 %v17595_v27  ;;  %v11110_v54 = vcombine.high %v3679_v3, %v3683_v9  ;;  %v4301_v9 = vsel %vm739_vm0, %v13981_v61, %v13983_v21  ;;  %v11093_v62 = vcombine.low %v3663_v25, %v3667_v35  ;;  %v3655_v41 = vld [vmem:[%s11951_s29 + $0x58] sm:$0xff]  ;;  %v14451_v6 = vld [vmem:[%s11951_s29 + $0x90] sm:$0xff] }
 0x217   : > { %3596 = vmatpush1.bf16.msra.mxu1 %v12903_v15  ;;  %v4158_v51 = vpop.permute.xlu0 %4157  ;;  %3574 = vmatprep.mubr.bf16.mxu0 %v17595_v27  ;;  %v4302_v10 = vsel %vm739_vm0, %v13983_v21, %v14011_v20  ;;  %v11102_v3 = vcombine.high %v3671_v52, %v3675_v59  ;;  %v4294_v21 = vsel %vm739_vm0, %v14033_v22, %v14049_v49 }
 0x218   : > { %3555 = vmatpush1.bf16.msra.mxu0 %v17716_v57  ;;  %v4160_v46 = vpop.permute.xlu1 %4159  ;;  %3597 = vmatprep.subr.bf16.mxu1 %v3448_v39  ;;  %v4303_v39 = vsel %vm739_vm0, %v14011_v20, %v14028_v29  ;;  %v11084_v61 = vcombine.high %v13830_v40, %v13833_v38  ;;  %v4295_v20 = vsel %vm739_vm0, %v14049_v49, %v4178_v34 }
 0x219   : > { %4133 = vrot.lane.b32.xlu0 %v11100_v4, %s11881_s30  ;;  %3556 = vmatprep.subr.bf16.mxu0 %v3444_v43  ;;  %v4293_v52 = vsel %vm739_vm0, %v14051_v42, %v14033_v22  ;;  %v11094_v40 = vcombine.high %v3663_v25, %v3667_v35  ;;  %v11076_v49 = vcombine.high %v13860_v14, %v13863_v18  ;;  %v3651_v22 = vld [vmem:[%s11951_s29 + $0x38] sm:$0xff] }
 0x21a   : > { %4135 = vrot.lane.b32.xlu1 %v11101_v7, %s11881_s30  ;;  %v4296_v7 = vsel %vm739_vm0, %v4178_v34, %v14070_v12  ;;  %v3647_v34 = vld [vmem:[%s11951_s29 + $0x18] sm:$0xff] }
 0x21b   : > { %3598 = vmatpush1.bf16.msra.mxu1 %v3446_v53  ;;  %v4156_v13 = vpop.permute.xlu0 %4155  ;;  %v3659_v53 = vld [vmem:[%s11951_s29 + $0x78] sm:$0xff]  ;;  %v11077_v18 = vcombine.low %v3647_v34, %v3651_v22 }
 0x21c   : > { %3557 = vmatpush1.bf16.msra.mxu0 %v3442_v44  ;;  %4477 = vmatprep.subr.bf16.mxu1 %v4303_v39  ;;  %v4162_v43 = vpop.permute.xlu1 %4161  ;;  %v4286_v42 = vsel %vm739_vm0, %v4156_v13, %v4158_v51  ;;  %v11086_v14 = vcombine.high %v3655_v41, %v3659_v53 }
 0x21d   : > { %4436 = vmatprep.subr.bf16.mxu0 %v4301_v9  ;;  %4153 = vrot.lane.b32.xlu0 %v11110_v54, %s11881_s30  ;;  %v4287_v54 = vsel %vm739_vm0, %v4158_v51, %v4160_v46  ;;  %v4288_v38 = vsel %vm739_vm0, %v4160_v46, %v4162_v43 }
 0x21e   : > { %11070 = vmatmul.mubr.msk.bf16.vlgmr.msra.gmra.mxu1 %vm3457_vm12, %v11802_v45  ;;  %4117 = vrot.lane.b32.xlu1 %v11092_v8, %s11881_s30 }
 0x21f   : > { %11068 = vmatmul.mubr.msk.bf16.vlgmr.msra.gmra.mxu0 %vm3457_vm12, %v11802_v45  ;;  %4478 = vmatpush1.bf16.msra.mxu1 %v4302_v10  ;;  %v14114_v4 = vpop.permute.xlu0 %4163  ;;  %v11085_v45 = vcombine.low %v3655_v41, %v3659_v53  ;;  %vm289_vm12 = vcmask 339272  }
 0x220   : > { %4437 = vmatpush1.bf16.msra.mxu0 %v4300_v47  ;;  %4479 = vmatprep.subr.bf16.mxu1 %v4296_v7  ;;  %v4142_v32 = vpop.permute.xlu1 %4141  ;;  %v4289_v23 = vsel %vm739_vm0, %v4162_v43, %v14114_v4  ;;  %v3727_v47 = vld [vmem:[%s11951_s29 + $0x298] sm:$0xff]  ;;  %295 = vst.msk [vmem:[#allocation2 + $0xd4] sm:$0xf] %vm289_vm12, %v17595_v27  ;;  %290 = vst.msk [vmem:[#allocation2 + $0x20] sm:$0xf] %vm289_vm12, %v17595_v27 }
 0x221   : > { %4438 = vmatprep.subr.bf16.mxu0 %v4294_v21  ;;  %4119 = vrot.lane.b32.xlu0 %v11093_v62, %s11881_s30  ;;  %v11078_v62 = vcombine.high %v3647_v34, %v3651_v22  ;;  %v11157_v21 = vcombine.low %v3727_v47, %v3727_v47  ;;  %291 = vst.msk [vmem:[#allocation2 + $0x44] sm:$0xf] %vm289_vm12, %v17595_v27  ;;  %292 = vst.msk [vmem:[#allocation2 + $0x68] sm:$0xf] %vm289_vm12, %v17595_v27 }
 0x222   : > { %4137 = vrot.lane.b32.xlu1 %v11102_v3, %s11881_s30  ;;  %v11156_v3 = vcombine.high %v13893_v1, %v13893_v1  ;;  %v3723_v1 = vld [vmem:[%s11951_s29 + $0x278] sm:$0xff]  ;;  %293 = vst.msk [vmem:[#allocation2 + $0x8c] sm:$0xf] %vm289_vm12, %v17595_v27  ;;  %294 = vst.msk [vmem:[#allocation2 + $0xb0] sm:$0xf] %vm289_vm12, %v17595_v27 }
 0x223   : > { %4480 = vmatpush1.bf16.msra.mxu1 %v4295_v20  ;;  %v4144_v59 = vpop.permute.xlu0 %4143  ;;  %296 = vst.msk [vmem:[#allocation2 + $0xf8] sm:$0xf] %vm289_vm12, %v17595_v27  ;;  %297 = vst.msk [vmem:[#allocation2 + $0x11c] sm:$0xf] %vm289_vm12, %v17595_v27 }
 0x224   : > { %4439 = vmatpush1.bf16.msra.mxu0 %v4293_v52  ;;  %4481 = vmatprep.subr.bf16.mxu1 %v4289_v23  ;;  %v4140_v44 = vpop.permute.xlu1 %4139  ;;  %v4280_v9 = vsel %vm739_vm0, %v4142_v32, %v4144_v59  ;;  %302 = vst.msk [vmem:[#allocation3 + $0x20] sm:$0xf] %vm289_vm12, %v17595_v27  ;;  %303 = vst.msk [vmem:[#allocation3 + $0x44] sm:$0xf] %vm289_vm12, %v17595_v27 }
 0x225   : > { %4440 = vmatprep.subr.bf16.mxu0 %v4287_v54  ;;  %4101 = vrot.lane.b32.xlu0 %v11084_v61, %s11881_s30  ;;  %v4279_v51 = vsel %vm739_vm0, %v4140_v44, %v4142_v32  ;;  %v11158_v61 = vcombine.high %v3727_v47, %v3727_v47  ;;  %304 = vst.msk [vmem:[#allocation3 + $0x68] sm:$0xf] %vm289_vm12, %v17595_v27  ;;  %305 = vst.msk [vmem:[#allocation3 + $0x8c] sm:$0xf] %vm289_vm12, %v17595_v27  ;;  %vm306_vm12 = vcmask 1044464  }
 0x226   : > { %4103 = vrot.lane.b32.xlu1 %v11085_v45, %s11881_s30  ;;  %v3719_v45 = vld [vmem:[%s11951_s29 + $0x258] sm:$0xff]  ;;  %307 = vst.msk [vmem:[#allocation4] sm:$0xf] %vm306_vm12, %v17595_v27  ;;  %308 = vst.msk [vmem:[#allocation4 + $0x24] sm:$0xf] %vm306_vm12, %v17595_v27 }
 0x227   : > { %4482 = vmatpush1.bf16.msra.mxu1 %v4288_v38  ;;  %v4146_v8 = vpop.permute.xlu0 %4145  ;;  %v11148_v38 = vcombine.high %v13913_v60, %v13916_v28  ;;  %309 = vst.msk [vmem:[#allocation4 + $0x48] sm:$0xf] %vm306_vm12, %v17595_v27  ;;  %310 = vst.msk [vmem:[#allocation4 + $0x6c] sm:$0xf] %vm306_vm12, %v17595_v27 }
 0x228   : > { %4441 = vmatpush1.bf16.msra.mxu0 %v4286_v42  ;;  %v14141_v39 = vpop.permute.xlu1 %4147  ;;  %v4281_v25 = vsel %vm739_vm0, %v4144_v59, %v4146_v8  ;;  %v3711_v42 = vld [vmem:[%s11951_s29 + $0x218] sm:$0xff] }
 0x229   : > { %4442 = vmatprep.subr.bf16.mxu0 %v4280_v9  ;;  %4121 = vrot.lane.b32.xlu0 %v11094_v40, %s11881_s30  ;;  %v4282_v46 = vsel %vm739_vm0, %v4146_v8, %v14141_v39  ;;  %v3715_v8 = vld [vmem:[%s11951_s29 + $0x238] sm:$0xff] }
 0x22a   : > { %4085 = vrot.lane.b32.xlu1 %v11076_v49, %s11881_s30  ;;  %4483 = vmatprep.subr.bf16.mxu1 %v4282_v46  ;;  %v11149_v49 = vcombine.low %v3719_v45, %v3723_v1  ;;  %v11141_v60 = vcombine.low %v3711_v42, %v3715_v8  ;;  %v11142_v47 = vcombine.high %v3711_v42, %v3715_v8  ;;  %v11804_v8 = vld [vmem:[%s11951_s29 + $0x1c8] sm:$0xff] }
 0x22b   : > { %4484 = vmatpush1.bf16.msra.mxu1 %v4281_v25  ;;  %v4126_v35 = vpop.permute.xlu0 %4125 }
 0x22c   : > { %4443 = vmatpush1.bf16.msra.mxu0 %v4279_v51  ;;  %v4128_v13 = vpop.permute.xlu1 %4127 }
 0x22d   : > { %4087 = vrot.lane.b32.xlu0 %v11077_v18, %s11881_s30  ;;  %v4273_v43 = vsel %vm739_vm0, %v4126_v35, %v4128_v13 }
 0x22e   : > { %4105 = vrot.lane.b32.xlu1 %v11086_v14, %s11881_s30  ;;  %v14153_v10 = vpop.f32.mrf.mxu0  ;;  %4444 = vmatprep.subr.bf16.mxu0 %v4273_v43 }
 0x22f   : > { %v4124_v7 = vpop.permute.xlu0 %4123 }
 0x230   : > { %v4272_v41 = vsel %vm739_vm0, %v4124_v7, %v4126_v35  ;;  %v4130_v53 = vpop.permute.xlu1 %4129  ;;  %v14159_v32 = vpop.f32.mrf.mxu0 }
 0x231   : > { %4089 = vrot.lane.b32.xlu0 %v11078_v62, %s11881_s30  ;;  %4445 = vmatpush1.bf16.msra.mxu0 %v4272_v41  ;;  %v4274_v40 = vsel %vm739_vm0, %v4128_v13, %v4130_v53  ;;  %v17718_v13 = vcombine.high %v13771_v33, %v13774_v24  ;;  %v11150_v62 = vcombine.high %v3719_v45, %v3723_v1  ;;  %v4883_v33 = vld [vmem:[%s11951_s29 + $0x1a0] sm:$0xff] }
 0x232   : > { %4245 = vrot.lane.b32.xlu1 %v11156_v3, %s11881_s30  ;;  %v2219_v23 = vpop.f32.mrf.mxu0 }
 0x233   : > { %v14163_v20 = vpop.permute.xlu0 %4131 }
 0x234   : > { %v4110_v52 = vpop.permute.xlu1 %4109  ;;  %v2220_v59 = vpop.f32.mrf.mxu0  ;;  %v4275_v44 = vsel %vm739_vm0, %v4130_v53, %v14163_v20 }
 0x235   : > { %v14169_v54 = vpop.f32.mrf.mxu1  ;;  %4247 = vrot.lane.b32.xlu0 %v11157_v21, %s11881_s30  ;;  %4485 = vmatprep.subr.bf16.mxu1 %v4275_v44 }
 0x236   : > { %4249 = vrot.lane.b32.xlu1 %v11158_v61, %s11881_s30  ;;  %4486 = vmatpush1.bf16.msra.mxu1 %v4274_v40 }
 0x237   : > { %v14176_v34 = vpop.f32.mrf.mxu1  ;;  %v4112_v22 = vpop.permute.xlu0 %4111 }
 0x238   : > { %v4108_v9 = vpop.permute.xlu1 %4107  ;;  %v4266_v25 = vsel %vm739_vm0, %v4110_v52, %v4112_v22 }
 0x239   : > { %v4265_v46 = vsel %vm739_vm0, %v4108_v9, %v4110_v52  ;;  %v2260_v18 = vpop.f32.mrf.mxu1  ;;  %4229 = vrot.lane.b32.xlu0 %v11148_v38, %s11881_s30  ;;  %4446 = vmatprep.subr.bf16.mxu0 %v4266_v25  ;;  %v4884_v52 = vld [vmem:[%s11951_s29 + $0x1a8] sm:$0xff]  ;;  %v17722_v38 = vld [vmem:[#allocation32_spill] sm:$0xff] }
 0x23a   : > { %4231 = vrot.lane.b32.xlu1 %v11149_v49, %s11881_s30  ;;  %4447 = vmatpush1.bf16.msra.mxu0 %v4265_v46  ;;  %v11233_v9 = vcombine.low %v4884_v52, %v11804_v8 }
 0x23b   : > { %v2261_v28 = vpop.f32.mrf.mxu1  ;;  %v4114_v14 = vpop.permute.xlu0 %4113 }
 0x23c   : > { %v14184_v51 = vpop.permute.xlu1 %4115  ;;  %v4267_v35 = vsel %vm739_vm0, %v4112_v22, %v4114_v14  ;;  %v17723_v22 = vld [vmem:[#allocation40_spill] sm:$0xff] }
 0x23d   : > { %4213 = vrot.lane.b32.xlu0 %v17718_v13, %s11881_s30  ;;  %v4268_v43 = vsel %vm739_vm0, %v4114_v14, %v14184_v51  ;;  %v17725_v13 = vld [vmem:[#allocation36_spill] sm:$0xff] }
 0x23e   : > { %4215 = vrot.lane.b32.xlu1 %v11141_v60, %s11881_s30  ;;  %v2449_v3 = vpop.f32.mrf.mxu0  ;;  %4487 = vmatprep.subr.bf16.mxu1 %v4268_v43  ;;  %v17726_v43 = vld [vmem:[#allocation8_spill] sm:$0xff] }
 0x23f   : > { %v14195_v7 = vadd.f32 %v2449_v3, %v13966_v0  ;;  %4488 = vmatpush1.bf16.msra.mxu1 %v4267_v35  ;;  %v4094_v41 = vpop.permute.xlu0 %4093  ;;  %v11803_v0 = vld [vmem:[%s11951_s29 + $0x1c0] sm:$0xff]  ;;  %v14225_v35 = vld [vmem:[%s11951_s29 + $0x1b0] sm:$0xff] }
 0x240   : > { %v4096_v53 = vpop.permute.xlu1 %4095  ;;  %v2451_v21 = vpop.f32.mrf.mxu0  ;;  %v11232_v1 = vcombine.high %v4883_v33, %v11803_v0 }
 0x241   : > { %17719 = vst [vmem:[#allocation17_spill] sm:$0xff] %v14195_v7  ;;  %v14199_v24 = vadd.f32 %v2451_v21, %v13985_v30  ;;  %4233 = vrot.lane.b32.xlu0 %v11150_v62, %s11881_s30  ;;  %v4259_v23 = vsel %vm739_vm0, %v4094_v41, %v4096_v53  ;;  %v14232_v62 = vrot.slane %v11233_v9, 2  ;;  %v17727_v21 = vld [vmem:[#allocation27_spill] sm:$0xff] }
 0x242   : > { %4217 = vrot.lane.b32.xlu1 %v11142_v47, %s11881_s30  ;;  %4448 = vmatprep.subr.bf16.mxu0 %v4259_v23  ;;  %v2453_v61 = vpop.f32.mrf.mxu0  ;;  %v14220_v18 = vrot.slane %v11232_v1, 2  ;;  %v11234_v47 = vcombine.high %v4884_v52, %v11804_v8 }
 0x243   : > { %17720 = vst [vmem:[#allocation11_spill] sm:$0xff] %v14199_v24  ;;  %v4092_v45 = vpop.permute.xlu0 %4091  ;;  %v14240_v61 = vld [vmem:[%s11951_s29 + $0x1d0] sm:$0xff] }
 0x244   : > { %v4258_v59 = vsel %vm739_vm0, %v4092_v45, %v4094_v41  ;;  %v4098_v44 = vpop.permute.xlu1 %4097  ;;  %v2490_v40 = vpop.f32.mrf.mxu1  ;;  %v4875_v45 = vld [vmem:[%s11951_s29 + $0x160] sm:$0xff] }
 0x245   : > { %v14208_v30 = vadd.f32 %v2490_v40, %v13979_v5  ;;  %5326 = vrot.lane.b32.xlu0 %v17722_v38, %s11881_s30  ;;  %4449 = vmatpush1.bf16.msra.mxu0 %v4258_v59  ;;  %v2454_v49 = vpop.f32.mrf.mxu0  ;;  %v11231_v5 = vcombine.low %v4883_v33, %v11803_v0  ;;  %v5205_v33 = vsel %vm1178_vm4, %v14220_v18, %v17727_v21  ;;  %v4879_v0 = vld [vmem:[%s11951_s29 + $0x180] sm:$0xff]  ;;  %v4880_v40 = vld [vmem:[%s11951_s29 + $0x188] sm:$0xff] }
 0x246   : > { %5328 = vrot.lane.b32.xlu1 %v17723_v22, %s11881_s30  ;;  %v2492_v42 = vpop.f32.mrf.mxu1  ;;  %v17728_v49 = vld [vmem:[#allocation7_spill] sm:$0xff]  ;;  %v11224_v8 = vcombine.high %v4875_v45, %v4879_v0 }
 0x247   : > { %17721 = vst [vmem:[#allocation22_spill] sm:$0xff] %v14208_v30  ;;  %v14216_v25 = vadd.f32 %v2492_v42, %v13991_v37  ;;  %v14218_v46 = vpop.permute.xlu0 %4099  ;;  %v4260_v37 = vsel %vm739_vm0, %v4096_v53, %v4098_v44  ;;  %v14237_v23 = vrot.slane %v11231_v5, 2  ;;  %v11235_v53 = vcombine.low %v14225_v35, %v14240_v61 }
 0x248   : > { %v4078_v60 = vpop.permute.xlu1 %4077  ;;  %v4261_v28 = vsel %vm739_vm0, %v4098_v44, %v14218_v46  ;;  %v2494_v14 = vpop.f32.mrf.mxu1  ;;  %v4876_v44 = vld [vmem:[%s11951_s29 + $0x168] sm:$0xff]  ;;  %v5206_v22 = vsel %vm1178_vm4, %v14232_v62, %v17728_v49  ;;  %v5194_v42 = vrot.slane %v11234_v47, 2  ;;  %v17732_v47 = vld [vmem:[#allocation35_spill] sm:$0xff] }
 0x249   : > { %17724 = vst [vmem:[#allocation14_spill] sm:$0xff] %v14216_v25  ;;  %5324 = vrot.lane.b32.xlu0 %v17725_v13, %s11881_s30  ;;  %4489 = vmatprep.subr.bf16.mxu1 %v4261_v28  ;;  %v17730_v28 = vld [vmem:[#allocation31_spill] sm:$0xff]  ;;  %v11225_v14 = vcombine.low %v4876_v44, %v4880_v40 }
 0x24a   : > { %5330 = vrot.lane.b32.xlu1 %v17726_v43, %s11881_s30  ;;  %4490 = vmatpush1.bf16.msra.mxu1 %v4260_v37  ;;  %v2495_v3 = vpop.f32.mrf.mxu1  ;;  %v5207_v21 = vsel %vm1178_vm4, %v5194_v42, %v17732_v47  ;;  %v14285_v49 = vld [vmem:[%s11951_s29 + $0x190] sm:$0xff] }
 0x24b   : > { %v4080_v41 = vpop.permute.xlu0 %4079 }
 0x24c   : > { %v4076_v1 = vpop.permute.xlu1 %4075  ;;  %v4252_v59 = vsel %vm739_vm0, %v4078_v60, %v4080_v41 }
 0x24d   : > { %v4251_v52 = vsel %vm739_vm0, %v4076_v1, %v4078_v60  ;;  %5332 = vrot.lane.b32.xlu0 %v12957_v55, %s11881_s30  ;;  %4450 = vmatprep.subr.bf16.mxu0 %v4252_v59  ;;  %v5204_v60 = vsel %vm1178_vm4, %v14237_v23, %v17730_v28  ;;  %v14262_v55 = vrot.slane %v11235_v53, 2  ;;  %v11223_v53 = vcombine.low %v4875_v45, %v4879_v0  ;;  %v4867_v28 = vld [vmem:[%s11951_s29 + $0x120] sm:$0xff] }
 0x24e   : > { %5310 = vrot.lane.b32.xlu1 %v5205_v33, %s11881_s30  ;;  %v2531_v38 = vpop.f32.mrf.mxu0  ;;  %4451 = vmatpush1.bf16.msra.mxu0 %v4251_v52  ;;  %v5174_v33 = vrot.slane %v11224_v8, 2  ;;  %v14279_v59 = vrot.slane %v11225_v14, 2  ;;  %v11226_v52 = vcombine.high %v4876_v44, %v4880_v40  ;;  %v4871_v8 = vld [vmem:[%s11951_s29 + $0x140] sm:$0xff] }
 0x24f   : > { %v14257_v9 = vadd.f32 %v2531_v38, %v14153_v10  ;;  %v4082_v5 = vpop.permute.xlu0 %4081  ;;  %v14282_v38 = vld [vmem:[%s11951_s29 + $0x170] sm:$0xff]  ;;  %v11216_v47 = vcombine.high %v4867_v28, %v4871_v8 }
 0x250   : > { %v14264_v13 = vpop.permute.xlu1 %4083  ;;  %v2533_v37 = vpop.f32.mrf.mxu0  ;;  %v4253_v43 = vsel %vm739_vm0, %v4080_v41, %v4082_v5  ;;  %v5191_v40 = vsel %vm1178_vm4, %v5174_v33, %v14220_v18  ;;  %v11227_v14 = vcombine.low %v14282_v38, %v14285_v49 }
 0x251   : > { %17729 = vst [vmem:[#allocation24_spill] sm:$0xff] %v14257_v9  ;;  %v14268_v3 = vadd.f32 %v2533_v37, %v14159_v32  ;;  %5312 = vrot.lane.b32.xlu0 %v5206_v22, %s11881_s30  ;;  %v4254_v10 = vsel %vm739_vm0, %v4082_v5, %v14264_v13  ;;  %v5208_v32 = vsel %vm1178_vm4, %v14262_v55, %v12926_v16 }
 0x252   : > { %5308 = vrot.lane.b32.xlu1 %v5204_v60, %s11881_s30  ;;  %4491 = vmatprep.subr.bf16.mxu1 %v4254_v10  ;;  %v2535_v41 = vpop.f32.mrf.mxu0  ;;  %v5172_v60 = vrot.slane %v11223_v53, 2  ;;  %v5178_v10 = vrot.slane %v11226_v52, 2  ;;  %v5180_v52 = vrot.slane %v11227_v14, 2 }
 0x253   : > { %17731 = vst [vmem:[#allocation16_spill] sm:$0xff] %v14268_v3  ;;  %4492 = vmatpush1.bf16.msra.mxu1 %v4253_v43  ;;  %v4236_v1 = vpop.permute.xlu0 %4235  ;;  %v5193_v43 = vsel %vm1178_vm4, %v14279_v59, %v14232_v62  ;;  %v4872_v41 = vld [vmem:[%s11951_s29 + $0x148] sm:$0xff] }
 0x254   : > { %v4238_v22 = vpop.permute.xlu1 %4237  ;;  %v2572_v5 = vpop.f32.mrf.mxu1  ;;  %v5189_v62 = vsel %vm1178_vm4, %v5172_v60, %v14237_v23 }
 0x255   : > { %v14290_v45 = vadd.f32 %v2572_v5, %v14169_v54  ;;  %5314 = vrot.lane.b32.xlu0 %v5207_v21, %s11881_s30  ;;  %v2536_v0 = vpop.f32.mrf.mxu0  ;;  %v4321_v16 = vsel %vm739_vm0, %v4236_v1, %v4238_v22  ;;  %v4868_v21 = vld [vmem:[%s11951_s29 + $0x128] sm:$0xff] }
 0x256   : > { %5316 = vrot.lane.b32.xlu1 %v5208_v32, %s11881_s30  ;;  %v2574_v44 = vpop.f32.mrf.mxu1  ;;  %v11217_v5 = vcombine.low %v4868_v21, %v4872_v41 }
 0x257   : > { %17733 = vst [vmem:[#allocation19_spill] sm:$0xff] %v14290_v45  ;;  %v14300_v37 = vadd.f32 %v2574_v44, %v14176_v34  ;;  %v4240_v54 = vpop.permute.xlu0 %4239  ;;  %v4413_v34 = vsel %vm2074_vm6, %v4321_v16, 0  ;;  %v5195_v44 = vsel %vm1178_vm4, %v5178_v10, %v5194_v42  ;;  %v5197_v42 = vsel %vm1178_vm4, %v5180_v52, %v14262_v55  ;;  %v14374_v45 = vld [vmem:[%s11951_s29 + $0x110] sm:$0xff] }
 0x258   : > { %v4242_v1 = vpop.permute.xlu1 %4241  ;;  %v4322_v32 = vsel %vm739_vm0, %v4238_v22, %v4240_v54  ;;  %v2576_v18 = vpop.f32.mrf.mxu1 }
 0x259   : > { %17734 = vst [vmem:[#allocation13_spill] sm:$0xff] %v14300_v37  ;;  %5294 = vrot.lane.b32.xlu0 %v5191_v40, %s11881_s30  ;;  %11159 = vmatprep.subr.msk.bf16.mxu0 %vm2074_vm6, %v4322_v32  ;;  %v4323_v53 = vsel %vm739_vm0, %v4240_v54, %v4242_v1  ;;  %v14318_v40 = vrot.slane %v11216_v47, 2  ;;  %v11215_v32 = vcombine.low %v4867_v28, %v4871_v8  ;;  %v14323_v54 = vld [vmem:[%s11951_s29 + $0x130] sm:$0xff]  ;;  %v14334_v28 = vrot.slane %v11217_v5, 2 }
 0x25a   : > { %5296 = vrot.lane.b32.xlu1 %v5193_v43, %s11881_s30  ;;  %4463 = vmatpush2.bf16.msra.mxu0 %v4413_v34  ;;  %v2577_v22 = vpop.f32.mrf.mxu1  ;;  %v14326_v43 = vld [vmem:[%s11951_s29 + $0x150] sm:$0xff]  ;;  %v4419_v23 = vsel %vm2074_vm6, %v4323_v53, 0  ;;  %v11218_v8 = vcombine.high %v4868_v21, %v4872_v41  ;;  %v4863_v53 = vld [vmem:[%s11951_s29 + $0x100] sm:$0xff] }
 0x25b   : > { %v14315_v0 = vpop.permute.xlu0 %4243  ;;  %17735 = vst [vmem:[#allocation28_spill] sm:$0xff] %v14318_v40  ;;  %17736 = vst [vmem:[#allocation20_spill] sm:$0xff] %v14334_v28  ;;  %v5175_v47 = vsel %vm1178_vm4, %v14318_v40, %v5174_v33  ;;  %v11219_v34 = vcombine.low %v14323_v54, %v14326_v43  ;;  %v5177_v33 = vsel %vm1178_vm4, %v14334_v28, %v14279_v59 }
 0x25c   : > { %v4222_v18 = vpop.permute.xlu1 %4221  ;;  %v4324_v16 = vsel %vm739_vm0, %v4242_v1, %v14315_v0  ;;  %v14338_v1 = vrot.slane %v11215_v32, 2  ;;  %v14353_v21 = vrot.slane %v11218_v8, 2 }
 0x25d   : > { %5292 = vrot.lane.b32.xlu0 %v5189_v62, %s11881_s30  ;;  %11161 = vmatprep.subr.msk.bf16.mxu1 %vm2074_vm6, %v4324_v16  ;;  %v4859_v62 = vld [vmem:[%s11951_s29 + $0xe0] sm:$0xff]  ;;  %v4860_v16 = vld [vmem:[%s11951_s29 + $0xe8] sm:$0xff]  ;;  %v14357_v37 = vrot.slane %v11219_v34, 2 }
 0x25e   : > { %5298 = vrot.lane.b32.xlu1 %v5195_v44, %s11881_s30  ;;  %4504 = vmatpush2.bf16.msra.mxu1 %v4419_v23  ;;  %17737 = vst [vmem:[#allocation23_spill] sm:$0xff] %v14338_v1  ;;  %v4864_v23 = vld [vmem:[%s11951_s29 + $0x108] sm:$0xff]  ;;  %17738 = vst [vmem:[#allocation15_spill] sm:$0xff] %v14353_v21  ;;  %v11208_v41 = vcombine.high %v4859_v62, %v4863_v53  ;;  %v5173_v32 = vsel %vm1178_vm4, %v14338_v1, %v5172_v60 }
 0x25f   : > { %v4224_v14 = vpop.permute.xlu0 %4223  ;;  %17739 = vst [vmem:[#allocation10_spill] sm:$0xff] %v14357_v37  ;;  %v5179_v60 = vsel %vm1178_vm4, %v14353_v21, %v5178_v10  ;;  %v11207_v34 = vcombine.low %v4859_v62, %v4863_v53 }
 0x260   : > { %v4220_v22 = vpop.permute.xlu1 %4219  ;;  %v4315_v44 = vsel %vm739_vm0, %v4222_v18, %v4224_v14  ;;  %v5142_v8 = vrot.slane %v11208_v41, 2 }
 0x261   : > { %v4314_v55 = vsel %vm739_vm0, %v4220_v22, %v4222_v18  ;;  %5300 = vrot.lane.b32.xlu0 %v5197_v42, %s11881_s30  ;;  %4464 = vmatprep.subr.bf16.mxu0 %v4315_v44  ;;  %v11209_v18 = vcombine.low %v4860_v16, %v4864_v23  ;;  %v5140_v62 = vrot.slane %v11207_v34, 2 }
 0x262   : > { %5278 = vrot.lane.b32.xlu1 %v5175_v47, %s11881_s30  ;;  %4465 = vmatpush2.bf16.msra.mxu0 %v4314_v55  ;;  %v11210_v55 = vcombine.high %v4860_v16, %v4864_v23 }
 0x263   : > { %v4226_v5 = vpop.permute.xlu0 %4225  ;;  %v5144_v44 = vrot.slane %v11209_v18, 2  ;;  %v5157_v34 = vsel %vm1178_vm4, %v5140_v62, %v14338_v1  ;;  %v4847_v1 = vld [vmem:[%s11951_s29 + $0x80] sm:$0xff] }
 0x264   : > { %v14359_v42 = vpop.permute.xlu1 %4227  ;;  %v4316_v47 = vsel %vm739_vm0, %v4224_v14, %v4226_v5  ;;  %v5181_v14 = vsel %vm1178_vm4, %v14357_v37, %v5180_v52  ;;  %v5159_v52 = vsel %vm1178_vm4, %v5142_v8, %v14318_v40  ;;  %v5146_v41 = vrot.slane %v11210_v55, 2 }
 0x265   : > { %5280 = vrot.lane.b32.xlu0 %v5177_v33, %s11881_s30  ;;  %v4317_v59 = vsel %vm739_vm0, %v4226_v5, %v14359_v42  ;;  %v14371_v33 = vld [vmem:[%s11951_s29 + $0xf0] sm:$0xff]  ;;  %v5161_v23 = vsel %vm1178_vm4, %v5144_v44, %v14334_v28 }
 0x266   : > { %5276 = vrot.lane.b32.xlu1 %v5173_v32, %s11881_s30  ;;  %4505 = vmatprep.subr.bf16.mxu1 %v4317_v59  ;;  %v4851_v32 = vld [vmem:[%s11951_s29 + $0xa0] sm:$0xff]  ;;  %v11211_v53 = vcombine.low %v14371_v33, %v14374_v45  ;;  %v5163_v55 = vsel %vm1178_vm4, %v5146_v41, %v14353_v21 }
 0x267   : > { %4506 = vmatpush2.bf16.msra.mxu1 %v4316_v47  ;;  %v4206_v22 = vpop.permute.xlu0 %4205  ;;  %v4855_v59 = vld [vmem:[%s11951_s29 + $0xc0] sm:$0xff]  ;;  %v4852_v47 = vld [vmem:[%s11951_s29 + $0xa8] sm:$0xff] }
 0x268   : > { %v4208_v5 = vpop.permute.xlu1 %4207  ;;  %v11200_v18 = vcombine.high %v4851_v32, %v4855_v59  ;;  %v5148_v3 = vrot.slane %v11211_v53, 2  ;;  %v11199_v24 = vcombine.low %v4851_v32, %v4855_v59 }
 0x269   : > { %5282 = vrot.lane.b32.xlu0 %v5179_v60, %s11881_s30  ;;  %v4308_v10 = vsel %vm739_vm0, %v4206_v22, %v4208_v5  ;;  %v4856_v60 = vld [vmem:[%s11951_s29 + $0xc8] sm:$0xff] }
 0x26a   : > { %5284 = vrot.lane.b32.xlu1 %v5181_v14, %s11881_s30  ;;  %4466 = vmatprep.subr.bf16.mxu0 %v4308_v10  ;;  %v11201_v9 = vcombine.low %v4852_v47, %v4856_v60  ;;  %v14398_v30 = vrot.slane %v11200_v18, 2  ;;  %v5165_v32 = vsel %vm1178_vm4, %v5148_v3, %v14357_v37  ;;  %v11202_v18 = vcombine.high %v4852_v47, %v4856_v60 }
 0x26b   : > { %v4204_v16 = vpop.permute.xlu0 %4203  ;;  %v14415_v21 = vrot.slane %v11199_v24, 2 }
 0x26c   : > { %v4307_v14 = vsel %vm739_vm0, %v4204_v16, %v4206_v22  ;;  %v4210_v10 = vpop.permute.xlu1 %4209  ;;  %v14403_v16 = vld [vmem:[%s11951_s29 + $0xb0] sm:$0xff]  ;;  %v5128_v59 = vrot.slane %v11201_v9, 2  ;;  %v5143_v7 = vsel %vm1178_vm4, %v14398_v30, %v5142_v8  ;;  %v5130_v9 = vrot.slane %v11202_v18, 2 }
 0x26d   : > { %5262 = vrot.lane.b32.xlu0 %v5159_v52, %s11881_s30  ;;  %4467 = vmatpush2.bf16.msra.mxu0 %v4307_v14  ;;  %v4309_v53 = vsel %vm739_vm0, %v4208_v5, %v4210_v10  ;;  %v5141_v60 = vsel %vm1178_vm4, %v14415_v21, %v5140_v62 }
 0x26e   : > { %5264 = vrot.lane.b32.xlu1 %v5161_v23, %s11881_s30  ;;  %v14406_v23 = vld [vmem:[%s11951_s29 + $0xd0] sm:$0xff]  ;;  %v5145_v24 = vsel %vm1178_vm4, %v5128_v59, %v5144_v44  ;;  %v5147_v44 = vsel %vm1178_vm4, %v5130_v9, %v5146_v41 }
 0x26f   : > { %v14394_v25 = vpop.permute.xlu0 %4211 }
 0x270   : > { %v4198_v22 = vpop.permute.xlu1 %4197  ;;  %v4310_v52 = vsel %vm739_vm0, %v4210_v10, %v14394_v25 }
 0x271   : > { %5260 = vrot.lane.b32.xlu0 %v5157_v34, %s11881_s30  ;;  %4507 = vmatprep.subr.bf16.mxu1 %v4310_v52  ;;  %v11203_v34 = vcombine.low %v14403_v16, %v14406_v23  ;;  %v4843_v52 = vld [vmem:[%s11951_s29 + $0x60] sm:$0xff] }
 0x272   : > { %5266 = vrot.lane.b32.xlu1 %v5163_v55, %s11881_s30  ;;  %4508 = vmatpush2.bf16.msra.mxu1 %v4309_v53  ;;  %v4844_v55 = vld [vmem:[%s11951_s29 + $0x68] sm:$0xff]  ;;  %v11192_v8 = vcombine.high %v4843_v52, %v4847_v1  ;;  %v11191_v18 = vcombine.low %v4843_v52, %v4847_v1  ;;  %v4835_v1 = vld [vmem:[%s11951_s29 + $0x20] sm:$0xcc] }
 0x273   : > { %v4200_v14 = vpop.permute.xlu0 %4199  ;;  %v4848_v53 = vld [vmem:[%s11951_s29 + $0x88] sm:$0xff]  ;;  %v14429_v37 = vrot.slane %v11203_v34, 2 }
 0x274   : > { %v3729_v5 = vpop.permute.xlu1 %3728  ;;  %v4305_v10 = vsel %vm739_vm0, %v4198_v22, %v4200_v14  ;;  %v11193_v28 = vcombine.low %v4844_v55, %v4848_v53  ;;  %v5104_v62 = vrot.slane %v11192_v8, 2 }
 0x275   : > { %5268 = vrot.lane.b32.xlu0 %v5165_v32, %s11881_s30  ;;  %4518 = vmatprep.subr.bf16.mxu0 %v4305_v10 }
 0x276   : > { %5246 = vrot.lane.b32.xlu1 %v5143_v7, %s11881_s30  ;;  %v4304_v7 = vsel %vm739_vm0, %v14028_v29, %v4198_v22  ;;  %v14445_v10 = vrot.slane %v11193_v28, 2  ;;  %v14457_v22 = vld [vmem:[%s11951_s29 + $0x40] sm:$0xff]  ;;  %v5127_v52 = vsel %vm1178_vm4, %v5104_v62, %v14398_v30 }
 0x277   : > { %v3731_v47 = vpop.permute.xlu0 %3730 }
 0x278   : > { %v4182_v40 = vpop.permute.xlu1 %4181  ;;  %11160 = vmatprep.mubr.msk.bf16.mxu0 %vm4408_vm13, %v3731_v47  ;;  %11162 = vmatprep.mubr.msk.bf16.mxu1 %vm4408_vm13, %v3731_v47  ;;  %v14433_v32 = vsel %vm3732_vm14, %v3729_v5, %v3731_v47  ;;  %v5149_v5 = vsel %vm1178_vm4, %v14429_v37, %v5148_v3  ;;  %vm7764_vm14 = vcmask 588800  }
 0x279   : > { %5248 = vrot.lane.b32.xlu0 %v5145_v24, %s11881_s30  ;;  %4469 = vmatmul.mubr.bf16.vlgmr.msra.gmra.mxu0 %v14433_v32  ;;  %v11194_v24 = vcombine.high %v4844_v55, %v4848_v53  ;;  %v4297_v28 = vsel %vm739_vm0, %v14070_v12, %v4182_v40  ;;  %v5101_v55 = vrot.slane %v11191_v18, 2 }
 0x27a   : > { %5244 = vrot.lane.b32.xlu1 %v5141_v60, %s11881_s30  ;;  %4510 = vmatmul.mubr.bf16.vlgmr.msra.gmra.mxu1 %v14433_v32  ;;  %v14448_v60 = vld [vmem:[%s11951_s29 + $0x70] sm:$0xff] }
 0x27b   : > { %4519 = vmatpush1.bf16.msra.mxu0 %v4304_v7  ;;  %11164 = vmatprep.mubr.msk.bf16.mxu0 %vm4408_vm13, %v3731_v47  ;;  %v4184_v34 = vpop.permute.xlu0 %4183  ;;  %v11195_v53 = vcombine.low %v14448_v60, %v14451_v6  ;;  %v11184_v7 = vcombine.high %v4835_v1, %v14457_v22 }
 0x27c   : > { %11166 = vmatprep.mubr.msk.bf16.mxu1 %vm4408_vm13, %v3731_v47  ;;  %v4202_v29 = vpop.permute.xlu1 %4201  ;;  %v4298_v41 = vsel %vm739_vm0, %v4182_v40, %v4184_v34  ;;  %v5129_v47 = vsel %vm1178_vm4, %v14445_v10, %v5128_v59  ;;  %v5125_v59 = vsel %vm1178_vm4, %v5101_v55, %v14415_v21  ;;  %vm280_vm13 = vcmask 1044472  }
 0x27d   : > { %4559 = vmatprep.subr.bf16.mxu1 %v4202_v29  ;;  %5250 = vrot.lane.b32.xlu0 %v5147_v44, %s11881_s30  ;;  %v4306_v3 = vsel %vm739_vm0, %v4200_v14, %v4202_v29  ;;  %v5110_v14 = vrot.slane %v11194_v24, 2  ;;  %v4836_v44 = vld [vmem:[%s11951_s29 + $0x28] sm:$0xcc]  ;;  %v5113_v18 = vrot.slane %v11195_v53, 2  ;;  %288 = vst.msk [vmem:[#allocation2 + $0xfc] sm:$0xf] %vm280_vm13, %v17595_v27 }
 0x27e   : > { %5252 = vrot.lane.b32.xlu1 %v5149_v5, %s11881_s30  ;;  %4520 = vmatprep.subr.bf16.mxu0 %v4298_v41  ;;  %v14473_v5 = vld [vmem:[%s11951_s29 + $0x48] sm:$0xff]  ;;  %299 = vst.msk [vmem:[#allocation3 + $0x24] sm:$0xf] %vm280_vm13, %v17595_v27  ;;  %300 = vst.msk [vmem:[#allocation3 + $0x48] sm:$0xf] %vm280_vm13, %v17595_v27 }
 0x27f   : > { %4560 = vmatpush1.bf16.msra.mxu1 %v4306_v3  ;;  %4521 = vmatpush1.bf16.msra.mxu0 %v4297_v28  ;;  %v4166_v8 = vpop.permute.xlu0 %4165  ;;  %v11185_v24 = vcombine.low %v4836_v44, %v14473_v5  ;;  %v5131_v41 = vsel %vm1178_vm4, %v5110_v14, %v5130_v9  ;;  %v11183_v3 = vcombine.low %v4835_v1, %v14457_v22 }
 0x280   : > { %v4168_v12 = vpop.permute.xlu1 %4167  ;;  %v4290_v30 = vsel %vm739_vm0, %v14114_v4, %v4166_v8  ;;  %v5103_v4 = vrot.slane %v11184_v7, 2  ;;  %v5133_v21 = vsel %vm1178_vm4, %v5113_v18, %v14429_v37  ;;  %v11186_v53 = vcombine.high %v4836_v44, %v14473_v5  ;;  %301 = vst.msk [vmem:[#allocation3 + $0x6c] sm:$0xf] %vm280_vm13, %v17595_v27 }
 0x281   : > { %5230 = vrot.lane.b32.xlu0 %v5127_v52, %s11881_s30  ;;  %v4291_v40 = vsel %vm739_vm0, %v4166_v8, %v4168_v12  ;;  %v14487_v8 = vld [vmem:[%s11951_s29 + $0x30] sm:$0xcc]  ;;  %v5106_v9 = vrot.slane %v11185_v24, 2 }
 0x282   : > { %5232 = vrot.lane.b32.xlu1 %v5129_v47, %s11881_s30  ;;  %4522 = vmatprep.subr.bf16.mxu0 %v4291_v40  ;;  %v14490_v47 = vld [vmem:[%s11951_s29 + $0x50] sm:$0xff]  ;;  %v5105_v7 = vsel %vm1178_vm4, %v5103_v4, %v5104_v62  ;;  %v5109_v44 = vrot.slane %v11186_v53, 2 }
 0x283   : > { %4523 = vmatpush1.bf16.msra.mxu0 %v4290_v30  ;;  %v4186_v29 = vpop.permute.xlu0 %4185  ;;  %v5100_v30 = vrot.slane %v11183_v3, 2  ;;  %v5108_v62 = vsel %vm1178_vm4, %v5106_v9, %v14445_v10 }
 0x284   : > { %v4150_v28 = vpop.permute.xlu1 %4149  ;;  %4561 = vmatprep.subr.bf16.mxu1 %v4186_v29  ;;  %v4299_v52 = vsel %vm739_vm0, %v4184_v34, %v4186_v29  ;;  %v11187_v34 = vcombine.low %v14487_v8, %v14490_v47 }
 0x285   : > { %5228 = vrot.lane.b32.xlu0 %v5125_v59, %s11881_s30  ;;  %4562 = vmatpush1.bf16.msra.mxu1 %v4299_v52  ;;  %v4283_v37 = vsel %vm739_vm0, %v14141_v39, %v4150_v28  ;;  %v5111_v39 = vsel %vm1178_vm4, %v5109_v44, %v5110_v14 }
 0x286   : > { %5234 = vrot.lane.b32.xlu1 %v5131_v41, %s11881_s30  ;;  %v5102_v41 = vsel %vm1178_vm4, %v5100_v30, %v5101_v55  ;;  %v5112_v4 = vrot.slane %v11187_v34, 2 }
 0x287   : > { %v4152_v1 = vpop.permute.xlu0 %4151 }
 0x288   : > { %v4170_v40 = vpop.permute.xlu1 %4169  ;;  %v4284_v29 = vsel %vm739_vm0, %v4150_v28, %v4152_v1  ;;  %v5114_v28 = vsel %vm1178_vm4, %v5112_v4, %v5113_v18  ;;  %v17743_v4 = vld [vmem:[#allocation18_spill] sm:$0xff] }
 0x289   : > { %4563 = vmatprep.subr.bf16.mxu1 %v4170_v40  ;;  %5236 = vrot.lane.b32.xlu0 %v5133_v21, %s11881_s30  ;;  %v4292_v59 = vsel %vm739_vm0, %v4168_v12, %v4170_v40 }
 0x28a   : > { %5214 = vrot.lane.b32.xlu1 %v5105_v7, %s11881_s30  ;;  %4524 = vmatprep.subr.bf16.mxu0 %v4284_v29 }
 0x28b   : > { %4564 = vmatpush1.bf16.msra.mxu1 %v4292_v59  ;;  %4525 = vmatpush1.bf16.msra.mxu0 %v4283_v37  ;;  %v4134_v24 = vpop.permute.xlu0 %4133 }
 0x28c   : > { %v4136_v3 = vpop.permute.xlu1 %4135  ;;  %v4276_v12 = vsel %vm739_vm0, %v14163_v20, %v4134_v24 }
 0x28d   : > { %5216 = vrot.lane.b32.xlu0 %v5108_v62, %s11881_s30  ;;  %v4277_v52 = vsel %vm739_vm0, %v4134_v24, %v4136_v3 }
 0x28e   : > { %5212 = vrot.lane.b32.xlu1 %v5102_v41, %s11881_s30  ;;  %4526 = vmatprep.subr.bf16.mxu0 %v4277_v52  ;;  %v17744_v52 = vld [vmem:[#allocation38_spill] sm:$0xff] }
 0x28f   : > { %4527 = vmatpush1.bf16.msra.mxu0 %v4276_v12  ;;  %v4154_v10 = vpop.permute.xlu0 %4153 }
 0x290   : > { %v4118_v21 = vpop.permute.xlu1 %4117  ;;  %4565 = vmatprep.subr.bf16.mxu1 %v4154_v10  ;;  %v4285_v55 = vsel %vm739_vm0, %v4152_v1, %v4154_v10  ;;  %v17742_v1 = vld [vmem:[#allocation12_spill] sm:$0xff] }
 0x291   : > { %5218 = vrot.lane.b32.xlu0 %v5111_v39, %s11881_s30  ;;  %v14518_v20 = vpop.f32.mrf.mxu0  ;;  %4566 = vmatpush1.bf16.msra.mxu1 %v4285_v55  ;;  %v4269_v59 = vsel %vm739_vm0, %v14184_v51, %v4118_v21 }
 0x292   : > { %17740 = vst [vmem:[#allocation41_spill] sm:$0xff] %v14518_v20  ;;  %5220 = vrot.lane.b32.xlu1 %v5114_v28, %s11881_s30  ;;  %v14521_v9 = vpop.f32.mrf.mxu1 }
 0x293   : > { %v4120_v53 = vpop.permute.xlu0 %4119  ;;  %v14523_v7 = vpop.f32.mrf.mxu0 }
 0x294   : > { %17741 = vst [vmem:[#allocation43_spill] sm:$0xff] %v14523_v7  ;;  %v4138_v14 = vpop.permute.xlu1 %4137  ;;  %v14525_v30 = vpop.f32.mrf.mxu1  ;;  %v4270_v18 = vsel %vm739_vm0, %v4118_v21, %v4120_v53 }
 0x295   : > { %4567 = vmatprep.subr.bf16.mxu1 %v4138_v14  ;;  %5388 = vrot.lane.b32.xlu0 %v17742_v1, %s11881_s30  ;;  %v3287_v34 = vpop.f32.mrf.mxu0  ;;  %v4278_v40 = vsel %vm739_vm0, %v4136_v3, %v4138_v14 }
 0x296   : > { %5390 = vrot.lane.b32.xlu1 %v17697_v26, %s11881_s30  ;;  %v3328_v29 = vpop.f32.mrf.mxu1  ;;  %4528 = vmatprep.subr.bf16.mxu0 %v4270_v18  ;;  %v17745_v18 = vld [vmem:[#allocation21_spill] sm:$0xff] }
 0x297   : > { %4568 = vmatpush1.bf16.msra.mxu1 %v4278_v40  ;;  %4529 = vmatpush1.bf16.msra.mxu0 %v4269_v59  ;;  %v4102_v37 = vpop.permute.xlu0 %4101  ;;  %v3288_v62 = vpop.f32.mrf.mxu0  ;;  %v11806_v59 = vld [vmem:[%s11951_s29 + $0x2e0] sm:$0xff] }
 0x298   : > { %v4104_v44 = vpop.permute.xlu1 %4103  ;;  %v3329_v24 = vpop.f32.mrf.mxu1  ;;  %v4262_v41 = vsel %vm739_vm0, %v14218_v46, %v4102_v37 }
 0x299   : > { %5392 = vrot.lane.b32.xlu0 %v17743_v4, %s11881_s30  ;;  %v4263_v3 = vsel %vm739_vm0, %v4102_v37, %v4104_v44  ;;  %v17748_v4 = vld [vmem:[#allocation29_spill] sm:$0xff] }
 0x29a   : > { %5394 = vrot.lane.b32.xlu1 %v17696_v36, %s11881_s30  ;;  %4530 = vmatprep.subr.bf16.mxu0 %v4263_v3 }
 0x29b   : > { %4531 = vmatpush1.bf16.msra.mxu0 %v4262_v41  ;;  %v4122_v26 = vpop.permute.xlu0 %4121  ;;  %v3642_v41 = vld [vmem:[%s11951_s29 + $0x2d0] sm:$0xcc] }
 0x29c   : > { %v4086_v51 = vpop.permute.xlu1 %4085  ;;  %4569 = vmatprep.subr.bf16.mxu1 %v4122_v26  ;;  %v4271_v12 = vsel %vm739_vm0, %v4120_v53, %v4122_v26  ;;  %v3641_v26 = vld [vmem:[%s11951_s29 + $0x2c8] sm:$0xcc] }
 0x29d   : > { %5396 = vrot.lane.b32.xlu0 %v17744_v52, %s11881_s30  ;;  %4570 = vmatpush1.bf16.msra.mxu1 %v4271_v12  ;;  %v4255_v28 = vsel %vm739_vm0, %v14264_v13, %v4086_v51 }
 0x29e   : > { %5374 = vrot.lane.b32.xlu1 %v17701_v31, %s11881_s30 }
 0x29f   : > { %v4088_v46 = vpop.permute.xlu0 %4087 }
 0x2a0   : > { %v4106_v39 = vpop.permute.xlu1 %4105  ;;  %v4256_v10 = vsel %vm739_vm0, %v4086_v51, %v4088_v46 }
 0x2a1   : > { %4571 = vmatprep.subr.bf16.mxu1 %v4106_v39  ;;  %5376 = vrot.lane.b32.xlu0 %v17704_v63, %s11881_s30  ;;  %v4264_v36 = vsel %vm739_vm0, %v4104_v44, %v4106_v39  ;;  %v17747_v44 = vld [vmem:[#allocation25_spill] sm:$0xff] }
 0x2a2   : > { %5372 = vrot.lane.b32.xlu1 %v17705_v11, %s11881_s30  ;;  %4532 = vmatprep.subr.bf16.mxu0 %v4256_v10  ;;  %v17749_v10 = vld [vmem:[#allocation51_spill] sm:$0xff] }
 0x2a3   : > { %4572 = vmatpush1.bf16.msra.mxu1 %v4264_v36  ;;  %4533 = vmatpush1.bf16.msra.mxu0 %v4255_v28  ;;  %v4090_v31 = vpop.permute.xlu0 %4089  ;;  %v17750_v28 = vld [vmem:[#allocation26_spill] sm:$0xff] }
 0x2a4   : > { %v4246_v21 = vpop.permute.xlu1 %4245  ;;  %4573 = vmatprep.subr.bf16.mxu1 %v4090_v31  ;;  %v4257_v55 = vsel %vm739_vm0, %v4088_v46, %v4090_v31  ;;  %v11807_v46 = vld [vmem:[%s11951_s29 + $0x2f0] sm:$0xff]  ;;  %v11808_v31 = vld [vmem:[%s11951_s29 + $0x2e8] sm:$0xff] }
 0x2a5   : > { %5378 = vrot.lane.b32.xlu0 %v17700_v58, %s11881_s30  ;;  %v4325_v63 = vsel %vm739_vm0, %v14315_v0, %v4246_v21  ;;  %v3640_v58 = vld [vmem:[%s11951_s29 + $0x2c0] sm:$0xcc]  ;;  %v11172_v39 = vcombine.high %v3642_v41, %v11807_v46 }
 0x2a6   : > { %5380 = vrot.lane.b32.xlu1 %v17716_v57, %s11881_s30  ;;  %v17746_v57 = vld [vmem:[#allocation33_spill] sm:$0xff]  ;;  %v4425_v0 = vsel %vm2074_vm6, %v4325_v63, 0  ;;  %v11168_v37 = vcombine.high %v3640_v58, %v11806_v59  ;;  %v11167_v62 = vcombine.low %v3640_v58, %v11806_v59  ;;  %v11809_v59 = vld [vmem:[%s11951_s29 + $0x1d8] sm:$0xff] }
 0x2a7   : > { %4574 = vmatpush1.bf16.msra.mxu1 %v4257_v55  ;;  %v4248_v11 = vpop.permute.xlu0 %4247  ;;  %v11169_v55 = vcombine.low %v3641_v26, %v11808_v31  ;;  %v17751_v58 = vld [vmem:[#allocation9_spill] sm:$0xff] }
 0x2a8   : > { %v4250_v13 = vpop.permute.xlu1 %4249  ;;  %v4326_v53 = vsel %vm739_vm0, %v4246_v21, %v4248_v11  ;;  %v4621_v12 = vrot.slane %v11168_v37, 2  ;;  %v4620_v52 = vrot.slane %v11167_v62, 2  ;;  %v11170_v21 = vcombine.high %v3641_v26, %v11808_v31 }
 0x2a9   : > { %v4327_v14 = vsel %vm739_vm0, %v4248_v11, %v4250_v13  ;;  %5358 = vrot.lane.b32.xlu0 %v17745_v18, %s11881_s30  ;;  %11163 = vmatprep.subr.msk.bf16.mxu0 %vm2074_vm6, %v4326_v53  ;;  %v4625_v53 = vrot.slane %v11172_v39, 2  ;;  %v14596_v18 = vld [vmem:[%s11951_s29 + $0x1b8] sm:$0xff] }
 0x2aa   : > { %5360 = vrot.lane.b32.xlu1 %v17746_v57, %s11881_s30  ;;  %11165 = vmatprep.subr.msk.bf16.mxu1 %vm2074_vm6, %v4250_v13  ;;  %v4431_v1 = vsel %vm2074_vm6, %v4327_v14, 0  ;;  %v4632_v13 = vsel %vm1178_vm4, %v4620_v52, 0  ;;  %v11171_v14 = vcombine.low %v3642_v41, %v11807_v46  ;;  %v3643_v57 = vld [vmem:[%s11951_s29 + $0x2d8] sm:$0xcc]  ;;  %v11237_v37 = vcombine.low %v14596_v18, %v11809_v59 }
 0x2ab   : > { %4545 = vmatpush2.bf16.msra.mxu0 %v4425_v0  ;;  %4586 = vmatpush2.bf16.msra.mxu1 %v4431_v1  ;;  %v4230_v34 = vpop.permute.xlu0 %4229  ;;  %v17752_v0 = vld [vmem:[#allocation30_spill] sm:$0xff]  ;;  %v4623_v1 = vrot.slane %v11170_v21, 2  ;;  %v11810_v41 = vld [vmem:[%s11951_s29 + $0x2f8] sm:$0xff]  ;;  %v11228_v46 = vcombine.high %v14282_v38, %v14285_v49  ;;  %v14643_v38 = vld [vmem:[%s17368_s1] sm:$0xf] }
 0x2ac   : > { %v4232_v40 = vpop.permute.xlu1 %4231  ;;  %v4318_v29 = vsel %vm739_vm0, %v14359_v42, %v4230_v34  ;;  %v11173_v26 = vcombine.low %v3643_v57, %v11810_v41  ;;  %v5200_v52 = vrot.slane %v11237_v37, 2 }
 0x2ad   : > { %5356 = vrot.lane.b32.xlu0 %v17747_v44, %s11881_s30  ;;  %v4319_v24 = vsel %vm739_vm0, %v4230_v34, %v4232_v40  ;;  %v4622_v34 = vrot.slane %v11169_v55, 2  ;;  %v5182_v55 = vrot.slane %v11228_v46, 2 }
 0x2ae   : > { %5362 = vrot.lane.b32.xlu1 %v17748_v4, %s11881_s30  ;;  %4546 = vmatprep.subr.bf16.mxu0 %v4319_v24  ;;  %v4624_v24 = vrot.slane %v11171_v14, 2  ;;  %v5210_v21 = vsel %vm1178_vm4, %v5200_v52, %v12975_v56  ;;  %v11220_v56 = vcombine.high %v14323_v54, %v14326_v43 }
 0x2af   : > { %4547 = vmatpush2.bf16.msra.mxu0 %v4318_v29  ;;  %v4214_v3 = vpop.permute.xlu0 %4213  ;;  %v4638_v4 = vsel %vm1178_vm4, %v4622_v34, 0 }
 0x2b0   : > { %v4216_v51 = vpop.permute.xlu1 %4215  ;;  %v4311_v42 = vsel %vm739_vm0, %v14394_v25, %v4214_v3 }
 0x2b1   : > { %5364 = vrot.lane.b32.xlu0 %v17749_v10, %s11881_s30  ;;  %v4312_v36 = vsel %vm739_vm0, %v4214_v3, %v4216_v51 }
 0x2b2   : > { %5342 = vrot.lane.b32.xlu1 %v17750_v28, %s11881_s30  ;;  %4548 = vmatprep.subr.bf16.mxu0 %v4312_v36  ;;  %v17754_v36 = vld [vmem:[#allocation54_spill] sm:$0xff] }
 0x2b3   : > { %4549 = vmatpush2.bf16.msra.mxu0 %v4311_v42  ;;  %v4234_v25 = vpop.permute.xlu0 %4233  ;;  %v14626_v42 = vld [vmem:[%s11951_s29 + $0x198] sm:$0xff] }
 0x2b4   : > { %v4218_v63 = vpop.permute.xlu1 %4217  ;;  %4587 = vmatprep.subr.bf16.mxu1 %v4234_v25  ;;  %v4320_v11 = vsel %vm739_vm0, %v4232_v40, %v4234_v25  ;;  %11175 = vmatprep.subr.msk.bf16.mxu0 %vm1178_vm4, %v4621_v12  ;;  %v11236_v40 = vcombine.high %v14225_v35, %v14240_v61  ;;  %v11174_v35 = vcombine.high %v3643_v57, %v11810_v41  ;;  %v17753_v61 = vld [vmem:[#allocation34_spill] sm:$0xff] }
 0x2b5   : > { %5344 = vrot.lane.b32.xlu0 %v17751_v58, %s11881_s30  ;;  %4588 = vmatpush2.bf16.msra.mxu1 %v4320_v11  ;;  %v4313_v44 = vsel %vm739_vm0, %v4216_v51, %v4218_v63  ;;  %v14623_v51 = vld [vmem:[%s11951_s29 + $0x178] sm:$0xff]  ;;  %v11238_v25 = vcombine.high %v14596_v18, %v11809_v59 }
 0x2b6   : > { %5340 = vrot.lane.b32.xlu1 %v17752_v0, %s11881_s30  ;;  %4551 = vmatmul.mubr.bf16.vlgmr.msra.gmra.mxu0 %v14433_v32  ;;  %v5198_v3 = vrot.slane %v11236_v40, 2  ;;  %v4627_v10 = vrot.slane %v11174_v35, 2  ;;  %v11229_v28 = vcombine.low %v14623_v51, %v14626_v42  ;;  %v14666_v11 = vld [vmem:[%s11951_s29 + $0x158] sm:$0xff]  ;;  %v11230_v59 = vcombine.high %v14623_v51, %v14626_v42  ;;  %v17760_v42 = vld [vmem:[#allocation6_spill] sm:$0xff] }
 0x2b7   : > { %v14606_v29 = vpop.permute.xlu0 %5326  ;;  %4589 = vmatprep.subr.bf16.mxu1 %v4218_v63  ;;  %4670 = vmatpush1.bf16.msra.mxu0 %v4632_v13  ;;  %v14663_v63 = vld [vmem:[%s11951_s29 + $0x138] sm:$0xff]  ;;  %v5202_v58 = vrot.slane %v11238_v25, 2  ;;  %v11212_v35 = vcombine.high %v14371_v33, %v14374_v45 }
 0x2b8   : > { %v14610_v62 = vpop.permute.xlu1 %5328  ;;  %4687 = vmatprep.mubr.bf16.mxu0 %v17595_v27  ;;  %11179 = vmatprep.subr.msk.bf16.mxu0 %vm1178_vm4, %v4625_v53  ;;  %v5209_v49 = vsel %vm1178_vm4, %v5198_v3, %v12891_v19  ;;  %v5184_v13 = vrot.slane %v11229_v28, 2  ;;  %v5199_v18 = vsel %vm1178_vm4, %v5182_v55, %v5198_v3  ;;  %v11221_v57 = vcombine.low %v14663_v63, %v14666_v11  ;;  %v14754_v25 = vld [vmem:[%s11951_s29 + $0xb8] sm:$0xff] }
 0x2b9   : > { %5346 = vrot.lane.b32.xlu0 %v17753_v61, %s11881_s30  ;;  %4590 = vmatpush2.bf16.msra.mxu1 %v4313_v44  ;;  %v14652_v31 = vsel %vm739_vm0, %v14606_v29, %v14610_v62  ;;  %v17759_v44 = vld [vmem:[#allocation57_spill] sm:$0xff]  ;;  %v14717_v61 = vld [vmem:[%s11951_s29 + $0xf8] sm:$0xff]  ;;  %v5150_v28 = vrot.slane %v11212_v35, 2 }
 0x2ba   : > { %5348 = vrot.lane.b32.xlu1 %v12924_v50, %s11881_s30  ;;  %11177 = vmatprep.subr.msk.bf16.mxu1 %vm1178_vm4, %v4623_v1  ;;  %v4644_v50 = vsel %vm1178_vm4, %v4624_v24, 0  ;;  %17755 = vst [vmem:[#allocation46_spill] sm:$0xff] %v14652_v31  ;;  %v5201_v43 = vsel %vm1178_vm4, %v5184_v13, %v5200_v52  ;;  %v14688_v1 = vrot.slane %v11220_v56, 2  ;;  %v5211_v24 = vsel %vm1178_vm4, %v5202_v58, %v17759_v44 }
 0x2bb   : > { %v5325_v12 = vpop.permute.xlu0 %5324  ;;  %v14712_v41 = vrot.slane %v11221_v57, 2  ;;  %v5186_v52 = vrot.slane %v11230_v59, 2 }
 0x2bc   : > { %v14630_v39 = vpop.permute.xlu1 %5330  ;;  %4592 = vmatmul.mubr.bf16.vlgmr.msra.gmra.mxu1 %v14433_v32  ;;  %v4626_v32 = vrot.slane %v11173_v26, 2  ;;  %v14692_v34 = vsel %vm739_vm0, %v5325_v12, %v14606_v29  ;;  %v5183_v12 = vsel %vm1178_vm4, %v14688_v1, %v5182_v55 }
 0x2bd   : > { %5334 = vrot.lane.b32.xlu0 %v17754_v36, %s11881_s30  ;;  %4711 = vmatpush1.bf16.msra.mxu1 %v4638_v4  ;;  %17757 = vst [vmem:[#allocation47_spill] sm:$0xff] %v14692_v34  ;;  %v14720_v4 = vld [vmem:[%s11951_s29 + $0x118] sm:$0xff]  ;;  %v5185_v36 = vsel %vm1178_vm4, %v14712_v41, %v5184_v13  ;;  %v14751_v55 = vsel %vm739_vm0, %v14610_v62, %v14630_v39 }
 0x2be   : > { %5336 = vrot.lane.b32.xlu1 %v12999_v2, %s11881_s30  ;;  %11176 = vmatmul.mubr.msk.bf16.vlgmr.msra.gmra.mxu0 %vm4628_vm15, %v14643_v38  ;;  %v4650_v53 = vsel %vm1178_vm4, %v4626_v32, 0  ;;  %v11213_v46 = vcombine.low %v14717_v61, %v14720_v4  ;;  %17762 = vst [vmem:[#allocation40_spill] sm:$0xff] %v14751_v55  ;;  %v11214_v44 = vcombine.high %v14717_v61, %v14720_v4 }
 0x2bf   : > { %4752 = vmatpush1.bf16.msra.mxu0 %v4644_v50  ;;  %v14654_v2 = vpop.permute.xlu0 %5332  ;;  %4728 = vmatprep.mubr.bf16.mxu1 %v17595_v27 }
 0x2c0   : > { %5604 = vmatprep.subr.bf16.mxu0 %v14652_v31  ;;  %v5311_v19 = vpop.permute.xlu1 %5310  ;;  %11181 = vmatprep.subr.msk.bf16.mxu1 %vm1178_vm4, %v4627_v10 }
 0x2c1   : > { %5318 = vrot.lane.b32.xlu0 %v5209_v49, %s11881_s30  ;;  %4769 = vmatprep.mubr.bf16.mxu0 %v17595_v27  ;;  %v11222_v49 = vcombine.high %v14663_v63, %v14666_v11  ;;  %v11204_v11 = vcombine.high %v14403_v16, %v14406_v23 }
 0x2c2   : > { %5320 = vrot.lane.b32.xlu1 %v5210_v21, %s11881_s30 }
 0x2c3   : > { %v14674_v14 = vpop.permute.xlu0 %5312  ;;  %v5134_v59 = vrot.slane %v11204_v11, 2 }
 0x2c4   : > { %v5309_v0 = vpop.permute.xlu1 %5308  ;;  %11178 = vmatmul.mubr.msk.bf16.vlgmr.msra.gmra.mxu1 %vm4628_vm15, %v14643_v38  ;;  %v14685_v54 = vsel %vm739_vm0, %v5311_v19, %v14674_v14 }
 0x2c5   : > { %4793 = vmatpush1.bf16.msra.mxu1 %v4650_v53  ;;  %5338 = vrot.lane.b32.xlu0 %v12983_v17, %s11881_s30  ;;  %17756 = vst [vmem:[#allocation39_spill] sm:$0xff] %v14685_v54  ;;  %v14702_v17 = vsel %vm739_vm0, %v14630_v39, %v14654_v2  ;;  %v14734_v45 = vsel %vm739_vm0, %v5309_v0, %v5311_v19  ;;  %v14757_v19 = vld [vmem:[%s11951_s29 + $0xd8] sm:$0xff] }
 0x2c6   : > { %v14694_v40 = vpop.f32.mrf.mxu1  ;;  %5302 = vrot.lane.b32.xlu1 %v5199_v18, %s11881_s30  ;;  %11180 = vmatmul.mubr.msk.bf16.vlgmr.msra.gmra.mxu0 %vm4628_vm15, %v14643_v38  ;;  %17758 = vst [vmem:[#allocation42_spill] sm:$0xff] %v14702_v17  ;;  %17761 = vst [vmem:[#allocation32_spill] sm:$0xff] %v14734_v45  ;;  %v5203_v39 = vsel %vm1178_vm4, %v5186_v52, %v5202_v58  ;;  %v5167_v53 = vsel %vm1178_vm4, %v5150_v28, %v14688_v1  ;;  %v14776_v18 = vrot.slane %v11222_v49, 2 }
 0x2c7   : > { %v14706_v37 = vpop.f32.mrf.mxu0  ;;  %5605 = vmatpush1.bf16.msra.mxu0 %v14692_v34  ;;  %5645 = vmatprep.subr.bf16.mxu1 %v14702_v17  ;;  %v5315_v29 = vpop.permute.xlu0 %5314  ;;  %v11205_v57 = vcombine.low %v14754_v25, %v14757_v19 }
 0x2c8   : > { %v14722_v3 = vpop.f32.mrf.mxu1  ;;  %5606 = vmatprep.subr.bf16.mxu0 %v14685_v54  ;;  %v14725_v26 = vpop.permute.xlu1 %5316  ;;  %4810 = vmatprep.mubr.bf16.mxu1 %v17595_v27  ;;  %v14787_v16 = vsel %vm739_vm0, %v14674_v14, %v5315_v29  ;;  %v5187_v35 = vsel %vm1178_vm4, %v14776_v18, %v5186_v52  ;;  %v5151_v52 = vsel %vm1178_vm4, %v5134_v59, %v5150_v28 }
 0x2c9   : > { %v14728_v51 = vpop.f32.mrf.mxu0  ;;  %5304 = vrot.lane.b32.xlu0 %v5201_v43, %s11881_s30  ;;  %11240 = vmatprep.mubr.msk.bf16.mxu0 %vm5576_vm2, %v17760_v42  ;;  %v14768_v62 = vsel %vm739_vm0, %v5315_v29, %v14725_v26  ;;  %17766 = vst [vmem:[#allocation7_spill] sm:$0xff] %v14787_v16 }
 0x2ca   : > { %v3410_v33 = vpop.f32.mrf.mxu1  ;;  %5322 = vrot.lane.b32.xlu1 %v5211_v24, %s11881_s30  ;;  %17764 = vst [vmem:[#allocation8_spill] sm:$0xff] %v14768_v62 }
 0x2cb   : > { %v3369_v50 = vpop.f32.mrf.mxu0  ;;  %5607 = vmatpush1.bf16.msra.mxu0 %v14734_v45  ;;  %v5295_v10 = vpop.permute.xlu0 %5294  ;;  %v5136_v33 = vrot.slane %v11205_v57, 2 }
 0x2cc   : > { %v3411_v32 = vpop.f32.mrf.mxu1  ;;  %v5297_v21 = vpop.permute.xlu1 %5296  ;;  %11182 = vmatmul.mubr.msk.bf16.vlgmr.msra.gmra.mxu1 %vm4628_vm15, %v14643_v38  ;;  %v5152_v38 = vrot.slane %v11213_v46, 2  ;;  %v14809_v46 = vld [vmem:[%s11951_s29 + $0x78] sm:$0xff]  ;;  %vm8023_vm15 = vcmask 883712  }
 0x2cd   : > { %v3370_v56 = vpop.f32.mrf.mxu0  ;;  %5646 = vmatpush1.bf16.msra.mxu1 %v14751_v55  ;;  %5286 = vrot.lane.b32.xlu0 %v5183_v12, %s11881_s30  ;;  %v14762_v63 = vsel %vm739_vm0, %v5295_v10, %v5297_v21  ;;  %v11196_v12 = vcombine.high %v14448_v60, %v14451_v6  ;;  %v14812_v50 = vld [vmem:[%s11951_s29 + $0x98] sm:$0xff] }
 0x2ce   : > { %17763 = vst [vmem:[#allocation36_spill] sm:$0xff] %v14762_v63  ;;  %5288 = vrot.lane.b32.xlu1 %v5185_v36, %s11881_s30  ;;  %5608 = vmatprep.subr.bf16.mxu0 %v14762_v63  ;;  %v5169_v43 = vsel %vm1178_vm4, %v5152_v38, %v14712_v41  ;;  %v11197_v49 = vcombine.low %v14809_v46, %v14812_v50 }
 0x2cf   : > { %5647 = vmatprep.subr.bf16.mxu1 %v14768_v62  ;;  %v5293_v13 = vpop.permute.xlu0 %5292  ;;  %11242 = vmatprep.mubr.msk.bf16.mxu1 %vm5576_vm2, %v17760_v42  ;;  %v5153_v56 = vsel %vm1178_vm4, %v5136_v33, %v5152_v38  ;;  %v5116_v11 = vrot.slane %v11196_v12, 2 }
 0x2d0   : > { %v5299_v0 = vpop.permute.xlu1 %5298  ;;  %v14783_v58 = vsel %vm739_vm0, %v5293_v13, %v5295_v10 }
 0x2d1   : > { %17765 = vst [vmem:[#allocation27_spill] sm:$0xff] %v14783_v58  ;;  %5648 = vmatpush1.bf16.msra.mxu1 %v14787_v16  ;;  %5306 = vrot.lane.b32.xlu0 %v5203_v39, %s11881_s30  ;;  %v14826_v6 = vsel %vm739_vm0, %v5297_v21, %v5299_v0  ;;  %v11206_v21 = vcombine.high %v14754_v25, %v14757_v19  ;;  %v5119_v19 = vrot.slane %v11197_v49, 2 }
 0x2d2   : > { %v3535_v23 = vpop.f32.mrf.mxu1  ;;  %5270 = vrot.lane.b32.xlu1 %v5167_v53, %s11881_s30  ;;  %5609 = vmatpush1.bf16.msra.mxu0 %v14783_v58  ;;  %17772 = vst [vmem:[#allocation21_spill] sm:$0xff] %v14826_v6 }
 0x2d3   : > { %v14798_v14 = vadd.f32 %v3535_v23, %v14521_v9  ;;  %v14800_v29 = vpop.f32.mrf.mxu0  ;;  %v14802_v24 = vpop.permute.xlu0 %5300  ;;  %v14841_v23 = vld [vmem:[%s11951_s29 + $0x58] sm:$0xff]  ;;  %v5138_v12 = vrot.slane %v11206_v21, 2 }
 0x2d4   : > { %17768 = vst [vmem:[#allocation35_spill] sm:$0xff] %v14800_v29  ;;  %v3537_v10 = vpop.f32.mrf.mxu1  ;;  %v5279_v61 = vpop.permute.xlu1 %5278  ;;  %v14816_v9 = vsel %vm739_vm0, %v5299_v0, %v14802_v24  ;;  %v4838_v0 = vld [vmem:[%s11951_s29 + $0x38] sm:$0xcc]  ;;  %v17814_v29 = vld [vmem:[#allocation71_spill] sm:$0xff] }
 0x2d5   : > { %17767 = vst [vmem:[#allocation31_spill] sm:$0xff] %v14798_v14  ;;  %17769 = vst [vmem:[#allocation12_spill] sm:$0xff] %v14816_v9  ;;  %v14819_v4 = vadd.f32 %v3537_v10, %v14525_v30  ;;  %v14821_v36 = vpop.f32.mrf.mxu0  ;;  %5272 = vrot.lane.b32.xlu0 %v5169_v43, %s11881_s30  ;;  %5649 = vmatprep.subr.bf16.mxu1 %v14816_v9  ;;  %v5154_v30 = vrot.slane %v11214_v44, 2  ;;  %v11188_v43 = vcombine.high %v14487_v8, %v14490_v47  ;;  %v17818_v9 = vld [vmem:[#allocation68_spill] sm:$0xff] }
 0x2d6   : > { %17771 = vst [vmem:[#allocation38_spill] sm:$0xff] %v14821_v36  ;;  %5290 = vrot.lane.b32.xlu1 %v5187_v35, %s11881_s30  ;;  %5650 = vmatpush1.bf16.msra.mxu1 %v14826_v6  ;;  %v3539_v60 = vpop.f32.mrf.mxu1  ;;  %v5135_v35 = vsel %vm1178_vm4, %v5116_v11, %v5134_v59  ;;  %v11189_v10 = vcombine.low %v4838_v0, %v14841_v23  ;;  %v11821_v6 = vld [vmem:[%s11951_s29 + $0x1e8] sm:$0xff] }
 0x2d7   : > { %17770 = vst [vmem:[#allocation18_spill] sm:$0xff] %v14819_v4  ;;  %v5281_v32 = vpop.permute.xlu0 %5280  ;;  %v3498_v39 = vpop.f32.mrf.mxu0  ;;  %v5171_v25 = vsel %vm1178_vm4, %v5154_v30, %v14776_v18  ;;  %v5137_v8 = vsel %vm1178_vm4, %v5119_v19, %v5136_v33  ;;  %v5115_v59 = vrot.slane %v11188_v43, 2 }
 0x2d8   : > { %v5277_v13 = vpop.permute.xlu1 %5276  ;;  %v14837_v53 = vsel %vm739_vm0, %v5279_v61, %v5281_v32  ;;  %v3540_v57 = vpop.f32.mrf.mxu1 }
 0x2d9   : > { %17773 = vst [vmem:[#allocation33_spill] sm:$0xff] %v14837_v53  ;;  %v14844_v28 = vsel %vm739_vm0, %v5277_v13, %v5279_v61  ;;  %5254 = vrot.lane.b32.xlu0 %v5151_v52, %s11881_s30  ;;  %5610 = vmatprep.subr.bf16.mxu0 %v14837_v53  ;;  %v3499_v38 = vpop.f32.mrf.mxu0  ;;  %v5155_v13 = vsel %vm1178_vm4, %v5138_v12, %v5154_v30  ;;  %v5118_v57 = vrot.slane %v11189_v10, 2 }
 0x2da   : > { %17774 = vst [vmem:[#allocation25_spill] sm:$0xff] %v14844_v28  ;;  %5256 = vrot.lane.b32.xlu1 %v5153_v56, %s11881_s30  ;;  %5611 = vmatpush1.bf16.msra.mxu0 %v14844_v28  ;;  %v11198_v56 = vcombine.high %v14809_v46, %v14812_v50  ;;  %v11190_v38 = vcombine.high %v4838_v0, %v14841_v23 }
 0x2db   : > { %v5283_v44 = vpop.permute.xlu0 %5282  ;;  %v5117_v30 = vsel %vm1178_vm4, %v5115_v59, %v5116_v11  ;;  %v5120_v10 = vsel %vm1178_vm4, %v5118_v57, %v5119_v19 }
 0x2dc   : > { %v14856_v61 = vpop.permute.xlu1 %5284  ;;  %v14859_v60 = vsel %vm739_vm0, %v5281_v32, %v5283_v44 }
 0x2dd   : > { %17775 = vst [vmem:[#allocation29_spill] sm:$0xff] %v14859_v60  ;;  %5274 = vrot.lane.b32.xlu0 %v5171_v25, %s11881_s30  ;;  %v14864_v52 = vsel %vm739_vm0, %v5283_v44, %v14856_v61 }
 0x2de   : > { %17776 = vst [vmem:[#allocation51_spill] sm:$0xff] %v14864_v52  ;;  %v3617_v49 = vpop.f32.mrf.mxu1  ;;  %5238 = vrot.lane.b32.xlu1 %v5135_v35, %s11881_s30  ;;  %5651 = vmatprep.subr.bf16.mxu1 %v14864_v52  ;;  %v11820_v52 = vld [vmem:[%s11951_s29 + $0x1c8] sm:$0xff] }
 0x2df   : > { %v14872_v32 = vadd.f32 %v3617_v49, %v14694_v40  ;;  %v3576_v39 = vpop.f32.mrf.mxu0  ;;  %5652 = vmatpush1.bf16.msra.mxu1 %v14859_v60  ;;  %v5263_v21 = vpop.permute.xlu0 %5262  ;;  %v11314_v28 = vcombine.low %v11820_v52, %v11821_v6 }
 0x2e0   : > { %v14878_v25 = vadd.f32 %v3576_v39, %v14706_v37  ;;  %v3619_v33 = vpop.f32.mrf.mxu1  ;;  %v5265_v43 = vpop.permute.xlu1 %5264  ;;  %v5122_v37 = vrot.slane %v11198_v56, 2 }
 0x2e1   : > { %17777 = vst [vmem:[#allocation26_spill] sm:$0xff] %v14872_v32  ;;  %v14881_v44 = vadd.f32 %v3619_v33, %v14722_v3  ;;  %v3578_v46 = vpop.f32.mrf.mxu0  ;;  %5240 = vrot.lane.b32.xlu0 %v5137_v8, %s11881_s30  ;;  %v5426_v40 = vsel %vm739_vm0, %v5263_v21, %v5265_v43  ;;  %v5121_v3 = vrot.slane %v11190_v38, 2 }
 0x2e2   : > { %17778 = vst [vmem:[#allocation9_spill] sm:$0xff] %v14878_v25  ;;  %v14886_v50 = vadd.f32 %v3578_v46, %v14728_v51  ;;  %5258 = vrot.lane.b32.xlu1 %v5155_v13, %s11881_s30  ;;  %5612 = vmatprep.subr.bf16.mxu0 %v5426_v40  ;;  %v3621_v0 = vpop.f32.mrf.mxu1  ;;  %v5139_v13 = vsel %vm1178_vm4, %v5122_v37, %v5138_v12  ;;  %v17781_v40 = vld [vmem:[#allocation37_spill] sm:$0xff] }
 0x2e3   : > { %17779 = vst [vmem:[#allocation30_spill] sm:$0xff] %v14881_v44  ;;  %v5261_v35 = vpop.permute.xlu0 %5260  ;;  %v3580_v49 = vpop.f32.mrf.mxu0  ;;  %v5123_v59 = vsel %vm1178_vm4, %v5121_v3, %v5122_v37  ;;  %v11815_v44 = vld [vmem:[%s11951_s29 + $0x208] sm:$0xff] }
 0x2e4   : > { %17780 = vst [vmem:[#allocation34_spill] sm:$0xff] %v14886_v50  ;;  %v5267_v39 = vpop.permute.xlu1 %5266  ;;  %v5425_v8 = vsel %vm739_vm0, %v5261_v35, %v5263_v21  ;;  %v3622_v33 = vpop.f32.mrf.mxu1  ;;  %v17783_v35 = vld [vmem:[#allocation44_spill] sm:$0xff] }
 0x2e5   : > { %5222 = vrot.lane.b32.xlu0 %v5117_v30, %s11881_s30  ;;  %5613 = vmatpush1.bf16.msra.mxu0 %v5425_v8  ;;  %v3581_v51 = vpop.f32.mrf.mxu0  ;;  %v5427_v21 = vsel %vm739_vm0, %v5265_v43, %v5267_v39  ;;  %v17782_v30 = vld [vmem:[#allocation45_spill] sm:$0xff]  ;;  %v17784_v8 = vld [vmem:[#allocation48_spill] sm:$0xff] }
 0x2e6   : > { %5224 = vrot.lane.b32.xlu1 %v5120_v10, %s11881_s30 }
 0x2e7   : > { %v14895_v11 = vpop.permute.xlu0 %5268 }
 0x2e8   : > { %v5247_v56 = vpop.permute.xlu1 %5246  ;;  %v5428_v19 = vsel %vm739_vm0, %v5267_v39, %v14895_v11 }
 0x2e9   : > { %5242 = vrot.lane.b32.xlu0 %v5139_v13, %s11881_s30  ;;  %5653 = vmatprep.subr.bf16.mxu1 %v5428_v19 }
 0x2ea   : > { %5226 = vrot.lane.b32.xlu1 %v5123_v59, %s11881_s30  ;;  %5654 = vmatpush1.bf16.msra.mxu1 %v5427_v21  ;;  %v17785_v59 = vld [vmem:[#allocation55_spill] sm:$0xff]  ;;  %v17787_v21 = vld [vmem:[#allocation52_spill] sm:$0xff] }
 0x2eb   : > { %v5249_v57 = vpop.permute.xlu0 %5248 }
 0x2ec   : > { %v5245_v38 = vpop.permute.xlu1 %5244  ;;  %v5419_v12 = vsel %vm739_vm0, %v5247_v56, %v5249_v57 }
 0x2ed   : > { %v5418_v46 = vsel %vm739_vm0, %v5245_v38, %v5247_v56  ;;  %5398 = vrot.lane.b32.xlu0 %v17781_v40, %s11881_s30  ;;  %5614 = vmatprep.subr.bf16.mxu0 %v5419_v12  ;;  %v17788_v38 = vld [vmem:[#allocation58_spill] sm:$0xff] }
 0x2ee   : > { %5400 = vrot.lane.b32.xlu1 %v17782_v30, %s11881_s30  ;;  %5615 = vmatpush1.bf16.msra.mxu0 %v5418_v46 }
 0x2ef   : > { %v5251_v37 = vpop.permute.xlu0 %5250 }
 0x2f0   : > { %v14909_v0 = vpop.permute.xlu1 %5252  ;;  %v5420_v43 = vsel %vm739_vm0, %v5249_v57, %v5251_v37 }
 0x2f1   : > { %5402 = vrot.lane.b32.xlu0 %v17783_v35, %s11881_s30  ;;  %v5421_v10 = vsel %vm739_vm0, %v5251_v37, %v14909_v0  ;;  %v17789_v37 = vld [vmem:[#allocation53_spill] sm:$0xff]  ;;  %v17790_v35 = vld [vmem:[#allocation56_spill] sm:$0xff] }
 0x2f2   : > { %5382 = vrot.lane.b32.xlu1 %v17713_v48, %s11881_s30  ;;  %5655 = vmatprep.subr.bf16.mxu1 %v5421_v10  ;;  %v17786_v48 = vld [vmem:[#allocation49_spill] sm:$0xff]  ;;  %v11257_v10 = vcombine.high %v14457_v22, %v14457_v22 }
 0x2f3   : > { %5656 = vmatpush1.bf16.msra.mxu1 %v5420_v43  ;;  %v5231_v3 = vpop.permute.xlu0 %5230  ;;  %v11256_v43 = vcombine.low %v14457_v22, %v14457_v22  ;;  %v11259_v22 = vcombine.high %v14473_v5, %v14473_v5 }
 0x2f4   : > { %v5233_v49 = vpop.permute.xlu1 %5232 }
 0x2f5   : > { %5384 = vrot.lane.b32.xlu0 %v12903_v15, %s11881_s30  ;;  %v5412_v39 = vsel %vm739_vm0, %v5231_v3, %v5233_v49 }
 0x2f6   : > { %5366 = vrot.lane.b32.xlu1 %v17784_v8, %s11881_s30  ;;  %5616 = vmatprep.subr.bf16.mxu0 %v5412_v39 }
 0x2f7   : > { %v5229_v33 = vpop.permute.xlu0 %5228 }
 0x2f8   : > { %v5235_v51 = vpop.permute.xlu1 %5234  ;;  %v5411_v13 = vsel %vm739_vm0, %v5229_v33, %v5231_v3  ;;  %v11258_v33 = vcombine.low %v14473_v5, %v14473_v5 }
 0x2f9   : > { %5368 = vrot.lane.b32.xlu0 %v17785_v59, %s11881_s30  ;;  %5617 = vmatpush1.bf16.msra.mxu0 %v5411_v13  ;;  %v5413_v57 = vsel %vm739_vm0, %v5233_v49, %v5235_v51  ;;  %v5781_v13 = vld [vmem:[%s11951_s29] sm:$0xff] }
 0x2fa   : > { %5386 = vrot.lane.b32.xlu1 %v17786_v48, %s11881_s30  ;;  %v5785_v59 = vld [vmem:[%s11951_s29 + $0x20] sm:$0xff] }
 0x2fb   : > { %v14928_v56 = vpop.permute.xlu0 %5236 }
 0x2fc   : > { %v5215_v15 = vpop.permute.xlu1 %5214  ;;  %v5414_v19 = vsel %vm739_vm0, %v5235_v51, %v14928_v56 }
 0x2fd   : > { %5350 = vrot.lane.b32.xlu0 %v17787_v21, %s11881_s30  ;;  %5657 = vmatprep.subr.bf16.mxu1 %v5414_v19  ;;  %v11249_v21 = vcombine.high %v5781_v13, %v5785_v59 }
 0x2fe   : > { %5352 = vrot.lane.b32.xlu1 %v17788_v38, %s11881_s30  ;;  %5658 = vmatpush1.bf16.msra.mxu1 %v5413_v57  ;;  %v5782_v57 = vld [vmem:[%s11951_s29 + $0x8] sm:$0xff] }
 0x2ff   : > { %v5217_v12 = vpop.permute.xlu0 %5216  ;;  %v5786_v38 = vld [vmem:[%s11951_s29 + $0x28] sm:$0xff] }
 0x300   : > { %v5213_v46 = vpop.permute.xlu1 %5212  ;;  %v5405_v40 = vsel %vm739_vm0, %v5215_v15, %v5217_v12 }
 0x301   : > { %v5404_v30 = vsel %vm739_vm0, %v5213_v46, %v5215_v15  ;;  %5370 = vrot.lane.b32.xlu0 %v17789_v37, %s11881_s30  ;;  %5618 = vmatprep.subr.bf16.mxu0 %v5405_v40  ;;  %v11260_v15 = vcombine.low %v14490_v47, %v14490_v47 }
 0x302   : > { %5354 = vrot.lane.b32.xlu1 %v17790_v35, %s11881_s30  ;;  %5619 = vmatpush1.bf16.msra.mxu0 %v5404_v30  ;;  %v11250_v30 = vcombine.low %v5782_v57, %v5786_v38 }
 0x303   : > { %v5219_v3 = vpop.permute.xlu0 %5218 }
 0x304   : > { %v14947_v49 = vpop.permute.xlu1 %5220  ;;  %v5406_v39 = vsel %vm739_vm0, %v5217_v12, %v5219_v3 }
 0x305   : > { %5866 = vrot.lane.b32.xlu0 %v11256_v43, %s11887_s22  ;;  %v5407_v8 = vsel %vm739_vm0, %v5219_v3, %v14947_v49  ;;  %v11248_v43 = vcombine.low %v5781_v13, %v5785_v59  ;;  %v5787_v3 = vld [vmem:[%s11951_s29 + $0x30] sm:$0xff] }
 0x306   : > { %5868 = vrot.lane.b32.xlu1 %v11257_v10, %s11887_s22  ;;  %5659 = vmatprep.subr.bf16.mxu1 %v5407_v8  ;;  %v5783_v10 = vld [vmem:[%s11951_s29 + $0x10] sm:$0xff] }
 0x307   : > { %5660 = vmatpush1.bf16.msra.mxu1 %v5406_v39  ;;  %v5389_v51 = vpop.permute.xlu0 %5388 }
 0x308   : > { %v5391_v48 = vpop.permute.xlu1 %5390 }
 0x309   : > { %5870 = vrot.lane.b32.xlu0 %v11258_v33, %s11887_s22  ;;  %v5481_v19 = vsel %vm739_vm0, %v5389_v51, %v5391_v48  ;;  %v11252_v51 = vcombine.low %v5783_v10, %v5787_v3 }
 0x30a   : > { %5872 = vrot.lane.b32.xlu1 %v11259_v22, %s11887_s22  ;;  %v14971_v40 = vsel %vm1311_vm3, %v5481_v19, 0  ;;  %v11251_v22 = vcombine.high %v5782_v57, %v5786_v38  ;;  %v11261_v19 = vcombine.high %v14490_v47, %v14490_v47  ;;  %v11702_v47 = vld [vmem:[%s17368_s1 + $0x4] ss:$0 sps:$4 sm:$0xff]  }
 0x30b   : > { %v5393_v5 = vpop.permute.xlu0 %5392  ;;  %17792 = vst [vmem:[#allocation57_spill] sm:$0xff] %v14971_v40 }
 0x30c   : > { %v5395_v12 = vpop.permute.xlu1 %5394  ;;  %v14968_v46 = vsel %vm739_vm0, %v5391_v48, %v5393_v5 }
 0x30d   : > { %17791 = vst [vmem:[#allocation54_spill] sm:$0xff] %v14968_v46  ;;  %5874 = vrot.lane.b32.xlu0 %v11260_v15, %s11887_s22  ;;  %11239 = vmatprep.subr.msk.bf16.mxu0 %vm1311_vm3, %v14968_v46  ;;  %v5483_v37 = vsel %vm739_vm0, %v5393_v5, %v5395_v12 }
 0x30e   : > { %5852 = vrot.lane.b32.xlu1 %v11249_v21, %s11887_s22  ;;  %5629 = vmatpush2.bf16.msra.mxu0 %v14971_v40  ;;  %v14991_v33 = vsel %vm1311_vm3, %v5483_v37, 0  ;;  %v11262_v21 = vcombine.low %v14841_v23, %v14841_v23 }
 0x30f   : > { %v14979_v35 = vpop.permute.xlu0 %5396  ;;  %17794 = vst [vmem:[#allocation37_spill] sm:$0xff] %v14991_v33 }
 0x310   : > { %v5375_v39 = vpop.permute.xlu1 %5374  ;;  %v14985_v8 = vsel %vm739_vm0, %v5395_v12, %v14979_v35 }
 0x311   : > { %17793 = vst [vmem:[#allocation6_spill] sm:$0xff] %v14985_v8  ;;  %5854 = vrot.lane.b32.xlu0 %v11250_v30, %s11887_s22  ;;  %11241 = vmatprep.subr.msk.bf16.mxu1 %vm1311_vm3, %v14985_v8  ;;  %v11263_v30 = vcombine.high %v14841_v23, %v14841_v23 }
 0x312   : > { %5850 = vrot.lane.b32.xlu1 %v11248_v43, %s11887_s22  ;;  %5670 = vmatpush2.bf16.msra.mxu1 %v14991_v33  ;;  %v5784_v43 = vld [vmem:[%s11951_s29 + $0x18] sm:$0xff] }
 0x313   : > { %v5377_v13 = vpop.permute.xlu0 %5376 }
 0x314   : > { %v5373_v59 = vpop.permute.xlu1 %5372  ;;  %v14996_v48 = vsel %vm739_vm0, %v5375_v39, %v5377_v13 }
 0x315   : > { %17795 = vst [vmem:[#allocation45_spill] sm:$0xff] %v14996_v48  ;;  %v14999_v15 = vsel %vm739_vm0, %v5373_v59, %v5375_v39  ;;  %5856 = vrot.lane.b32.xlu0 %v11251_v22, %s11887_s22  ;;  %5630 = vmatprep.subr.bf16.mxu0 %v14996_v48  ;;  %v5788_v39 = vld [vmem:[%s11951_s29 + $0x38] sm:$0xff] }
 0x316   : > { %17796 = vst [vmem:[#allocation44_spill] sm:$0xff] %v14999_v15  ;;  %5858 = vrot.lane.b32.xlu1 %v11252_v51, %s11887_s22  ;;  %5631 = vmatpush2.bf16.msra.mxu0 %v14999_v15  ;;  %v11254_v59 = vcombine.low %v5784_v43, %v5788_v39 }
 0x317   : > { %v5379_v57 = vpop.permute.xlu0 %5378 }
 0x318   : > { %v15009_v38 = vpop.permute.xlu1 %5380  ;;  %v15012_v5 = vsel %vm739_vm0, %v5377_v13, %v5379_v57  ;;  %v11253_v13 = vcombine.high %v5783_v10, %v5787_v3 }
 0x319   : > { %17797 = vst [vmem:[#allocation48_spill] sm:$0xff] %v15012_v5  ;;  %5876 = vrot.lane.b32.xlu0 %v11261_v19, %s11887_s22  ;;  %v15017_v12 = vsel %vm739_vm0, %v5379_v57, %v15009_v38  ;;  %v11255_v57 = vcombine.high %v5784_v43, %v5788_v39  ;;  %v11812_v43 = vld [vmem:[%s11951_s29 + $0x220] sm:$0xff] }
 0x31a   : > { %17798 = vst [vmem:[#allocation55_spill] sm:$0xff] %v15017_v12  ;;  %5878 = vrot.lane.b32.xlu1 %v11262_v21, %s11887_s22  ;;  %5671 = vmatprep.subr.bf16.mxu1 %v15017_v12  ;;  %v11813_v39 = vld [vmem:[%s11951_s29 + $0x200] sm:$0xff] }
 0x31b   : > { %5672 = vmatpush2.bf16.msra.mxu1 %v15012_v5  ;;  %v5359_v37 = vpop.permute.xlu0 %5358  ;;  %v11320_v4 = vcombine.low %v11813_v39, %v11812_v43  ;;  %v6797_v5 = vld [vmem:[%s11951_s29 + $0x38] sm:$0xff] }
 0x31c   : > { %v5361_v22 = vpop.permute.xlu1 %5360 }
 0x31d   : > { %5796 = vrot.lane.b32.xlu0 %v11702_v47, %s11888_s27  ;;  %v15030_v51 = vsel %vm739_vm0, %v5359_v37, %v5361_v22  ;;  %s11895_s27 = smov 112  }
 0x31e   : > { %17799 = vst [vmem:[#allocation49_spill] sm:$0xff] %v15030_v51  ;;  %5880 = vrot.lane.b32.xlu1 %v11263_v30, %s11887_s22  ;;  %5632 = vmatprep.subr.bf16.mxu0 %v15030_v51  ;;  %v11866_v51 = vld [vmem:[%s11951_s29 + $0x108] sm:$0xff] }
 0x31f   : > { %v5357_v19 = vpop.permute.xlu0 %5356 }
 0x320   : > { %v5363_v23 = vpop.permute.xlu1 %5362  ;;  %v15035_v21 = vsel %vm739_vm0, %v5357_v19, %v5359_v37  ;;  %v17803_v37 = vld [vmem:[#allocation66_spill] sm:$0xff] }
 0x321   : > { %17800 = vst [vmem:[#allocation52_spill] sm:$0xff] %v15035_v21  ;;  %5860 = vrot.lane.b32.xlu0 %v11253_v13, %s11887_s22  ;;  %5633 = vmatpush2.bf16.msra.mxu0 %v15035_v21  ;;  %v15049_v30 = vsel %vm739_vm0, %v5361_v22, %v5363_v23  ;;  %v11321_v13 = vcombine.high %v11813_v39, %v11812_v43  ;;  %v11814_v19 = vld [vmem:[%s11951_s29 + $0x228] sm:$0xff]  ;;  %v17806_v22 = vld [vmem:[#allocation75_spill] sm:$0xff]  ;;  %v6253_v39 = vrot.slane %v11320_v4, 2  ;;  %v11819_v4 = vld [vmem:[%s11951_s29 + $0x1e0] sm:$0xff] }
 0x322   : > { %5862 = vrot.lane.b32.xlu1 %v11254_v59, %s11887_s22  ;;  %17802 = vst [vmem:[#allocation53_spill] sm:$0xff] %v15049_v30  ;;  %v11322_v32 = vcombine.low %v11815_v44, %v11814_v19  ;;  %v11323_v7 = vcombine.high %v11815_v44, %v11814_v19  ;;  %v17813_v44 = vld [vmem:[#allocation61_spill] sm:$0xff]  ;;  %v15093_v19 = vld [vmem:[%s11951_s29 + $0x210] sm:$0xff] }
 0x323   : > { %v15040_v10 = vpop.permute.xlu0 %5364 }
 0x324   : > { %v5343_v3 = vpop.permute.xlu1 %5342  ;;  %v15044_v47 = vsel %vm739_vm0, %v5363_v23, %v15040_v10  ;;  %v17807_v23 = vld [vmem:[#allocation69_spill] sm:$0xff]  ;;  %v15070_v36 = vrot.slane %v11322_v32, 2  ;;  %v15101_v20 = vrot.slane %v11323_v7, 2 }
 0x325   : > { %17801 = vst [vmem:[#allocation58_spill] sm:$0xff] %v15044_v47  ;;  %5864 = vrot.lane.b32.xlu0 %v11255_v57, %s11887_s22  ;;  %5673 = vmatprep.subr.bf16.mxu1 %v15044_v47  ;;  %v17812_v32 = vld [vmem:[#allocation85_spill] sm:$0xff]  ;;  %v6793_v47 = vld [vmem:[%s11951_s29 + $0x18] sm:$0xff] }
 0x326   : > { %6391 = vrot.lane.b32.xlu1 %v17803_v37, %s11881_s30  ;;  %5674 = vmatpush2.bf16.msra.mxu1 %v15049_v30  ;;  %v6255_v37 = vrot.slane %v11321_v13, 2  ;;  %v17811_v13 = vld [vmem:[#allocation5_spill] sm:$0xff] }
 0x327   : > { %v5345_v59 = vpop.permute.xlu0 %5344  ;;  %v17817_v7 = vld [vmem:[#allocation65_spill] sm:$0xff] }
 0x328   : > { %v5341_v50 = vpop.permute.xlu1 %5340  ;;  %v15059_v57 = vsel %vm739_vm0, %v5343_v3, %v5345_v59  ;;  %v6270_v43 = vsel %vm1178_vm4, %v6255_v37, %v17813_v44  ;;  %v11818_v44 = vld [vmem:[%s11951_s29 + $0x1c0] sm:$0xff] }
 0x329   : > { %17804 = vst [vmem:[#allocation56_spill] sm:$0xff] %v15059_v57  ;;  %v15062_v25 = vsel %vm739_vm0, %v5341_v50, %v5343_v3  ;;  %6393 = vrot.lane.b32.xlu0 %v17806_v22, %s11881_s30  ;;  %5634 = vmatprep.subr.bf16.mxu0 %v15059_v57  ;;  %v17809_v22 = vld [vmem:[#allocation72_spill] sm:$0xff]  ;;  %v11313_v33 = vcombine.high %v11818_v44, %v11819_v4  ;;  %v6786_v57 = vld [vmem:[%s11951_s29 + $0xe0] sm:$0xcc] }
 0x32a   : > { %17805 = vst [vmem:[#allocation66_spill] sm:$0xff] %v15062_v25  ;;  %6389 = vrot.lane.b32.xlu1 %v17807_v23, %s11881_s30  ;;  %5635 = vmatpush2.bf16.msra.mxu0 %v15062_v25 }
 0x32b   : > { %v5347_v14 = vpop.permute.xlu0 %5346 }
 0x32c   : > { %v15072_v50 = vpop.permute.xlu1 %5348  ;;  %v15075_v3 = vsel %vm739_vm0, %v5345_v59, %v5347_v14  ;;  %v15090_v59 = vld [vmem:[%s11951_s29 + $0x230] sm:$0xff] }
 0x32d   : > { %17808 = vst [vmem:[#allocation75_spill] sm:$0xff] %v15075_v3  ;;  %6395 = vrot.lane.b32.xlu0 %v17809_v22, %s11881_s30  ;;  %v15081_v23 = vsel %vm739_vm0, %v5347_v14, %v15072_v50  ;;  %5637 = vmatmul.mubr.bf16.vlgmr.msra.gmra.mxu0 %v17811_v13  ;;  %v11324_v22 = vcombine.low %v15093_v19, %v15090_v59 }
 0x32e   : > { %17810 = vst [vmem:[#allocation69_spill] sm:$0xff] %v15081_v23  ;;  %6397 = vrot.lane.b32.xlu1 %v17812_v32, %s11881_s30  ;;  %5675 = vmatprep.subr.bf16.mxu1 %v15081_v23  ;;  %v6271_v32 = vsel %vm1178_vm4, %v15070_v36, %v17814_v29  ;;  %v6269_v29 = vsel %vm1178_vm4, %v6253_v39, %v17817_v7 }
 0x32f   : > { %5676 = vmatpush2.bf16.msra.mxu1 %v15075_v3  ;;  %v5335_v14 = vpop.permute.xlu0 %5334  ;;  %11244 = vmatprep.mubr.msk.bf16.mxu0 %vm5576_vm2, %v17760_v42  ;;  %v15119_v46 = vrot.slane %v11324_v22, 2 }
 0x330   : > { %v5337_v8 = vpop.permute.xlu1 %5336  ;;  %v15109_v40 = vsel %vm739_vm0, %v14654_v2, %v5335_v14 }
 0x331   : > { %17815 = vst [vmem:[#allocation72_spill] sm:$0xff] %v15109_v40  ;;  %6375 = vrot.lane.b32.xlu0 %v6270_v43, %s11881_s30  ;;  %v15113_v60 = vsel %vm739_vm0, %v5335_v14, %v5337_v8  ;;  %v6272_v43 = vsel %vm1178_vm4, %v15101_v20, %v17818_v9  ;;  %v15127_v14 = vrot.slane %v11313_v33, 2  ;;  %v17821_v9 = vld [vmem:[#allocation81_spill] sm:$0xff] }
 0x332   : > { %17816 = vst [vmem:[#allocation5_spill] sm:$0xff] %v15113_v60  ;;  %6377 = vrot.lane.b32.xlu1 %v6271_v32, %s11881_s30  ;;  %5686 = vmatprep.subr.bf16.mxu0 %v15113_v60  ;;  %v11312_v32 = vcombine.low %v11818_v44, %v11819_v4  ;;  %v6273_v33 = vsel %vm1178_vm4, %v15119_v46, %v17821_v9  ;;  %v15145_v44 = vrot.slane %v11314_v28, 2  ;;  %v11824_v60 = vld [vmem:[%s11951_s29 + $0x1a0] sm:$0xff] }
 0x333   : > { %5687 = vmatpush1.bf16.msra.mxu0 %v15109_v40  ;;  %v5319_v2 = vpop.permute.xlu0 %5318  ;;  %5678 = vmatmul.mubr.bf16.vlgmr.msra.gmra.mxu1 %v17811_v13 }
 0x334   : > { %v5321_v7 = vpop.permute.xlu1 %5320  ;;  %v15132_v22 = vsel %vm739_vm0, %v14725_v26, %v5319_v2  ;;  %11246 = vmatprep.mubr.msk.bf16.mxu1 %vm5576_vm2, %v17760_v42  ;;  %v11315_v26 = vcombine.high %v11820_v52, %v11821_v6  ;;  %vm8241_vm2 = vcmask 343044  }
 0x335   : > { %17819 = vst [vmem:[#allocation85_spill] sm:$0xff] %v15132_v22  ;;  %6373 = vrot.lane.b32.xlu0 %v6269_v29, %s11881_s30  ;;  %v15138_v40 = vsel %vm739_vm0, %v5319_v2, %v5321_v7  ;;  %v6256_v29 = vsel %vm1178_vm4, %v15127_v14, %v6255_v37  ;;  %v15152_v2 = vrot.slane %v11312_v32, 2  ;;  %v6258_v32 = vsel %vm1178_vm4, %v15145_v44, %v15070_v36 }
 0x336   : > { %17820 = vst [vmem:[#allocation61_spill] sm:$0xff] %v15138_v40  ;;  %6379 = vrot.lane.b32.xlu1 %v6272_v43, %s11881_s30  ;;  %5688 = vmatprep.subr.bf16.mxu0 %v15138_v40  ;;  %v15155_v43 = vld [vmem:[%s11951_s29 + $0x1f0] sm:$0xff] }
 0x337   : > { %5689 = vmatpush1.bf16.msra.mxu0 %v15132_v22  ;;  %v15148_v4 = vpop.permute.xlu0 %5338  ;;  %v15158_v40 = vld [vmem:[%s11951_s29 + $0x1d0] sm:$0xff]  ;;  %v15177_v22 = vrot.slane %v11315_v26, 2 }
 0x338   : > { %17822 = vst [vmem:[#allocation71_spill] sm:$0xff] %v15148_v4  ;;  %v11316_v28 = vcombine.low %v15158_v40, %v15155_v43  ;;  %v5303_v9 = vpop.permute.xlu1 %5302  ;;  %5727 = vmatprep.subr.bf16.mxu1 %v15148_v4  ;;  %v15165_v6 = vsel %vm739_vm0, %v5337_v8, %v15148_v4  ;;  %v11825_v8 = vld [vmem:[%s11951_s29 + $0x180] sm:$0xff] }
 0x339   : > { %17823 = vst [vmem:[#allocation65_spill] sm:$0xff] %v15165_v6  ;;  %6381 = vrot.lane.b32.xlu0 %v6273_v33, %s11881_s30  ;;  %v15168_v52 = vpop.f32.mrf.mxu0  ;;  %5728 = vmatpush1.bf16.msra.mxu1 %v15165_v6  ;;  %v11305_v4 = vcombine.high %v11825_v8, %v11824_v60  ;;  %v6254_v33 = vsel %vm1178_vm4, %v15152_v2, %v6253_v39  ;;  %v11827_v6 = vld [vmem:[%s11951_s29 + $0x188] sm:$0xff] }
 0x33a   : > { %17824 = vst [vmem:[#allocation68_spill] sm:$0xff] %v15168_v52  ;;  %6359 = vrot.lane.b32.xlu1 %v6256_v29, %s11881_s30  ;;  %v15172_v37 = vpop.f32.mrf.mxu1  ;;  %v15185_v52 = vrot.slane %v11316_v28, 2  ;;  %v11826_v29 = vld [vmem:[%s11951_s29 + $0x1a8] sm:$0xff] }
 0x33b   : > { %17825 = vst [vmem:[#allocation81_spill] sm:$0xff] %v15172_v37  ;;  %v5305_v16 = vpop.permute.xlu0 %5304  ;;  %v15181_v53 = vpop.f32.mrf.mxu0  ;;  %v11306_v37 = vcombine.low %v11827_v6, %v11826_v29  ;;  %v15211_v55 = vrot.slane %v11305_v4, 2 }
 0x33c   : > { %17826 = vst [vmem:[#allocation98_spill] sm:$0xff] %v15181_v53  ;;  %v15189_v58 = vpop.permute.xlu1 %5322  ;;  %v15191_v62 = vpop.f32.mrf.mxu1  ;;  %v15194_v36 = vsel %vm739_vm0, %v5303_v9, %v5305_v16  ;;  %v6260_v53 = vsel %vm1178_vm4, %v15177_v22, %v15101_v20 }
 0x33d   : > { %17827 = vst [vmem:[#allocation99_spill] sm:$0xff] %v15189_v58  ;;  %17828 = vst [vmem:[#allocation100_spill] sm:$0xff] %v15191_v62  ;;  %5729 = vmatprep.subr.bf16.mxu1 %v15189_v58  ;;  %6361 = vrot.lane.b32.xlu0 %v6258_v32, %s11881_s30  ;;  %v4474_v26 = vpop.f32.mrf.mxu0  ;;  %v15200_v39 = vsel %vm739_vm0, %v5321_v7, %v15189_v58  ;;  %v15206_v62 = vsel %vm739_vm0, %v14802_v24, %v5303_v9  ;;  %v15218_v9 = vrot.slane %v11306_v37, 2  ;;  %v15236_v37 = vld [vmem:[%s11951_s29 + $0x1b0] sm:$0xff] }
 0x33e   : > { %17829 = vst [vmem:[#allocation101_spill] sm:$0xff] %v15194_v36  ;;  %17830 = vst [vmem:[#allocation102_spill] sm:$0xff] %v15200_v39  ;;  %6357 = vrot.lane.b32.xlu1 %v6254_v33, %s11881_s30  ;;  %v4515_v28 = vpop.f32.mrf.mxu1  ;;  %5690 = vmatprep.subr.bf16.mxu0 %v15194_v36  ;;  %v11304_v32 = vcombine.low %v11825_v8, %v11824_v60  ;;  %v6262_v24 = vsel %vm1178_vm4, %v15185_v52, %v15119_v46  ;;  %v15239_v8 = vld [vmem:[%s11951_s29 + $0x190] sm:$0xff]  ;;  %v11839_v36 = vld [vmem:[%s11951_s29 + $0x108] sm:$0xff] }
 0x33f   : > { %17831 = vst [vmem:[#allocation103_spill] sm:$0xff] %v15206_v62  ;;  %5730 = vmatpush1.bf16.msra.mxu1 %v15200_v39  ;;  %5691 = vmatpush1.bf16.msra.mxu0 %v15206_v62  ;;  %v5287_v7 = vpop.permute.xlu0 %5286  ;;  %v4475_v33 = vpop.f32.mrf.mxu0  ;;  %v11307_v26 = vcombine.high %v11827_v6, %v11826_v29  ;;  %v6240_v46 = vsel %vm1178_vm4, %v15211_v55, %v15127_v14  ;;  %v11833_v39 = vld [vmem:[%s11951_s29 + $0x148] sm:$0xff] }
 0x340   : > { %v5289_v28 = vpop.permute.xlu1 %5288  ;;  %v4516_v20 = vpop.f32.mrf.mxu1  ;;  %v15222_v60 = vsel %vm739_vm0, %v14856_v61, %v5287_v7  ;;  %v15233_v6 = vrot.slane %v11304_v32, 2  ;;  %v6242_v29 = vsel %vm1178_vm4, %v15218_v9, %v15145_v44  ;;  %v11830_v32 = vld [vmem:[%s11951_s29 + $0x160] sm:$0xff] }
 0x341   : > { %17832 = vst [vmem:[#allocation104_spill] sm:$0xff] %v15222_v60  ;;  %6363 = vrot.lane.b32.xlu0 %v6260_v53, %s11881_s30  ;;  %v15226_v4 = vsel %vm739_vm0, %v5287_v7, %v5289_v28  ;;  %v11308_v53 = vcombine.low %v15239_v8, %v15236_v37  ;;  %v15249_v14 = vrot.slane %v11307_v26, 2  ;;  %v11831_v7 = vld [vmem:[%s11951_s29 + $0x140] sm:$0xff] }
 0x342   : > { %17833 = vst [vmem:[#allocation105_spill] sm:$0xff] %v15226_v4  ;;  %6365 = vrot.lane.b32.xlu1 %v6262_v24, %s11881_s30  ;;  %5692 = vmatprep.subr.bf16.mxu0 %v15226_v4  ;;  %17834 = vst [vmem:[#allocation106_spill] sm:$0xff] %v15233_v6  ;;  %v11297_v33 = vcombine.high %v11831_v7, %v11830_v32  ;;  %v6238_v44 = vsel %vm1178_vm4, %v15233_v6, %v15152_v2 }
 0x343   : > { %5693 = vmatpush1.bf16.msra.mxu0 %v15222_v60  ;;  %v15244_v61 = vpop.permute.xlu0 %5306  ;;  %17836 = vst [vmem:[#allocation108_spill] sm:$0xff] %v15249_v14  ;;  %v15264_v26 = vrot.slane %v11308_v53, 2  ;;  %v11832_v60 = vld [vmem:[%s11951_s29 + $0x168] sm:$0xff] }
 0x344   : > { %17835 = vst [vmem:[#allocation107_spill] sm:$0xff] %v15244_v61  ;;  %v5271_v24 = vpop.permute.xlu1 %5270  ;;  %5731 = vmatprep.subr.bf16.mxu1 %v15244_v61  ;;  %v15256_v20 = vsel %vm739_vm0, %v5305_v16, %v15244_v61  ;;  %v11298_v4 = vcombine.low %v11833_v39, %v11832_v60  ;;  %v6244_v16 = vsel %vm1178_vm4, %v15249_v14, %v15177_v22  ;;  %v6207_v61 = vrot.slane %v11297_v33, 2 }
 0x345   : > { %17837 = vst [vmem:[#allocation109_spill] sm:$0xff] %v15256_v20  ;;  %6343 = vrot.lane.b32.xlu0 %v6240_v46, %s11881_s30  ;;  %5732 = vmatpush1.bf16.msra.mxu1 %v15256_v20  ;;  %17838 = vst [vmem:[#allocation110_spill] sm:$0xff] %v15264_v26  ;;  %v11296_v46 = vcombine.low %v11831_v7, %v11830_v32  ;;  %v5429_v22 = vsel %vm739_vm0, %v14895_v11, %v5271_v24  ;;  %v15295_v11 = vld [vmem:[%s11951_s29 + $0x150] sm:$0xff] }
 0x346   : > { %6345 = vrot.lane.b32.xlu1 %v6242_v29, %s11881_s30  ;;  %v6246_v53 = vsel %vm1178_vm4, %v15264_v26, %v15185_v52  ;;  %v6209_v32 = vrot.slane %v11298_v4, 2  ;;  %v11299_v7 = vcombine.high %v11833_v39, %v11832_v60 }
 0x347   : > { %v5273_v62 = vpop.permute.xlu0 %5272 }
 0x348   : > { %v15271_v58 = vpop.permute.xlu1 %5290  ;;  %v5430_v29 = vsel %vm739_vm0, %v5271_v24, %v5273_v62  ;;  %v6226_v24 = vsel %vm1178_vm4, %v6209_v32, %v15218_v9 }
 0x349   : > { %17839 = vst [vmem:[#allocation111_spill] sm:$0xff] %v15271_v58  ;;  %5733 = vmatprep.subr.bf16.mxu1 %v15271_v58  ;;  %6341 = vrot.lane.b32.xlu0 %v6238_v44, %s11881_s30  ;;  %v15278_v2 = vsel %vm739_vm0, %v5289_v28, %v15271_v58  ;;  %v6224_v28 = vsel %vm1178_vm4, %v6207_v61, %v15211_v55  ;;  %v15289_v44 = vrot.slane %v11296_v46, 2  ;;  %v6211_v46 = vrot.slane %v11299_v7, 2 }
 0x34a   : > { %17840 = vst [vmem:[#allocation112_spill] sm:$0xff] %v15278_v2  ;;  %6347 = vrot.lane.b32.xlu1 %v6244_v16, %s11881_s30  ;;  %5694 = vmatprep.subr.bf16.mxu0 %v5430_v29  ;;  %v15292_v16 = vld [vmem:[%s11951_s29 + $0x170] sm:$0xff]  ;;  %v11836_v29 = vld [vmem:[%s11951_s29 + $0x120] sm:$0xff] }
 0x34b   : > { %5734 = vmatpush1.bf16.msra.mxu1 %v15278_v2  ;;  %5695 = vmatpush1.bf16.msra.mxu0 %v5429_v22  ;;  %v5255_v33 = vpop.permute.xlu0 %5254  ;;  %v11300_v52 = vcombine.low %v15295_v11, %v15292_v16  ;;  %v11837_v22 = vld [vmem:[%s11951_s29 + $0x100] sm:$0xff]  ;;  %v6228_v7 = vsel %vm1178_vm4, %v6211_v46, %v15249_v14 }
 0x34c   : > { %v5257_v39 = vpop.permute.xlu1 %5256  ;;  %v5422_v60 = vsel %vm739_vm0, %v14909_v0, %v5255_v33  ;;  %v11289_v2 = vcombine.high %v11837_v22, %v11836_v29  ;;  %v6222_v0 = vsel %vm1178_vm4, %v15289_v44, %v15233_v6 }
 0x34d   : > { %6349 = vrot.lane.b32.xlu0 %v6246_v53, %s11881_s30  ;;  %v5423_v4 = vsel %vm739_vm0, %v5255_v33, %v5257_v39  ;;  %v6213_v20 = vrot.slane %v11300_v52, 2  ;;  %v11838_v53 = vld [vmem:[%s11951_s29 + $0x128] sm:$0xff] }
 0x34e   : > { %6327 = vrot.lane.b32.xlu1 %v6224_v28, %s11881_s30  ;;  %5696 = vmatprep.subr.bf16.mxu0 %v5423_v4  ;;  %v11290_v33 = vcombine.low %v11839_v36, %v11838_v53  ;;  %v11288_v4 = vcombine.low %v11837_v22, %v11836_v29  ;;  %v11291_v3 = vcombine.high %v11839_v36, %v11838_v53  ;;  %v15330_v36 = vld [vmem:[%s11951_s29 + $0x130] sm:$0xff] }
 0x34f   : > { %5697 = vmatpush1.bf16.msra.mxu0 %v5422_v60  ;;  %v5275_v58 = vpop.permute.xlu0 %5274  ;;  %v6191_v60 = vrot.slane %v11289_v2, 2  ;;  %v6230_v45 = vsel %vm1178_vm4, %v6213_v20, %v15264_v26  ;;  %v6789_v26 = vld [vmem:[%s11951_s29 + $0xf8] sm:$0xcc] }
 0x350   : > { %v5239_v63 = vpop.permute.xlu1 %5238  ;;  %5735 = vmatprep.subr.bf16.mxu1 %v5275_v58  ;;  %v5431_v28 = vsel %vm739_vm0, %v5273_v62, %v5275_v58  ;;  %v15320_v17 = vrot.slane %v11290_v33, 2  ;;  %v6189_v22 = vrot.slane %v11288_v4, 2  ;;  %v15339_v33 = vrot.slane %v11291_v3, 2  ;;  %v11844_v3 = vld [vmem:[%s11951_s29 + $0xe8] sm:$0xff] }
 0x351   : > { %6329 = vrot.lane.b32.xlu0 %v6226_v24, %s11881_s30  ;;  %5736 = vmatpush1.bf16.msra.mxu1 %v5431_v28  ;;  %v5415_v24 = vsel %vm739_vm0, %v14928_v56, %v5239_v63  ;;  %v6208_v29 = vsel %vm1178_vm4, %v6191_v60, %v6207_v61  ;;  %v11843_v56 = vld [vmem:[%s11951_s29 + $0xc0] sm:$0xff] }
 0x352   : > { %6325 = vrot.lane.b32.xlu1 %v6222_v0, %s11881_s30  ;;  %v15333_v0 = vld [vmem:[%s11951_s29 + $0x110] sm:$0xff]  ;;  %v6212_v54 = vsel %vm1178_vm4, %v15339_v33, %v6211_v46 }
 0x353   : > { %v5241_v52 = vpop.permute.xlu0 %5240  ;;  %v11292_v53 = vcombine.low %v15333_v0, %v15330_v36 }
 0x354   : > { %v5259_v62 = vpop.permute.xlu1 %5258  ;;  %v5416_v58 = vsel %vm739_vm0, %v5239_v63, %v5241_v52  ;;  %v11842_v63 = vld [vmem:[%s11951_s29 + $0xe0] sm:$0xff] }
 0x355   : > { %5737 = vmatprep.subr.bf16.mxu1 %v5259_v62  ;;  %6331 = vrot.lane.b32.xlu0 %v6228_v7, %s11881_s30  ;;  %v5424_v2 = vsel %vm739_vm0, %v5257_v39, %v5259_v62  ;;  %v11281_v61 = vcombine.high %v11843_v56, %v11842_v63  ;;  %v6206_v62 = vsel %vm1178_vm4, %v6189_v22, %v15289_v44 }
 0x356   : > { %6333 = vrot.lane.b32.xlu1 %v6230_v45, %s11881_s30  ;;  %5698 = vmatprep.subr.bf16.mxu0 %v5416_v58  ;;  %v6210_v45 = vsel %vm1178_vm4, %v15320_v17, %v6209_v32  ;;  %v6197_v32 = vrot.slane %v11292_v53, 2  ;;  %v11845_v58 = vld [vmem:[%s11951_s29 + $0xc8] sm:$0xff] }
 0x357   : > { %5738 = vmatpush1.bf16.msra.mxu1 %v5424_v2  ;;  %5699 = vmatpush1.bf16.msra.mxu0 %v5415_v24  ;;  %v5223_v39 = vpop.permute.xlu0 %5222  ;;  %v11282_v2 = vcombine.low %v11845_v58, %v11844_v3  ;;  %v11283_v46 = vcombine.high %v11845_v58, %v11844_v3  ;;  %v5777_v58 = vld [vmem:[%s11951_s29 + $0x88] sm:$0xcc] }
 0x358   : > { %v5225_v28 = vpop.permute.xlu1 %5224  ;;  %v5408_v7 = vsel %vm739_vm0, %v14947_v49, %v5223_v39  ;;  %v6169_v49 = vrot.slane %v11281_v61, 2  ;;  %v6214_v44 = vsel %vm1178_vm4, %v6197_v32, %v6213_v20 }
 0x359   : > { %6311 = vrot.lane.b32.xlu0 %v6208_v29, %s11881_s30  ;;  %v5409_v4 = vsel %vm739_vm0, %v5223_v39, %v5225_v28  ;;  %v11280_v29 = vcombine.low %v11843_v56, %v11842_v63  ;;  %v6172_v53 = vrot.slane %v11282_v2, 2  ;;  %v15362_v56 = vld [vmem:[%s11951_s29 + $0xf0] sm:$0xff] }
 0x35a   : > { %6313 = vrot.lane.b32.xlu1 %v6210_v45, %s11881_s30  ;;  %5700 = vmatprep.subr.bf16.mxu0 %v5409_v4  ;;  %v6192_v61 = vsel %vm1178_vm4, %v6169_v49, %v6191_v60 }
 0x35b   : > { %5701 = vmatpush1.bf16.msra.mxu0 %v5408_v7  ;;  %v5243_v24 = vpop.permute.xlu0 %5242  ;;  %v15359_v63 = vrot.slane %v11280_v29, 2 }
 0x35c   : > { %v5227_v39 = vpop.permute.xlu1 %5226  ;;  %5739 = vmatprep.subr.bf16.mxu1 %v5243_v24  ;;  %v5417_v45 = vsel %vm739_vm0, %v5241_v52, %v5243_v24  ;;  %v15365_v52 = vld [vmem:[%s11951_s29 + $0xd0] sm:$0xff]  ;;  %v11848_v24 = vld [vmem:[%s11951_s29 + $0xa0] sm:$0xff] }
 0x35d   : > { %6309 = vrot.lane.b32.xlu0 %v6206_v62, %s11881_s30  ;;  %5740 = vmatpush1.bf16.msra.mxu1 %v5417_v45  ;;  %v11284_v4 = vcombine.low %v15365_v52, %v15362_v56  ;;  %v5776_v62 = vld [vmem:[%s11951_s29 + $0x80] sm:$0xcc]  ;;  %v5410_v3 = vsel %vm739_vm0, %v5225_v28, %v5227_v39  ;;  %v6175_v28 = vrot.slane %v11283_v46, 2  ;;  %v6190_v45 = vsel %vm1178_vm4, %v15359_v63, %v6189_v22 }
 0x35e   : > { %6315 = vrot.lane.b32.xlu1 %v6212_v54, %s11881_s30  ;;  %5741 = vmatprep.subr.bf16.mxu1 %v5227_v39  ;;  %v11273_v29 = vcombine.high %v5776_v62, %v11848_v24 }
 0x35f   : > { %v5399_v7 = vpop.permute.xlu0 %5398  ;;  %v6196_v22 = vsel %vm1178_vm4, %v6175_v28, %v15339_v33 }
 0x360   : > { %v5401_v54 = vpop.permute.xlu1 %5400  ;;  %v5485_v20 = vsel %vm739_vm0, %v14979_v35, %v5399_v7  ;;  %v6194_v35 = vsel %vm1178_vm4, %v6172_v53, %v15320_v17 }
 0x361   : > { %6317 = vrot.lane.b32.xlu0 %v6214_v44, %s11881_s30  ;;  %v15376_v60 = vsel %vm739_vm0, %v5399_v7, %v5401_v54  ;;  %5742 = vmatpush1.bf16.msra.mxu1 %v5410_v3  ;;  %v15379_v2 = vsel %vm1311_vm3, %v5485_v20, 0  ;;  %v6178_v44 = vrot.slane %v11284_v4, 2  ;;  %v11849_v7 = vld [vmem:[%s11951_s29 + $0xa8] sm:$0xff]  ;;  %v6168_v4 = vrot.slane %v11273_v29, 2 }
 0x362   : > { %17841 = vst [vmem:[#allocation113_spill] sm:$0xff] %v15376_v60  ;;  %17842 = vst [vmem:[#allocation114_spill] sm:$0xff] %v15379_v2  ;;  %6295 = vrot.lane.b32.xlu1 %v6192_v61, %s11881_s30  ;;  %11243 = vmatprep.subr.msk.bf16.mxu0 %vm1311_vm3, %v15376_v60  ;;  %v11274_v61 = vcombine.low %v5777_v58, %v11849_v7  ;;  %v11272_v3 = vcombine.low %v5776_v62, %v11848_v24 }
 0x363   : > { %5711 = vmatpush2.bf16.msra.mxu0 %v15379_v2  ;;  %v15388_v39 = vpop.permute.xlu0 %5402  ;;  %v6198_v60 = vsel %vm1178_vm4, %v6178_v44, %v6197_v32  ;;  %v6170_v32 = vsel %vm1178_vm4, %v6168_v4, %v6169_v49 }
 0x364   : > { %17843 = vst [vmem:[#allocation115_spill] sm:$0xff] %v15388_v39  ;;  %v5383_v20 = vpop.permute.xlu1 %5382  ;;  %11245 = vmatprep.subr.msk.bf16.mxu1 %vm1311_vm3, %v15388_v39  ;;  %v5487_v17 = vsel %vm739_vm0, %v5401_v54, %v15388_v39  ;;  %v6171_v34 = vrot.slane %v11274_v61, 2  ;;  %v11275_v54 = vcombine.high %v5777_v58, %v11849_v7  ;;  %v15407_v39 = vld [vmem:[%s11951_s29 + $0x90] sm:$0xcc]  ;;  %v6165_v62 = vrot.slane %v11272_v3, 2 }
 0x365   : > { %6297 = vrot.lane.b32.xlu0 %v6194_v35, %s11881_s30  ;;  %v15399_v46 = vsel %vm1311_vm3, %v5487_v17, 0  ;;  %v15416_v33 = vsel %vm739_vm0, %v15009_v38, %v5383_v20  ;;  %v15422_v58 = vld [vmem:[%s11951_s29 + $0xb0] sm:$0xff] }
 0x366   : > { %17844 = vst [vmem:[#allocation116_spill] sm:$0xff] %v15399_v46  ;;  %6293 = vrot.lane.b32.xlu1 %v6190_v45, %s11881_s30  ;;  %5752 = vmatpush2.bf16.msra.mxu1 %v15399_v46  ;;  %17846 = vst [vmem:[#allocation118_spill] sm:$0xff] %v15416_v33  ;;  %v11276_v24 = vcombine.low %v15407_v39, %v15422_v58  ;;  %v6173_v45 = vsel %vm1178_vm4, %v6171_v34, %v6172_v53  ;;  %v6174_v7 = vrot.slane %v11275_v54, 2  ;;  %v17856_v54 = vld [vmem:[#allocation59_spill] sm:$0xff] }
 0x367   : > { %v5385_v2 = vpop.permute.xlu0 %5384  ;;  %v6167_v53 = vsel %vm1178_vm4, %v6165_v62, %v15359_v63 }
 0x368   : > { %v5367_v35 = vpop.permute.xlu1 %5366  ;;  %v15410_v17 = vsel %vm739_vm0, %v5383_v20, %v5385_v2 }
 0x369   : > { %17845 = vst [vmem:[#allocation117_spill] sm:$0xff] %v15410_v17  ;;  %6299 = vrot.lane.b32.xlu0 %v6196_v22, %s11881_s30  ;;  %5712 = vmatprep.subr.bf16.mxu0 %v15410_v17  ;;  %v15442_v34 = vsel %vm739_vm0, %v15040_v10, %v5367_v35  ;;  %v6813_v17 = vld [vmem:[%s11951_s29 + $0xb8] sm:$0xff] }
 0x36a   : > { %6301 = vrot.lane.b32.xlu1 %v6198_v60, %s11881_s30  ;;  %5713 = vmatpush2.bf16.msra.mxu0 %v15416_v33  ;;  %17850 = vst [vmem:[#allocation122_spill] sm:$0xff] %v15442_v34  ;;  %v6177_v60 = vrot.slane %v11276_v24, 2 }
 0x36b   : > { %v5369_v29 = vpop.permute.xlu0 %5368 }
 0x36c   : > { %v15427_v61 = vpop.permute.xlu1 %5386  ;;  %v15430_v38 = vsel %vm739_vm0, %v5367_v35, %v5369_v29  ;;  %v6179_v63 = vsel %vm1178_vm4, %v6177_v60, %v6178_v44 }
 0x36d   : > { %17847 = vst [vmem:[#allocation119_spill] sm:$0xff] %v15427_v61  ;;  %17848 = vst [vmem:[#allocation120_spill] sm:$0xff] %v15430_v38  ;;  %5753 = vmatprep.subr.bf16.mxu1 %v15427_v61  ;;  %6279 = vrot.lane.b32.xlu0 %v6170_v32, %s11881_s30  ;;  %v15436_v49 = vsel %vm739_vm0, %v5385_v2, %v15427_v61  ;;  %v6176_v2 = vsel %vm1178_vm4, %v6174_v7, %v6175_v28  ;;  %v17859_v7 = vld [vmem:[#allocation63_spill] sm:$0xff] }
 0x36e   : > { %17849 = vst [vmem:[#allocation121_spill] sm:$0xff] %v15436_v49  ;;  %6281 = vrot.lane.b32.xlu1 %v6173_v45, %s11881_s30  ;;  %5714 = vmatprep.subr.bf16.mxu0 %v15430_v38  ;;  %v6792_v61 = vld [vmem:[%s11951_s29 + $0x10] sm:$0xff] }
 0x36f   : > { %5754 = vmatpush2.bf16.msra.mxu1 %v15436_v49  ;;  %5715 = vmatpush2.bf16.msra.mxu0 %v15442_v34  ;;  %v5351_v20 = vpop.permute.xlu0 %5350  ;;  %v6796_v38 = vld [vmem:[%s11951_s29 + $0x30] sm:$0xff] }
 0x370   : > { %v5353_v22 = vpop.permute.xlu1 %5352  ;;  %v15451_v4 = vsel %vm739_vm0, %v15072_v50, %v5351_v20 }
 0x371   : > { %17851 = vst [vmem:[#allocation123_spill] sm:$0xff] %v15451_v4  ;;  %6277 = vrot.lane.b32.xlu0 %v6167_v53, %s11881_s30  ;;  %v15455_v10 = vsel %vm739_vm0, %v5351_v20, %v5353_v22 }
 0x372   : > { %17852 = vst [vmem:[#allocation124_spill] sm:$0xff] %v15455_v10  ;;  %6283 = vrot.lane.b32.xlu1 %v6176_v2, %s11881_s30  ;;  %5716 = vmatprep.subr.bf16.mxu0 %v15455_v10 }
 0x373   : > { %5717 = vmatpush2.bf16.msra.mxu0 %v15451_v4  ;;  %v15461_v3 = vpop.permute.xlu0 %5370 }
 0x374   : > { %17853 = vst [vmem:[#allocation125_spill] sm:$0xff] %v15461_v3  ;;  %v15463_v28 = vpop.permute.xlu1 %5354  ;;  %5755 = vmatprep.subr.bf16.mxu1 %v15461_v3  ;;  %v15468_v50 = vsel %vm739_vm0, %v5369_v29, %v15461_v3  ;;  %v17858_v29 = vld [vmem:[#allocation50_spill] sm:$0xff] }
 0x375   : > { %17854 = vst [vmem:[#allocation126_spill] sm:$0xff] %v15463_v28  ;;  %17855 = vst [vmem:[#allocation127_spill] sm:$0xff] %v15468_v50  ;;  %6285 = vrot.lane.b32.xlu0 %v6179_v63, %s11881_s30  ;;  %5756 = vmatpush2.bf16.msra.mxu1 %v15468_v50  ;;  %v15478_v24 = vsel %vm739_vm0, %v5353_v22, %v15463_v28 }
 0x376   : > { %6421 = vrot.lane.b32.xlu1 %v17856_v54, %s11881_s30  ;;  %v4552_v44 = vpop.f32.mrf.mxu0  ;;  %5757 = vmatprep.subr.bf16.mxu1 %v15463_v28  ;;  %17857 = vst [vmem:[#allocation59_spill] sm:$0xff] %v15478_v24 }
 0x377   : > { %v5867_v35 = vpop.permute.xlu0 %5866  ;;  %5719 = vmatmul.mubr.bf16.vlgmr.msra.gmra.mxu0 %v17811_v13 }
 0x378   : > { %v5869_v32 = vpop.permute.xlu1 %5868  ;;  %v4554_v62 = vpop.f32.mrf.mxu0  ;;  %5965 = vmatprep.mubr.bf16.mxu0 %v17595_v27 }
 0x379   : > { %6423 = vrot.lane.b32.xlu0 %v17858_v29, %s11881_s30  ;;  %5758 = vmatpush2.bf16.msra.mxu1 %v15478_v24  ;;  %v5890_v45 = vsel %vm5882_vm5, %v5867_v35, %v5869_v32  ;;  %v17860_v29 = vld [vmem:[#allocation62_spill] sm:$0xff] }
 0x37a   : > { %6425 = vrot.lane.b32.xlu1 %v17859_v7, %s11881_s30  ;;  %v4556_v53 = vpop.f32.mrf.mxu0  ;;  %v5910_v22 = vsel %vm2074_vm6, %v5890_v45, 0  ;;  %v17861_v7 = vld [vmem:[#allocation73_spill] sm:$0xff] }
 0x37b   : > { %v5871_v60 = vpop.permute.xlu0 %5870 }
 0x37c   : > { %v5873_v20 = vpop.permute.xlu1 %5872  ;;  %v4557_v2 = vpop.f32.mrf.mxu0  ;;  %v5891_v63 = vsel %vm5882_vm5, %v5869_v32, %v5871_v60  ;;  %5760 = vmatmul.mubr.bf16.vlgmr.msra.gmra.mxu1 %v17811_v13 }
 0x37d   : > { %v15490_v54 = vpop.f32.mrf.mxu1  ;;  %6427 = vrot.lane.b32.xlu0 %v17860_v29, %s11881_s30  ;;  %11264 = vmatprep.subr.msk.bf16.mxu0 %vm2074_vm6, %v5891_v63  ;;  %v5892_v35 = vsel %vm5882_vm5, %v5871_v60, %v5873_v20  ;;  %v17864_v63 = vld [vmem:[#allocation60_spill] sm:$0xff] }
 0x37e   : > { %6429 = vrot.lane.b32.xlu1 %v17861_v7, %s11881_s30  ;;  %v15498_v53 = vpop.f32.mrf.mxu0  ;;  %5946 = vmatpush1.bf16.msra.mxu0 %v5910_v22  ;;  %v5916_v60 = vsel %vm2074_vm6, %v5892_v35, 0  ;;  %v17865_v22 = vld [vmem:[#allocation70_spill] sm:$0xff]  ;;  %v17867_v35 = vld [vmem:[#allocation64_spill] sm:$0xff] }
 0x37f   : > { %17862 = vst [vmem:[#allocation50_spill] sm:$0xff] %v15498_v53  ;;  %v15500_v32 = vpop.f32.mrf.mxu1  ;;  %v5875_v2 = vpop.permute.xlu0 %5874  ;;  %6006 = vmatprep.mubr.bf16.mxu1 %v17595_v27 }
 0x380   : > { %v5853_v45 = vpop.permute.xlu1 %5852  ;;  %v15503_v46 = vpop.f32.mrf.mxu0  ;;  %v5893_v29 = vsel %vm5882_vm5, %v5873_v20, %v5875_v2  ;;  %v11325_v20 = vcombine.high %v15093_v19, %v15090_v59 }
 0x381   : > { %17863 = vst [vmem:[#allocation63_spill] sm:$0xff] %v15503_v46  ;;  %v4597_v24 = vpop.f32.mrf.mxu1  ;;  %6407 = vrot.lane.b32.xlu0 %v17864_v63, %s11881_s30  ;;  %11266 = vmatprep.subr.msk.bf16.mxu1 %vm2074_vm6, %v5893_v29 }
 0x382   : > { %6409 = vrot.lane.b32.xlu1 %v17865_v22, %s11881_s30  ;;  %v4693_v7 = vpop.f32.mrf.mxu0  ;;  %5987 = vmatpush1.bf16.msra.mxu1 %v5916_v60  ;;  %v17868_v22 = vld [vmem:[#allocation67_spill] sm:$0xff]  ;;  %v11851_v60 = vld [vmem:[%s11951_s29 + $0x238] sm:$0xff] }
 0x383   : > { %v4598_v53 = vpop.f32.mrf.mxu1  ;;  %v5855_v28 = vpop.permute.xlu0 %5854  ;;  %v11852_v7 = vld [vmem:[%s11951_s29 + $0x218] sm:$0xff] }
 0x384   : > { %v5851_v24 = vpop.permute.xlu1 %5850  ;;  %v4694_v46 = vpop.f32.mrf.mxu0  ;;  %v5884_v63 = vsel %vm5882_vm5, %v5853_v45, %v5855_v28  ;;  %v11326_v59 = vcombine.low %v11852_v7, %v11851_v60 }
 0x385   : > { %v5883_v29 = vsel %vm5882_vm5, %v5851_v24, %v5853_v45  ;;  %v15516_v50 = vpop.f32.mrf.mxu1  ;;  %6405 = vrot.lane.b32.xlu0 %v17867_v35, %s11881_s30  ;;  %5947 = vmatprep.subr.bf16.mxu0 %v5884_v63  ;;  %v6263_v45 = vrot.slane %v11325_v20, 2  ;;  %v11317_v20 = vcombine.high %v15158_v40, %v15155_v43 }
 0x386   : > { %17866 = vst [vmem:[#allocation62_spill] sm:$0xff] %v15516_v50  ;;  %6411 = vrot.lane.b32.xlu1 %v17868_v22, %s11881_s30  ;;  %v4771_v53 = vpop.f32.mrf.mxu0  ;;  %5948 = vmatpush1.bf16.msra.mxu0 %v5883_v29  ;;  %v17872_v29 = vld [vmem:[#allocation80_spill] sm:$0xff] }
 0x387   : > { %v15524_v19 = vadd.f32 %v4771_v53, %v4552_v44  ;;  %v15526_v46 = vpop.f32.mrf.mxu1  ;;  %v5857_v4 = vpop.permute.xlu0 %5856  ;;  %v17873_v44 = vld [vmem:[#allocation82_spill] sm:$0xff]  ;;  %v6265_v53 = vrot.slane %v11326_v59, 2  ;;  %v17877_v59 = vld [vmem:[#allocation87_spill] sm:$0xff] }
 0x388   : > { %17870 = vst [vmem:[#allocation60_spill] sm:$0xff] %v15526_v46  ;;  %v5859_v24 = vpop.permute.xlu1 %5858  ;;  %v4773_v50 = vpop.f32.mrf.mxu0  ;;  %v5885_v63 = vsel %vm5882_vm5, %v5855_v28, %v5857_v4 }
 0x389   : > { %17869 = vst [vmem:[#allocation73_spill] sm:$0xff] %v15524_v19  ;;  %v15529_v35 = vadd.f32 %v4773_v50, %v4554_v62  ;;  %v4734_v22 = vpop.f32.mrf.mxu1  ;;  %6413 = vrot.lane.b32.xlu0 %v17872_v29, %s11881_s30  ;;  %v5886_v3 = vsel %vm5882_vm5, %v5857_v4, %v5859_v24  ;;  %v17874_v50 = vld [vmem:[#allocation77_spill] sm:$0xff] }
 0x38a   : > { %6399 = vrot.lane.b32.xlu1 %v17873_v44, %s11881_s30  ;;  %5988 = vmatprep.subr.bf16.mxu1 %v5886_v3  ;;  %v4775_v19 = vpop.f32.mrf.mxu0  ;;  %v6274_v62 = vsel %vm1178_vm4, %v6263_v45, %v17874_v50  ;;  %v11853_v22 = vld [vmem:[%s11951_s29 + $0x1d8] sm:$0xff]  ;;  %v17875_v3 = vld [vmem:[#allocation89_spill] sm:$0xff] }
 0x38b   : > { %17871 = vst [vmem:[#allocation70_spill] sm:$0xff] %v15529_v35  ;;  %v4735_v46 = vpop.f32.mrf.mxu1  ;;  %5989 = vmatpush1.bf16.msra.mxu1 %v5885_v63  ;;  %v5877_v28 = vpop.permute.xlu0 %5876  ;;  %v11854_v35 = vld [vmem:[%s11951_s29 + $0x1f8] sm:$0xff]  ;;  %v6275_v19 = vsel %vm1178_vm4, %v6265_v53, %v17877_v59  ;;  %v11327_v63 = vcombine.high %v11852_v7, %v11851_v60 }
 0x38c   : > { %v11318_v29 = vcombine.low %v11853_v22, %v11854_v35  ;;  %v5879_v49 = vpop.permute.xlu1 %5878  ;;  %v4776_v4 = vpop.f32.mrf.mxu0  ;;  %v5894_v10 = vsel %vm5882_vm5, %v5875_v2, %v5877_v28  ;;  %v6247_v46 = vrot.slane %v11317_v20, 2  ;;  %v17879_v20 = vld [vmem:[#allocation88_spill] sm:$0xff] }
 0x38d   : > { %v4812_v44 = vpop.f32.mrf.mxu1  ;;  %6401 = vrot.lane.b32.xlu0 %v17875_v3, %s11881_s30  ;;  %v5895_v40 = vsel %vm5882_vm5, %v5877_v28, %v5879_v49  ;;  %v11309_v28 = vcombine.high %v15239_v8, %v15236_v37  ;;  %v11856_v3 = vld [vmem:[%s11951_s29 + $0x198] sm:$0xff] }
 0x38e   : > { %v15547_v43 = vadd.f32 %v4812_v44, %v15490_v54  ;;  %6383 = vrot.lane.b32.xlu1 %v6274_v62, %s11881_s30  ;;  %11268 = vmatprep.subr.msk.bf16.mxu0 %vm2074_vm6, %v5895_v40  ;;  %v6249_v4 = vrot.slane %v11318_v29, 2  ;;  %v5922_v62 = vsel %vm2074_vm6, %v5894_v10, 0  ;;  %v6264_v8 = vsel %vm1178_vm4, %v6247_v46, %v6263_v45  ;;  %v11855_v29 = vld [vmem:[%s11951_s29 + $0x1b8] sm:$0xff] }
 0x38f   : > { %v4814_v2 = vpop.f32.mrf.mxu1  ;;  %v5797_v50 = vpop.permute.xlu0 %5796  ;;  %v11310_v40 = vcombine.low %v11856_v3, %v11855_v29  ;;  %v15572_v59 = vrot.slane %v11309_v28, 2 }
 0x390   : > { %17876 = vst [vmem:[#allocation64_spill] sm:$0xff] %v15547_v43  ;;  %v15556_v54 = vadd.f32 %v4814_v2, %v15500_v32  ;;  %v5881_v44 = vpop.permute.xlu1 %5880  ;;  %11265 = vmatmul.mubr.msk.bf16.vlgmr.msra.gmra.mxu0 %vm5905_vm7, %v5797_v50  ;;  %11267 = vmatmul.mubr.msk.bf16.vlgmr.msra.gmra.mxu1 %vm5905_vm7, %v5797_v50  ;;  %v6267_v32 = vrot.slane %v11327_v63, 2 }
 0x391   : > { %v5896_v60 = vsel %vm5882_vm5, %v5879_v49, %v5881_v44  ;;  %6028 = vmatpush1.bf16.msra.mxu0 %v5922_v62  ;;  %6385 = vrot.lane.b32.xlu0 %v6275_v19, %s11881_s30  ;;  %v4816_v7 = vpop.f32.mrf.mxu1  ;;  %v6266_v49 = vsel %vm1178_vm4, %v6249_v4, %v6265_v53  ;;  %17880 = vst [vmem:[#allocation80_spill] sm:$0xff] %v15572_v59  ;;  %v17881_v53 = vld [vmem:[#allocation84_spill] sm:$0xff]  ;;  %v15581_v28 = vrot.slane %v11310_v40, 2 }
 0x392   : > { %17878 = vst [vmem:[#allocation67_spill] sm:$0xff] %v15556_v54  ;;  %6403 = vrot.lane.b32.xlu1 %v17879_v20, %s11881_s30  ;;  %11270 = vmatprep.subr.msk.bf16.mxu1 %vm2074_vm6, %v5881_v44  ;;  %v5928_v37 = vsel %vm2074_vm6, %v5896_v60, 0  ;;  %v11319_v19 = vcombine.high %v11853_v22, %v11854_v35  ;;  %v6276_v63 = vsel %vm1178_vm4, %v6267_v32, %v17881_v53  ;;  %v11857_v7 = vld [vmem:[%s11951_s29 + $0x178] sm:$0xff] }
 0x393   : > { %6069 = vmatpush1.bf16.msra.mxu1 %v5928_v37  ;;  %v5861_v10 = vpop.permute.xlu0 %5860  ;;  %6047 = vmatprep.mubr.bf16.mxu0 %v17595_v27  ;;  %v4817_v2 = vpop.f32.mrf.mxu1  ;;  %17882 = vst [vmem:[#allocation82_spill] sm:$0xff] %v15581_v28  ;;  %v11301_v35 = vcombine.high %v15295_v11, %v15292_v16  ;;  %v11858_v20 = vld [vmem:[%s11951_s29 + $0x158] sm:$0xff]  ;;  %v6250_v16 = vsel %vm1178_vm4, %v15581_v28, %v6249_v4 }
 0x394   : > { %v5863_v44 = vpop.permute.xlu1 %5862  ;;  %v5887_v62 = vsel %vm5882_vm5, %v5859_v24, %v5861_v10  ;;  %6088 = vmatprep.mubr.bf16.mxu1 %v17595_v27  ;;  %v6248_v24 = vsel %vm1178_vm4, %v15572_v59, %v6247_v46  ;;  %v6251_v60 = vrot.slane %v11319_v19, 2  ;;  %v11302_v37 = vcombine.low %v11858_v20, %v11857_v7 }
 0x395   : > { %6367 = vrot.lane.b32.xlu0 %v6264_v8, %s11881_s30  ;;  %v5888_v45 = vsel %vm5882_vm5, %v5861_v10, %v5863_v44  ;;  %v6215_v11 = vrot.slane %v11301_v35, 2  ;;  %v11311_v46 = vcombine.high %v11856_v3, %v11855_v29  ;;  %v11293_v2 = vcombine.high %v15333_v0, %v15330_v36 }
 0x396   : > { %6369 = vrot.lane.b32.xlu1 %v6266_v49, %s11881_s30  ;;  %6029 = vmatprep.subr.bf16.mxu0 %v5888_v45  ;;  %v6268_v49 = vsel %vm1178_vm4, %v6251_v60, %v6267_v32  ;;  %v6217_v19 = vrot.slane %v11302_v37, 2  ;;  %v15617_v32 = vld [vmem:[%s11951_s29 + $0x118] sm:$0xff]  ;;  %v11285_v37 = vcombine.high %v15365_v52, %v15362_v56 }
 0x397   : > { %6030 = vmatpush1.bf16.msra.mxu0 %v5887_v62  ;;  %v5865_v22 = vpop.permute.xlu0 %5864  ;;  %v6232_v36 = vsel %vm1178_vm4, %v6215_v11, %v15572_v59  ;;  %v15613_v0 = vrot.slane %v11311_v46, 2  ;;  %v6199_v53 = vrot.slane %v11293_v2, 2  ;;  %v11861_v46 = vld [vmem:[%s11951_s29 + $0xf8] sm:$0xff]  ;;  %v6788_v59 = vld [vmem:[%s11951_s29 + $0xf0] sm:$0xcc] }
 0x398   : > { %v6392_v8 = vpop.permute.xlu1 %6391  ;;  %6070 = vmatprep.subr.bf16.mxu1 %v5865_v22  ;;  %v5889_v10 = vsel %vm5882_vm5, %v5863_v44, %v5865_v22  ;;  %v6234_v45 = vsel %vm1178_vm4, %v6217_v19, %v15581_v28  ;;  %v6181_v52 = vrot.slane %v11285_v37, 2  ;;  %v11863_v37 = vld [vmem:[%s11951_s29 + $0xb8] sm:$0xff] }
 0x399   : > { %6387 = vrot.lane.b32.xlu0 %v6276_v63, %s11881_s30  ;;  %6071 = vmatpush1.bf16.msra.mxu1 %v5889_v10  ;;  %17885 = vst [vmem:[#allocation87_spill] sm:$0xff] %v15613_v0  ;;  %v11303_v63 = vcombine.high %v11858_v20, %v11857_v7  ;;  %v6252_v7 = vsel %vm1178_vm4, %v15613_v0, %v6251_v60 }
 0x39a   : > { %6351 = vrot.lane.b32.xlu1 %v6248_v24, %s11881_s30  ;;  %11269 = vmatmul.mubr.msk.bf16.vlgmr.msra.gmra.mxu0 %vm5905_vm7, %v5797_v50  ;;  %v6216_v10 = vsel %vm1178_vm4, %v6199_v53, %v6215_v11 }
 0x39b   : > { %v6394_v40 = vpop.permute.xlu0 %6393  ;;  %11329 = vmatprep.mubr.msk.bf16.mxu0 %vm6579_vm8, %v17760_v42 }
 0x39c   : > { %v6390_v44 = vpop.permute.xlu1 %6389  ;;  %11271 = vmatmul.mubr.msk.bf16.vlgmr.msra.gmra.mxu1 %vm5905_vm7, %v5797_v50  ;;  %v15602_v62 = vsel %vm739_vm0, %v6392_v8, %v6394_v40  ;;  %v11859_v50 = vld [vmem:[%s11951_s29 + $0x138] sm:$0xff] }
 0x39d   : > { %17883 = vst [vmem:[#allocation77_spill] sm:$0xff] %v15602_v62  ;;  %v15605_v4 = vsel %vm739_vm0, %v6390_v44, %v6392_v8  ;;  %6353 = vrot.lane.b32.xlu0 %v6250_v16, %s11881_s30  ;;  %6606 = vmatprep.subr.bf16.mxu0 %v15602_v62  ;;  %v11294_v29 = vcombine.low %v15617_v32, %v11859_v50  ;;  %v6219_v16 = vrot.slane %v11303_v63, 2 }
 0x39e   : > { %17884 = vst [vmem:[#allocation89_spill] sm:$0xff] %v15605_v4  ;;  %6371 = vrot.lane.b32.xlu1 %v6268_v49, %s11881_s30  ;;  %6607 = vmatpush1.bf16.msra.mxu0 %v15605_v4  ;;  %v11295_v60 = vcombine.high %v15617_v32, %v11859_v50 }
 0x39f   : > { %v6396_v3 = vpop.permute.xlu0 %6395  ;;  %11331 = vmatprep.mubr.msk.bf16.mxu1 %vm6579_vm8, %v17760_v42  ;;  %v6201_v20 = vrot.slane %v11294_v29, 2 }
 0x3a0   : > { %v15624_v35 = vpop.permute.xlu1 %6397  ;;  %v15627_v22 = vsel %vm739_vm0, %v6394_v40, %v6396_v3  ;;  %v11862_v40 = vld [vmem:[%s11951_s29 + $0xd8] sm:$0xff]  ;;  %v6203_v50 = vrot.slane %v11295_v60, 2 }
 0x3a1   : > { %17886 = vst [vmem:[#allocation88_spill] sm:$0xff] %v15627_v22  ;;  %6335 = vrot.lane.b32.xlu0 %v6232_v36, %s11881_s30  ;;  %v15632_v24 = vsel %vm739_vm0, %v6396_v3, %v15624_v35  ;;  %v11286_v49 = vcombine.low %v11862_v40, %v11861_v46  ;;  %v6218_v56 = vsel %vm1178_vm4, %v6201_v20, %v6217_v19 }
 0x3a2   : > { %17887 = vst [vmem:[#allocation84_spill] sm:$0xff] %v15632_v24  ;;  %6337 = vrot.lane.b32.xlu1 %v6234_v45, %s11881_s30  ;;  %6647 = vmatprep.subr.bf16.mxu1 %v15632_v24  ;;  %v6236_v36 = vsel %vm1178_vm4, %v6219_v16, %v15613_v0  ;;  %v11277_v3 = vcombine.high %v15407_v39, %v15422_v58  ;;  %v5779_v45 = vld [vmem:[%s11951_s29 + $0x98] sm:$0xcc]  ;;  %v6790_v24 = vld [vmem:[%s11951_s29] sm:$0xff] }
 0x3a3   : > { %6648 = vmatpush1.bf16.msra.mxu1 %v15627_v22  ;;  %v6376_v8 = vpop.permute.xlu0 %6375  ;;  %v6184_v29 = vrot.slane %v11286_v49, 2  ;;  %v6200_v19 = vsel %vm1178_vm4, %v6181_v52, %v6199_v53  ;;  %v11287_v54 = vcombine.high %v11862_v40, %v11861_v46  ;;  %v11279_v46 = vcombine.high %v5779_v45, %v11863_v37 }
 0x3a4   : > { %v6378_v2 = vpop.permute.xlu1 %6377  ;;  %v6180_v58 = vrot.slane %v11277_v3, 2 }
 0x3a5   : > { %6355 = vrot.lane.b32.xlu0 %v6252_v7, %s11881_s30  ;;  %v15646_v44 = vsel %vm739_vm0, %v6376_v8, %v6378_v2  ;;  %v6202_v39 = vsel %vm1178_vm4, %v6184_v29, %v6201_v20  ;;  %v6220_v20 = vsel %vm1178_vm4, %v6203_v50, %v6219_v16 }
 0x3a6   : > { %17888 = vst [vmem:[#allocation128_spill] sm:$0xff] %v15646_v44  ;;  %6319 = vrot.lane.b32.xlu1 %v6216_v10, %s11881_s30  ;;  %6608 = vmatprep.subr.bf16.mxu0 %v15646_v44  ;;  %v11278_v10 = vcombine.low %v5779_v45, %v11863_v37  ;;  %v6182_v60 = vsel %vm1178_vm4, %v6180_v58, %v6181_v52  ;;  %v6794_v44 = vld [vmem:[%s11951_s29 + $0x20] sm:$0xff] }
 0x3a7   : > { %v6374_v11 = vpop.permute.xlu0 %6373 }
 0x3a8   : > { %v6380_v63 = vpop.permute.xlu1 %6379  ;;  %v15658_v7 = vsel %vm739_vm0, %v6374_v11, %v6376_v8  ;;  %v6187_v11 = vrot.slane %v11287_v54, 2 }
 0x3a9   : > { %17889 = vst [vmem:[#allocation129_spill] sm:$0xff] %v15658_v7  ;;  %6321 = vrot.lane.b32.xlu0 %v6218_v56, %s11881_s30  ;;  %6609 = vmatpush1.bf16.msra.mxu0 %v15658_v7  ;;  %v15675_v53 = vsel %vm739_vm0, %v6378_v2, %v6380_v63  ;;  %v6183_v56 = vrot.slane %v11278_v10, 2  ;;  %v6186_v2 = vrot.slane %v11279_v46, 2  ;;  %v17899_v46 = vld [vmem:[#allocation79_spill] sm:$0xff] }
 0x3aa   : > { %6339 = vrot.lane.b32.xlu1 %v6236_v36, %s11881_s30  ;;  %17891 = vst [vmem:[#allocation131_spill] sm:$0xff] %v15675_v53  ;;  %v6204_v54 = vsel %vm1178_vm4, %v6187_v11, %v6203_v50 }
 0x3ab   : > { %v15665_v49 = vpop.permute.xlu0 %6381  ;;  %v6185_v16 = vsel %vm1178_vm4, %v6183_v56, %v6184_v29  ;;  %v6188_v29 = vsel %vm1178_vm4, %v6186_v2, %v6187_v11  ;;  %v6806_v11 = vld [vmem:[%s11951_s29 + $0x80] sm:$0xff] }
 0x3ac   : > { %v6360_v43 = vpop.permute.xlu1 %6359  ;;  %v15670_v8 = vsel %vm739_vm0, %v6380_v63, %v15665_v49 }
 0x3ad   : > { %17890 = vst [vmem:[#allocation130_spill] sm:$0xff] %v15670_v8  ;;  %6303 = vrot.lane.b32.xlu0 %v6200_v19, %s11881_s30  ;;  %6649 = vmatprep.subr.bf16.mxu1 %v15670_v8 }
 0x3ae   : > { %6305 = vrot.lane.b32.xlu1 %v6202_v39, %s11881_s30  ;;  %6650 = vmatpush1.bf16.msra.mxu1 %v15675_v53  ;;  %v17897_v39 = vld [vmem:[#allocation74_spill] sm:$0xff] }
 0x3af   : > { %v6362_v40 = vpop.permute.xlu0 %6361  ;;  %v6803_v53 = vld [vmem:[%s11951_s29 + $0x68] sm:$0xff] }
 0x3b0   : > { %v6358_v36 = vpop.permute.xlu1 %6357  ;;  %v15682_v3 = vsel %vm739_vm0, %v6360_v43, %v6362_v40 }
 0x3b1   : > { %17892 = vst [vmem:[#allocation132_spill] sm:$0xff] %v15682_v3  ;;  %v15685_v19 = vsel %vm739_vm0, %v6358_v36, %v6360_v43  ;;  %6323 = vrot.lane.b32.xlu0 %v6220_v20, %s11881_s30  ;;  %6610 = vmatprep.subr.bf16.mxu0 %v15682_v3  ;;  %v6810_v36 = vld [vmem:[%s11951_s29 + $0xa0] sm:$0xff]  ;;  %v6804_v3 = vld [vmem:[%s11951_s29 + $0x70] sm:$0xff] }
 0x3b2   : > { %17893 = vst [vmem:[#allocation133_spill] sm:$0xff] %v15685_v19  ;;  %6287 = vrot.lane.b32.xlu1 %v6182_v60, %s11881_s30  ;;  %6611 = vmatpush1.bf16.msra.mxu0 %v15685_v19 }
 0x3b3   : > { %v6364_v52 = vpop.permute.xlu0 %6363 }
 0x3b4   : > { %v15693_v45 = vpop.permute.xlu1 %6365  ;;  %v15696_v63 = vsel %vm739_vm0, %v6362_v40, %v6364_v52  ;;  %v17900_v40 = vld [vmem:[#allocation78_spill] sm:$0xff] }
 0x3b5   : > { %17894 = vst [vmem:[#allocation134_spill] sm:$0xff] %v15696_v63  ;;  %6289 = vrot.lane.b32.xlu0 %v6185_v16, %s11881_s30  ;;  %v15701_v43 = vsel %vm739_vm0, %v6364_v52, %v15693_v45  ;;  %v17902_v52 = vld [vmem:[#allocation76_spill] sm:$0xff] }
 0x3b6   : > { %17895 = vst [vmem:[#allocation135_spill] sm:$0xff] %v15701_v43  ;;  %6307 = vrot.lane.b32.xlu1 %v6204_v54, %s11881_s30  ;;  %6651 = vmatprep.subr.bf16.mxu1 %v15701_v43  ;;  %v6799_v43 = vld [vmem:[%s11951_s29 + $0x48] sm:$0xff] }
 0x3b7   : > { %6652 = vmatpush1.bf16.msra.mxu1 %v15696_v63  ;;  %v6344_v50 = vpop.permute.xlu0 %6343  ;;  %v15754_v63 = vld [vmem:[%s11951_s29 + $0x90] sm:$0xff]  ;;  %v15794_v22 = vcombine.high %v6799_v43, %v6803_v53 }
 0x3b8   : > { %v6346_v37 = vpop.permute.xlu1 %6345 }
 0x3b9   : > { %6291 = vrot.lane.b32.xlu0 %v6188_v29, %s11881_s30  ;;  %v15709_v10 = vsel %vm739_vm0, %v6344_v50, %v6346_v37  ;;  %v17904_v29 = vld [vmem:[#allocation86_spill] sm:$0xff] }
 0x3ba   : > { %17896 = vst [vmem:[#allocation136_spill] sm:$0xff] %v15709_v10  ;;  %6431 = vrot.lane.b32.xlu1 %v17897_v39, %s11881_s30  ;;  %6612 = vmatprep.subr.bf16.mxu0 %v15709_v10  ;;  %v6807_v39 = vld [vmem:[%s11951_s29 + $0x88] sm:$0xff] }
 0x3bb   : > { %v6342_v58 = vpop.permute.xlu0 %6341 }
 0x3bc   : > { %v6348_v20 = vpop.permute.xlu1 %6347  ;;  %v15715_v56 = vsel %vm739_vm0, %v6342_v58, %v6344_v50  ;;  %v15739_v50 = vcombine.high %v6806_v11, %v6810_v36  ;;  %v6811_v58 = vld [vmem:[%s11951_s29 + $0xa8] sm:$0xff] }
 0x3bd   : > { %17898 = vst [vmem:[#allocation74_spill] sm:$0xff] %v15715_v56  ;;  %6433 = vrot.lane.b32.xlu0 %v17899_v46, %s11881_s30  ;;  %6613 = vmatpush1.bf16.msra.mxu0 %v15715_v56  ;;  %v15734_v54 = vsel %vm739_vm0, %v6346_v37, %v6348_v20  ;;  %v17905_v37 = vld [vmem:[#allocation83_spill] sm:$0xff]  ;;  %v6802_v56 = vld [vmem:[%s11951_s29 + $0x60] sm:$0xff] }
 0x3be   : > { %6435 = vrot.lane.b32.xlu1 %v17900_v40, %s11881_s30  ;;  %17903 = vst [vmem:[#allocation78_spill] sm:$0xff] %v15734_v54 }
 0x3bf   : > { %v15722_v60 = vpop.permute.xlu0 %6349 }
 0x3c0   : > { %v6328_v16 = vpop.permute.xlu1 %6327  ;;  %v15728_v2 = vsel %vm739_vm0, %v6348_v20, %v15722_v60  ;;  %v15747_v20 = vcombine.low %v6807_v39, %v6811_v58 }
 0x3c1   : > { %17901 = vst [vmem:[#allocation79_spill] sm:$0xff] %v15728_v2  ;;  %6415 = vrot.lane.b32.xlu0 %v17902_v52, %s11881_s30  ;;  %6653 = vmatprep.subr.bf16.mxu1 %v15728_v2 }
 0x3c2   : > { %6417 = vrot.lane.b32.xlu1 %v17904_v29, %s11881_s30  ;;  %6654 = vmatpush1.bf16.msra.mxu1 %v15734_v54  ;;  %v15751_v29 = vcombine.low %v6806_v11, %v6810_v36  ;;  %v6798_v36 = vld [vmem:[%s11951_s29 + $0x40] sm:$0xff] }
 0x3c3   : > { %v6330_v46 = vpop.permute.xlu0 %6329  ;;  %v15790_v8 = vcombine.low %v6798_v36, %v6802_v56 }
 0x3c4   : > { %v6326_v40 = vpop.permute.xlu1 %6325  ;;  %v6459_v52 = vsel %vm739_vm0, %v6328_v16, %v6330_v46 }
 0x3c5   : > { %v6458_v2 = vsel %vm739_vm0, %v6326_v40, %v6328_v16  ;;  %6419 = vrot.lane.b32.xlu0 %v17905_v37, %s11881_s30  ;;  %6614 = vmatprep.subr.bf16.mxu0 %v6459_v52  ;;  %v15757_v16 = vld [vmem:[%s11951_s29 + $0xb0] sm:$0xff] }
 0x3c6   : > { %6946 = vrot.lane.b32.xlu1 %v15739_v50, %s11887_s22  ;;  %6615 = vmatpush1.bf16.msra.mxu0 %v6458_v2  ;;  %v15766_v2 = vcombine.high %v6807_v39, %v6811_v58  ;;  %v15772_v11 = vcombine.low %v15754_v63, %v15757_v16  ;;  %v15781_v39 = vcombine.high %v6798_v36, %v6802_v56  ;;  %v6795_v36 = vld [vmem:[%s11951_s29 + $0x28] sm:$0xff] }
 0x3c7   : > { %v6332_v54 = vpop.permute.xlu0 %6331  ;;  %v15785_v58 = vcombine.low %v6799_v43, %v6803_v53  ;;  %v15811_v53 = vcombine.high %v6790_v24, %v6794_v44  ;;  %v6791_v43 = vld [vmem:[%s11951_s29 + $0x8] sm:$0xff] }
 0x3c8   : > { %v15759_v40 = vpop.permute.xlu1 %6333  ;;  %v6460_v52 = vsel %vm739_vm0, %v6330_v46, %v6332_v54 }
 0x3c9   : > { %6948 = vrot.lane.b32.xlu0 %v15747_v20, %s11887_s22  ;;  %v6461_v37 = vsel %vm739_vm0, %v6332_v54, %v15759_v40 }
 0x3ca   : > { %6944 = vrot.lane.b32.xlu1 %v15751_v29, %s11887_s22  ;;  %6655 = vmatprep.subr.bf16.mxu1 %v6461_v37 }
 0x3cb   : > { %6656 = vmatpush1.bf16.msra.mxu1 %v6460_v52  ;;  %v6312_v46 = vpop.permute.xlu0 %6311 }
 0x3cc   : > { %v6314_v10 = vpop.permute.xlu1 %6313 }
 0x3cd   : > { %6950 = vrot.lane.b32.xlu0 %v15766_v2, %s11887_s22  ;;  %v6452_v54 = vsel %vm739_vm0, %v6312_v46, %v6314_v10 }
 0x3ce   : > { %6952 = vrot.lane.b32.xlu1 %v15772_v11, %s11887_s22  ;;  %6616 = vmatprep.subr.bf16.mxu0 %v6452_v54  ;;  %v6800_v54 = vld [vmem:[%s11951_s29 + $0x50] sm:$0xff] }
 0x3cf   : > { %v6310_v52 = vpop.permute.xlu0 %6309  ;;  %v15807_v56 = vcombine.low %v6800_v54, %v6804_v3  ;;  %v15858_v30 = vcombine.high %v6800_v54, %v6804_v3 }
 0x3d0   : > { %v6316_v37 = vpop.permute.xlu1 %6315  ;;  %v6451_v19 = vsel %vm739_vm0, %v6310_v52, %v6312_v46 }
 0x3d1   : > { %6930 = vrot.lane.b32.xlu0 %v15781_v39, %s11887_s22  ;;  %6617 = vmatpush1.bf16.msra.mxu0 %v6451_v19  ;;  %v6453_v19 = vsel %vm739_vm0, %v6314_v10, %v6316_v37  ;;  %v15819_v10 = vcombine.low %v6791_v43, %v6795_v36 }
 0x3d2   : > { %6932 = vrot.lane.b32.xlu1 %v15785_v58, %s11887_s22 }
 0x3d3   : > { %v15798_v7 = vpop.permute.xlu0 %6317 }
 0x3d4   : > { %v6296_v46 = vpop.permute.xlu1 %6295  ;;  %v6454_v52 = vsel %vm739_vm0, %v6316_v37, %v15798_v7  ;;  %v15823_v37 = vcombine.low %v6790_v24, %v6794_v44  ;;  %v15838_v24 = vcombine.low %v6792_v61, %v6796_v38 }
 0x3d5   : > { %6928 = vrot.lane.b32.xlu0 %v15790_v8, %s11887_s22  ;;  %6657 = vmatprep.subr.bf16.mxu1 %v6454_v52 }
 0x3d6   : > { %6934 = vrot.lane.b32.xlu1 %v15794_v22, %s11887_s22  ;;  %6658 = vmatpush1.bf16.msra.mxu1 %v6453_v19 }
 0x3d7   : > { %v6298_v4 = vpop.permute.xlu0 %6297 }
 0x3d8   : > { %v6294_v62 = vpop.permute.xlu1 %6293  ;;  %v6445_v34 = vsel %vm739_vm0, %v6296_v46, %v6298_v4 }
 0x3d9   : > { %v6444_v52 = vsel %vm739_vm0, %v6294_v62, %v6296_v46  ;;  %6936 = vrot.lane.b32.xlu0 %v15807_v56, %s11887_s22  ;;  %6618 = vmatprep.subr.bf16.mxu0 %v6445_v34  ;;  %v15834_v46 = vcombine.high %v6791_v43, %v6795_v36  ;;  %v15847_v43 = vcombine.high %v15754_v63, %v15757_v16  ;;  %v6801_v63 = vld [vmem:[%s11951_s29 + $0x58] sm:$0xff] }
 0x3da   : > { %6914 = vrot.lane.b32.xlu1 %v15811_v53, %s11887_s22  ;;  %6619 = vmatpush1.bf16.msra.mxu0 %v6444_v52  ;;  %v6809_v52 = vld [vmem:[%s11951_s29 + $0x98] sm:$0xff] }
 0x3db   : > { %v6300_v19 = vpop.permute.xlu0 %6299  ;;  %v15851_v36 = vcombine.low %v6809_v52, %v6813_v17  ;;  %v6805_v16 = vld [vmem:[%s11951_s29 + $0x78] sm:$0xff] }
 0x3dc   : > { %v15827_v33 = vpop.permute.xlu1 %6301  ;;  %v6446_v62 = vsel %vm739_vm0, %v6298_v4, %v6300_v19  ;;  %v15870_v54 = vcombine.low %v6801_v63, %v6805_v16 }
 0x3dd   : > { %6916 = vrot.lane.b32.xlu0 %v15819_v10, %s11887_s22  ;;  %v6447_v34 = vsel %vm739_vm0, %v6300_v19, %v15827_v33 }
 0x3de   : > { %6912 = vrot.lane.b32.xlu1 %v15823_v37, %s11887_s22  ;;  %6659 = vmatprep.subr.bf16.mxu1 %v6447_v34 }
 0x3df   : > { %6660 = vmatpush1.bf16.msra.mxu1 %v6446_v62  ;;  %v6280_v44 = vpop.permute.xlu0 %6279 }
 0x3e0   : > { %v6282_v4 = vpop.permute.xlu1 %6281 }
 0x3e1   : > { %6918 = vrot.lane.b32.xlu0 %v15834_v46, %s11887_s22  ;;  %v6438_v19 = vsel %vm739_vm0, %v6280_v44, %v6282_v4 }
 0x3e2   : > { %6920 = vrot.lane.b32.xlu1 %v15838_v24, %s11887_s22  ;;  %6620 = vmatprep.subr.bf16.mxu0 %v6438_v19 }
 0x3e3   : > { %v6278_v62 = vpop.permute.xlu0 %6277 }
 0x3e4   : > { %v6284_v34 = vpop.permute.xlu1 %6283  ;;  %v6437_v23 = vsel %vm739_vm0, %v6278_v62, %v6280_v44  ;;  %v15874_v62 = vcombine.high %v6809_v52, %v6813_v17  ;;  %v15889_v17 = vcombine.high %v6792_v61, %v6796_v38 }
 0x3e5   : > { %6954 = vrot.lane.b32.xlu0 %v15847_v43, %s11887_s22  ;;  %6621 = vmatpush1.bf16.msra.mxu0 %v6437_v23  ;;  %v11864_v23 = vld [vmem:[%s17368_s1 + $0x4] ss:$0 sps:$4 sm:$0xff]   ;;  %v6439_v3 = vsel %vm739_vm0, %v6282_v4, %v6284_v34 }
 0x3e6   : > { %6956 = vrot.lane.b32.xlu1 %v15851_v36, %s11887_s22 }
 0x3e7   : > { %v15862_v19 = vpop.permute.xlu0 %6285 }
 0x3e8   : > { %v6422_v31 = vpop.permute.xlu1 %6421  ;;  %v6440_v44 = vsel %vm739_vm0, %v6284_v34, %v15862_v19 }
 0x3e9   : > { %6814 = vrot.lane.b32.xlu0 %v11864_v23, %s11889_s9  ;;  %6661 = vmatprep.subr.bf16.mxu1 %v6440_v44  ;;  %v6787_v44 = vld [vmem:[%s11951_s29 + $0xe8] sm:$0xcc] }
 0x3ea   : > { %6938 = vrot.lane.b32.xlu1 %v15858_v30, %s11887_s22  ;;  %6662 = vmatpush1.bf16.msra.mxu1 %v6439_v3  ;;  %v11865_v3 = vld [vmem:[%s11951_s29 + $0x100] sm:$0xff] }
 0x3eb   : > { %v6424_v25 = vpop.permute.xlu0 %6423  ;;  %v11365_v12 = vcombine.high %v6786_v57, %v11865_v3  ;;  %v11364_v48 = vcombine.low %v6786_v57, %v11865_v3 }
 0x3ec   : > { %v6426_v21 = vpop.permute.xlu1 %6425  ;;  %v6500_v23 = vsel %vm739_vm0, %v6422_v31, %v6424_v25  ;;  %v15897_v31 = vcombine.low %v6793_v47, %v6797_v5 }
 0x3ed   : > { %6940 = vrot.lane.b32.xlu0 %v15870_v54, %s11887_s22  ;;  %v15884_v4 = vsel %vm739_vm0, %v6424_v25, %v6426_v21  ;;  %v15887_v34 = vsel %vm1178_vm4, %v6500_v23, 0  ;;  %v15891_v52 = vpop.f32.mrf.mxu0  ;;  %v11366_v23 = vcombine.low %v6787_v44, %v11866_v51  ;;  %v7193_v57 = vrot.slane %v11364_v48, 2  ;;  %v17917_v48 = vld [vmem:[#allocation23_spill] sm:$0xff] }
 0x3ee   : > { %17906 = vst [vmem:[#allocation76_spill] sm:$0xff] %v15884_v4  ;;  %17907 = vst [vmem:[#allocation86_spill] sm:$0xff] %v15887_v34  ;;  %6958 = vrot.lane.b32.xlu1 %v15874_v62, %s11887_s22  ;;  %11328 = vmatprep.subr.msk.bf16.mxu0 %vm1178_vm4, %v15884_v4 }
 0x3ef   : > { %17908 = vst [vmem:[#allocation83_spill] sm:$0xff] %v15891_v52  ;;  %6635 = vmatpush2.bf16.msra.mxu0 %v15887_v34  ;;  %v6428_v25 = vpop.permute.xlu0 %6427  ;;  %v15902_v15 = vpop.f32.mrf.mxu0  ;;  %v15916_v34 = vcombine.high %v6801_v63, %v6805_v16  ;;  %v7197_v28 = vrot.slane %v11366_v23, 2 }
 0x3f0   : > { %17909 = vst [vmem:[#allocation137_spill] sm:$0xff] %v15902_v15  ;;  %v15904_v61 = vpop.permute.xlu1 %6429  ;;  %v6502_v38 = vsel %vm739_vm0, %v6426_v21, %v6428_v25  ;;  %v15922_v21 = vcombine.high %v6793_v47, %v6797_v5  ;;  %v7195_v15 = vrot.slane %v11365_v12, 2 }
 0x3f1   : > { %6922 = vrot.lane.b32.xlu0 %v15889_v17, %s11887_s22  ;;  %v15911_v52 = vsel %vm739_vm0, %v6428_v25, %v15904_v61  ;;  %v15914_v4 = vsel %vm1178_vm4, %v6502_v38, 0  ;;  %v5642_v0 = vpop.f32.mrf.mxu0  ;;  %v11367_v38 = vcombine.high %v6787_v44, %v11866_v51  ;;  %v17915_v51 = vld [vmem:[#allocation28_spill] sm:$0xff]  ;;  %v11867_v44 = vld [vmem:[%s11951_s29 + $0x110] sm:$0xff] }
 0x3f2   : > { %17910 = vst [vmem:[#allocation138_spill] sm:$0xff] %v15911_v52  ;;  %17911 = vst [vmem:[#allocation139_spill] sm:$0xff] %v15914_v4  ;;  %6924 = vrot.lane.b32.xlu1 %v15897_v31, %s11887_s22  ;;  %11330 = vmatprep.subr.msk.bf16.mxu1 %vm1178_vm4, %v15911_v52  ;;  %v7196_v47 = vsel %vm1178_vm4, %v7195_v15, %v17915_v51  ;;  %v11368_v3 = vcombine.low %v6788_v59, %v11867_v44 }
 0x3f3   : > { %6676 = vmatpush2.bf16.msra.mxu1 %v15914_v4  ;;  %v6408_v25 = vpop.permute.xlu0 %6407  ;;  %v15926_v63 = vpop.f32.mrf.mxu1  ;;  %v7199_v4 = vrot.slane %v11367_v38, 2  ;;  %v11369_v52 = vcombine.high %v6788_v59, %v11867_v44  ;;  %v7194_v51 = vsel %vm1178_vm4, %v7193_v57, %v17917_v48  ;;  %v11371_v44 = vcombine.high %v6789_v26, %v15617_v32 }
 0x3f4   : > { %17912 = vst [vmem:[#allocation140_spill] sm:$0xff] %v15926_v63  ;;  %v6410_v0 = vpop.permute.xlu1 %6409  ;;  %v5643_v16 = vpop.f32.mrf.mxu0 }
 0x3f5   : > { %6942 = vrot.lane.b32.xlu0 %v15916_v34, %s11887_s22  ;;  %v15931_v5 = vsel %vm739_vm0, %v6408_v25, %v6410_v0  ;;  %v15933_v12 = vpop.f32.mrf.mxu1  ;;  %v17916_v16 = vld [vmem:[#allocation20_spill] sm:$0xff] }
 0x3f6   : > { %17913 = vst [vmem:[#allocation141_spill] sm:$0xff] %v15931_v5  ;;  %17914 = vst [vmem:[#allocation142_spill] sm:$0xff] %v15933_v12  ;;  %6926 = vrot.lane.b32.xlu1 %v15922_v21, %s11887_s22  ;;  %6636 = vmatprep.subr.bf16.mxu0 %v15931_v5  ;;  %v7198_v63 = vsel %vm1178_vm4, %v7197_v28, %v17916_v16  ;;  %v7201_v5 = vrot.slane %v11368_v3, 2  ;;  %v11370_v28 = vcombine.low %v6789_v26, %v15617_v32  ;;  %v17919_v26 = vld [vmem:[#allocation10_spill] sm:$0xff] }
 0x3f7   : > { %v6406_v23 = vpop.permute.xlu0 %6405  ;;  %v5683_v14 = vpop.f32.mrf.mxu1 }
 0x3f8   : > { %v6412_v12 = vpop.permute.xlu1 %6411  ;;  %v15945_v6 = vsel %vm739_vm0, %v6406_v23, %v6408_v25  ;;  %v17918_v14 = vld [vmem:[#allocation15_spill] sm:$0xff]  ;;  %v7203_v25 = vrot.slane %v11369_v52, 2  ;;  %v7202_v32 = vsel %vm1178_vm4, %v7201_v5, %v17919_v26  ;;  %v7207_v23 = vrot.slane %v11371_v44, 2 }
 0x3f9   : > { %7211 = vrot.lane.b32.xlu0 %v7196_v47, %s11881_s30  ;;  %6637 = vmatpush2.bf16.msra.mxu0 %v15945_v6  ;;  %v5684_v15 = vpop.f32.mrf.mxu1  ;;  %v7200_v38 = vsel %vm1178_vm4, %v7199_v4, %v17918_v14  ;;  %v15966_v57 = vsel %vm739_vm0, %v6410_v0, %v6412_v12  ;;  %v7205_v4 = vrot.slane %v11370_v28, 2 }
 0x3fa   : > { %7213 = vrot.lane.b32.xlu1 %v7198_v63, %s11881_s30  ;;  %v7204_v3 = vsel %vm1178_vm4, %v7203_v25, %v14688_v1  ;;  %v7208_v48 = vsel %vm1178_vm4, %v7207_v23, %v14776_v18 }
 0x3fb   : > { %v15953_v59 = vpop.permute.xlu0 %6413  ;;  %v7206_v1 = vsel %vm1178_vm4, %v7205_v4, %v14712_v41  ;;  %v16026_v4 = vld [vmem:[%s11951_s29 + $0x110] sm:$0xff] }
 0x3fc   : > { %v6400_v47 = vpop.permute.xlu1 %6399  ;;  %6639 = vmatmul.mubr.bf16.vlgmr.msra.gmra.mxu0 %v17811_v13  ;;  %v15961_v63 = vsel %vm739_vm0, %v6412_v12, %v15953_v59  ;;  %v7459_v12 = vld [vmem:[%s11951_s29 + $0x100] sm:$0xff] }
 0x3fd   : > { %7209 = vrot.lane.b32.xlu0 %v7194_v51, %s11881_s30  ;;  %6677 = vmatprep.subr.bf16.mxu1 %v15961_v63  ;;  %v15985_v5 = vsel %vm739_vm0, %v15624_v35, %v6400_v47  ;;  %v11412_v35 = vcombine.low %v7459_v12, %v7459_v12  ;;  %v11413_v14 = vcombine.high %v7459_v12, %v7459_v12 }
 0x3fe   : > { %7215 = vrot.lane.b32.xlu1 %v7200_v38, %s11881_s30  ;;  %6678 = vmatpush2.bf16.msra.mxu1 %v15966_v57  ;;  %v7460_v38 = vld [vmem:[%s11951_s29 + $0x108] sm:$0xff] }
 0x3ff   : > { %v6402_v52 = vpop.permute.xlu0 %6401  ;;  %11333 = vmatprep.mubr.msk.bf16.mxu0 %vm6579_vm8, %v17760_v42 }
 0x400   : > { %v6384_v16 = vpop.permute.xlu1 %6383  ;;  %v15977_v0 = vsel %vm739_vm0, %v6400_v47, %v6402_v52 }
 0x401   : > { %7217 = vrot.lane.b32.xlu0 %v7202_v32, %s11881_s30  ;;  %6680 = vmatmul.mubr.bf16.vlgmr.msra.gmra.mxu1 %v17811_v13  ;;  %v16010_v18 = vsel %vm739_vm0, %v15665_v49, %v6384_v16  ;;  %v11414_v49 = vcombine.low %v7460_v38, %v7460_v38  ;;  %v11415_v32 = vcombine.high %v7460_v38, %v7460_v38 }
 0x402   : > { %7219 = vrot.lane.b32.xlu1 %v7204_v3, %s11881_s30  ;;  %6688 = vmatprep.subr.bf16.mxu0 %v15977_v0  ;;  %v7455_v3 = vld [vmem:[%s11951_s29 + $0xe0] sm:$0xff] }
 0x403   : > { %6689 = vmatpush1.bf16.msra.mxu0 %v15985_v5  ;;  %v6386_v15 = vpop.permute.xlu0 %6385  ;;  %11335 = vmatprep.mubr.msk.bf16.mxu1 %vm6579_vm8, %v17760_v42  ;;  %vm8387_vm8 = vcmask 334852  }
 0x404   : > { %v15995_v51 = vpop.permute.xlu1 %6403  ;;  %v15998_v28 = vsel %vm739_vm0, %v6384_v16, %v6386_v15 }
 0x405   : > { %6729 = vmatprep.subr.bf16.mxu1 %v15995_v51  ;;  %7221 = vrot.lane.b32.xlu0 %v7206_v1, %s11881_s30  ;;  %v16004_v41 = vsel %vm739_vm0, %v6402_v52, %v15995_v51  ;;  %v11416_v1 = vcombine.low %v16026_v4, %v16026_v4 }
 0x406   : > { %17920 = vst [vmem:[#allocation28_spill] sm:$0xff] %v16004_v41  ;;  %7223 = vrot.lane.b32.xlu1 %v7208_v48, %s11881_s30  ;;  %6690 = vmatprep.subr.bf16.mxu0 %v15998_v28  ;;  %v7452_v48 = vld [vmem:[%s11951_s29 + $0xc8] sm:$0xff] }
 0x407   : > { %6730 = vmatpush1.bf16.msra.mxu1 %v16004_v41  ;;  %6691 = vmatpush1.bf16.msra.mxu0 %v16010_v18  ;;  %v6368_v25 = vpop.permute.xlu0 %6367 }
 0x408   : > { %v6370_v44 = vpop.permute.xlu1 %6369  ;;  %v16017_v47 = vsel %vm739_vm0, %v15693_v45, %v6368_v25  ;;  %v7451_v45 = vld [vmem:[%s11951_s29 + $0xc0] sm:$0xff] }
 0x409   : > { %17921 = vst [vmem:[#allocation20_spill] sm:$0xff] %v16017_v47  ;;  %7681 = vrot.lane.b32.xlu0 %v11412_v35, %s11887_s22  ;;  %v16021_v26 = vsel %vm739_vm0, %v6368_v25, %v6370_v44  ;;  %v11405_v12 = vcombine.high %v7451_v45, %v7455_v3  ;;  %v7456_v35 = vld [vmem:[%s11951_s29 + $0xe8] sm:$0xff] }
 0x40a   : > { %17922 = vst [vmem:[#allocation23_spill] sm:$0xff] %v16021_v26  ;;  %7683 = vrot.lane.b32.xlu1 %v11413_v14, %s11887_s22  ;;  %6692 = vmatprep.subr.bf16.mxu0 %v16021_v26  ;;  %v17999_v26 = vld [vmem:[#allocation112_spill] sm:$0xff] }
 0x40b   : > { %6693 = vmatpush1.bf16.msra.mxu0 %v16017_v47  ;;  %v16029_v52 = vpop.permute.xlu0 %6387 }
 0x40c   : > { %17923 = vst [vmem:[#allocation15_spill] sm:$0xff] %v16029_v52  ;;  %v6352_v23 = vpop.permute.xlu1 %6351  ;;  %6731 = vmatprep.subr.bf16.mxu1 %v16029_v52  ;;  %v16036_v16 = vsel %vm739_vm0, %v6386_v15, %v16029_v52  ;;  %v16068_v52 = vld [vmem:[%s11951_s29 + $0xf0] sm:$0xff] }
 0x40d   : > { %17924 = vst [vmem:[#allocation10_spill] sm:$0xff] %v16036_v16  ;;  %7685 = vrot.lane.b32.xlu0 %v11414_v49, %s11887_s22  ;;  %6732 = vmatpush1.bf16.msra.mxu1 %v16036_v16  ;;  %v11406_v49 = vcombine.low %v7452_v48, %v7456_v35  ;;  %v11404_v16 = vcombine.low %v7451_v45, %v7455_v3 }
 0x40e   : > { %7687 = vrot.lane.b32.xlu1 %v11415_v32, %s11887_s22  ;;  %v16060_v32 = vsel %vm739_vm0, %v15722_v60, %v6352_v23  ;;  %v11407_v60 = vcombine.high %v7452_v48, %v7456_v35 }
 0x40f   : > { %v6354_v14 = vpop.permute.xlu0 %6353  ;;  %17928 = vst [vmem:[#allocation146_spill] sm:$0xff] %v16060_v32 }
 0x410   : > { %v16045_v38 = vpop.permute.xlu1 %6371  ;;  %v16048_v15 = vsel %vm739_vm0, %v6352_v23, %v6354_v14 }
 0x411   : > { %17925 = vst [vmem:[#allocation143_spill] sm:$0xff] %v16045_v38  ;;  %17926 = vst [vmem:[#allocation144_spill] sm:$0xff] %v16048_v15  ;;  %6733 = vmatprep.subr.bf16.mxu1 %v16045_v38  ;;  %7689 = vrot.lane.b32.xlu0 %v11416_v1, %s11887_s22  ;;  %v16054_v25 = vsel %vm739_vm0, %v6370_v44, %v16045_v38  ;;  %v16065_v1 = vld [vmem:[%s11951_s29 + $0xd0] sm:$0xff] }
 0x412   : > { %17927 = vst [vmem:[#allocation145_spill] sm:$0xff] %v16054_v25  ;;  %7667 = vrot.lane.b32.xlu1 %v11405_v12, %s11887_s22  ;;  %6694 = vmatprep.subr.bf16.mxu0 %v16048_v15  ;;  %v11408_v45 = vcombine.low %v16065_v1, %v16068_v52  ;;  %v17995_v15 = vld [vmem:[#allocation104_spill] sm:$0xff] }
 0x413   : > { %6734 = vmatpush1.bf16.msra.mxu1 %v16054_v25  ;;  %6695 = vmatpush1.bf16.msra.mxu0 %v16060_v32  ;;  %v6336_v47 = vpop.permute.xlu0 %6335  ;;  %v17987_v25 = vld [vmem:[#allocation85_spill] sm:$0xff] }
 0x414   : > { %v6338_v44 = vpop.permute.xlu1 %6337  ;;  %v6462_v12 = vsel %vm739_vm0, %v15759_v40, %v6336_v47 }
 0x415   : > { %7669 = vrot.lane.b32.xlu0 %v11406_v49, %s11887_s22  ;;  %v6463_v38 = vsel %vm739_vm0, %v6336_v47, %v6338_v44 }
 0x416   : > { %7665 = vrot.lane.b32.xlu1 %v11404_v16, %s11887_s22  ;;  %6696 = vmatprep.subr.bf16.mxu0 %v6463_v38 }
 0x417   : > { %6697 = vmatpush1.bf16.msra.mxu0 %v6462_v12  ;;  %v16077_v3 = vpop.permute.xlu0 %6355 }
 0x418   : > { %17929 = vst [vmem:[#allocation147_spill] sm:$0xff] %v16077_v3  ;;  %v6320_v23 = vpop.permute.xlu1 %6319  ;;  %6735 = vmatprep.subr.bf16.mxu1 %v16077_v3  ;;  %v16082_v40 = vsel %vm739_vm0, %v6354_v14, %v16077_v3 }
 0x419   : > { %17930 = vst [vmem:[#allocation148_spill] sm:$0xff] %v16082_v40  ;;  %7671 = vrot.lane.b32.xlu0 %v11407_v60, %s11887_s22  ;;  %6736 = vmatpush1.bf16.msra.mxu1 %v16082_v40  ;;  %v6455_v14 = vsel %vm739_vm0, %v15798_v7, %v6320_v23  ;;  %v17983_v40 = vld [vmem:[#allocation72_spill] sm:$0xff] }
 0x41a   : > { %7673 = vrot.lane.b32.xlu1 %v11408_v45, %s11887_s22 }
 0x41b   : > { %v6322_v47 = vpop.permute.xlu0 %6321 }
 0x41c   : > { %v6340_v16 = vpop.permute.xlu1 %6339  ;;  %v6456_v48 = vsel %vm739_vm0, %v6320_v23, %v6322_v47 }
 0x41d   : > { %6737 = vmatprep.subr.bf16.mxu1 %v6340_v16  ;;  %7651 = vrot.lane.b32.xlu0 %v15739_v50, %s11887_s22  ;;  %v6464_v35 = vsel %vm739_vm0, %v6338_v44, %v6340_v16 }
 0x41e   : > { %7653 = vrot.lane.b32.xlu1 %v15747_v20, %s11887_s22  ;;  %6698 = vmatprep.subr.bf16.mxu0 %v6456_v48 }
 0x41f   : > { %6738 = vmatpush1.bf16.msra.mxu1 %v6464_v35  ;;  %6699 = vmatpush1.bf16.msra.mxu0 %v6455_v14  ;;  %v6304_v38 = vpop.permute.xlu0 %6303  ;;  %v11417_v35 = vcombine.high %v16026_v4, %v16026_v4  ;;  %v7462_v14 = vld [vmem:[%s11951_s29 + $0x118] sm:$0xff] }
 0x420   : > { %v6306_v49 = vpop.permute.xlu1 %6305  ;;  %v6448_v12 = vsel %vm739_vm0, %v15827_v33, %v6304_v38 }
 0x421   : > { %7649 = vrot.lane.b32.xlu0 %v15751_v29, %s11887_s22  ;;  %v6449_v50 = vsel %vm739_vm0, %v6304_v38, %v6306_v49 }
 0x422   : > { %7655 = vrot.lane.b32.xlu1 %v15766_v2, %s11887_s22  ;;  %6700 = vmatprep.subr.bf16.mxu0 %v6449_v50 }
 0x423   : > { %6701 = vmatpush1.bf16.msra.mxu0 %v6448_v12  ;;  %v6324_v20 = vpop.permute.xlu0 %6323 }
 0x424   : > { %v6288_v44 = vpop.permute.xlu1 %6287  ;;  %6739 = vmatprep.subr.bf16.mxu1 %v6324_v20  ;;  %v6457_v7 = vsel %vm739_vm0, %v6322_v47, %v6324_v20 }
 0x425   : > { %7657 = vrot.lane.b32.xlu0 %v15772_v11, %s11887_s22  ;;  %6740 = vmatpush1.bf16.msra.mxu1 %v6457_v7  ;;  %v6441_v11 = vsel %vm739_vm0, %v15862_v19, %v6288_v44 }
 0x426   : > { %7635 = vrot.lane.b32.xlu1 %v15781_v39, %s11887_s22 }
 0x427   : > { %v6290_v33 = vpop.permute.xlu0 %6289 }
 0x428   : > { %v6308_v29 = vpop.permute.xlu1 %6307  ;;  %v6442_v60 = vsel %vm739_vm0, %v6288_v44, %v6290_v33 }
 0x429   : > { %6741 = vmatprep.subr.bf16.mxu1 %v6308_v29  ;;  %7637 = vrot.lane.b32.xlu0 %v15785_v58, %s11887_s22  ;;  %v6450_v2 = vsel %vm739_vm0, %v6306_v49, %v6308_v29  ;;  %v11419_v29 = vcombine.high %v7462_v14, %v7462_v14 }
 0x42a   : > { %7633 = vrot.lane.b32.xlu1 %v15790_v8, %s11887_s22  ;;  %6702 = vmatprep.subr.bf16.mxu0 %v6442_v60 }
 0x42b   : > { %6742 = vmatpush1.bf16.msra.mxu1 %v6450_v2  ;;  %6703 = vmatpush1.bf16.msra.mxu0 %v6441_v11  ;;  %v6292_v39 = vpop.permute.xlu0 %6291  ;;  %v7454_v11 = vld [vmem:[%s11951_s29 + $0xd8] sm:$0xff] }
 0x42c   : > { %v6432_v45 = vpop.permute.xlu1 %6431  ;;  %6743 = vmatprep.subr.bf16.mxu1 %v6292_v39  ;;  %v6443_v23 = vsel %vm739_vm0, %v6290_v33, %v6292_v39  ;;  %v7458_v39 = vld [vmem:[%s11951_s29 + $0xf8] sm:$0xff] }
 0x42d   : > { %7639 = vrot.lane.b32.xlu0 %v15794_v22, %s11887_s22  ;;  %v6504_v8 = vsel %vm739_vm0, %v15904_v61, %v6432_v45 }
 0x42e   : > { %7641 = vrot.lane.b32.xlu1 %v15807_v56, %s11887_s22  ;;  %v16138_v22 = vsel %vm1178_vm4, %v6504_v8, 0 }
 0x42f   : > { %6744 = vmatpush1.bf16.msra.mxu1 %v6443_v23  ;;  %v6434_v58 = vpop.permute.xlu0 %6433 }
 0x430   : > { %v16122_v47 = vpop.permute.xlu1 %6435  ;;  %v16125_v19 = vsel %vm739_vm0, %v6432_v45, %v6434_v58 }
 0x431   : > { %v6506_v16 = vsel %vm739_vm0, %v6434_v58, %v16122_v47  ;;  %7619 = vrot.lane.b32.xlu0 %v15811_v53, %s11887_s22  ;;  %11332 = vmatprep.subr.msk.bf16.mxu0 %vm1178_vm4, %v16125_v19 }
 0x432   : > { %7621 = vrot.lane.b32.xlu1 %v15819_v10, %s11887_s22  ;;  %11334 = vmatprep.subr.msk.bf16.mxu1 %vm1178_vm4, %v16122_v47  ;;  %v16141_v56 = vsel %vm1178_vm4, %v6506_v16, 0  ;;  %v11409_v16 = vcombine.high %v16065_v1, %v16068_v52  ;;  %v11411_v1 = vcombine.high %v7454_v11, %v7458_v39 }
 0x433   : > { %6717 = vmatpush2.bf16.msra.mxu0 %v16138_v22  ;;  %6758 = vmatpush2.bf16.msra.mxu1 %v16141_v56  ;;  %v6416_v53 = vpop.permute.xlu0 %6415 }
 0x434   : > { %v6418_v61 = vpop.permute.xlu1 %6417  ;;  %v16147_v48 = vsel %vm739_vm0, %v15953_v59, %v6416_v53 }
 0x435   : > { %7617 = vrot.lane.b32.xlu0 %v15823_v37, %s11887_s22  ;;  %v16152_v10 = vsel %vm739_vm0, %v6416_v53, %v6418_v61  ;;  %v11410_v53 = vcombine.low %v7454_v11, %v7458_v39 }
 0x436   : > { %7623 = vrot.lane.b32.xlu1 %v15834_v46, %s11887_s22  ;;  %6718 = vmatprep.subr.bf16.mxu0 %v16152_v10  ;;  %v11418_v46 = vcombine.low %v7462_v14, %v7462_v14 }
 0x437   : > { %6719 = vmatpush2.bf16.msra.mxu0 %v16147_v48  ;;  %v16161_v38 = vpop.permute.xlu0 %6419  ;;  %v16163_v59 = vpop.f32.mrf.mxu0 }
 0x438   : > { %v6947_v49 = vpop.permute.xlu1 %6946  ;;  %6759 = vmatprep.subr.bf16.mxu1 %v16161_v38  ;;  %v16168_v37 = vsel %vm739_vm0, %v6418_v61, %v16161_v38 }
 0x439   : > { %7625 = vrot.lane.b32.xlu0 %v15838_v24, %s11887_s22  ;;  %6760 = vmatpush2.bf16.msra.mxu1 %v16168_v37  ;;  %v16173_v4 = vpop.f32.mrf.mxu0 }
 0x43a   : > { %7691 = vrot.lane.b32.xlu1 %v11417_v35, %s11887_s22  ;;  %6721 = vmatmul.mubr.bf16.vlgmr.msra.gmra.mxu0 %v17811_v13 }
 0x43b   : > { %v6949_v12 = vpop.permute.xlu0 %6948  ;;  %v5724_v50 = vpop.f32.mrf.mxu0  ;;  %7041 = vmatprep.mubr.bf16.mxu0 %v17595_v27 }
 0x43c   : > { %v6945_v20 = vpop.permute.xlu1 %6944  ;;  %6762 = vmatmul.mubr.bf16.vlgmr.msra.gmra.mxu1 %v17811_v13  ;;  %v6975_v24 = vsel %vm5882_vm5, %v6947_v49, %v6949_v12  ;;  %v16180_v44 = vpop.f32.mrf.mxu1 }
 0x43d   : > { %17931 = vst [vmem:[#allocation149_spill] sm:$0xff] %v16180_v44  ;;  %v6974_v7 = vsel %vm5882_vm5, %v6945_v20, %v6947_v49  ;;  %7693 = vrot.lane.b32.xlu0 %v11418_v46, %s11887_s22  ;;  %7019 = vmatprep.subr.bf16.mxu0 %v6975_v24  ;;  %v5725_v33 = vpop.f32.mrf.mxu0 }
 0x43e   : > { %7463 = vrot.lane.b32.xlu1 %v17811_v13, %s11890_s10  ;;  %7020 = vmatpush1.bf16.msra.mxu0 %v6974_v7  ;;  %v16185_v60 = vpop.f32.mrf.mxu1  ;;  %v7423_v33 = vld [vmem:[%s11951_s29 + $0x140] sm:$0xcc] }
 0x43f   : > { %17932 = vst [vmem:[#allocation150_spill] sm:$0xff] %v16185_v60  ;;  %v6951_v2 = vpop.permute.xlu0 %6950  ;;  %7082 = vmatprep.mubr.bf16.mxu1 %v17595_v27  ;;  %v17991_v60 = vld [vmem:[#allocation103_spill] sm:$0xff] }
 0x440   : > { %v16190_v45 = vpop.permute.xlu1 %6952  ;;  %v6976_v23 = vsel %vm5882_vm5, %v6949_v12, %v6951_v2  ;;  %v5765_v8 = vpop.f32.mrf.mxu1 }
 0x441   : > { %7465 = vrot.lane.b32.xlu0 %v17760_v42, %s11890_s10  ;;  %v6977_v58 = vsel %vm5882_vm5, %v6951_v2, %v16190_v45 }
 0x442   : > { %7695 = vrot.lane.b32.xlu1 %v11419_v29, %s11887_s22  ;;  %7060 = vmatprep.subr.bf16.mxu1 %v6977_v58  ;;  %v5766_v61 = vpop.f32.mrf.mxu1 }
 0x443   : > { %7061 = vmatpush1.bf16.msra.mxu1 %v6976_v23  ;;  %v6931_v35 = vpop.permute.xlu0 %6930  ;;  %v7424_v23 = vld [vmem:[%s11951_s29 + $0x148] sm:$0xcc] }
 0x444   : > { %v6933_v14 = vpop.permute.xlu1 %6932 }
 0x445   : > { %7675 = vrot.lane.b32.xlu0 %v11409_v16, %s11887_s22  ;;  %v6968_v49 = vsel %vm5882_vm5, %v6931_v35, %v6933_v14 }
 0x446   : > { %7677 = vrot.lane.b32.xlu1 %v11410_v53, %s11887_s22  ;;  %7021 = vmatprep.subr.bf16.mxu0 %v6968_v49 }
 0x447   : > { %v6929_v46 = vpop.permute.xlu0 %6928 }
 0x448   : > { %v6935_v12 = vpop.permute.xlu1 %6934  ;;  %v6967_v52 = vsel %vm5882_vm5, %v6929_v46, %v6931_v35 }
 0x449   : > { %7659 = vrot.lane.b32.xlu0 %v15847_v43, %s11887_s22  ;;  %7022 = vmatpush1.bf16.msra.mxu0 %v6967_v52  ;;  %v6969_v7 = vsel %vm5882_vm5, %v6933_v14, %v6935_v12 }
 0x44a   : > { %7661 = vrot.lane.b32.xlu1 %v15851_v36, %s11887_s22 }
 0x44b   : > { %v16207_v50 = vpop.permute.xlu0 %6936 }
 0x44c   : > { %v6915_v20 = vpop.permute.xlu1 %6914  ;;  %v6970_v24 = vsel %vm5882_vm5, %v6935_v12, %v16207_v50 }
 0x44d   : > { %7679 = vrot.lane.b32.xlu0 %v11411_v1, %s11887_s22  ;;  %7062 = vmatprep.subr.bf16.mxu1 %v6970_v24 }
 0x44e   : > { %7643 = vrot.lane.b32.xlu1 %v15858_v30, %s11887_s22  ;;  %7063 = vmatpush1.bf16.msra.mxu1 %v6969_v7  ;;  %v11868_v30 = vld [vmem:[%s11951_s29 + $0x160] sm:$0xff]  ;;  %v7425_v7 = vld [vmem:[%s11951_s29 + $0x150] sm:$0xcc] }
 0x44f   : > { %v6917_v43 = vpop.permute.xlu0 %6916  ;;  %v11429_v58 = vcombine.high %v7423_v33, %v11868_v30  ;;  %v11428_v1 = vcombine.low %v7423_v33, %v11868_v30  ;;  %v11870_v30 = vld [vmem:[%s11951_s29 + $0x170] sm:$0xff] }
 0x450   : > { %v6913_v36 = vpop.permute.xlu1 %6912  ;;  %v16216_v29 = vpop.f32.mrf.mxu0  ;;  %v6961_v2 = vsel %vm5882_vm5, %v6915_v20, %v6917_v43 }
 0x451   : > { %v6960_v11 = vsel %vm5882_vm5, %v6913_v36, %v6915_v20  ;;  %v16220_v39 = vpop.f32.mrf.mxu1  ;;  %7645 = vrot.lane.b32.xlu0 %v15870_v54, %s11887_s22  ;;  %7023 = vmatprep.subr.bf16.mxu0 %v6961_v2  ;;  %v11869_v54 = vld [vmem:[%s11951_s29 + $0x168] sm:$0xff]  ;;  %v7978_v52 = vrot.slane %v11429_v58, 2  ;;  %v7976_v33 = vrot.slane %v11428_v1, 2  ;;  %v11432_v58 = vcombine.low %v7425_v7, %v11870_v30  ;;  %v11871_v1 = vld [vmem:[%s11951_s29 + $0x178] sm:$0xff] }
 0x452   : > { %v16225_v8 = vpop.f32.mrf.mxu0  ;;  %7024 = vmatpush1.bf16.msra.mxu0 %v6960_v11  ;;  %7663 = vrot.lane.b32.xlu1 %v15874_v62, %s11887_s22  ;;  %v11430_v49 = vcombine.low %v7424_v23, %v11869_v54  ;;  %v11431_v2 = vcombine.high %v7424_v23, %v11869_v54  ;;  %v7426_v23 = vld [vmem:[%s11951_s29 + $0x158] sm:$0xcc]  ;;  %v11433_v54 = vcombine.high %v7425_v7, %v11870_v30 }
 0x453   : > { %v16230_v16 = vpop.f32.mrf.mxu1  ;;  %v6919_v53 = vpop.permute.xlu0 %6918 }
 0x454   : > { %v16232_v61 = vpop.permute.xlu1 %6920  ;;  %v5971_v35 = vpop.f32.mrf.mxu0  ;;  %v6962_v14 = vsel %vm5882_vm5, %v6917_v43, %v6919_v53  ;;  %v7980_v36 = vrot.slane %v11430_v49, 2 }
 0x455   : > { %v6012_v46 = vpop.f32.mrf.mxu1  ;;  %7627 = vrot.lane.b32.xlu0 %v15889_v17, %s11887_s22  ;;  %v6963_v62 = vsel %vm5882_vm5, %v6919_v53, %v16232_v61 }
 0x456   : > { %7064 = vmatprep.subr.bf16.mxu1 %v6963_v62  ;;  %v5972_v12 = vpop.f32.mrf.mxu0  ;;  %7629 = vrot.lane.b32.xlu1 %v15897_v31, %s11887_s22  ;;  %v7979_v31 = vsel %vm1178_vm4, %v7978_v52, %v15211_v55  ;;  %v17933_v62 = vld [vmem:[#allocation106_spill] sm:$0xff]  ;;  %v7984_v52 = vrot.slane %v11432_v58, 2  ;;  %v11435_v58 = vcombine.high %v7426_v23, %v11871_v1 }
 0x457   : > { %v6013_v20 = vpop.f32.mrf.mxu1  ;;  %7065 = vmatpush1.bf16.msra.mxu1 %v6962_v14  ;;  %v6955_v24 = vpop.permute.xlu0 %6954  ;;  %v7982_v14 = vrot.slane %v11431_v2, 2  ;;  %v7977_v12 = vsel %vm1178_vm4, %v7976_v33, %v17933_v62  ;;  %v17934_v2 = vld [vmem:[#allocation108_spill] sm:$0xff] }
 0x458   : > { %v6957_v43 = vpop.permute.xlu1 %6956  ;;  %v6978_v55 = vsel %vm5882_vm5, %v16190_v45, %v6955_v24  ;;  %v11434_v20 = vcombine.low %v7426_v23, %v11871_v1 }
 0x459   : > { %7647 = vrot.lane.b32.xlu0 %v15916_v34, %s11887_s22  ;;  %v6979_v17 = vsel %vm5882_vm5, %v6955_v24, %v6957_v43 }
 0x45a   : > { %v16246_v11 = vpop.f32.mrf.mxu0  ;;  %7101 = vmatprep.subr.bf16.mxu0 %v6979_v17  ;;  %7631 = vrot.lane.b32.xlu1 %v15922_v21, %s11887_s22  ;;  %v7981_v21 = vsel %vm1178_vm4, %v7980_v36, %v15218_v9  ;;  %v7983_v17 = vsel %vm1178_vm4, %v7982_v14, %v17934_v2  ;;  %v7988_v62 = vrot.slane %v11434_v20, 2  ;;  %v17939_v2 = vld [vmem:[#allocation87_spill] sm:$0xff] }
 0x45b   : > { %v16253_v53 = vpop.permute.xlu0 %6814 }
 0x45c   : > { %v6939_v34 = vpop.permute.xlu1 %6938  ;;  %v16256_v35 = vpop.f32.mrf.mxu0  ;;  %11360 = vmatmul.mubr.msk.bf16.vlgmr.msra.gmra.mxu0 %vm7005_vm9, %v16253_v53  ;;  %11361 = vmatmul.mubr.msk.bf16.vlgmr.msra.gmra.mxu1 %vm7005_vm9, %v16253_v53 }
 0x45d   : > { %v16266_v49 = vpop.f32.mrf.mxu1  ;;  %7102 = vmatpush1.bf16.msra.mxu0 %v6978_v55  ;;  %7994 = vrot.lane.b32.xlu0 %v7979_v31, %s11881_s30  ;;  %v7986_v31 = vrot.slane %v11433_v54, 2  ;;  %v6971_v55 = vsel %vm5882_vm5, %v16207_v50, %v6939_v34 }
 0x45e   : > { %v6053_v46 = vpop.f32.mrf.mxu0  ;;  %7123 = vmatprep.mubr.bf16.mxu0 %v17595_v27  ;;  %7164 = vmatprep.mubr.bf16.mxu1 %v17595_v27 }
 0x45f   : > { %v16274_v45 = vpop.f32.mrf.mxu1  ;;  %v6941_v9 = vpop.permute.xlu0 %6940  ;;  %7996 = vrot.lane.b32.xlu1 %v7981_v21, %s11881_s30  ;;  %v17935_v21 = vld [vmem:[#allocation110_spill] sm:$0xff] }
 0x460   : > { %v6959_v24 = vpop.permute.xlu1 %6958  ;;  %v6054_v7 = vpop.f32.mrf.mxu0  ;;  %v6972_v36 = vsel %vm5882_vm5, %v6939_v34, %v6941_v9  ;;  %v7985_v46 = vsel %vm1178_vm4, %v7984_v52, %v17935_v21  ;;  %v7990_v34 = vrot.slane %v11435_v58, 2  ;;  %v17937_v52 = vld [vmem:[#allocation82_spill] sm:$0xff]  ;;  %v17941_v58 = vld [vmem:[#allocation49_spill] sm:$0xff]  ;;  %v17942_v21 = vld [vmem:[#allocation55_spill] sm:$0xff] }
 0x461   : > { %v6094_v33 = vpop.f32.mrf.mxu1  ;;  %7142 = vmatprep.subr.bf16.mxu1 %v6959_v24  ;;  %7992 = vrot.lane.b32.xlu0 %v7977_v12, %s11881_s30  ;;  %v6980_v30 = vsel %vm5882_vm5, %v6957_v43, %v6959_v24  ;;  %v17936_v43 = vld [vmem:[#allocation80_spill] sm:$0xff]  ;;  %v7989_v1 = vsel %vm1178_vm4, %v7988_v62, %v17937_v52  ;;  %v17949_v52 = vld [vmem:[#allocation53_spill] sm:$0xff] }
 0x462   : > { %7103 = vmatprep.subr.bf16.mxu0 %v6972_v36  ;;  %7143 = vmatpush1.bf16.msra.mxu1 %v6980_v30  ;;  %v7987_v23 = vsel %vm1178_vm4, %v7986_v31, %v17936_v43  ;;  %v17938_v36 = vld [vmem:[#allocation45_spill] sm:$0xff]  ;;  %v17940_v33 = vld [vmem:[#allocation44_spill] sm:$0xff]  ;;  %v17947_v43 = vld [vmem:[#allocation66_spill] sm:$0xff] }
 0x463   : > { %v6095_v7 = vpop.f32.mrf.mxu1  ;;  %7104 = vmatpush1.bf16.msra.mxu0 %v6971_v55  ;;  %v6923_v14 = vpop.permute.xlu0 %6922  ;;  %7998 = vrot.lane.b32.xlu1 %v7983_v17, %s11881_s30  ;;  %v7991_v17 = vsel %vm1178_vm4, %v7990_v34, %v17939_v2  ;;  %v316_v31 = vld [vmem:[%s17369_s2] sm:$0xff]  ;;  %v17948_v34 = vld [vmem:[#allocation46_spill] sm:$0xff] }
 0x464   : > { %v6925_v54 = vpop.permute.xlu1 %6924  ;;  %v6964_v12 = vsel %vm5882_vm5, %v16232_v61, %v6923_v14  ;;  %v17954_v2 = vld [vmem:[#allocation42_spill] sm:$0xff] }
 0x465   : > { %8000 = vrot.lane.b32.xlu0 %v7985_v46, %s11881_s30  ;;  %v6965_v50 = vsel %vm5882_vm5, %v6923_v14, %v6925_v54  ;;  %v17943_v46 = vld [vmem:[#allocation52_spill] sm:$0xff] }
 0x466   : > { %7105 = vmatprep.subr.bf16.mxu0 %v6965_v50  ;;  %v17944_v14 = vld [vmem:[#allocation56_spill] sm:$0xff] }
 0x467   : > { %7106 = vmatpush1.bf16.msra.mxu0 %v6964_v12  ;;  %v6943_v20 = vpop.permute.xlu0 %6942  ;;  %8002 = vrot.lane.b32.xlu1 %v7987_v23, %s11881_s30  ;;  %v17945_v12 = vld [vmem:[#allocation48_spill] sm:$0xff] }
 0x468   : > { %v6927_v24 = vpop.permute.xlu1 %6926  ;;  %7243 = vmatprep.subr.bf16.mxu0 %v17938_v36  ;;  %7144 = vmatprep.subr.bf16.mxu1 %v6943_v20  ;;  %v6973_v61 = vsel %vm5882_vm5, %v6941_v9, %v6943_v20  ;;  %v17952_v36 = vld [vmem:[#allocation39_spill] sm:$0xff] }
 0x469   : > { %8004 = vrot.lane.b32.xlu0 %v7989_v1, %s11881_s30  ;;  %7145 = vmatpush1.bf16.msra.mxu1 %v6973_v61  ;;  %v6966_v55 = vsel %vm5882_vm5, %v6925_v54, %v6927_v24  ;;  %v17946_v54 = vld [vmem:[#allocation58_spill] sm:$0xff]  ;;  %v17950_v1 = vld [vmem:[#allocation69_spill] sm:$0xff]  ;;  %v17953_v61 = vld [vmem:[#allocation75_spill] sm:$0xff] }
 0x46a   : > { %11362 = vmatmul.mubr.msk.bf16.vlgmr.msra.gmra.mxu0 %vm7005_vm9, %v16253_v53  ;;  %7146 = vmatprep.subr.bf16.mxu1 %v6927_v24 }
 0x46b   : > { %7244 = vmatpush1.bf16.msra.mxu0 %v17940_v33  ;;  %v7212_v30 = vpop.permute.xlu0 %7211  ;;  %11373 = vmatprep.mubr.msk.bf16.mxu0 %vm7240_vm11, %v17760_v42 }
 0x46c   : > { %v16309_v9 = vpop.permute.xlu1 %7213  ;;  %7245 = vmatprep.subr.bf16.mxu0 %v17941_v58  ;;  %8006 = vrot.lane.b32.xlu1 %v7991_v17, %s11881_s30  ;;  %v17955_v17 = vld [vmem:[#allocation32_spill] sm:$0xff] }
 0x46d   : > { %319 = vperm.xlu0 %11666, %v316_v31   ;;  %7147 = vmatpush1.bf16.msra.mxu1 %v6966_v55  ;;  %v17956_v58 = vld [vmem:[#allocation36_spill] sm:$0xff] }
 0x46e   : > { %7284 = vmatprep.subr.bf16.mxu1 %v17942_v21  ;;  %v17957_v55 = vld [vmem:[#allocation40_spill] sm:$0xff] }
 0x46f   : > { %7246 = vmatpush1.bf16.msra.mxu0 %v17943_v46  ;;  %v7210_v62 = vpop.permute.xlu0 %7209  ;;  %v17958_v21 = vld [vmem:[#allocation8_spill] sm:$0xff]  ;;  %v17959_v46 = vld [vmem:[#allocation27_spill] sm:$0xff] }
 0x470   : > { %v16316_v7 = vpop.permute.xlu1 %7215  ;;  %7247 = vmatprep.subr.bf16.mxu0 %v17944_v14  ;;  %11363 = vmatmul.mubr.msk.bf16.vlgmr.msra.gmra.mxu1 %vm7005_vm9, %v16253_v53  ;;  %v17951_v53 = vld [vmem:[#allocation47_spill] sm:$0xff]  ;;  %vm8647_vm9 = vcmask 7168  }
 0x471   : > { %7285 = vmatpush1.bf16.msra.mxu1 %v17945_v12  ;;  %11375 = vmatprep.mubr.msk.bf16.mxu1 %vm7240_vm11, %v17760_v42 }
 0x472   : > { %7286 = vmatprep.subr.bf16.mxu1 %v17946_v54  ;;  %v17960_v54 = vld [vmem:[#allocation33_spill] sm:$0xff] }
 0x473   : > { %7248 = vmatpush1.bf16.msra.mxu0 %v17947_v43  ;;  %v16326_v23 = vpop.permute.xlu0 %7217  ;;  %v17961_v43 = vld [vmem:[#allocation7_spill] sm:$0xff] }
 0x474   : > { %v16328_v50 = vpop.permute.xlu1 %7219  ;;  %7249 = vmatprep.subr.bf16.mxu0 %v17948_v34  ;;  %v17962_v34 = vld [vmem:[#allocation12_spill] sm:$0xff] }
 0x475   : > { %7287 = vmatpush1.bf16.msra.mxu1 %v17949_v52  ;;  %v17963_v52 = vld [vmem:[#allocation25_spill] sm:$0xff] }
 0x476   : > { %7288 = vmatprep.subr.bf16.mxu1 %v17950_v1 }
 0x477   : > { %7250 = vmatpush1.bf16.msra.mxu0 %v17951_v53  ;;  %v16334_v20 = vpop.permute.xlu0 %7221  ;;  %v7226_v53 = vsel %vm739_vm0, %v7212_v30, %v16309_v9 }
 0x478   : > { %v16348_v24 = vpop.permute.xlu1 %7223  ;;  %7251 = vmatprep.subr.bf16.mxu0 %v17952_v36 }
 0x479   : > { %7289 = vmatpush1.bf16.msra.mxu1 %v17953_v61  ;;  %v17964_v61 = vld [vmem:[#allocation21_spill] sm:$0xff] }
 0x47a   : > { %7290 = vmatprep.subr.bf16.mxu1 %v17954_v2  ;;  %v7225_v2 = vsel %vm739_vm0, %v7210_v62, %v7212_v30 }
 0x47b   : > { %7252 = vmatpush1.bf16.msra.mxu0 %v17955_v17  ;;  %v16354_v31 = vpop.permute.xlu0 %7681  ;;  %v17965_v17 = vld [vmem:[#allocation51_spill] sm:$0xff] }
 0x47c   : > { %v16356_v33 = vpop.permute.xlu1 %7683  ;;  %7253 = vmatprep.subr.bf16.mxu0 %v17956_v58 }
 0x47d   : > { %7291 = vmatpush1.bf16.msra.mxu1 %v17957_v55 }
 0x47e   : > { %7292 = vmatprep.subr.bf16.mxu1 %v17958_v21  ;;  %v17966_v21 = vld [vmem:[#allocation54_spill] sm:$0xff] }
 0x47f   : > { %7254 = vmatpush1.bf16.msra.mxu0 %v17959_v46  ;;  %v16362_v14 = vpop.permute.xlu0 %7685  ;;  %v17967_v46 = vld [vmem:[#allocation29_spill] sm:$0xff] }
 0x480   : > { %v16364_v12 = vpop.permute.xlu1 %7687  ;;  %7255 = vmatprep.subr.bf16.mxu0 %v17960_v54  ;;  %v7228_v54 = vsel %vm739_vm0, %v16316_v7, %v16326_v23 }
 0x481   : > { %7293 = vmatpush1.bf16.msra.mxu1 %v17961_v43  ;;  %v17968_v43 = vld [vmem:[#allocation57_spill] sm:$0xff] }
 0x482   : > { %7294 = vmatprep.subr.bf16.mxu1 %v17962_v34  ;;  %v17969_v34 = vld [vmem:[#allocation117_spill] sm:$0xff] }
 0x483   : > { %7256 = vmatpush1.bf16.msra.mxu0 %v17963_v52  ;;  %v16370_v1 = vpop.permute.xlu0 %7689  ;;  %v7227_v52 = vsel %vm739_vm0, %v16309_v9, %v16316_v7  ;;  %v17974_v9 = vld [vmem:[#allocation119_spill] sm:$0xff]  ;;  %v17975_v7 = vld [vmem:[#allocation122_spill] sm:$0xff] }
 0x484   : > { %v16374_v36 = vpop.permute.xlu1 %7667  ;;  %7257 = vmatprep.subr.bf16.mxu0 %v7226_v53  ;;  %v17970_v53 = vld [vmem:[#allocation6_spill] sm:$0xff] }
 0x485   : > { %7295 = vmatpush1.bf16.msra.mxu1 %v17964_v61  ;;  %v17971_v61 = vld [vmem:[#allocation118_spill] sm:$0xff] }
 0x486   : > { %7296 = vmatprep.subr.bf16.mxu1 %v17965_v17 }
 0x487   : > { %7258 = vmatpush1.bf16.msra.mxu0 %v7225_v2  ;;  %v16379_v58 = vpop.permute.xlu0 %7669 }
 0x488   : > { %v16381_v55 = vpop.permute.xlu1 %7665  ;;  %11372 = vmatprep.subr.msk.bf16.mxu0 %vm1311_vm3, %v17966_v21  ;;  %v17972_v21 = vld [vmem:[#allocation120_spill] sm:$0xff] }
 0x489   : > { %7297 = vmatpush1.bf16.msra.mxu1 %v17967_v46  ;;  %v17973_v46 = vld [vmem:[#allocation37_spill] sm:$0xff] }
 0x48a   : > { %7298 = vmatprep.subr.bf16.mxu1 %v7228_v54 }
 0x48b   : > { %7274 = vmatpush2.bf16.msra.mxu0 %v17968_v43  ;;  %v16390_v30 = vpop.permute.xlu0 %7671 }
 0x48c   : > { %v16392_v62 = vpop.permute.xlu1 %7673  ;;  %7325 = vmatprep.subr.bf16.mxu0 %v17969_v34  ;;  %v17976_v34 = vld [vmem:[#allocation124_spill] sm:$0xff] }
 0x48d   : > { %7299 = vmatpush1.bf16.msra.mxu1 %v7227_v52  ;;  %v17977_v52 = vld [vmem:[#allocation121_spill] sm:$0xff] }
 0x48e   : > { %7276 = vmatmul.mubr.bf16.vlgmr.msra.gmra.mxu0 %v17811_v13  ;;  %11374 = vmatprep.subr.msk.bf16.mxu1 %vm1311_vm3, %v17970_v53  ;;  %v17978_v53 = vld [vmem:[#allocation125_spill] sm:$0xff] }
 0x48f   : > { %7326 = vmatpush1.bf16.msra.mxu0 %v17971_v61  ;;  %v16402_v2 = vpop.permute.xlu0 %7651  ;;  %11377 = vmatprep.mubr.msk.bf16.mxu0 %vm7240_vm11, %v17760_v42  ;;  %v17979_v61 = vld [vmem:[#allocation123_spill] sm:$0xff] }
 0x490   : > { %v16406_v17 = vpop.permute.xlu1 %7653  ;;  %7327 = vmatprep.subr.bf16.mxu0 %v17972_v21 }
 0x491   : > { %7315 = vmatpush2.bf16.msra.mxu1 %v17973_v46 }
 0x492   : > { %7366 = vmatprep.subr.bf16.mxu1 %v17974_v9  ;;  %v17980_v9 = vld [vmem:[#allocation5_spill] sm:$0xff] }
 0x493   : > { %7328 = vmatpush1.bf16.msra.mxu0 %v17975_v7  ;;  %v16416_v54 = vpop.permute.xlu0 %7649  ;;  %v17981_v7 = vld [vmem:[#allocation127_spill] sm:$0xff] }
 0x494   : > { %v16418_v43 = vpop.permute.xlu1 %7655  ;;  %7329 = vmatprep.subr.bf16.mxu0 %v17976_v34  ;;  %7317 = vmatmul.mubr.bf16.vlgmr.msra.gmra.mxu1 %v17811_v13  ;;  %v17982_v34 = vld [vmem:[#allocation126_spill] sm:$0xff] }
 0x495   : > { %7367 = vmatpush1.bf16.msra.mxu1 %v17977_v52  ;;  %11379 = vmatprep.mubr.msk.bf16.mxu1 %vm7240_vm11, %v17760_v42  ;;  %v17984_v42 = vld [vmem:[#allocation61_spill] sm:$0xff]  ;;  %vm8795_vm11 = vcmask 261120  }
 0x496   : > { %7368 = vmatprep.subr.bf16.mxu1 %v17978_v53  ;;  %v17985_v53 = vld [vmem:[#allocation59_spill] sm:$0xff] }
 0x497   : > { %7330 = vmatpush1.bf16.msra.mxu0 %v17979_v61  ;;  %v16427_v21 = vpop.permute.xlu0 %7657  ;;  %v17986_v61 = vld [vmem:[#allocation71_spill] sm:$0xff] }
 0x498   : > { %v16429_v46 = vpop.permute.xlu1 %7635  ;;  %7331 = vmatprep.subr.bf16.mxu0 %v17980_v9 }
 0x499   : > { %7369 = vmatpush1.bf16.msra.mxu1 %v17981_v7  ;;  %v17988_v7 = vld [vmem:[#allocation101_spill] sm:$0xff] }
 0x49a   : > { %7370 = vmatprep.subr.bf16.mxu1 %v17982_v34  ;;  %v17989_v34 = vld [vmem:[#allocation65_spill] sm:$0xff] }
 0x49b   : > { %7332 = vmatpush1.bf16.msra.mxu0 %v17983_v40  ;;  %v16435_v52 = vpop.permute.xlu0 %7637  ;;  %v17990_v40 = vld [vmem:[#allocation99_spill] sm:$0xff] }
 0x49c   : > { %v16437_v3 = vpop.permute.xlu1 %7633  ;;  %7333 = vmatprep.subr.bf16.mxu0 %v17984_v42 }
 0x49d   : > { %7371 = vmatpush1.bf16.msra.mxu1 %v17985_v53  ;;  %v17992_v53 = vld [vmem:[#allocation105_spill] sm:$0xff] }
 0x49e   : > { %7372 = vmatprep.subr.bf16.mxu1 %v17986_v61  ;;  %v17993_v61 = vld [vmem:[#allocation102_spill] sm:$0xff] }
 0x49f   : > { %7334 = vmatpush1.bf16.msra.mxu0 %v17987_v25  ;;  %v16443_v32 = vpop.permute.xlu0 %7639  ;;  %v17994_v25 = vld [vmem:[#allocation107_spill] sm:$0xff] }
 0x4a0   : > { %v16445_v9 = vpop.permute.xlu1 %7641  ;;  %7335 = vmatprep.subr.bf16.mxu0 %v17988_v7  ;;  %v7230_v7 = vsel %vm739_vm0, %v16328_v50, %v16334_v20 }
 0x4a1   : > { %7373 = vmatpush1.bf16.msra.mxu1 %v17989_v34 }
 0x4a2   : > { %7374 = vmatprep.subr.bf16.mxu1 %v17990_v40  ;;  %v7229_v40 = vsel %vm739_vm0, %v16326_v23, %v16328_v50  ;;  %v7726_v50 = vsel %vm5882_vm5, %v16356_v33, %v16362_v14 }
 0x4a3   : > { %7336 = vmatpush1.bf16.msra.mxu0 %v17991_v60  ;;  %v16451_v44 = vpop.permute.xlu0 %7619  ;;  %v17996_v60 = vld [vmem:[#allocation109_spill] sm:$0xff] }
 0x4a4   : > { %v16453_v42 = vpop.permute.xlu1 %7621  ;;  %7337 = vmatprep.subr.bf16.mxu0 %v17992_v53  ;;  %v17997_v53 = vld [vmem:[#allocation111_spill] sm:$0xff] }
 0x4a5   : > { %7375 = vmatpush1.bf16.msra.mxu1 %v17993_v61 }
 0x4a6   : > { %7376 = vmatprep.subr.bf16.mxu1 %v17994_v25  ;;  %v17998_v25 = vld [vmem:[#allocation113_spill] sm:$0xff] }
 0x4a7   : > { %7338 = vmatpush1.bf16.msra.mxu0 %v17995_v15  ;;  %v16459_v41 = vpop.permute.xlu0 %7617 }
 0x4a8   : > { %v16464_v34 = vpop.permute.xlu1 %7623  ;;  %7339 = vmatprep.subr.bf16.mxu0 %v7230_v7  ;;  %v7725_v7 = vsel %vm5882_vm5, %v16354_v31, %v16356_v33  ;;  %v18001_v31 = vld [vmem:[#allocation115_spill] sm:$0xff]  ;;  %v7719_v33 = vsel %vm5882_vm5, %v16374_v36, %v16379_v58 }
 0x4a9   : > { %7377 = vmatpush1.bf16.msra.mxu1 %v17996_v60  ;;  %v18000_v60 = vld [vmem:[#allocation114_spill] sm:$0xff] }
 0x4aa   : > { %7378 = vmatprep.subr.bf16.mxu1 %v17997_v53  ;;  %v7769_v53 = vsel %vm2074_vm6, %v7725_v7, 0  ;;  %v7728_v7 = vsel %vm5882_vm5, %v16364_v12, %v16370_v1 }
 0x4ab   : > { %7340 = vmatpush1.bf16.msra.mxu0 %v7229_v40  ;;  %v16471_v61 = vpop.permute.xlu0 %7625 }
 0x4ac   : > { %v16473_v15 = vpop.permute.xlu1 %7691  ;;  %11376 = vmatprep.subr.msk.bf16.mxu0 %vm1311_vm3, %v17998_v25 }
 0x4ad   : > { %7379 = vmatpush1.bf16.msra.mxu1 %v17999_v26  ;;  %v7231_v26 = vsel %vm739_vm0, %v16334_v20, %v16348_v24  ;;  %v7727_v20 = vsel %vm5882_vm5, %v16362_v14, %v16364_v12  ;;  %v7721_v12 = vsel %vm5882_vm5, %v16390_v30, %v16392_v62 }
 0x4ae   : > { %7380 = vmatprep.subr.bf16.mxu1 %v16348_v24  ;;  %v18002_v24 = vld [vmem:[#allocation116_spill] sm:$0xff]  ;;  %v7775_v14 = vsel %vm2074_vm6, %v7727_v20, 0  ;;  %v7720_v20 = vsel %vm5882_vm5, %v16379_v58, %v16390_v30  ;;  %v7713_v58 = vsel %vm5882_vm5, %v16406_v17, %v16418_v43 }
 0x4af   : > { %7356 = vmatpush2.bf16.msra.mxu0 %v18000_v60  ;;  %v16483_v23 = vpop.permute.xlu0 %7693 }
 0x4b0   : > { %v16488_v40 = vpop.permute.xlu1 %7463  ;;  %11420 = vmatprep.subr.msk.bf16.mxu0 %vm2074_vm6, %v7726_v50  ;;  %v7718_v50 = vsel %vm5882_vm5, %v16381_v55, %v16374_v36  ;;  %v7711_v36 = vsel %vm5882_vm5, %v16416_v54, %v16402_v2  ;;  %v7704_v54 = vsel %vm5882_vm5, %v16437_v3, %v16429_v46  ;;  %v7707_v3 = vsel %vm5882_vm5, %v16443_v32, %v16445_v9 }
 0x4b1   : > { %7381 = vmatpush1.bf16.msra.mxu1 %v7231_v26 }
 0x4b2   : > { %7358 = vmatmul.mubr.bf16.vlgmr.msra.gmra.mxu0 %v17811_v13  ;;  %11378 = vmatprep.subr.msk.bf16.mxu1 %vm1311_vm3, %v18001_v31  ;;  %vm7467_vm3 = vcmask 162816  }
 0x4b3   : > { %7799 = vmatpush1.bf16.msra.mxu0 %v7769_v53  ;;  %v7466_v25 = vpop.permute.xlu0 %7465  ;;  %7824 = vmatprep.mubr.bf16.mxu0 %v17595_v27  ;;  %v7712_v53 = vsel %vm5882_vm5, %v16402_v2, %v16406_v17  ;;  %v7714_v2 = vsel %vm5882_vm5, %v16418_v43, %v16427_v21 }
 0x4b4   : > { %v16502_v60 = vpop.permute.xlu1 %7695  ;;  %7800 = vmatprep.subr.bf16.mxu0 %v7719_v33 }
 0x4b5   : > { %7397 = vmatpush2.bf16.msra.mxu1 %v18002_v24 }
 0x4b6   : > { %11422 = vmatprep.subr.msk.bf16.mxu1 %vm2074_vm6, %v7728_v7 }
 0x4b7   : > { %7801 = vmatpush1.bf16.msra.mxu0 %v7718_v50  ;;  %v7676_v26 = vpop.permute.xlu0 %7675  ;;  %v7698_v50 = vsel %vm5882_vm5, %v16451_v44, %v16453_v42 }
 0x4b8   : > { %7802 = vmatprep.subr.bf16.mxu0 %v7712_v53  ;;  %7399 = vmatmul.mubr.bf16.vlgmr.msra.gmra.mxu1 %v17811_v13  ;;  %v16527_v55 = vpop.permute.xlu1 %7677  ;;  %v7705_v13 = vsel %vm5882_vm5, %v16429_v46, %v16435_v52  ;;  %v7697_v46 = vsel %vm5882_vm5, %v16459_v41, %v16451_v44  ;;  %v7706_v41 = vsel %vm5882_vm5, %v16435_v52, %v16443_v32 }
 0x4b9   : > { %7840 = vmatpush1.bf16.msra.mxu1 %v7775_v14  ;;  %7865 = vmatprep.mubr.bf16.mxu1 %v17595_v27  ;;  %v16572_v44 = vsel %vm7467_vm3, %v16488_v40, %v7466_v25  ;;  %v7723_v32 = vsel %vm5882_vm5, %v7676_v26, %v16527_v55  ;;  %v7699_v25 = vsel %vm5882_vm5, %v16453_v42, %v16464_v34 }
 0x4ba   : > { %7841 = vmatprep.subr.bf16.mxu1 %v7721_v12 }
 0x4bb   : > { %7803 = vmatpush1.bf16.msra.mxu0 %v7711_v36  ;;  %v7660_v31 = vpop.permute.xlu0 %7659  ;;  %v7729_v36 = vsel %vm5882_vm5, %v16370_v1, %v16473_v15  ;;  %v7700_v1 = vsel %vm5882_vm5, %v16464_v34, %v16471_v61 }
 0x4bc   : > { %7804 = vmatprep.subr.bf16.mxu0 %v7705_v13  ;;  %v16532_v33 = vpop.f32.mrf.mxu0  ;;  %v7662_v53 = vpop.permute.xlu1 %7661  ;;  %v7730_v13 = vsel %vm5882_vm5, %v16473_v15, %v16483_v23  ;;  %v7781_v15 = vsel %vm2074_vm6, %v7729_v36, 0 }
 0x4bd   : > { %7842 = vmatpush1.bf16.msra.mxu1 %v7720_v20 }
 0x4be   : > { %v16543_v24 = vpop.f32.mrf.mxu0  ;;  %7843 = vmatprep.subr.bf16.mxu1 %v7714_v2 }
 0x4bf   : > { %7805 = vmatpush1.bf16.msra.mxu0 %v7704_v54  ;;  %v7680_v7 = vpop.permute.xlu0 %7679  ;;  %v7731_v54 = vsel %vm5882_vm5, %v16483_v23, %v16502_v60 }
 0x4c0   : > { %7806 = vmatprep.subr.bf16.mxu0 %v7698_v50  ;;  %v6644_v30 = vpop.f32.mrf.mxu0  ;;  %v7644_v2 = vpop.permute.xlu1 %7643  ;;  %v7722_v50 = vsel %vm5882_vm5, %v16392_v62, %v7676_v26  ;;  %v7787_v42 = vsel %vm2074_vm6, %v7731_v54, 0  ;;  %v7715_v62 = vsel %vm5882_vm5, %v16427_v21, %v7660_v31  ;;  %v7724_v26 = vsel %vm5882_vm5, %v16527_v55, %v7680_v7  ;;  %v18013_v54 = vld [vmem:[#allocation43_spill] sm:$0xff] }
 0x4c1   : > { %v16551_v14 = vpop.f32.mrf.mxu1  ;;  %7844 = vmatpush1.bf16.msra.mxu1 %v7713_v58  ;;  %v7716_v30 = vsel %vm5882_vm5, %v7660_v31, %v7662_v53 }
 0x4c2   : > { %7845 = vmatprep.subr.bf16.mxu1 %v7707_v3  ;;  %v6645_v12 = vpop.f32.mrf.mxu0 }
 0x4c3   : > { %7807 = vmatpush1.bf16.msra.mxu0 %v7697_v46  ;;  %v7646_v17 = vpop.permute.xlu0 %7645  ;;  %v16562_v43 = vpop.f32.mrf.mxu1  ;;  %v7708_v12 = vsel %vm5882_vm5, %v16445_v9, %v7644_v2  ;;  %v18004_v9 = vld [vmem:[#allocation86_spill] sm:$0xff] }
 0x4c4   : > { %11424 = vmatprep.subr.msk.bf16.mxu0 %vm2074_vm6, %v7730_v13  ;;  %v7664_v58 = vpop.permute.xlu1 %7663  ;;  %v7709_v23 = vsel %vm5882_vm5, %v7644_v2, %v7646_v17  ;;  %v18008_v2 = vld [vmem:[#allocation139_spill] sm:$0xff] }
 0x4c5   : > { %7846 = vmatpush1.bf16.msra.mxu1 %v7706_v41  ;;  %v6685_v20 = vpop.f32.mrf.mxu1  ;;  %v7717_v36 = vsel %vm5882_vm5, %v7662_v53, %v7664_v58  ;;  %v18005_v53 = vld [vmem:[#allocation141_spill] sm:$0xff] }
 0x4c6   : > { %11421 = vmatmul.mubr.msk.bf16.vlgmr.msra.gmra.mxu0 %vm7764_vm14, %v16572_v44  ;;  %7847 = vmatprep.subr.bf16.mxu1 %v7700_v1  ;;  %v18007_v20 = vld [vmem:[#allocation77_spill] sm:$0xff] }
 0x4c7   : > { %7881 = vmatpush1.bf16.msra.mxu0 %v7781_v15  ;;  %7906 = vmatprep.mubr.bf16.mxu0 %v17595_v27  ;;  %v6686_v52 = vpop.f32.mrf.mxu1  ;;  %v7628_v40 = vpop.permute.xlu0 %7627 }
 0x4c8   : > { %7882 = vmatprep.subr.bf16.mxu0 %v7723_v32  ;;  %v7701_v21 = vsel %vm5882_vm5, %v16471_v61, %v7628_v40  ;;  %v18009_v32 = vld [vmem:[#allocation89_spill] sm:$0xff]  ;;  %v18010_v52 = vld [vmem:[#allocation128_spill] sm:$0xff] }
 0x4c9   : > { %7848 = vmatpush1.bf16.msra.mxu1 %v7699_v25 }
 0x4ca   : > { %11426 = vmatprep.subr.msk.bf16.mxu1 %vm2074_vm6, %v16502_v60  ;;  %v7630_v60 = vpop.permute.xlu1 %7629 }
 0x4cb   : > { %7883 = vmatpush1.bf16.msra.mxu0 %v7722_v50  ;;  %v7648_v34 = vpop.permute.xlu0 %7647  ;;  %v7702_v46 = vsel %vm5882_vm5, %v7628_v40, %v7630_v60  ;;  %v18011_v40 = vld [vmem:[#allocation41_spill] sm:$0xff]  ;;  %v18014_v50 = vld [vmem:[#allocation38_spill] sm:$0xff] }
 0x4cc   : > { %7884 = vmatprep.subr.bf16.mxu0 %v7716_v30  ;;  %11423 = vmatmul.mubr.msk.bf16.vlgmr.msra.gmra.mxu1 %vm7764_vm14, %v16572_v44  ;;  %v7710_v55 = vsel %vm5882_vm5, %v7646_v17, %v7648_v34  ;;  %v18006_v17 = vld [vmem:[#allocation138_spill] sm:$0xff]  ;;  %v18015_v30 = vld [vmem:[#allocation68_spill] sm:$0xff] }
 0x4cd   : > { %7922 = vmatpush1.bf16.msra.mxu1 %v7787_v42  ;;  %7947 = vmatprep.mubr.bf16.mxu1 %v17595_v27  ;;  %v18016_v42 = vld [vmem:[#allocation50_spill] sm:$0xff] }
 0x4ce   : > { %7923 = vmatprep.subr.bf16.mxu1 %v7680_v7  ;;  %v18003_v7 = vld [vmem:[#allocation76_spill] sm:$0xff]  ;;  %v7632_v13 = vpop.permute.xlu1 %7631 }
 0x4cf   : > { %7885 = vmatpush1.bf16.msra.mxu0 %v7715_v62  ;;  %v7995_v3 = vpop.permute.xlu0 %7994  ;;  %v7703_v61 = vsel %vm5882_vm5, %v7630_v60, %v7632_v13  ;;  %v18019_v60 = vld [vmem:[#allocation81_spill] sm:$0xff]  ;;  %vm16744_vm5 = vmor %vm8241_vm2, %vm2074_vm6 }
 0x4d0   : > { %7886 = vmatprep.subr.bf16.mxu0 %v7709_v23  ;;  %v18017_v23 = vld [vmem:[#allocation98_spill] sm:$0xff] }
 0x4d1   : > { %7924 = vmatpush1.bf16.msra.mxu1 %v7724_v26  ;;  %v18020_v26 = vld [vmem:[#allocation62_spill] sm:$0xff] }
 0x4d2   : > { %7925 = vmatprep.subr.bf16.mxu1 %v7664_v58  ;;  %v7997_v1 = vpop.permute.xlu1 %7996  ;;  %v3497_v58 = vadd.f32 %v18014_v50, %v18013_v54  ;;  %v18032_v50 = vld [vmem:[#allocation133_spill] sm:$0xff] }
 0x4d3   : > { %7887 = vmatpush1.bf16.msra.mxu0 %v7708_v12  ;;  %v7993_v31 = vpop.permute.xlu0 %7992  ;;  %v18021_v12 = vld [vmem:[#allocation100_spill] sm:$0xff] }
 0x4d4   : > { %7888 = vmatprep.subr.bf16.mxu0 %v7702_v46  ;;  %v16644_v46 = vadd.f32 %v18020_v26, %v18019_v60  ;;  %v18034_v60 = vld [vmem:[#allocation131_spill] sm:$0xff] }
 0x4d5   : > { %7926 = vmatpush1.bf16.msra.mxu1 %v7717_v36  ;;  %v18022_v36 = vld [vmem:[#allocation60_spill] sm:$0xff] }
 0x4d6   : > { %7927 = vmatprep.subr.bf16.mxu1 %v7648_v34  ;;  %v4690_v34 = vadd.f32 %v18016_v42, %v18015_v30 }
 0x4d7   : > { %7889 = vmatpush1.bf16.msra.mxu0 %v7701_v21  ;;  %v16618_v41 = vpop.permute.xlu0 %8000  ;;  %v16648_v21 = vadd.f32 %v18022_v36, %v18021_v12 }
 0x4d8   : > { %11436 = vmatprep.subr.msk.bf16.mxu0 %vm1178_vm4, %v18003_v7  ;;  %v6643_v7 = vadd.f32 %v16543_v24, %v16225_v8 }
 0x4d9   : > { %7928 = vmatpush1.bf16.msra.mxu1 %v7710_v55  ;;  %v18023_v55 = vld [vmem:[#allocation84_spill] sm:$0xff] }
 0x4da   : > { %11425 = vmatmul.mubr.msk.bf16.vlgmr.msra.gmra.mxu0 %vm7764_vm14, %v16572_v44  ;;  %7929 = vmatprep.subr.bf16.mxu1 %v7632_v13  ;;  %v16657_v13 = vadd.f32 %v16551_v14, %v16220_v39  ;;  %v18028_v14 = vld [vmem:[#allocation11_spill] sm:$0xff] }
 0x4db   : > { %8029 = vmatpush1.bf16.msra.mxu0 %v18004_v9  ;;  %8058 = vmatprep.mubr.bf16.mxu0 %v17595_v27  ;;  %v16629_v15 = vpop.permute.xlu0 %8004  ;;  %v16661_v9 = vadd.f32 %v16562_v43, %v16230_v16  ;;  %v18027_v16 = vld [vmem:[#allocation17_spill] sm:$0xff] }
 0x4dc   : > { %8030 = vmatprep.subr.bf16.mxu0 %v18005_v53  ;;  %v8008_v53 = vsel %vm739_vm0, %v7993_v31, %v7995_v3 }
 0x4dd   : > { %7930 = vmatpush1.bf16.msra.mxu1 %v7703_v61  ;;  %v18024_v61 = vld [vmem:[#allocation129_spill] sm:$0xff] }
 0x4de   : > { %11438 = vmatprep.subr.msk.bf16.mxu1 %vm1178_vm4, %v18006_v17  ;;  %v18025_v17 = vld [vmem:[#allocation132_spill] sm:$0xff] }
 0x4df   : > { %8031 = vmatpush1.bf16.msra.mxu0 %v15945_v6  ;;  %v18012_v6 = vld [vmem:[#allocation35_spill] sm:$0xff] }
 0x4e0   : > { %8032 = vmatprep.subr.bf16.mxu0 %v18007_v20  ;;  %11427 = vmatmul.mubr.msk.bf16.vlgmr.msra.gmra.mxu1 %vm7764_vm14, %v16572_v44  ;;  %v3495_v25 = vadd.f32 %v18012_v6, %v18011_v40  ;;  %v7999_v44 = vpop.permute.xlu1 %7998  ;;  %v18031_v6 = vld [vmem:[#allocation137_spill] sm:$0xff] }
 0x4e1   : > { %8070 = vmatpush1.bf16.msra.mxu1 %v18008_v2  ;;  %8099 = vmatprep.mubr.bf16.mxu1 %v17595_v27  ;;  %v16670_v8 = vsel %vm739_vm0, %v7997_v1, %v7999_v44  ;;  %v16674_v39 = vsel %vm739_vm0, %v7999_v44, %v16618_v41 }
 0x4e2   : > { %8071 = vmatprep.subr.bf16.mxu1 %v15961_v63  ;;  %v18018_v63 = vld [vmem:[#allocation63_spill] sm:$0xff] }
 0x4e3   : > { %8033 = vmatpush1.bf16.msra.mxu0 %v18009_v32  ;;  %v4692_v62 = vadd.f32 %v18018_v63, %v18017_v23 }
 0x4e4   : > { %8034 = vmatprep.subr.bf16.mxu0 %v18010_v52  ;;  %v18030_v52 = vld [vmem:[#allocation83_spill] sm:$0xff] }
 0x4e5   : > { %8072 = vmatpush1.bf16.msra.mxu1 %v15966_v57  ;;  %v6641_v57 = vadd.f32 %v16532_v33, %v16216_v29  ;;  %v8009_v29 = vsel %vm739_vm0, %v7995_v3, %v7997_v1  ;;  %v18026_v33 = vld [vmem:[#allocation88_spill] sm:$0xff]  ;;  %v18029_v3 = vld [vmem:[#allocation130_spill] sm:$0xff] }
 0x4e6   : > { %8073 = vmatprep.subr.bf16.mxu1 %v18023_v55 }
 0x4e7   : > { %8035 = vmatpush1.bf16.msra.mxu0 %v18024_v61  ;;  %v18035_v61 = vld [vmem:[#allocation135_spill] sm:$0xff] }
 0x4e8   : > { %8036 = vmatprep.subr.bf16.mxu0 %v18025_v17  ;;  %v16666_v20 = vpop.permute.xlu0 %319 }
 0x4e9   : > { %8074 = vmatpush1.bf16.msra.mxu1 %v18026_v33  ;;  %v2579_v24 = vadd.f32 %v18027_v16, %v16666_v20  ;;  %v2580_v43 = vadd.f32 %v18028_v14, %v16666_v20  ;;  %v3624_v31 = vadd.f32 %v3495_v25, %v16666_v20  ;;  %v3625_v2 = vadd.f32 %v3497_v58, %v16666_v20  ;;  %v18033_v58 = vld [vmem:[#allocation136_spill] sm:$0xff]  ;;  %v18036_v16 = vld [vmem:[#allocation90_spill] sm:$0xff]  ;;  %v18037_v14 = vld [vmem:[#allocation91_spill] sm:$0xff] }
 0x4ea   : > { %8075 = vmatprep.subr.bf16.mxu1 %v18029_v3  ;;  %v4819_v1 = vadd.f32 %v4690_v34, %v16666_v20  ;;  %v4820_v32 = vadd.f32 %v4692_v62, %v16666_v20  ;;  %v5639_v40 = vadd.f32 %v18030_v52, %v16666_v20  ;;  %v5641_v54 = vadd.f32 %v18031_v6, %v16666_v20  ;;  %v18040_v6 = vld [vmem:[#allocation95_spill] sm:$0xff] }
 0x4eb   : > { %8037 = vmatpush1.bf16.msra.mxu0 %v18032_v50  ;;  %v2587_v44 = vmax.f32 %v2579_v24, 0.0  ;;  %v2588_v30 = vmax.f32 %v2580_v43, 0.0  ;;  %v3632_v25 = vmax.f32 %v3624_v31, 0.0  ;;  %v3633_v42 = vmax.f32 %v3625_v2, 0.0  ;;  %v18038_v31 = vld [vmem:[#allocation74_spill] sm:$0xff] }
 0x4ec   : > { %8038 = vmatprep.subr.bf16.mxu0 %v18033_v58  ;;  %v4827_v23 = vmax.f32 %v4819_v1, 0.0  ;;  %v4828_v34 = vmax.f32 %v4820_v32, 0.0  ;;  %v5768_v63 = vmax.f32 %v5639_v40, 0.0  ;;  %v5769_v62 = vmax.f32 %v5641_v54, 0.0  ;;  %v18041_v50 = vld [vmem:[#allocation134_spill] sm:$0xff] }
 0x4ed   : > { %8076 = vmatpush1.bf16.msra.mxu1 %v18034_v60  ;;  %v6770_v26 = vadd.f32 %v6641_v57, %v16666_v20  ;;  %v6771_v12 = vadd.f32 %v6643_v7, %v16666_v20  ;;  %v11597_v36 = vpack.c.bf16 %v2588_v30, %v2587_v44  ;;  %v11601_v55 = vpack.c.bf16 %v3633_v42, %v3632_v25  ;;  %v18039_v7 = vld [vmem:[#allocation94_spill] sm:$0xff]  ;;  %v18042_v42 = vld [vmem:[#allocation92_spill] sm:$0xff] }
 0x4ee   : > { %8077 = vmatprep.subr.bf16.mxu1 %v18035_v61  ;;  %v11605_v17 = vpack.c.bf16 %v4828_v34, %v4827_v23  ;;  %v11609_v33 = vpack.c.bf16 %v5769_v62, %v5768_v63  ;;  %v1500_v24 = vadd.f32 %v18036_v16, %v16666_v20  ;;  %v1501_v43 = vadd.f32 %v18037_v14, %v16666_v20  ;;  %v18043_v23 = vld [vmem:[#allocation79_spill] sm:$0xff]  ;;  %v18045_v60 = vld [vmem:[#allocation96_spill] sm:$0xff] }
 0x4ef   : > { %8039 = vmatpush1.bf16.msra.mxu0 %v18038_v31  ;;  %v6778_v2 = vmax.f32 %v6770_v26, 0.0  ;;  %v6779_v3 = vmax.f32 %v6771_v12, 0.0  ;;  %8549 = vrot.lane.b32.xlu0 %v11597_v36, %s11881_s30  ;;  %v8582_v57 = vmax.bf16 %v11601_v55, %v11597_v36  ;;  %v1504_v1 = vadd.f32 %v18039_v7, %v16666_v20  ;;  %v18046_v55 = vld [vmem:[#allocation97_spill] sm:$0xff]  ;;  %v18049_v31 = vld [vmem:[#allocation78_spill] sm:$0xff] }
 0x4f0   : > { %8040 = vmatprep.subr.bf16.mxu0 %v8009_v29  ;;  %v8598_v32 = vmax.bf16 %v11609_v33, %v11605_v17  ;;  %v1508_v52 = vmax.f32 %v1500_v24, 0.0  ;;  %v1509_v40 = vmax.f32 %v1501_v43, 0.0  ;;  %v1505_v54 = vadd.f32 %v18040_v6, %v16666_v20  ;;  %v18044_v29 = vld [vmem:[#allocation93_spill] sm:$0xff] }
 0x4f1   : > { %8078 = vmatpush1.bf16.msra.mxu1 %v18041_v50  ;;  %v16707_v44 = vpack.c.bf16 %v6779_v3, %v6778_v2  ;;  %v8590_v30 = vmax.bf16 %v11605_v17, %v8582_v57  ;;  %v1512_v25 = vmax.f32 %v1504_v1, 0.0  ;;  %v1502_v58 = vadd.f32 %v18042_v42, %v16666_v20  ;;  %v18047_v17 = vld [vmem:[#allocation22_spill] sm:$0xff]  ;;  %v18050_v57 = vld [vmem:[#allocation31_spill] sm:$0xff]  ;;  %v18054_v42 = vld [vmem:[#allocation140_spill] sm:$0xff] }
 0x4f2   : > { %8079 = vmatprep.subr.bf16.mxu1 %v18043_v23  ;;  %v11593_v34 = vpack.c.bf16 %v1509_v40, %v1508_v52  ;;  %v1513_v63 = vmax.f32 %v1505_v54, 0.0  ;;  %v1503_v62 = vadd.f32 %v18044_v29, %v16666_v20  ;;  %v1506_v26 = vadd.f32 %v18045_v60, %v16666_v20  ;;  %v18051_v1 = vld [vmem:[#allocation18_spill] sm:$0xff] }
 0x4f3   : > { %8041 = vmatpush1.bf16.msra.mxu0 %v8008_v53  ;;  %v16717_v12 = vmax.bf16 %v16707_v44, %v8598_v32  ;;  %8663 = vst [vmem:[#allocation3 + $0x28] sm:$0xff] %v8590_v30  ;;  %v1510_v36 = vmax.f32 %v1502_v58, 0.0  ;;  %v1507_v61 = vadd.f32 %v18046_v55, %v16666_v20  ;;  %v2581_v33 = vadd.f32 %v18047_v17, %v16666_v20  ;;  %v18048_v53 = vld [vmem:[#allocation14_spill] sm:$0xff]  ;;  %v16737_v32 = vld [vmem:[%s17368_s1] sm:$0xf] }
 0x4f4   : > { %11440 = vmatprep.subr.msk.bf16.mxu0 %vm1178_vm4, %v16125_v19  ;;  %8511 = vrot.lane.b32.xlu1 %v11593_v34, %s11881_s30  ;;  %v11595_v16 = vpack.c.bf16 %v1513_v63, %v1512_v25  ;;  %v1511_v24 = vmax.f32 %v1503_v62, 0.0  ;;  %v1514_v14 = vmax.f32 %v1506_v26, 0.0  ;;  %v2582_v43 = vadd.f32 %v18048_v53, %v16666_v20 }
 0x4f5   : > { %8080 = vmatpush1.bf16.msra.mxu1 %v18049_v31  ;;  %8667 = vst [vmem:[#allocation3 + $0x4c] sm:$0xff] %v16717_v12  ;;  %v1515_v2 = vmax.f32 %v1507_v61, 0.0  ;;  %v2589_v3 = vmax.f32 %v2581_v33, 0.0  ;;  %v3626_v7 = vadd.f32 %v18050_v57, %v16666_v20  ;;  %v3627_v19 = vadd.f32 %v18051_v1, %v16666_v20  ;;  %v18057_v33 = vld [vmem:[#allocation16_spill] sm:$0xff] }
 0x4f6   : > { %11437 = vmatmul.mubr.msk.bf16.vlgmr.msra.gmra.mxu0 %vm8023_vm15, %v16737_v32  ;;  %8081 = vmatprep.subr.bf16.mxu1 %v16674_v39  ;;  %v11594_v52 = vpack.c.bf16 %v1511_v24, %v1510_v36  ;;  %v2590_v6 = vmax.f32 %v2582_v43, 0.0  ;;  %v4821_v54 = vadd.f32 %v16644_v46, %v16666_v20  ;;  %v4822_v50 = vadd.f32 %v16648_v21, %v16666_v20  ;;  %v18055_v46 = vld [vmem:[#allocation142_spill] sm:$0xff]  ;;  %v18058_v43 = vld [vmem:[#allocation9_spill] sm:$0xff] }
 0x4f7   : > { %8111 = vmatpush1.bf16.msra.mxu0 %v16138_v22  ;;  %8515 = vrot.lane.b32.xlu0 %v11595_v16, %s11881_s30  ;;  %v11596_v30 = vpack.c.bf16 %v1515_v2, %v1514_v14  ;;  %v3634_v39 = vmax.f32 %v3626_v7, 0.0  ;;  %v3635_v25 = vmax.f32 %v3627_v19, 0.0  ;;  %v5680_v58 = vadd.f32 %v18054_v42, %v16666_v20 }
 0x4f8   : > { %8112 = vmatprep.subr.bf16.mxu0 %v16152_v10  ;;  %8513 = vrot.lane.b32.xlu1 %v11594_v52, %s11881_s30  ;;  %v4829_v23 = vmax.f32 %v4821_v54, 0.0  ;;  %v4830_v34 = vmax.f32 %v4822_v50, 0.0  ;;  %v5682_v63 = vadd.f32 %v18055_v46, %v16666_v20  ;;  %v6772_v22 = vadd.f32 %v16657_v13, %v16666_v20 }
 0x4f9   : > { %8082 = vmatpush1.bf16.msra.mxu1 %v16670_v8  ;;  %8243 = vst.msk [vmem:[#allocation2 + $0x1c] sm:$0xff] %vm16744_vm5, %v11596_v30  ;;  %v5770_v21 = vmax.f32 %v5680_v58, 0.0  ;;  %v6773_v29 = vadd.f32 %v16661_v9, %v16666_v20  ;;  %v11598_v10 = vpack.c.bf16 %v2590_v6, %v2589_v3  ;;  %v11602_v62 = vpack.c.bf16 %v3635_v25, %v3634_v39  ;;  %v18056_v8 = vld [vmem:[#allocation24_spill] sm:$0xff]  ;;  %v18060_v25 = vld [vmem:[#allocation73_spill] sm:$0xff]  ;;  %v18061_v58 = vld [vmem:[#allocation70_spill] sm:$0xff] }
 0x4fa   : > { %8140 = vmatprep.mubr.bf16.mxu0 %v17595_v27  ;;  %v6722_v60 = vpop.f32.mrf.mxu0  ;;  %11442 = vmatprep.subr.msk.bf16.mxu1 %vm1178_vm4, %v16122_v47  ;;  %v5771_v26 = vmax.f32 %v5682_v63, 0.0  ;;  %v6780_v36 = vmax.f32 %v6772_v22, 0.0  ;;  %v11606_v13 = vpack.c.bf16 %v4830_v34, %v4829_v23  ;;  %v2583_v55 = vadd.f32 %v18056_v8, %v16666_v20  ;;  %vm16832_vm4 = vmor %vm8387_vm8, %vm2074_vm6 }
 0x4fb   : > { %v6723_v61 = vadd.f32 %v6722_v60, %v16246_v11  ;;  %8113 = vmatpush1.bf16.msra.mxu0 %v16147_v48  ;;  %v6781_v9 = vmax.f32 %v6773_v29, 0.0  ;;  %v8583_v17 = vmax.bf16 %v11602_v62, %v11598_v10  ;;  %v2584_v16 = vadd.f32 %v18057_v33, %v16666_v20  ;;  %v18059_v48 = vld [vmem:[#allocation34_spill] sm:$0xff]  ;;  %v18065_v33 = vld [vmem:[#allocation28_spill] sm:$0xff] }
 0x4fc   : > { %v6724_v24 = vpop.f32.mrf.mxu0  ;;  %8114 = vmatprep.subr.bf16.mxu0 %v15977_v0  ;;  %v6763_v47 = vpop.f32.mrf.mxu1  ;;  %11439 = vmatmul.mubr.msk.bf16.vlgmr.msra.gmra.mxu1 %vm8023_vm15, %v16737_v32  ;;  %v11610_v14 = vpack.c.bf16 %v5771_v26, %v5770_v21  ;;  %v2591_v53 = vmax.f32 %v2583_v55, 0.0  ;;  %v3628_v11 = vadd.f32 %v18058_v43, %v16666_v20  ;;  %v3629_v31 = vadd.f32 %v18059_v48, %v16666_v20  ;;  %v18070_v43 = vld [vmem:[#allocation15_spill] sm:$0xff] }
 0x4fd   : > { %v6774_v2 = vadd.f32 %v6723_v61, %v16666_v20  ;;  %v6725_v3 = vadd.f32 %v6724_v24, %v16256_v35  ;;  %v6764_v57 = vadd.f32 %v6763_v47, %v16266_v49  ;;  %8152 = vmatpush1.bf16.msra.mxu1 %v16141_v56  ;;  %v16787_v0 = vpack.c.bf16 %v6781_v9, %v6780_v36  ;;  %v18067_v24 = vld [vmem:[#allocation30_spill] sm:$0xff] }
 0x4fe   : > { %v6765_v7 = vpop.f32.mrf.mxu1  ;;  %8153 = vmatprep.subr.bf16.mxu1 %v16161_v38  ;;  %v16790_v1 = vmax.bf16 %v11606_v13, %v8583_v17  ;;  %v8599_v19 = vmax.bf16 %v11610_v14, %v11606_v13  ;;  %8551 = vrot.lane.b32.xlu1 %v11598_v10, %s11881_s30  ;;  %v2592_v52 = vmax.f32 %v2584_v16, 0.0  ;;  %v3636_v6 = vmax.f32 %v3628_v11, 0.0  ;;  %v6726_v54 = vpop.f32.mrf.mxu0  ;;  %v18062_v13 = vld [vmem:[#allocation23_spill] sm:$0xff] }
 0x4ff   : > { %v6782_v50 = vmax.f32 %v6774_v2, 0.0  ;;  %v6775_v35 = vadd.f32 %v6725_v3, %v16666_v20  ;;  %v6776_v49 = vadd.f32 %v6764_v57, %v16666_v20  ;;  %v6766_v56 = vadd.f32 %v6765_v7, %v16274_v45  ;;  %8115 = vmatpush1.bf16.msra.mxu0 %v15985_v5  ;;  %8181 = vmatprep.mubr.bf16.mxu1 %v17595_v27  ;;  %v18072_v57 = vld [vmem:[#allocation20_spill] sm:$0xff]  ;;  %v8003_v54 = vpop.permute.xlu1 %8002 }
 0x500   : > { %8116 = vmatprep.subr.bf16.mxu0 %v15998_v28  ;;  %v8506_v38 = vld [vmem:[#allocation2 + $0x1c] sm:$0xff]  ;;  %v16800_v30 = vmax.bf16 %v16787_v0, %v8599_v19  ;;  %8664 = vst [vmem:[#allocation3 + $0x30] sm:$0xff] %v16790_v1  ;;  %v3637_v39 = vmax.f32 %v3629_v31, 0.0  ;;  %v4823_v42 = vadd.f32 %v18060_v25, %v16666_v20  ;;  %v4824_v23 = vadd.f32 %v18061_v58, %v16666_v20  ;;  %v6727_v45 = vpop.f32.mrf.mxu0  ;;  %v6767_v34 = vpop.f32.mrf.mxu1 }
 0x501   : > { %v6783_v5 = vmax.f32 %v6775_v35, 0.0  ;;  %v6784_v46 = vmax.f32 %v6776_v49, 0.0  ;;  %v6777_v63 = vadd.f32 %v6766_v56, %v16666_v20  ;;  %8517 = vrot.lane.b32.xlu0 %v8506_v38, %s11881_s30  ;;  %8154 = vmatpush1.bf16.msra.mxu1 %v16168_v37  ;;  %v5721_v28 = vadd.f32 %v16163_v59, %v16666_v20  ;;  %v18071_v31 = vld [vmem:[#allocation64_spill] sm:$0xff]  ;;  %v18075_v56 = vld [vmem:[#allocation149_spill] sm:$0xff]  ;;  %v18077_v45 = vld [vmem:[#allocation10_spill] sm:$0xff] }
 0x502   : > { %8668 = vst [vmem:[#allocation3 + $0x54] sm:$0xff] %v16800_v30  ;;  %8155 = vmatprep.subr.bf16.mxu1 %v15995_v51  ;;  %v4831_v22 = vmax.f32 %v4823_v42, 0.0  ;;  %v4832_v21 = vmax.f32 %v4824_v23, 0.0  ;;  %v5723_v29 = vadd.f32 %v16173_v4, %v16666_v20  ;;  %v11599_v10 = vpack.c.bf16 %v2592_v52, %v2591_v53  ;;  %v6768_v62 = vpop.f32.mrf.mxu1  ;;  %v18063_v51 = vld [vmem:[#allocation19_spill] sm:$0xff]  ;;  %v18064_v4 = vld [vmem:[#allocation13_spill] sm:$0xff]  ;;  %v18074_v35 = vld [vmem:[#allocation144_spill] sm:$0xff] }
 0x503   : > { %v16816_v60 = vpack.c.bf16 %v6783_v5, %v6782_v50  ;;  %v6785_v26 = vmax.f32 %v6777_v63, 0.0  ;;  %8117 = vmatpush1.bf16.msra.mxu0 %v16010_v18  ;;  %v5772_v37 = vmax.f32 %v5721_v28, 0.0  ;;  %v11603_v36 = vpack.c.bf16 %v3637_v39, %v3636_v6  ;;  %v18066_v18 = vld [vmem:[#allocation26_spill] sm:$0xff]  ;;  %v18073_v52 = vld [vmem:[#allocation67_spill] sm:$0xff] }
 0x504   : > { %8118 = vmatprep.subr.bf16.mxu0 %v18062_v13  ;;  %v5773_v59 = vmax.f32 %v5723_v29, 0.0  ;;  %v11607_v8 = vpack.c.bf16 %v4832_v21, %v4831_v22  ;;  %8553 = vrot.lane.b32.xlu1 %v11599_v10, %s11881_s30  ;;  %v2585_v55 = vadd.f32 %v18063_v51, %v16666_v20  ;;  %v2586_v61 = vadd.f32 %v18064_v4, %v16666_v20  ;;  %v18076_v39 = vld [vmem:[#allocation150_spill] sm:$0xff]  ;;  %v18078_v28 = vld [vmem:[#allocation143_spill] sm:$0xff] }
 0x505   : > { %v11616_v9 = vpack.c.bf16 %v6785_v26, %v6784_v46  ;;  %v8584_v17 = vmax.bf16 %v11603_v36, %v11599_v10  ;;  %8156 = vmatpush1.bf16.msra.mxu1 %v18065_v33  ;;  %v3630_v16 = vadd.f32 %v18066_v18, %v16666_v20  ;;  %v3631_v47 = vadd.f32 %v18067_v24, %v16666_v20  ;;  %v18079_v21 = vld [vmem:[#allocation146_spill] sm:$0xff]  ;;  %v18080_v10 = vld [vmem:[#allocation145_spill] sm:$0xff]  ;;  %v18081_v26 = vld [vmem:[#allocation147_spill] sm:$0xff] }
 0x506   : > { %v11611_v53 = vpack.c.bf16 %v5773_v59, %v5772_v37  ;;  %8157 = vmatprep.subr.bf16.mxu1 %v18070_v43  ;;  %v2593_v11 = vmax.f32 %v2585_v55, 0.0  ;;  %v2594_v48 = vmax.f32 %v2586_v61, 0.0  ;;  %v4825_v2 = vadd.f32 %v18071_v31, %v16666_v20  ;;  %v8007_v37 = vpop.permute.xlu1 %8006  ;;  %v18082_v36 = vld [vmem:[#allocation148_spill] sm:$0xff] }
 0x507   : > { %8425 = vst.msk [vmem:[#allocation2 + $0xd0] sm:$0xff] %vm16832_vm4, %v11616_v9  ;;  %v16841_v3 = vmax.bf16 %v11607_v8, %v8584_v17  ;;  %8119 = vmatpush1.bf16.msra.mxu0 %v18072_v57  ;;  %v3638_v7 = vmax.f32 %v3630_v16, 0.0  ;;  %v3639_v19 = vmax.f32 %v3631_v47, 0.0  ;;  %v4826_v6 = vadd.f32 %v18073_v52, %v16666_v20 }
 0x508   : > { %v8600_v50 = vmax.bf16 %v11611_v53, %v11607_v8  ;;  %8120 = vmatprep.subr.bf16.mxu0 %v18074_v35  ;;  %v4833_v49 = vmax.f32 %v4825_v2, 0.0  ;;  %v5762_v38 = vadd.f32 %v18075_v56, %v16666_v20  ;;  %v5764_v25 = vadd.f32 %v18076_v39, %v16666_v20 }
 0x509   : > { %8665 = vst [vmem:[#allocation3 + $0x38] sm:$0xff] %v16841_v3  ;;  %v4834_v42 = vmax.f32 %v4826_v6, 0.0  ;;  %v11600_v58 = vpack.c.bf16 %v2594_v48, %v2593_v11  ;;  %v11604_v23 = vpack.c.bf16 %v3639_v19, %v3638_v7  ;;  %8158 = vmatpush1.bf16.msra.mxu1 %v18077_v45  ;;  %v8013_v34 = vsel %vm739_vm0, %v8003_v54, %v16629_v15 }
 0x50a   : > { %v16856_v5 = vmax.bf16 %v16816_v60, %v8600_v50  ;;  %v5774_v46 = vmax.f32 %v5762_v38, 0.0  ;;  %v5775_v63 = vmax.f32 %v5764_v25, 0.0  ;;  %8159 = vmatprep.subr.bf16.mxu1 %v18078_v28  ;;  %v8012_v62 = vsel %vm739_vm0, %v16618_v41, %v8003_v54 }
 0x50b   : > { %8279 = vst.msk [vmem:[#allocation2 + $0x40] sm:$0xff] %vm16744_vm5, %v11600_v58  ;;  %8315 = vst.msk [vmem:[#allocation2 + $0x64] sm:$0xff] %vm16744_vm5, %v11604_v23  ;;  %v11608_v22 = vpack.c.bf16 %v4834_v42, %v4833_v49  ;;  %8121 = vmatpush1.bf16.msra.mxu0 %v18079_v21  ;;  %v8014_v51 = vsel %vm739_vm0, %v16629_v15, %v8007_v37 }
 0x50c   : > { %8669 = vst [vmem:[#allocation3 + $0x5c] sm:$0xff] %v16856_v5  ;;  %v11612_v29 = vpack.c.bf16 %v5775_v63, %v5774_v46  ;;  %8122 = vmatprep.subr.bf16.mxu0 %v8013_v34 }
 0x50d   : > { %8351 = vst.msk [vmem:[#allocation2 + $0x88] sm:$0xff] %vm16744_vm5, %v11608_v22  ;;  %8160 = vmatpush1.bf16.msra.mxu1 %v18080_v10 }
 0x50e   : > { %8389 = vst.msk [vmem:[#allocation2 + $0xac] sm:$0xff] %vm16832_vm4, %v11612_v29  ;;  %8161 = vmatprep.subr.bf16.mxu1 %v18081_v26  ;;  %v16880_v61 = vld [vmem:[#allocation2 + $0xd0] sm:$0xff] }
 0x50f   : > { %8123 = vmatpush1.bf16.msra.mxu0 %v8012_v62 }
 0x511   : > { %8162 = vmatpush1.bf16.msra.mxu1 %v18082_v36 }
 0x512   : > { %v8544_v13 = vld [vmem:[#allocation2 + $0x40] sm:$0xff]  ;;  %11441 = vmatmul.mubr.msk.bf16.vlgmr.msra.gmra.mxu0 %vm8023_vm15, %v16737_v32  ;;  %8163 = vmatprep.subr.bf16.mxu1 %v8007_v37 }
 0x513   : > { %v8581_v59 = vld [vmem:[#allocation2 + $0x64] sm:$0xff]  ;;  %8555 = vrot.lane.b32.xlu1 %v8544_v13, %s11881_s30  ;;  %8831 = vmatprep.mubr.bf16.mxu0 %v17595_v27 }
 0x514   : > { %v8585_v8 = vmax.bf16 %v8581_v59, %v8544_v13  ;;  %v8589_v41 = vld [vmem:[#allocation2 + $0x88] sm:$0xff] }
 0x515   : > { %v8597_v4 = vld [vmem:[#allocation2 + $0xac] sm:$0xff]  ;;  %8164 = vmatpush1.bf16.msra.mxu1 %v8014_v51 }
 0x516   : > { %v8593_v55 = vmax.bf16 %v8589_v41, %v8585_v8  ;;  %v8601_v9 = vmax.bf16 %v8597_v4, %v8589_v41 }
 0x518   : > { %8666 = vst.msk [vmem:[#allocation3 + $0x40] sm:$0xff] %vm16744_vm5, %v8593_v55  ;;  %v8609_v17 = vmax.bf16 %v16880_v61, %v8601_v9  ;;  %11443 = vmatmul.mubr.msk.bf16.vlgmr.msra.gmra.mxu1 %vm8023_vm15, %v16737_v32 }
 0x519   : > { %8874 = vmatprep.mubr.bf16.mxu1 %v17595_v27 }
 0x51a   : > { %8670 = vst.msk [vmem:[#allocation3 + $0x64] sm:$0xff] %vm16832_vm4, %v8609_v17 }
 0x51c   : > { %v7043_v15 = vpop.f32.mrf.mxu0  ;;  %v7084_v33 = vpop.f32.mrf.mxu1 }
 0x51e   : > { %v7045_v18 = vpop.f32.mrf.mxu0  ;;  %v7086_v16 = vpop.f32.mrf.mxu1 }
 0x520   : > { %v7047_v24 = vpop.f32.mrf.mxu0  ;;  %v7088_v47 = vpop.f32.mrf.mxu1 }
 0x522   : > { %v7048_v53 = vpop.f32.mrf.mxu0  ;;  %v7089_v43 = vpop.f32.mrf.mxu1 }
 0x52a   : > { %v7125_v11 = vpop.f32.mrf.mxu0 }
 0x52c   : > { %v7127_v48 = vpop.f32.mrf.mxu0 }
 0x52e   : > { %v7129_v31 = vpop.f32.mrf.mxu0 }
 0x530   : > { %v7130_v2 = vpop.f32.mrf.mxu0  ;;  %v7166_v57 = vpop.f32.mrf.mxu1 }
 0x532   : > { %v7168_v7 = vpop.f32.mrf.mxu1 }
 0x534   : > { %v7170_v32 = vpop.f32.mrf.mxu1 }
 0x536   : > { %v7171_v19 = vpop.f32.mrf.mxu1 }
 0x54e   : > { %v7277_v52 = vpop.f32.mrf.mxu0 }
 0x54f   : > { %v7278_v6 = vadd.f32 %v7277_v52, %v7043_v15 }
 0x550   : > { %v7279_v54 = vpop.f32.mrf.mxu0 }
 0x551   : > { %v7407_v50 = vadd.f32 %v7278_v6, %v16666_v20  ;;  %v7280_v35 = vadd.f32 %v7279_v54, %v7045_v18 }
 0x552   : > { %v7281_v49 = vpop.f32.mrf.mxu0 }
 0x553   : > { %v7408_v56 = vadd.f32 %v7280_v35, %v16666_v20  ;;  %v7415_v25 = vmax.f32 %v7407_v50, 0.0 }
 0x554   : > { %v7282_v38 = vpop.f32.mrf.mxu0  ;;  %v7318_v39 = vpop.f32.mrf.mxu1 }
 0x555   : > { %v7416_v42 = vmax.f32 %v7408_v56, 0.0  ;;  %v7319_v58 = vadd.f32 %v7318_v39, %v7084_v33 }
 0x556   : > { %v7320_v23 = vpop.f32.mrf.mxu1 }
 0x557   : > { %v16892_v45 = vpack.c.bf16 %v7416_v42, %v7415_v25  ;;  %v7409_v34 = vadd.f32 %v7319_v58, %v16666_v20  ;;  %v7321_v46 = vadd.f32 %v7320_v23, %v7086_v16 }
 0x558   : > { %v7322_v63 = vpop.f32.mrf.mxu1 }
 0x559   : > { %v7410_v28 = vadd.f32 %v7321_v46, %v16666_v20  ;;  %v7417_v21 = vmax.f32 %v7409_v34, 0.0 }
 0x55a   : > { %v7323_v22 = vpop.f32.mrf.mxu1 }
 0x55b   : > { %v7418_v29 = vmax.f32 %v7410_v28, 0.0 }
 0x55d   : > { %v16896_v10 = vpack.c.bf16 %v7418_v29, %v7417_v21 }
 0x566   : > { %v8512_v46 = vpop.permute.xlu1 %8511 }
 0x572   : > { %v7359_v62 = vpop.f32.mrf.mxu0 }
 0x573   : > { %v7360_v26 = vadd.f32 %v7359_v62, %v7125_v11 }
 0x574   : > { %v7361_v37 = vpop.f32.mrf.mxu0 }
 0x575   : > { %v7411_v36 = vadd.f32 %v7360_v26, %v16666_v20  ;;  %v7362_v13 = vadd.f32 %v7361_v37, %v7127_v48 }
 0x576   : > { %v7363_v59 = vpop.f32.mrf.mxu0 }
 0x577   : > { %v7412_v8 = vadd.f32 %v7362_v13, %v16666_v20  ;;  %v7419_v55 = vmax.f32 %v7411_v36, 0.0  ;;  %v8614_v36 = vmax.bf16 %v16892_v45, %v16707_v44  ;;  %v8519_v45 = vrot.slane %v8512_v46, 4 }
 0x578   : > { %v7364_v41 = vpop.f32.mrf.mxu0  ;;  %v7400_v51 = vpop.f32.mrf.mxu1 }
 0x579   : > { %v7420_v4 = vmax.f32 %v7412_v8, 0.0  ;;  %v7401_v9 = vadd.f32 %v7400_v51, %v7166_v57  ;;  %v16919_v41 = vpop.permute.xlu1 %8513 }
 0x57a   : > { %v7402_v17 = vpop.f32.mrf.mxu1 }
 0x57b   : > { %v16900_v15 = vpack.c.bf16 %v7420_v4, %v7419_v55  ;;  %v7413_v33 = vadd.f32 %v7401_v9, %v16666_v20  ;;  %v7403_v18 = vadd.f32 %v7402_v17, %v7168_v7  ;;  %v8550_v17 = vpop.permute.xlu0 %8549 }
 0x57c   : > { %v7404_v16 = vpop.f32.mrf.mxu1 }
 0x57d   : > { %v7414_v24 = vadd.f32 %v7403_v18, %v16666_v20  ;;  %v7421_v53 = vmax.f32 %v7413_v33, 0.0 }
 0x57e   : > { %v7405_v47 = vpop.f32.mrf.mxu1 }
 0x57f   : > { %v7422_v43 = vmax.f32 %v7414_v24, 0.0  ;;  %v8615_v24 = vmax.bf16 %v16896_v10, %v16787_v0 }
 0x581   : > { %v11620_v11 = vpack.c.bf16 %v7422_v43, %v7421_v53  ;;  %v8557_v53 = vrot.slane %v8550_v17, 4  ;;  %v8552_v43 = vpop.permute.xlu1 %8551 }
 0x583   : > { %8461 = vst.msk [vmem:[#allocation2 + $0xf4] sm:$0xff] %vm16832_vm4, %v11620_v11  ;;  %v8520_v11 = vrot.slane %v16919_v41, 4  ;;  %v8561_v10 = vsel %vm739_vm0, %v8557_v53, %v8550_v17 }
 0x586   : > { %v7826_v48 = vpop.f32.mrf.mxu0 }
 0x588   : > { %v7828_v31 = vpop.f32.mrf.mxu0 }
 0x58a   : > { %v7830_v2 = vpop.f32.mrf.mxu0 }
 0x58c   : > { %v7831_v57 = vpop.f32.mrf.mxu0  ;;  %v7867_v32 = vpop.f32.mrf.mxu1 }
 0x58e   : > { %v7869_v19 = vpop.f32.mrf.mxu1 }
 0x590   : > { %v7871_v52 = vpop.f32.mrf.mxu1 }
 0x592   : > { %v7872_v6 = vpop.f32.mrf.mxu1 }
 0x59a   : > { %v16906_v54 = vpop.f32.mrf.mxu0 }
 0x59c   : > { %v16908_v7 = vpop.f32.mrf.mxu0 }
 0x59e   : > { %v7912_v50 = vpop.f32.mrf.mxu0 }
 0x5a0   : > { %v7913_v35 = vpop.f32.mrf.mxu0  ;;  %v16910_v49 = vpop.f32.mrf.mxu1 }
 0x5a2   : > { %v16912_v56 = vpop.f32.mrf.mxu1 }
 0x5a4   : > { %v7953_v38 = vpop.f32.mrf.mxu1 }
 0x5a6   : > { %v7954_v39 = vpop.f32.mrf.mxu1 }
 0x5b6   : > { %v8060_v25 = vpop.f32.mrf.mxu0 }
 0x5b7   : > { %v8061_v42 = vadd.f32 %v8060_v25, %v7826_v48 }
 0x5b8   : > { %v8062_v58 = vpop.f32.mrf.mxu0 }
 0x5b9   : > { %v8190_v23 = vadd.f32 %v8061_v42, %v16666_v20  ;;  %v8063_v34 = vadd.f32 %v8062_v58, %v7828_v31  ;;  %v8523_v31 = vsel %vm739_vm0, %v8519_v45, %v8512_v46 }
 0x5ba   : > { %v8064_v63 = vpop.f32.mrf.mxu0 }
 0x5bb   : > { %v8191_v28 = vadd.f32 %v8063_v34, %v16666_v20  ;;  %v8198_v29 = vmax.f32 %v8190_v23, 0.0 }
 0x5bc   : > { %v8065_v22 = vpop.f32.mrf.mxu0  ;;  %v8101_v21 = vpop.f32.mrf.mxu1 }
 0x5bd   : > { %v8199_v62 = vmax.f32 %v8191_v28, 0.0  ;;  %v8102_v26 = vadd.f32 %v8101_v21, %v7867_v32 }
 0x5be   : > { %v8103_v37 = vpop.f32.mrf.mxu1 }
 0x5bf   : > { %v11621_v13 = vpack.c.bf16 %v8199_v62, %v8198_v29  ;;  %v8192_v59 = vadd.f32 %v8102_v26, %v16666_v20  ;;  %v8104_v8 = vadd.f32 %v8103_v37, %v7869_v19  ;;  %v8525_v19 = vsel %vm2074_vm6, %v8519_v45, %v8520_v11  ;;  %v8516_v26 = vpop.permute.xlu0 %8515 }
 0x5c0   : > { %v8105_v51 = vpop.f32.mrf.mxu1  ;;  %v8526_v50 = vsel %vm739_vm0, %v8525_v19, %v16919_v41  ;;  %v8521_v41 = vrot.slane %v8516_v26, 4 }
 0x5c1   : > { %8494 = vst [vmem:[#allocation2 + $0x100] sm:$0xff] %v11621_v13  ;;  %v8193_v55 = vadd.f32 %v8104_v8, %v16666_v20  ;;  %v8622_v4 = vmax.bf16 %v11621_v13, %v8614_v36  ;;  %v8200_v33 = vmax.f32 %v8192_v59, 0.0 }
 0x5c2   : > { %v8106_v9 = vpop.f32.mrf.mxu1 }
 0x5c3   : > { %v8201_v18 = vmax.f32 %v8193_v55, 0.0  ;;  %8671 = vst [vmem:[#allocation3 + $0x70] sm:$0xff] %v8622_v4  ;;  %v16923_v16 = vcombine.low %v16717_v12, %v8622_v4  ;;  %v16926_v44 = vcombine.high %v16717_v12, %v8622_v4  ;;  %v8558_v12 = vrot.slane %v8552_v43, 4 }
 0x5c5   : > { %v11622_v47 = vpack.c.bf16 %v8201_v18, %v8200_v33  ;;  %8811 = vmatprep.subr.bf16.mxu0 %v16926_v44  ;;  %v8562_v6 = vsel %vm2074_vm6, %v8557_v53, %v8558_v12 }
 0x5c6   : > { %8812 = vmatpush1.bf16.msra.mxu0 %v16923_v16  ;;  %v8563_v38 = vsel %vm739_vm0, %v8562_v6, %v8552_v43 }
 0x5c7   : > { %8495 = vst [vmem:[#allocation2 + $0x108] sm:$0xff] %v11622_v47  ;;  %v8623_v48 = vmax.bf16 %v11622_v47, %v8615_v24 }
 0x5c8   : > { %v8498_v2 = vld [vmem:[#allocation2 + $0xfc] sm:$0xff] }
 0x5c9   : > { %v8536_v57 = vmax.bf16 %v8523_v31, %v8498_v2  ;;  %8672 = vst [vmem:[#allocation3 + $0x78] sm:$0xff] %v8623_v48  ;;  %v16935_v32 = vcombine.low %v16800_v30, %v8623_v48  ;;  %v16938_v0 = vcombine.high %v16800_v30, %v8623_v48  ;;  %v8613_v48 = vld [vmem:[#allocation2 + $0xf4] sm:$0xff] }
 0x5cb   : > { %v8573_v52 = vmax.bf16 %v8561_v10, %v8536_v57  ;;  %8854 = vmatprep.subr.bf16.mxu1 %v16938_v0  ;;  %v8617_v57 = vmax.bf16 %v8613_v48, %v16880_v61  ;;  %v16982_v61 = vld [vmem:[%s17370_s3] sm:$0xff]  }
 0x5cc   : > { %8855 = vmatpush1.bf16.msra.mxu1 %v16935_v32 }
 0x5cd   : > { %8631 = vrot.lane.b32.xlu0 %v8573_v52, %s11891_s14 }
 0x5ce   : > { %v8499_v35 = vld [vmem:[#allocation2 + $0x104] sm:$0xff] }
 0x5cf   : > { %v8537_v30 = vmax.bf16 %v8526_v50, %v8499_v35 }
 0x5d1   : > { %v8574_v39 = vmax.bf16 %v8563_v38, %v8537_v30 }
 0x5d2   : > { %v8142_v25 = vpop.f32.mrf.mxu0 }
 0x5d3   : > { %v8143_v42 = vadd.f32 %v8142_v25, %v16906_v54  ;;  %8633 = vrot.lane.b32.xlu1 %v8574_v39, %s11891_s14  ;;  %v8616_v54 = vmax.bf16 %v16900_v15, %v16816_v60  ;;  %v8518_v60 = vpop.permute.xlu0 %8517  ;;  %v8527_v15 = vsel %vm2074_vm6, %v8520_v11, %v8521_v41  ;;  %v8687_v25 = vld [vmem:[#allocation3 + $0x6c] sm:$0xff] }
 0x5d4   : > { %v8144_v58 = vpop.f32.mrf.mxu0  ;;  %v8528_v24 = vsel %vm739_vm0, %v8527_v15, %v8516_v26 }
 0x5d5   : > { %v8194_v23 = vadd.f32 %v8143_v42, %v16666_v20  ;;  %v8145_v34 = vadd.f32 %v8144_v58, %v16908_v7  ;;  %v8554_v7 = vpop.permute.xlu1 %8553  ;;  %v11506_v42 = vcombine.low %v8687_v25, %v8687_v25  ;;  %v8688_v58 = vld [vmem:[#allocation3 + $0x74] sm:$0xff] }
 0x5d6   : > { %v8146_v46 = vpop.f32.mrf.mxu0 }
 0x5d7   : > { %v8195_v63 = vadd.f32 %v8145_v34, %v16666_v20  ;;  %v8202_v21 = vmax.f32 %v8194_v23, 0.0  ;;  %v11508_v23 = vcombine.low %v8688_v58, %v8688_v58  ;;  %v11507_v34 = vcombine.high %v8687_v25, %v8687_v25  ;;  %v11715_v46 = vld [vmem:[#allocation3 + $0x2c] ss:$36 sps:$4 sm:$0xff]  }
 0x5d8   : > { %v8147_v28 = vpop.f32.mrf.mxu0  ;;  %v8183_v22 = vpop.f32.mrf.mxu1 }
 0x5d9   : > { %v8203_v29 = vmax.f32 %v8195_v63, 0.0  ;;  %v8184_v62 = vadd.f32 %v8183_v22, %v16910_v49  ;;  %v8559_v49 = vrot.slane %v8554_v7, 4  ;;  %v8556_v18 = vpop.permute.xlu1 %8555  ;;  %v11717_v63 = vld [vmem:[#allocation3 + $0x28] ss:$36 sps:$4 sm:$0xff]   ;;  %v11509_v28 = vcombine.high %v8688_v58, %v8688_v58 }
 0x5da   : > { %v8185_v37 = vpop.f32.mrf.mxu1  ;;  %v8560_v47 = vrot.slane %v8556_v18, 4  ;;  %v11720_v22 = vld [vmem:[#allocation3 + $0x24] ss:$36 sps:$4 sm:$0xff]  }
 0x5db   : > { %v11623_v36 = vpack.c.bf16 %v8203_v29, %v8202_v21  ;;  %v8196_v13 = vadd.f32 %v8184_v62, %v16666_v20  ;;  %v8186_v59 = vadd.f32 %v8185_v37, %v16912_v56  ;;  %v8522_v56 = vrot.slane %v8518_v60, 4  ;;  %v11723_v37 = vld [vmem:[#allocation3 + $0x30] ss:$36 sps:$4 sm:$0xff]  }
 0x5dc   : > { %v8187_v8 = vpop.f32.mrf.mxu1  ;;  %v8564_v45 = vsel %vm2074_vm6, %v8558_v12, %v8559_v49  ;;  %v8566_v11 = vsel %vm2074_vm6, %v8559_v49, %v8560_v47 }
 0x5dd   : > { %8496 = vst [vmem:[#allocation2 + $0x110] sm:$0xff] %v11623_v36  ;;  %v16959_v51 = vmax.bf16 %v11623_v36, %v8616_v54  ;;  %v8197_v55 = vadd.f32 %v8186_v59, %v16666_v20  ;;  %v8204_v9 = vmax.f32 %v8196_v13, 0.0  ;;  %v8565_v43 = vsel %vm739_vm0, %v8564_v45, %v8554_v7  ;;  %v11725_v36 = vld [vmem:[#allocation3 + $0x38] ss:$36 sps:$4 sm:$0xff]   ;;  %v11731_v8 = vld [vmem:[#allocation3 + $0x40] ss:$36 sps:$4 sm:$0xff]  }
 0x5de   : > { %v8188_v4 = vpop.f32.mrf.mxu1  ;;  %v8529_v31 = vsel %vm2074_vm6, %v8521_v41, %v8522_v56  ;;  %v8567_v30 = vsel %vm739_vm0, %v8566_v11, %v8556_v18  ;;  %v11727_v13 = vld [vmem:[#allocation3 + $0x34] ss:$36 sps:$4 sm:$0xff]   ;;  %v11729_v7 = vld [vmem:[#allocation3 + $0x3c] ss:$36 sps:$4 sm:$0xff]  }
 0x5df   : > { %8673 = vst [vmem:[#allocation3 + $0x80] sm:$0xff] %v16959_v51  ;;  %v8205_v17 = vmax.f32 %v8197_v55, 0.0  ;;  %v8530_v12 = vsel %vm739_vm0, %v8529_v31, %v8518_v60  ;;  %v11733_v55 = vld [vmem:[#allocation3 + $0x44] ss:$36 sps:$4 sm:$0xff]   ;;  %v17016_v45 = vcombine.high %v16856_v5, %v16959_v51 }
 0x5e1   : > { %v11624_v33 = vpack.c.bf16 %v8205_v17, %v8204_v9 }
 0x5e3   : > { %8497 = vst.msk [vmem:[#allocation2 + $0x118] sm:$0xff] %vm16832_vm4, %v11624_v33  ;;  %v9678_v33 = vld [vmem:[#allocation3 + $0x28] sm:$0xff] }
 0x5e4   : > { %v8500_v20 = vld [vmem:[#allocation2 + $0x10c] sm:$0xff] }
 0x5e5   : > { %v8538_v53 = vmax.bf16 %v8528_v24, %v8500_v20 }
 0x5e6   : > { %v8689_v21 = vld [vmem:[#allocation3 + $0x7c] sm:$0xff] }
 0x5e7   : > { %v8575_v2 = vmax.bf16 %v8565_v43, %v8538_v53  ;;  %v11511_v29 = vcombine.high %v8689_v21, %v8689_v21  ;;  %v11510_v62 = vcombine.low %v8689_v21, %v8689_v21 }
 0x5e9   : > { %8635 = vrot.lane.b32.xlu0 %v8575_v2, %s11891_s14 }
 0x5ea   : > { %v8621_v10 = vld [vmem:[#allocation2 + $0x118] sm:$0xff] }
 0x5eb   : > { %v8502_v19 = vld [vmem:[#allocation2 + $0x11c] sm:$0xf]  ;;  %v8501_v52 = vld [vmem:[#allocation2 + $0x114] sm:$0xff]  ;;  %v8625_v6 = vmax.bf16 %v8621_v10, %v8617_v57 }
 0x5ec   : > { %v8540_v50 = vmax.bf16 %v8522_v56, %v8502_v19  ;;  %v8539_v35 = vmax.bf16 %v8530_v12, %v8501_v52  ;;  %v17043_v19 = vcombine.low %v16856_v5, %v16959_v51 }
 0x5ed   : > { %8674 = vst.msk [vmem:[#allocation3 + $0x88] sm:$0xff] %vm16832_vm4, %v8625_v6 }
 0x5ee   : > { %v8577_v38 = vmax.bf16 %v8560_v47, %v8540_v50  ;;  %v8576_v39 = vmax.bf16 %v8567_v30, %v8539_v35 }
 0x5f0   : > { %8639 = vrot.lane.b32.xlu0 %v8577_v38, %s11891_s14  ;;  %8637 = vrot.lane.b32.xlu1 %v8576_v39, %s11891_s14 }
 0x5f4   : > { %9049 = vrot.lane.b32.xlu0 %v11506_v42, %s11891_s14  ;;  %8713 = vrot.lane.b32.xlu1 %v16982_v61, %s11892_s17  ;;  %v8690_v26 = vld [vmem:[#allocation3 + $0x84] sm:$0xff]  ;;  %v11732_v41 = vld [vmem:[#allocation3 + $0x8c] ss:$0 sps:$4 sm:$0xff]  }
 0x5f5   : > { %v11512_v54 = vcombine.low %v8690_v26, %v8690_v26  ;;  %v11513_v59 = vcombine.high %v8690_v26, %v8690_v26  ;;  %v17033_v12 = vld [vmem:[#allocation3 + $0x68] ss:$36 sps:$4 sm:$0xff]  }
 0x5f6   : > { %v17047_v30 = vld [vmem:[#allocation3 + $0x64] ss:$36 sps:$4 sm:$0xff]  }
 0x5f8   : > { %9053 = vrot.lane.b32.xlu0 %v11508_v23, %s11891_s14  ;;  %9051 = vrot.lane.b32.xlu1 %v11507_v34, %s11891_s14 }
 0x5fc   : > { %9035 = vrot.lane.b32.xlu0 %v11715_v46, %s11891_s14  ;;  %9033 = vrot.lane.b32.xlu1 %v11717_v63, %s11891_s14 }
 0x600   : > { %9055 = vrot.lane.b32.xlu0 %v11509_v28, %s11891_s14  ;;  %9031 = vrot.lane.b32.xlu1 %v11720_v22, %s11891_s14  ;;  %v323_v28 = vld [vmem:[%s17371_s4 + $0x8] sm:$0xff] }
 0x604   : > { %9059 = vrot.lane.b32.xlu0 %v11511_v29, %s11891_s14  ;;  %9057 = vrot.lane.b32.xlu1 %v11510_v62, %s11891_s14  ;;  %v322_v29 = vld [vmem:[%s17371_s4] sm:$0xff] }
 0x608   : > { %9037 = vrot.lane.b32.xlu0 %v11723_v37, %s11891_s14  ;;  %9061 = vrot.lane.b32.xlu1 %v11512_v54, %s11891_s14 }
 0x60c   : > { %9041 = vrot.lane.b32.xlu0 %v11725_v36, %s11891_s14  ;;  %9039 = vrot.lane.b32.xlu1 %v11727_v13, %s11891_s14 }
 0x610   : > { %9063 = vrot.lane.b32.xlu0 %v11513_v59, %s11891_s14  ;;  %9043 = vrot.lane.b32.xlu1 %v11729_v7, %s11891_s14 }
 0x614   : > { %9045 = vrot.lane.b32.xlu0 %v11731_v8, %s11891_s14  ;;  %9065 = vrot.lane.b32.xlu1 %v11732_v41, %s11891_s14 }
 0x618   : > { %9047 = vrot.lane.b32.xlu1 %v11733_v55, %s11891_s14  ;;  %9322 = vrot.lane.b32.xlu0 %v16982_v61, %s11893_s18 }
 0x61c   : > { %9682 = vrot.lane.b32.xlu0 %v16982_v61, %s11894_s19 }
 0x63f   : > { %v8632_v4 = vpop.permute.xlu0 %8631 }
 0x640   : > { %v8641_v9 = vrot.slane %v8632_v4, 4 }
 0x645   : > { %v8634_v49 = vpop.permute.xlu1 %8633 }
 0x646   : > { %v8642_v17 = vrot.slane %v8634_v49, 4 }
 0x648   : > { %v8646_v60 = vsel %vm2074_vm6, %v8641_v9, %v8642_v17 }
 0x649   : > { %v8648_v15 = vsel %vm8647_vm9, %v8632_v4, %v8646_v60 }
 0x64a   : > { %v17007_v18 = vcombine.high %v8648_v15, %v9678_v33  ;;  %v17009_v56 = vcombine.low %v8648_v15, %v9678_v33 }
 0x64c   : > { %9718 = vrot.lane.b32.xlu1 %v17007_v18, %s11881_s30  ;;  %8813 = vmatprep.subr.bf16.mxu0 %v17007_v18 }
 0x64d   : > { %8814 = vmatpush1.bf16.msra.mxu0 %v17009_v56 }
 0x64e   : > { %8897 = vmatprep.subr.bf16.mxu0 %v17016_v45 }
 0x650   : > { %9716 = vrot.lane.b32.xlu1 %v17009_v56, %s11881_s30 }
 0x65b   : > { %v8636_v24 = vpop.permute.xlu0 %8635 }
 0x65c   : > { %v8643_v20 = vrot.slane %v8636_v24, 4 }
 0x65e   : > { %v8649_v47 = vsel %vm2074_vm6, %v8642_v17, %v8643_v20 }
 0x65f   : > { %v8650_v53 = vsel %vm8647_vm9, %v8634_v49, %v8649_v47 }
 0x660   : > { %v17025_v43 = vcombine.low %v8650_v53, %v16790_v1  ;;  %v17028_v48 = vcombine.high %v8650_v53, %v16790_v1 }
 0x662   : > { %v8640_v31 = vpop.permute.xlu0 %8639  ;;  %v8638_v2 = vpop.permute.xlu1 %8637  ;;  %9720 = vrot.lane.b32.xlu0 %v17025_v43, %s11881_s30  ;;  %8856 = vmatprep.subr.bf16.mxu1 %v17028_v48 }
 0x663   : > { %v8645_v11 = vrot.slane %v8640_v31, 4  ;;  %v8644_v57 = vrot.slane %v8638_v2, 4  ;;  %9722 = vrot.lane.b32.xlu1 %v17028_v48, %s11881_s30  ;;  %8857 = vmatpush1.bf16.msra.mxu1 %v17025_v43 }
 0x664   : > { %8940 = vmatprep.subr.bf16.mxu1 %v17033_v12 }
 0x665   : > { %v8651_v1 = vsel %vm2074_vm6, %v8643_v20, %v8644_v57  ;;  %v8653_v10 = vsel %vm2074_vm6, %v8644_v57, %v8645_v11 }
 0x666   : > { %v8652_v52 = vsel %vm8647_vm9, %v8636_v24, %v8651_v1  ;;  %v8654_v6 = vsel %vm8647_vm9, %v8638_v2, %v8653_v10  ;;  %v9050_v50 = vpop.permute.xlu0 %9049  ;;  %v8714_v35 = vpop.permute.xlu1 %8713 }
 0x667   : > { %8662 = vst.msk [vmem:[#allocation3 + $0x1c] sm:$0xff] %vm16744_vm5, %v8654_v6  ;;  %11493 = vmatmul.mubr.msk.bf16.vlgmr.msra.gmra.mxu0 %vm8795_vm11, %v8714_v35  ;;  %11494 = vmatmul.mubr.msk.bf16.vlgmr.msra.gmra.mxu1 %vm8795_vm11, %v8714_v35  ;;  %v17054_v38 = vcombine.high %v8652_v52, %v16841_v3  ;;  %v17057_v5 = vcombine.low %v8652_v52, %v16841_v3 }
 0x668   : > { %8898 = vmatpush1.bf16.msra.mxu0 %v17043_v19  ;;  %8941 = vmatpush1.bf16.msra.mxu1 %v17047_v30 }
 0x669   : > { %9726 = vrot.lane.b32.xlu1 %v17054_v38, %s11881_s30  ;;  %9724 = vrot.lane.b32.xlu0 %v17057_v5, %s11881_s30 }
 0x66a   : > { %v9054_v51 = vpop.permute.xlu0 %9053  ;;  %v9052_v39 = vpop.permute.xlu1 %9051  ;;  %8899 = vmatprep.subr.bf16.mxu0 %v17054_v38  ;;  %8917 = vmatprep.mubr.bf16.mxu0 %v17595_v27 }
 0x66b   : > { %v17068_v25 = vsel %vm8647_vm9, %v9052_v39, %v9054_v51  ;;  %8960 = vmatprep.mubr.bf16.mxu1 %v17595_v27  ;;  %v9075_v3 = vsel %vm8647_vm9, %v9050_v50, %v9052_v39 }
 0x66c   : > { %8900 = vmatpush1.bf16.msra.mxu0 %v17057_v5  ;;  %v17085_v63 = vsel %vm2074_vm6, %v9075_v3, 0 }
 0x66d   : > { %11515 = vmatprep.subr.msk.bf16.mxu0 %vm2074_vm6, %v17068_v25 }
 0x66e   : > { %v9036_v42 = vpop.permute.xlu0 %9035  ;;  %v9034_v58 = vpop.permute.xlu1 %9033  ;;  %v17075_v23 = vld [vmem:[#allocation3 + $0x1c] ss:$36 sps:$4 sm:$0xff]  }
 0x66f   : > { %v17077_v34 = vld [vmem:[#allocation3 + $0x20] ss:$36 sps:$4 sm:$0xff]   ;;  %11495 = vmatmul.mubr.msk.bf16.vlgmr.msra.gmra.mxu0 %vm8795_vm11, %v8714_v35  ;;  %v9068_v46 = vsel %vm8647_vm9, %v9034_v58, %v9036_v42  ;;  %9728 = vrot.lane.b32.xlu0 %v17075_v23, %s11881_s30 }
 0x670   : > { %8942 = vmatprep.subr.bf16.mxu1 %v17077_v34  ;;  %9730 = vrot.lane.b32.xlu1 %v17077_v34, %s11881_s30 }
 0x671   : > { %8943 = vmatpush1.bf16.msra.mxu1 %v17075_v23  ;;  %9131 = vmatpush1.bf16.msra.mxu0 %v17085_v63 }
 0x672   : > { %v9056_v22 = vpop.permute.xlu0 %9055  ;;  %v9032_v21 = vpop.permute.xlu1 %9031  ;;  %9150 = vmatprep.mubr.bf16.mxu0 %v17595_v27  ;;  %9132 = vmatprep.subr.bf16.mxu0 %v9068_v46 }
 0x673   : > { %v9067_v62 = vsel %vm8647_vm9, %v9032_v21, %v9034_v58  ;;  %v9077_v26 = vsel %vm8647_vm9, %v9054_v51, %v9056_v22  ;;  %326 = vperm.xlu0 %11666, %v322_v29  }
 0x674   : > { %11496 = vmatmul.mubr.msk.bf16.vlgmr.msra.gmra.mxu1 %vm8795_vm11, %v8714_v35  ;;  %331 = vperm.xlu1 %11667, %v323_v28   ;;  %v17106_v13 = vsel %vm2074_vm6, %v9077_v26, 0 }
 0x675   : > { %9193 = vmatprep.mubr.bf16.mxu1 %v17595_v27  ;;  %9133 = vmatpush1.bf16.msra.mxu0 %v9067_v62 }
 0x676   : > { %v9060_v37 = vpop.permute.xlu0 %9059  ;;  %v9058_v54 = vpop.permute.xlu1 %9057 }
 0x677   : > { %v17103_v36 = vsel %vm8647_vm9, %v9056_v22, %v9058_v54  ;;  %v9079_v59 = vsel %vm8647_vm9, %v9058_v54, %v9060_v37 }
 0x678   : > { %11517 = vmatprep.subr.msk.bf16.mxu1 %vm2074_vm6, %v17103_v36  ;;  %11516 = vmatmul.mubr.msk.bf16.vlgmr.msra.gmra.mxu0 %vm5905_vm7, %v16982_v61  ;;  %v17117_v55 = vsel %vm2074_vm6, %v9079_v59, 0 }
 0x679   : > { %9174 = vmatpush1.bf16.msra.mxu1 %v17106_v13  ;;  %9236 = vmatprep.mubr.bf16.mxu0 %v17595_v27 }
 0x67a   : > { %v9038_v7 = vpop.permute.xlu0 %9037  ;;  %v9062_v8 = vpop.permute.xlu1 %9061 }
 0x67b   : > { %v9080_v41 = vsel %vm8647_vm9, %v9060_v37, %v9062_v8  ;;  %v9069_v17 = vsel %vm8647_vm9, %v9036_v42, %v9038_v7 }
 0x67c   : > { %11519 = vmatprep.subr.msk.bf16.mxu0 %vm2074_vm6, %v9080_v41 }
 0x67d   : > { %9217 = vmatpush1.bf16.msra.mxu0 %v17117_v55 }
 0x67e   : > { %v9042_v4 = vpop.permute.xlu0 %9041  ;;  %v9040_v49 = vpop.permute.xlu1 %9039 }
 0x67f   : > { %v9070_v9 = vsel %vm8647_vm9, %v9038_v7, %v9040_v49  ;;  %v9071_v24 = vsel %vm8647_vm9, %v9040_v49, %v9042_v4 }
 0x680   : > { %9175 = vmatprep.subr.bf16.mxu1 %v9070_v9 }
 0x681   : > { %9176 = vmatpush1.bf16.msra.mxu1 %v9069_v17 }
 0x682   : > { %v9064_v60 = vpop.permute.xlu0 %9063  ;;  %v9044_v15 = vpop.permute.xlu1 %9043 }
 0x683   : > { %v9072_v33 = vsel %vm8647_vm9, %v9042_v4, %v9044_v15  ;;  %v9081_v20 = vsel %vm8647_vm9, %v9062_v8, %v9064_v60 }
 0x684   : > { %11518 = vmatmul.mubr.msk.bf16.vlgmr.msra.gmra.mxu1 %vm5905_vm7, %v16982_v61  ;;  %9218 = vmatprep.subr.bf16.mxu0 %v9072_v33  ;;  %v9113_v31 = vsel %vm2074_vm6, %v9081_v20, 0 }
 0x685   : > { %9219 = vmatpush1.bf16.msra.mxu0 %v9071_v24  ;;  %9279 = vmatprep.mubr.bf16.mxu1 %v17595_v27 }
 0x686   : > { %9339 = vmatprep.subr.bf16.mxu0 %v16926_v44  ;;  %v9066_v47 = vpop.permute.xlu1 %9065  ;;  %v9046_v2 = vpop.permute.xlu0 %9045 }
 0x687   : > { %v9082_v53 = vsel %vm8647_vm9, %v9064_v60, %v9066_v47  ;;  %v9073_v57 = vsel %vm8647_vm9, %v9044_v15, %v9046_v2 }
 0x688   : > { %11520 = vmatmul.mubr.msk.bf16.vlgmr.msra.gmra.mxu0 %vm5905_vm7, %v16982_v61  ;;  %11521 = vmatprep.subr.msk.bf16.mxu1 %vm2074_vm6, %v9082_v53 }
 0x689   : > { %9260 = vmatpush1.bf16.msra.mxu1 %v9113_v31  ;;  %9340 = vmatpush1.bf16.msra.mxu0 %v16923_v16 }
 0x68a   : > { %9341 = vmatprep.subr.bf16.mxu0 %v17007_v18  ;;  %v9048_v11 = vpop.permute.xlu1 %9047  ;;  %9359 = vmatprep.mubr.bf16.mxu0 %v17595_v27  ;;  %v9323_v1 = vpop.permute.xlu0 %9322 }
 0x68b   : > { %v9074_v44 = vsel %vm8647_vm9, %v9046_v2, %v9048_v11 }
 0x68c   : > { %9261 = vmatprep.subr.bf16.mxu1 %v9074_v44 }
 0x68d   : > { %9262 = vmatpush1.bf16.msra.mxu1 %v9073_v57  ;;  %9342 = vmatpush1.bf16.msra.mxu0 %v17009_v56 }
 0x68e   : > { %9382 = vmatprep.subr.bf16.mxu1 %v16938_v0  ;;  %9425 = vmatprep.subr.bf16.mxu0 %v17016_v45 }
 0x690   : > { %11522 = vmatmul.mubr.msk.bf16.vlgmr.msra.gmra.mxu1 %vm5905_vm7, %v16982_v61  ;;  %11523 = vmatmul.mubr.msk.bf16.vlgmr.msra.gmra.mxu0 %vm8795_vm11, %v9323_v1  ;;  %vm9499_vm7 = vcmask 64512  }
 0x691   : > { %9383 = vmatpush1.bf16.msra.mxu1 %v16935_v32  ;;  %9426 = vmatpush1.bf16.msra.mxu0 %v17043_v19  ;;  %v9683_v32 = vpop.permute.xlu0 %9682  ;;  %v17194_v19 = vld [vmem:[%s17372_s5] sm:$0xff]  }
 0x692   : > { %9384 = vmatprep.subr.bf16.mxu1 %v17028_v48  ;;  %9427 = vmatprep.subr.bf16.mxu0 %v17054_v38 }
 0x693   : > { %9402 = vmatprep.mubr.bf16.mxu1 %v17595_v27  ;;  %9445 = vmatprep.mubr.bf16.mxu0 %v17595_v27 }
 0x694   : > { %10109 = vrot.lane.b32.xlu0 %v17194_v19, %s11895_s27 }
 0x695   : > { %9385 = vmatpush1.bf16.msra.mxu1 %v17025_v43  ;;  %9428 = vmatpush1.bf16.msra.mxu0 %v17057_v5 }
 0x696   : > { %9468 = vmatprep.subr.bf16.mxu1 %v17033_v12  ;;  %11527 = vmatprep.subr.msk.bf16.mxu0 %vm2074_vm6, %v17068_v25 }
 0x698   : > { %11524 = vmatmul.mubr.msk.bf16.vlgmr.msra.gmra.mxu1 %vm8795_vm11, %v9323_v1  ;;  %11525 = vmatmul.mubr.msk.bf16.vlgmr.msra.gmra.mxu0 %vm8795_vm11, %v9323_v1 }
 0x699   : > { %9469 = vmatpush1.bf16.msra.mxu1 %v17047_v30  ;;  %9517 = vmatpush1.bf16.msra.mxu0 %v17085_v63 }
 0x69a   : > { %9470 = vmatprep.subr.bf16.mxu1 %v17077_v34  ;;  %11531 = vmatprep.subr.msk.bf16.mxu0 %vm2074_vm6, %v9080_v41 }
 0x69b   : > { %9488 = vmatprep.mubr.bf16.mxu1 %v17595_v27  ;;  %9534 = vmatprep.mubr.bf16.mxu0 %v17595_v27 }
 0x69d   : > { %9471 = vmatpush1.bf16.msra.mxu1 %v17075_v23 }
 0x69e   : > { %11529 = vmatprep.subr.msk.bf16.mxu1 %vm2074_vm6, %v17103_v36 }
 0x6a0   : > { %11526 = vmatmul.mubr.msk.bf16.vlgmr.msra.gmra.mxu1 %vm8795_vm11, %v9323_v1  ;;  %11528 = vmatmul.mubr.msk.bf16.vlgmr.msra.gmra.mxu0 %vm9499_vm7, %v16982_v61 }
 0x6a1   : > { %9603 = vmatpush1.bf16.msra.mxu0 %v17117_v55  ;;  %9560 = vmatpush1.bf16.msra.mxu1 %v17106_v13 }
 0x6a2   : > { %11533 = vmatprep.subr.msk.bf16.mxu1 %vm2074_vm6, %v9082_v53  ;;  %9577 = vmatprep.mubr.bf16.mxu1 %v17595_v27  ;;  %vm311_vm6 = vcmask 347464  }
 0x6a3   : > { %9620 = vmatprep.mubr.bf16.mxu0 %v17595_v27  ;;  %312 = vst.msk [vmem:[#allocation4 + $0x20] sm:$0xf] %vm311_vm6, %v17595_v27  ;;  %313 = vst.msk [vmem:[#allocation4 + $0x44] sm:$0xf] %vm311_vm6, %v17595_v27 }
 0x6a4   : > { %314 = vst.msk [vmem:[#allocation4 + $0x68] sm:$0xf] %vm311_vm6, %v17595_v27  ;;  %315 = vst.msk [vmem:[#allocation4 + $0x8c] sm:$0xf] %vm311_vm6, %v17595_v27 }
 0x6a8   : > { %11530 = vmatmul.mubr.msk.bf16.vlgmr.msra.gmra.mxu1 %vm9499_vm7, %v16982_v61  ;;  %11532 = vmatmul.mubr.msk.bf16.vlgmr.msra.gmra.mxu0 %vm9499_vm7, %v16982_v61 }
 0x6a9   : > { %9646 = vmatpush1.bf16.msra.mxu1 %v9113_v31  ;;  %9663 = vmatprep.mubr.bf16.mxu1 %v17595_v27 }
 0x6aa   : > { %9782 = vmatprep.mubr.bf16.mxu0 %v17595_v27 }
 0x6b0   : > { %11534 = vmatmul.mubr.msk.bf16.vlgmr.msra.gmra.mxu1 %vm9499_vm7, %v16982_v61 }
 0x6b1   : > { %9825 = vmatprep.mubr.bf16.mxu1 %v17595_v27 }
 0x6be   : > { %v9719_v16 = vpop.permute.xlu1 %9718 }
 0x6c2   : > { %v9717_v0 = vpop.permute.xlu1 %9716 }
 0x6c3   : > { %v9732_v45 = vsel %vm739_vm0, %v9717_v0, %v9719_v16 }
 0x6d4   : > { %v9721_v18 = vpop.permute.xlu0 %9720 }
 0x6d5   : > { %v9733_v56 = vsel %vm739_vm0, %v9719_v16, %v9721_v18  ;;  %v9723_v61 = vpop.permute.xlu1 %9722 }
 0x6d6   : > { %9764 = vmatprep.subr.bf16.mxu0 %v9733_v56  ;;  %v9734_v12 = vsel %vm739_vm0, %v9721_v18, %v9723_v61 }
 0x6d7   : > { %9765 = vmatpush1.bf16.msra.mxu0 %v9732_v45 }
 0x6da   : > { %11543 = vmatmul.mubr.msk.bf16.vlgmr.msra.gmra.mxu0 %vm3245_vm10, %v9683_v32 }
 0x6db   : > { %v9725_v43 = vpop.permute.xlu0 %9724  ;;  %9868 = vmatprep.mubr.bf16.mxu0 %v17595_v27  ;;  %v9727_v10 = vpop.permute.xlu1 %9726 }
 0x6dc   : > { %v9735_v48 = vsel %vm739_vm0, %v9723_v61, %v9725_v43  ;;  %v9736_v30 = vsel %vm739_vm0, %v9725_v43, %v9727_v10 }
 0x6dd   : > { %9807 = vmatprep.subr.bf16.mxu1 %v9735_v48 }
 0x6de   : > { %9808 = vmatpush1.bf16.msra.mxu1 %v9734_v12 }
 0x6e1   : > { %11544 = vmatmul.mubr.msk.bf16.vlgmr.msra.gmra.mxu1 %vm3245_vm10, %v9683_v32  ;;  %v9729_v6 = vpop.permute.xlu0 %9728 }
 0x6e2   : > { %v9731_v52 = vpop.permute.xlu1 %9730  ;;  %9911 = vmatprep.mubr.bf16.mxu1 %v17595_v27  ;;  %v9737_v35 = vsel %vm739_vm0, %v9727_v10, %v9729_v6 }
 0x6e3   : > { %9893 = vmatprep.subr.bf16.mxu1 %v9731_v52  ;;  %v9738_v50 = vsel %vm739_vm0, %v9729_v6, %v9731_v52  ;;  %9850 = vmatprep.subr.bf16.mxu0 %v9737_v35  ;;  %vm10446_vm0 = vcmask 15360  }
 0x6e4   : > { %9894 = vmatpush1.bf16.msra.mxu1 %v9738_v50  ;;  %9851 = vmatpush1.bf16.msra.mxu0 %v9736_v30 }
 0x6e7   : > { %11545 = vmatmul.mubr.msk.bf16.vlgmr.msra.gmra.mxu0 %vm3245_vm10, %v9683_v32 }
 0x6e8   : > { %10288 = vmatprep.mubr.bf16.mxu0 %v17595_v27 }
 0x6e9   : > { %11546 = vmatmul.mubr.msk.bf16.vlgmr.msra.gmra.mxu1 %vm3245_vm10, %v9683_v32 }
 0x6ea   : > { %10331 = vmatprep.mubr.bf16.mxu1 %v17595_v27 }
 0x6ee   : > { %v17214_v62 = vpop.permute.xlu0 %326 }
 0x6ef   : > { %v17219_v59 = vpop.permute.xlu1 %331 }
 0x727   : > { %v8833_v38 = vpop.f32.mrf.mxu0  ;;  %v8876_v5 = vpop.f32.mrf.mxu1 }
 0x729   : > { %v8835_v51 = vpop.f32.mrf.mxu0  ;;  %v8878_v39 = vpop.f32.mrf.mxu1 }
 0x72b   : > { %v8837_v25 = vpop.f32.mrf.mxu0  ;;  %v8880_v3 = vpop.f32.mrf.mxu1 }
 0x72d   : > { %v8839_v42 = vpop.f32.mrf.mxu0  ;;  %v8882_v23 = vpop.f32.mrf.mxu1 }
 0x72f   : > { %v8919_v58 = vpop.f32.mrf.mxu0 }
 0x731   : > { %v8921_v34 = vpop.f32.mrf.mxu0 }
 0x733   : > { %v8923_v46 = vpop.f32.mrf.mxu0 }
 0x734   : > { %v17210_v63 = vpop.f32.mrf.mxu1 }
 0x735   : > { %v8925_v28 = vpop.f32.mrf.mxu0 }
 0x736   : > { %v17212_v22 = vpop.f32.mrf.mxu1 }
 0x738   : > { %v9152_v21 = vpop.f32.mrf.mxu0  ;;  %v17217_v36 = vpop.f32.mrf.mxu1 }
 0x739   : > { %v9153_v29 = vadd.f32 %v9152_v21, %v8833_v38 }
 0x73a   : > { %v9154_v26 = vpop.f32.mrf.mxu0  ;;  %v17222_v49 = vpop.f32.mrf.mxu1 }
 0x73b   : > { %v9290_v37 = vadd.f32 %v9153_v29, %v17214_v62  ;;  %v9155_v54 = vadd.f32 %v9154_v26, %v8835_v51 }
 0x73c   : > { %v9156_v13 = vpop.f32.mrf.mxu0 }
 0x73d   : > { %v9291_v7 = vadd.f32 %v9155_v54, %v17214_v62  ;;  %v9157_v8 = vadd.f32 %v9156_v13, %v8837_v25  ;;  %v9306_v55 = vmax.f32 %v9290_v37, 0.0 }
 0x73e   : > { %v9158_v41 = vpop.f32.mrf.mxu0 }
 0x73f   : > { %v9307_v4 = vmax.f32 %v9291_v7, 0.0  ;;  %v9159_v9 = vadd.f32 %v9158_v41, %v8839_v42  ;;  %v9298_v17 = vadd.f32 %v9157_v8, %v17219_v59 }
 0x741   : > { %v11625_v60 = vpack.c.bf16 %v9307_v4, %v9306_v55  ;;  %v9299_v15 = vadd.f32 %v9159_v9, %v17219_v59  ;;  %v9314_v33 = vmax.f32 %v9298_v17, 0.0 }
 0x743   : > { %10018 = vst [vmem:[#allocation4 + $0x4] sm:$0xff] %v11625_v60  ;;  %v9315_v20 = vmax.f32 %v9299_v15, 0.0 }
 0x744   : > { %v9195_v24 = vpop.f32.mrf.mxu1 }
 0x745   : > { %v9196_v47 = vadd.f32 %v9195_v24, %v8876_v5  ;;  %v11629_v31 = vpack.c.bf16 %v9315_v20, %v9314_v33 }
 0x746   : > { %v9197_v53 = vpop.f32.mrf.mxu1 }
 0x747   : > { %v9292_v2 = vadd.f32 %v9196_v47, %v17214_v62  ;;  %v9198_v11 = vadd.f32 %v9197_v53, %v8878_v39  ;;  %10022 = vst [vmem:[#allocation4 + $0x28] sm:$0xff] %v11629_v31 }
 0x748   : > { %v9199_v44 = vpop.f32.mrf.mxu1  ;;  %v9238_v57 = vpop.f32.mrf.mxu0 }
 0x749   : > { %v9293_v1 = vadd.f32 %v9198_v11, %v17214_v62  ;;  %v9200_v16 = vadd.f32 %v9199_v44, %v8880_v3  ;;  %v9239_v32 = vadd.f32 %v9238_v57, %v8919_v58  ;;  %v9308_v56 = vmax.f32 %v9292_v2, 0.0 }
 0x74a   : > { %v9201_v0 = vpop.f32.mrf.mxu1  ;;  %v9240_v18 = vpop.f32.mrf.mxu0  ;;  %v10094_v54 = vld [vmem:[#allocation4] sm:$0xff] }
 0x74b   : > { %v9309_v45 = vmax.f32 %v9293_v1, 0.0  ;;  %v9300_v61 = vadd.f32 %v9200_v16, %v17219_v59  ;;  %v9202_v43 = vadd.f32 %v9201_v0, %v8882_v23  ;;  %v9294_v48 = vadd.f32 %v9239_v32, %v17214_v62 }
 0x74c   : > { %v9241_v12 = vadd.f32 %v9240_v18, %v8921_v34  ;;  %v9242_v10 = vpop.f32.mrf.mxu0 }
 0x74d   : > { %v11626_v52 = vpack.c.bf16 %v9309_v45, %v9308_v56  ;;  %v9316_v6 = vmax.f32 %v9300_v61, 0.0  ;;  %v9301_v50 = vadd.f32 %v9202_v43, %v17219_v59  ;;  %v9243_v30 = vadd.f32 %v9242_v10, %v8923_v46 }
 0x74e   : > { %v9295_v35 = vadd.f32 %v9241_v12, %v17214_v62  ;;  %v9244_v38 = vpop.f32.mrf.mxu0  ;;  %v11740_v39 = vld [vmem:[#allocation4 + $0x4] ss:$36 sps:$4 sm:$0xff]   ;;  %v9310_v25 = vmax.f32 %v9294_v48, 0.0 }
 0x74f   : > { %10019 = vst [vmem:[#allocation4 + $0xc] sm:$0xff] %v11626_v52  ;;  %v9317_v5 = vmax.f32 %v9301_v50, 0.0  ;;  %v9245_v51 = vadd.f32 %v9244_v38, %v8925_v28  ;;  %v9302_v42 = vadd.f32 %v9243_v30, %v17219_v59  ;;  %v10099_v23 = vld [vmem:[#allocation4 + $0x24] sm:$0xff]  ;;  %10187 = vrot.lane.b32.xlu1 %v11740_v39, %s11891_s14 }
 0x750   : > { %v9311_v3 = vmax.f32 %v9295_v35, 0.0  ;;  %v9281_v58 = vpop.f32.mrf.mxu1  ;;  %v11564_v8 = vcombine.low %v10094_v54, %v10099_v23  ;;  %v11743_v20 = vld [vmem:[#allocation4 + $0x8] ss:$36 sps:$4 sm:$0xff]   ;;  %v9361_v31 = vpop.f32.mrf.mxu0 }
 0x751   : > { %v11630_v34 = vpack.c.bf16 %v9317_v5, %v9316_v6  ;;  %v9303_v21 = vadd.f32 %v9245_v51, %v17219_v59  ;;  %v9282_v29 = vadd.f32 %v9281_v58, %v17210_v63  ;;  %v9318_v46 = vmax.f32 %v9302_v42, 0.0  ;;  %10189 = vrot.lane.b32.xlu0 %v11743_v20, %s11891_s14 }
 0x752   : > { %v11627_v26 = vpack.c.bf16 %v9311_v3, %v9310_v25  ;;  %v9283_v37 = vpop.f32.mrf.mxu1 }
 0x753   : > { %10023 = vst [vmem:[#allocation4 + $0x30] sm:$0xff] %v11630_v34  ;;  %v9319_v28 = vmax.f32 %v9303_v21, 0.0  ;;  %v9296_v13 = vadd.f32 %v9282_v29, %v17214_v62  ;;  %v9284_v7 = vadd.f32 %v9283_v37, %v17212_v22  ;;  %10185 = vrot.lane.b32.xlu1 %v11564_v8, %s11891_s14 }
 0x754   : > { %10020 = vst [vmem:[#allocation4 + $0x14] sm:$0xff] %v11627_v26  ;;  %v9285_v41 = vpop.f32.mrf.mxu1 }
 0x755   : > { %v11631_v55 = vpack.c.bf16 %v9319_v28, %v9318_v46  ;;  %v9297_v4 = vadd.f32 %v9284_v7, %v17214_v62  ;;  %v9286_v63 = vadd.f32 %v9285_v41, %v17217_v36  ;;  %v9312_v17 = vmax.f32 %v9296_v13, 0.0 }
 0x756   : > { %v9287_v9 = vpop.f32.mrf.mxu1 }
 0x757   : > { %10024 = vst [vmem:[#allocation4 + $0x38] sm:$0xff] %v11631_v55  ;;  %v9313_v60 = vmax.f32 %v9297_v4, 0.0  ;;  %v9304_v15 = vadd.f32 %v9286_v63, %v17219_v59  ;;  %v9288_v33 = vadd.f32 %v9287_v9, %v17222_v49  ;;  %v9363_v49 = vpop.f32.mrf.mxu0 }
 0x758   : > { %v9404_v57 = vpop.f32.mrf.mxu1 }
 0x759   : > { %v11628_v24 = vpack.c.bf16 %v9313_v60, %v9312_v17  ;;  %v9305_v22 = vadd.f32 %v9288_v33, %v17219_v59  ;;  %v9320_v47 = vmax.f32 %v9304_v15, 0.0  ;;  %v9365_v1 = vpop.f32.mrf.mxu0 }
 0x75a   : > { %v11745_v2 = vld [vmem:[#allocation4 + $0xc] ss:$36 sps:$4 sm:$0xff]   ;;  %v9406_v0 = vpop.f32.mrf.mxu1 }
 0x75b   : > { %10021 = vst.msk [vmem:[#allocation4 + $0x1c] sm:$0xff] %vm16744_vm5, %v11628_v24  ;;  %v9321_v53 = vmax.f32 %v9305_v22, 0.0  ;;  %v11746_v11 = vld [vmem:[#allocation4 + $0x10] ss:$36 sps:$4 sm:$0xff]   ;;  %10191 = vrot.lane.b32.xlu0 %v11745_v2, %s11891_s14  ;;  %v9367_v18 = vpop.f32.mrf.mxu0 }
 0x75c   : > { %10193 = vrot.lane.b32.xlu1 %v11746_v11, %s11891_s14  ;;  %v9408_v40 = vpop.f32.mrf.mxu1 }
 0x75d   : > { %v11632_v36 = vpack.c.bf16 %v9321_v53, %v9320_v47  ;;  %v9447_v56 = vpop.f32.mrf.mxu0 }
 0x75e   : > { %v11748_v44 = vld [vmem:[#allocation4 + $0x14] ss:$36 sps:$4 sm:$0xff]   ;;  %v9410_v45 = vpop.f32.mrf.mxu1 }
 0x75f   : > { %10025 = vst.msk [vmem:[#allocation4 + $0x40] sm:$0xff] %vm16744_vm5, %v11632_v36  ;;  %v11749_v16 = vld [vmem:[#allocation4 + $0x18] ss:$36 sps:$4 sm:$0xff]   ;;  %v17254_v61 = vpop.f32.mrf.mxu0 }
 0x760   : > { %10195 = vrot.lane.b32.xlu1 %v11748_v44, %s11891_s14  ;;  %10197 = vrot.lane.b32.xlu0 %v11749_v16, %s11891_s14  ;;  %v9490_v43 = vpop.f32.mrf.mxu1 }
 0x761   : > { %v17256_v48 = vpop.f32.mrf.mxu0 }
 0x762   : > { %v17258_v12 = vpop.f32.mrf.mxu1 }
 0x763   : > { %v17260_v10 = vpop.f32.mrf.mxu0 }
 0x764   : > { %v17262_v52 = vpop.f32.mrf.mxu1 }
 0x765   : > { %v9536_v6 = vpop.f32.mrf.mxu0 }
 0x766   : > { %v11751_v32 = vld [vmem:[#allocation4 + $0x1c] ss:$36 sps:$4 sm:$0xff]   ;;  %v17264_v50 = vpop.f32.mrf.mxu1  ;;  %v9537_v29 = vadd.f32 %v9536_v6, %v9361_v31 }
 0x767   : > { %10199 = vrot.lane.b32.xlu1 %v11751_v32, %s11891_s14  ;;  %v9538_v35 = vpop.f32.mrf.mxu0  ;;  %v11765_v14 = vld [vmem:[#allocation4 + $0x20] ss:$36 sps:$4 sm:$0xff]  }
 0x768   : > { %v9579_v30 = vpop.f32.mrf.mxu1  ;;  %v9539_v37 = vadd.f32 %v9538_v35, %v9363_v49 }
 0x769   : > { %v9540_v38 = vpop.f32.mrf.mxu0  ;;  %v9580_v4 = vadd.f32 %v9579_v30, %v9404_v57 }
 0x76a   : > { %v9581_v5 = vpop.f32.mrf.mxu1  ;;  %v9541_v13 = vadd.f32 %v9540_v38, %v9365_v1 }
 0x76b   : > { %v9542_v51 = vpop.f32.mrf.mxu0  ;;  %v9582_v53 = vadd.f32 %v9581_v5, %v9406_v0 }
 0x76c   : > { %v9583_v39 = vpop.f32.mrf.mxu1  ;;  %v9543_v63 = vadd.f32 %v9542_v51, %v9367_v18 }
 0x76d   : > { %v9622_v25 = vpop.f32.mrf.mxu0  ;;  %v9584_v31 = vadd.f32 %v9583_v39, %v9408_v40 }
 0x76e   : > { %v9585_v3 = vpop.f32.mrf.mxu1  ;;  %v9623_v6 = vadd.f32 %v9622_v25, %v9447_v56 }
 0x76f   : > { %v9624_v42 = vpop.f32.mrf.mxu0  ;;  %v9586_v1 = vadd.f32 %v9585_v3, %v9410_v45 }
 0x770   : > { %v9665_v58 = vpop.f32.mrf.mxu1 }
 0x771   : > { %v9626_v23 = vpop.f32.mrf.mxu0  ;;  %v9666_v38 = vadd.f32 %v9665_v58, %v9490_v43 }
 0x772   : > { %v9667_v34 = vpop.f32.mrf.mxu1  ;;  %v9627_v25 = vadd.f32 %v9626_v23, %v17256_v48 }
 0x773   : > { %v9628_v21 = vpop.f32.mrf.mxu0  ;;  %v9668_v56 = vadd.f32 %v9667_v34, %v17258_v12 }
 0x774   : > { %v9669_v26 = vpop.f32.mrf.mxu1 }
 0x776   : > { %v9671_v41 = vpop.f32.mrf.mxu1 }
 0x777   : > { %v9672_v48 = vadd.f32 %v9671_v41, %v17264_v50 }
 0x79a   : > { %v9784_v46 = vpop.f32.mrf.mxu0 }
 0x79b   : > { %v9922_v54 = vadd.f32 %v9784_v46, %v9537_v29 }
 0x79c   : > { %v9786_v28 = vpop.f32.mrf.mxu0 }
 0x79d   : > { %v9938_v7 = vadd.f32 %v9922_v54, %v17214_v62  ;;  %v9923_v8 = vadd.f32 %v9786_v28, %v9539_v37  ;;  %v9625_v37 = vadd.f32 %v9624_v42, %v17254_v61  ;;  %v9629_v61 = vadd.f32 %v9628_v21, %v17260_v10 }
 0x79e   : > { %v9788_v55 = vpop.f32.mrf.mxu0 }
 0x79f   : > { %v9939_v9 = vadd.f32 %v9923_v8, %v17214_v62  ;;  %v9930_v17 = vadd.f32 %v9788_v55, %v9541_v13  ;;  %v9954_v60 = vmax.f32 %v9938_v7, 0.0 }
 0x7a0   : > { %v9790_v15 = vpop.f32.mrf.mxu0 }
 0x7a1   : > { %v9827_v33 = vpop.f32.mrf.mxu1  ;;  %v9955_v24 = vmax.f32 %v9939_v9, 0.0  ;;  %v9946_v22 = vadd.f32 %v9930_v17, %v17219_v59  ;;  %v9931_v20 = vadd.f32 %v9790_v15, %v9543_v63 }
 0x7a2   : > { %v9924_v47 = vadd.f32 %v9827_v33, %v9580_v4  ;;  %v9670_v4 = vadd.f32 %v9669_v26, %v17262_v52 }
 0x7a3   : > { %v9829_v36 = vpop.f32.mrf.mxu1  ;;  %v11633_v2 = vpack.c.bf16 %v9955_v24, %v9954_v60  ;;  %v9947_v11 = vadd.f32 %v9931_v20, %v17219_v59  ;;  %v9962_v16 = vmax.f32 %v9946_v22, 0.0 }
 0x7a4   : > { %v9940_v49 = vadd.f32 %v9924_v47, %v17214_v62  ;;  %v9925_v44 = vadd.f32 %v9829_v36, %v9582_v53 }
 0x7a5   : > { %v9831_v57 = vpop.f32.mrf.mxu1  ;;  %10074 = vst [vmem:[#allocation4 + $0x4c] sm:$0xff] %v11633_v2  ;;  %v9963_v32 = vmax.f32 %v9947_v11, 0.0 }
 0x7a6   : > { %v9932_v18 = vadd.f32 %v9831_v57, %v9584_v31  ;;  %v9941_v35 = vadd.f32 %v9925_v44, %v17214_v62  ;;  %v9956_v51 = vmax.f32 %v9940_v49, 0.0  ;;  %v11754_v57 = vld [vmem:[#allocation4 + $0x48] ss:$36 sps:$4 sm:$0xff]  }
 0x7a7   : > { %v9833_v30 = vpop.f32.mrf.mxu1  ;;  %v11637_v0 = vpack.c.bf16 %v9963_v32, %v9962_v16  ;;  %v9870_v29 = vpop.f32.mrf.mxu0 }
 0x7a8   : > { %v9948_v40 = vadd.f32 %v9932_v18, %v17219_v59  ;;  %v9933_v5 = vadd.f32 %v9833_v30, %v9586_v1  ;;  %v9957_v39 = vmax.f32 %v9941_v35, 0.0  ;;  %v9926_v45 = vadd.f32 %v9870_v29, %v9623_v6 }
 0x7a9   : > { %v9913_v46 = vpop.f32.mrf.mxu1  ;;  %10078 = vst [vmem:[#allocation4 + $0x70] sm:$0xff] %v11637_v0  ;;  %v9872_v58 = vpop.f32.mrf.mxu0  ;;  %v335_v0 = vld [vmem:[%s17373_s6 + $0x8] sm:$0xff] }
 0x7aa   : > { %v9949_v3 = vadd.f32 %v9933_v5, %v17219_v59  ;;  %v9928_v54 = vadd.f32 %v9913_v46, %v9666_v38  ;;  %v11634_v43 = vpack.c.bf16 %v9957_v39, %v9956_v51  ;;  %v9964_v13 = vmax.f32 %v9948_v40, 0.0  ;;  %v334_v40 = vld [vmem:[%s17373_s6] sm:$0xff]  ;;  %v17308_v51 = vpop.permute.xlu0 %10109 }
 0x7ab   : > { %v9915_v28 = vpop.f32.mrf.mxu1  ;;  %v9942_v7 = vadd.f32 %v9926_v45, %v17214_v62  ;;  %v9927_v55 = vadd.f32 %v9872_v58, %v9625_v37  ;;  %v9874_v42 = vpop.f32.mrf.mxu0 }
 0x7ac   : > { %v9965_v8 = vmax.f32 %v9949_v3, 0.0  ;;  %10075 = vst [vmem:[#allocation4 + $0x54] sm:$0xff] %v11634_v43  ;;  %v9944_v63 = vadd.f32 %v9928_v54, %v17214_v62  ;;  %v9929_v9 = vadd.f32 %v9915_v28, %v9668_v56  ;;  %v9934_v17 = vadd.f32 %v9874_v42, %v9627_v25 }
 0x7ad   : > { %v9917_v12 = vpop.f32.mrf.mxu1  ;;  %v9943_v34 = vadd.f32 %v9927_v55, %v17214_v62  ;;  %v9958_v60 = vmax.f32 %v9942_v7, 0.0  ;;  %v9876_v15 = vpop.f32.mrf.mxu0 }
 0x7ae   : > { %v11638_v23 = vpack.c.bf16 %v9965_v8, %v9964_v13  ;;  %v9945_v33 = vadd.f32 %v9929_v9, %v17214_v62  ;;  %v9936_v24 = vadd.f32 %v9917_v12, %v9670_v4  ;;  %v9950_v21 = vadd.f32 %v9934_v17, %v17219_v59 }
 0x7af   : > { %v9919_v52 = vpop.f32.mrf.mxu1  ;;  %v9959_v10 = vmax.f32 %v9943_v34, 0.0  ;;  %v9935_v26 = vadd.f32 %v9876_v15, %v9629_v61  ;;  %v9960_v20 = vmax.f32 %v9944_v63, 0.0 }
 0x7b0   : > { %10079 = vst [vmem:[#allocation4 + $0x78] sm:$0xff] %v11638_v23  ;;  %v9937_v22 = vadd.f32 %v9919_v52, %v9672_v48  ;;  %v9961_v47 = vmax.f32 %v9945_v33, 0.0  ;;  %v9952_v50 = vadd.f32 %v9936_v24, %v17219_v59  ;;  %v11752_v41 = vld [vmem:[#allocation4 + $0x4c] ss:$36 sps:$4 sm:$0xff]   ;;  %v9966_v62 = vmax.f32 %v9950_v21, 0.0 }
 0x7b1   : > { %v11635_v53 = vpack.c.bf16 %v9959_v10, %v9958_v60  ;;  %v9951_v36 = vadd.f32 %v9935_v26, %v17219_v59  ;;  %10205 = vrot.lane.b32.xlu0 %v11752_v41, %s11891_s14  ;;  %v11755_v32 = vld [vmem:[#allocation4 + $0x50] ss:$36 sps:$4 sm:$0xff]  }
 0x7b2   : > { %v9953_v31 = vadd.f32 %v9937_v22, %v17219_v59  ;;  %v11636_v2 = vpack.c.bf16 %v9961_v47, %v9960_v20  ;;  %v9968_v49 = vmax.f32 %v9952_v50, 0.0  ;;  %10207 = vrot.lane.b32.xlu1 %v11755_v32, %s11891_s14 }
 0x7b3   : > { %10076 = vst [vmem:[#allocation4 + $0x5c] sm:$0xff] %v11635_v53  ;;  %v9967_v11 = vmax.f32 %v9951_v36, 0.0 }
 0x7b4   : > { %v9969_v44 = vmax.f32 %v9953_v31, 0.0  ;;  %10077 = vst.msk [vmem:[#allocation4 + $0x64] sm:$0xff] %vm16832_vm4, %v11636_v2 }
 0x7b5   : > { %v11639_v1 = vpack.c.bf16 %v9967_v11, %v9966_v62  ;;  %10203 = vrot.lane.b32.xlu0 %v11754_v57, %s11891_s14 }
 0x7b6   : > { %v11640_v16 = vpack.c.bf16 %v9969_v44, %v9968_v49 }
 0x7b7   : > { %10080 = vst [vmem:[#allocation4 + $0x80] sm:$0xff] %v11639_v1  ;;  %v11759_v59 = vld [vmem:[#allocation4 + $0x54] ss:$36 sps:$4 sm:$0xff]  }
 0x7b8   : > { %10081 = vst.msk [vmem:[#allocation4 + $0x88] sm:$0xff] %vm16832_vm4, %v11640_v16  ;;  %10209 = vrot.lane.b32.xlu1 %v11759_v59, %s11891_s14  ;;  %v11757_v18 = vld [vmem:[#allocation4 + $0x58] ss:$36 sps:$4 sm:$0xff]  }
 0x7b9   : > { %10211 = vrot.lane.b32.xlu0 %v11757_v18, %s11891_s14 }
 0x7be   : > { %v11761_v6 = vld [vmem:[#allocation4 + $0x60] ss:$36 sps:$4 sm:$0xff]  }
 0x7bf   : > { %10215 = vrot.lane.b32.xlu1 %v11761_v6, %s11891_s14  ;;  %v11760_v35 = vld [vmem:[#allocation4 + $0x5c] ss:$36 sps:$4 sm:$0xff]   ;;  %v11764_v30 = vld [vmem:[#allocation4 + $0x64] ss:$36 sps:$4 sm:$0xff]  }
 0x7c0   : > { %10213 = vrot.lane.b32.xlu0 %v11760_v35, %s11891_s14  ;;  %v11763_v38 = vld [vmem:[#allocation4 + $0x68] ss:$36 sps:$4 sm:$0xff]  }
 0x7c1   : > { %v10188_v5 = vpop.permute.xlu1 %10187 }
 0x7c3   : > { %10217 = vrot.lane.b32.xlu1 %v11764_v30, %s11891_s14  ;;  %v10190_v29 = vpop.permute.xlu0 %10189 }
 0x7c4   : > { %10219 = vrot.lane.b32.xlu0 %v11763_v38, %s11891_s14  ;;  %v10222_v13 = vsel %vm8647_vm9, %v10188_v5, %v10190_v29 }
 0x7c5   : > { %v10186_v39 = vpop.permute.xlu1 %10185 }
 0x7c6   : > { %v10221_v8 = vsel %vm8647_vm9, %v10186_v39, %v10188_v5 }
 0x7c7   : > { %10430 = vrot.lane.b32.xlu1 %v11752_v41, %s11896_s28 }
 0x7c8   : > { %10201 = vrot.lane.b32.xlu0 %v11765_v14, %s11891_s14  ;;  %s278_s14 = scalar_lea.vmem %s17374_s7, %s11592_s11 }
 0x7cb   : > { %10428 = vrot.lane.b32.xlu1 %v11754_v57, %s11896_s28 }
 0x7cc   : > { %10432 = vrot.lane.b32.xlu0 %v11755_v32, %s11896_s28 }
 0x7cd   : > { %v10192_v37 = vpop.permute.xlu0 %10191 }
 0x7ce   : > { %v10194_v46 = vpop.permute.xlu1 %10193  ;;  %v10223_v34 = vsel %vm8647_vm9, %v10190_v29, %v10192_v37 }
 0x7cf   : > { %10436 = vrot.lane.b32.xlu1 %v11757_v18, %s11896_s28  ;;  %v10224_v63 = vsel %vm8647_vm9, %v10192_v37, %v10194_v46 }
 0x7d0   : > { %10434 = vrot.lane.b32.xlu0 %v11759_v59, %s11896_s28 }
 0x7d2   : > { %v10196_v45 = vpop.permute.xlu1 %10195  ;;  %v10198_v3 = vpop.permute.xlu0 %10197 }
 0x7d3   : > { %10440 = vrot.lane.b32.xlu1 %v11761_v6, %s11896_s28  ;;  %v10226_v17 = vsel %vm8647_vm9, %v10196_v45, %v10198_v3  ;;  %v10225_v24 = vsel %vm8647_vm9, %v10194_v46, %v10196_v45 }
 0x7d4   : > { %10438 = vrot.lane.b32.xlu0 %v11760_v35, %s11896_s28 }
 0x7d7   : > { %10444 = vrot.lane.b32.xlu1 %v11763_v38, %s11896_s28 }
 0x7d8   : > { %10442 = vrot.lane.b32.xlu0 %v11764_v30, %s11896_s28 }
 0x7d9   : > { %v10200_v56 = vpop.permute.xlu1 %10199 }
 0x7da   : > { %v10227_v22 = vsel %vm8647_vm9, %v10198_v3, %v10200_v56 }
 0x7db   : > { %343 = vperm.xlu1 %11667, %v335_v0  }
 0x7dc   : > { %338 = vperm.xlu0 %11666, %v334_v40  }
 0x823   : > { %v10206_v54 = vpop.permute.xlu0 %10205 }
 0x824   : > { %v10208_v43 = vpop.permute.xlu1 %10207 }
 0x825   : > { %v10230_v58 = vsel %vm8647_vm9, %v10206_v54, %v10208_v43 }
 0x826   : > { %10268 = vmatprep.subr.bf16.mxu0 %v10230_v58 }
 0x827   : > { %v10204_v25 = vpop.permute.xlu0 %10203 }
 0x828   : > { %v10229_v28 = vsel %vm8647_vm9, %v10204_v25, %v10206_v54 }
 0x829   : > { %10269 = vmatpush1.bf16.msra.mxu0 %v10229_v28 }
 0x82a   : > { %10270 = vmatprep.subr.bf16.mxu0 %v10222_v13  ;;  %v10210_v7 = vpop.permute.xlu1 %10209 }
 0x82b   : > { %v10212_v55 = vpop.permute.xlu0 %10211  ;;  %v10231_v42 = vsel %vm8647_vm9, %v10208_v43, %v10210_v7 }
 0x82c   : > { %v10232_v4 = vsel %vm8647_vm9, %v10210_v7, %v10212_v55 }
 0x82d   : > { %10271 = vmatpush1.bf16.msra.mxu0 %v10221_v8  ;;  %10311 = vmatprep.subr.bf16.mxu1 %v10232_v4 }
 0x82e   : > { %10312 = vmatpush1.bf16.msra.mxu1 %v10231_v42 }
 0x82f   : > { %10313 = vmatprep.subr.bf16.mxu1 %v10224_v63 }
 0x830   : > { %11582 = vmatmul.mubr.msk.bf16.vlgmr.msra.gmra.mxu0 %vm8795_vm11, %v17308_v51 }
 0x831   : > { %v10216_v61 = vpop.permute.xlu1 %10215  ;;  %10374 = vmatprep.mubr.bf16.mxu0 %v17595_v27 }
 0x832   : > { %v10214_v9 = vpop.permute.xlu0 %10213  ;;  %10314 = vmatpush1.bf16.msra.mxu1 %v10223_v34 }
 0x833   : > { %v10233_v12 = vsel %vm8647_vm9, %v10212_v55, %v10214_v9  ;;  %v10234_v48 = vsel %vm8647_vm9, %v10214_v9, %v10216_v61 }
 0x834   : > { %10354 = vmatprep.subr.bf16.mxu0 %v10234_v48 }
 0x835   : > { %v10218_v23 = vpop.permute.xlu1 %10217  ;;  %10355 = vmatpush1.bf16.msra.mxu0 %v10233_v12  ;;  %11583 = vmatmul.mubr.msk.bf16.vlgmr.msra.gmra.mxu1 %vm8795_vm11, %v17308_v51 }
 0x836   : > { %v10220_v60 = vpop.permute.xlu0 %10219  ;;  %10356 = vmatprep.subr.bf16.mxu0 %v10226_v17  ;;  %v10235_v52 = vsel %vm8647_vm9, %v10216_v61, %v10218_v23  ;;  %10417 = vmatprep.mubr.bf16.mxu1 %v17595_v27 }
 0x837   : > { %v10236_v15 = vsel %vm8647_vm9, %v10218_v23, %v10220_v60 }
 0x838   : > { %10397 = vmatprep.subr.bf16.mxu1 %v10236_v15 }
 0x839   : > { %v10431_v33 = vpop.permute.xlu1 %10430  ;;  %10357 = vmatpush1.bf16.msra.mxu0 %v10225_v24  ;;  %10398 = vmatpush1.bf16.msra.mxu1 %v10235_v52 }
 0x83a   : > { %v10202_v10 = vpop.permute.xlu0 %10201 }
 0x83b   : > { %v10228_v21 = vsel %vm8647_vm9, %v10200_v56, %v10202_v10 }
 0x83c   : > { %11584 = vmatmul.mubr.msk.bf16.vlgmr.msra.gmra.mxu0 %vm8795_vm11, %v17308_v51  ;;  %10399 = vmatprep.subr.bf16.mxu1 %v10228_v21 }
 0x83d   : > { %v10429_v26 = vpop.permute.xlu1 %10428  ;;  %10400 = vmatpush1.bf16.msra.mxu1 %v10227_v22  ;;  %10498 = vmatprep.mubr.bf16.mxu0 %v17595_v27 }
 0x83e   : > { %v10433_v20 = vpop.permute.xlu0 %10432  ;;  %v10447_v41 = vsel %vm10446_vm0, %v10429_v26, %v10431_v33 }
 0x83f   : > { %v10448_v47 = vsel %vm10446_vm0, %v10431_v33, %v10433_v20 }
 0x840   : > { %11585 = vmatmul.mubr.msk.bf16.vlgmr.msra.gmra.mxu1 %vm8795_vm11, %v17308_v51  ;;  %10480 = vmatprep.subr.bf16.mxu0 %v10448_v47 }
 0x841   : > { %v10437_v50 = vpop.permute.xlu1 %10436  ;;  %10481 = vmatpush1.bf16.msra.mxu0 %v10447_v41  ;;  %10541 = vmatprep.mubr.bf16.mxu1 %v17595_v27 }
 0x842   : > { %v10435_v53 = vpop.permute.xlu0 %10434 }
 0x843   : > { %v10449_v36 = vsel %vm10446_vm0, %v10433_v20, %v10435_v53  ;;  %v10450_v31 = vsel %vm10446_vm0, %v10435_v53, %v10437_v50 }
 0x844   : > { %11586 = vmatmul.mubr.msk.bf16.vlgmr.msra.gmra.mxu0 %vm3245_vm10, %v17194_v19  ;;  %10523 = vmatprep.subr.bf16.mxu1 %v10450_v31 }
 0x845   : > { %v10441_v2 = vpop.permute.xlu1 %10440  ;;  %10524 = vmatpush1.bf16.msra.mxu1 %v10449_v36  ;;  %10584 = vmatprep.mubr.bf16.mxu0 %v17595_v27 }
 0x846   : > { %v10439_v62 = vpop.permute.xlu0 %10438 }
 0x847   : > { %v10451_v11 = vsel %vm10446_vm0, %v10437_v50, %v10439_v62  ;;  %v10452_v49 = vsel %vm10446_vm0, %v10439_v62, %v10441_v2 }
 0x848   : > { %11587 = vmatmul.mubr.msk.bf16.vlgmr.msra.gmra.mxu1 %vm3245_vm10, %v17194_v19  ;;  %10566 = vmatprep.subr.bf16.mxu0 %v10452_v49 }
 0x849   : > { %10567 = vmatpush1.bf16.msra.mxu0 %v10451_v11  ;;  %10627 = vmatprep.mubr.bf16.mxu1 %v17595_v27  ;;  %v10445_v57 = vpop.permute.xlu1 %10444 }
 0x84a   : > { %v10443_v44 = vpop.permute.xlu0 %10442 }
 0x84b   : > { %v10453_v1 = vsel %vm10446_vm0, %v10441_v2, %v10443_v44  ;;  %v10454_v16 = vsel %vm10446_vm0, %v10443_v44, %v10445_v57 }
 0x84c   : > { %11588 = vmatmul.mubr.msk.bf16.vlgmr.msra.gmra.mxu0 %vm3245_vm10, %v17194_v19  ;;  %10609 = vmatprep.subr.bf16.mxu1 %v10454_v16 }
 0x84d   : > { %10610 = vmatpush1.bf16.msra.mxu1 %v10453_v1 }
 0x850   : > { %11589 = vmatmul.mubr.msk.bf16.vlgmr.msra.gmra.mxu1 %vm3245_vm10, %v17194_v19 }
 0x856   : > { %v344_v4 = vpop.permute.xlu1 %343 }
 0x857   : > { %v339_v58 = vpop.permute.xlu0 %338 }
 0x8f0   : > { %v10290_v32 = vpop.f32.mrf.mxu0 }
 0x8f2   : > { %v10292_v59 = vpop.f32.mrf.mxu0 }
 0x8f4   : > { %v10294_v18 = vpop.f32.mrf.mxu0 }
 0x8f5   : > { %v10333_v6 = vpop.f32.mrf.mxu1 }
 0x8f6   : > { %v10296_v35 = vpop.f32.mrf.mxu0 }
 0x8f7   : > { %v10335_v27 = vpop.f32.mrf.mxu1 }
 0x8f9   : > { %v10337_v30 = vpop.f32.mrf.mxu1 }
 0x8fb   : > { %v10339_v14 = vpop.f32.mrf.mxu1 }
 0x8fc   : > { %v10376_v38 = vpop.f32.mrf.mxu0 }
 0x8fe   : > { %v10378_v0 = vpop.f32.mrf.mxu0 }
 0x900   : > { %v10380_v40 = vpop.f32.mrf.mxu0  ;;  %v10419_v5 = vpop.f32.mrf.mxu1 }
 0x902   : > { %v10382_v51 = vpop.f32.mrf.mxu0  ;;  %v10421_v39 = vpop.f32.mrf.mxu1 }
 0x904   : > { %v10423_v29 = vpop.f32.mrf.mxu1  ;;  %v10500_v46 = vpop.f32.mrf.mxu0 }
 0x905   : > { %v10501_v56 = vadd.f32 %v10500_v46, %v10290_v32 }
 0x906   : > { %v10425_v37 = vpop.f32.mrf.mxu1  ;;  %v10502_v45 = vpop.f32.mrf.mxu0 }
 0x907   : > { %v10503_v28 = vadd.f32 %v10502_v45, %v10292_v59  ;;  %v10638_v42 = vadd.f32 %v10501_v56, %v339_v58 }
 0x908   : > { %v10504_v3 = vpop.f32.mrf.mxu0  ;;  %v10543_v19 = vpop.f32.mrf.mxu1 }
 0x909   : > { %v10544_v54 = vadd.f32 %v10543_v19, %v10333_v6  ;;  %v10505_v13 = vadd.f32 %v10504_v3, %v10294_v18  ;;  %v10639_v23 = vadd.f32 %v10503_v28, %v339_v58  ;;  %v10654_v20 = vmax.f32 %v10638_v42, 0.0 }
 0x90a   : > { %v10506_v25 = vpop.f32.mrf.mxu0  ;;  %v10545_v43 = vpop.f32.mrf.mxu1 }
 0x90b   : > { %v10546_v7 = vadd.f32 %v10545_v43, %v10335_v27  ;;  %v10640_v61 = vadd.f32 %v10544_v54, %v339_v58  ;;  %v10646_v34 = vadd.f32 %v10505_v13, %v344_v4  ;;  %v10507_v15 = vadd.f32 %v10506_v25, %v10296_v35 }
 0x90c   : > { %v10547_v8 = vpop.f32.mrf.mxu1  ;;  %v10586_v55 = vpop.f32.mrf.mxu0  ;;  %v10655_v31 = vmax.f32 %v10639_v23, 0.0 }
 0x90d   : > { %v10548_v63 = vadd.f32 %v10547_v8, %v10337_v30  ;;  %v10587_v9 = vadd.f32 %v10586_v55, %v10376_v38  ;;  %v10641_v17 = vadd.f32 %v10546_v7, %v339_v58  ;;  %v10656_v10 = vmax.f32 %v10640_v61, 0.0 }
 0x90e   : > { %v10549_v12 = vpop.f32.mrf.mxu1  ;;  %v10588_v48 = vpop.f32.mrf.mxu0  ;;  %v10662_v2 = vmax.f32 %v10646_v34, 0.0  ;;  %v10647_v49 = vadd.f32 %v10507_v15, %v344_v4 }
 0x90f   : > { %v10550_v60 = vadd.f32 %v10549_v12, %v10339_v14  ;;  %v10589_v33 = vadd.f32 %v10588_v48, %v10378_v0  ;;  %v10642_v21 = vadd.f32 %v10587_v9, %v339_v58  ;;  %v10648_v47 = vadd.f32 %v10548_v63, %v344_v4 }
 0x910   : > { %v10590_v24 = vpop.f32.mrf.mxu0  ;;  %v10629_v52 = vpop.f32.mrf.mxu1  ;;  %v10657_v62 = vmax.f32 %v10641_v17, 0.0  ;;  %v10670_v32 = vmax.f32 %v10654_v20, %v10656_v10  ;;  %v10663_v45 = vmax.f32 %v10647_v49, 0.0 }
 0x911   : > { %v10591_v26 = vadd.f32 %v10590_v24, %v10380_v40  ;;  %v10630_v22 = vadd.f32 %v10629_v52, %v10419_v5  ;;  %v10649_v50 = vadd.f32 %v10550_v60, %v344_v4  ;;  %v10643_v41 = vadd.f32 %v10589_v33, %v339_v58 }
 0x912   : > { %v10592_v53 = vpop.f32.mrf.mxu0  ;;  %v10631_v36 = vpop.f32.mrf.mxu1  ;;  %v10658_v59 = vmax.f32 %v10642_v21, 0.0  ;;  %v10664_v35 = vmax.f32 %v10648_v47, 0.0  ;;  %v10671_v0 = vmax.f32 %v10655_v31, %v10657_v62 }
 0x913   : > { %v10644_v11 = vadd.f32 %v10630_v22, %v339_v58  ;;  %v10650_v44 = vadd.f32 %v10591_v26, %v344_v4  ;;  %v10593_v57 = vadd.f32 %v10592_v53, %v10382_v51  ;;  %v10632_v1 = vadd.f32 %v10631_v36, %v10421_v39 }
 0x914   : > { %v10633_v16 = vpop.f32.mrf.mxu1  ;;  %v10659_v18 = vmax.f32 %v10643_v41, 0.0  ;;  %v10665_v27 = vmax.f32 %v10649_v50, 0.0  ;;  %v10672_v51 = vmax.f32 %v10670_v32, %v10658_v59  ;;  %v10681_v25 = vmax.f32 %v10662_v2, %v10664_v35 }
 0x915   : > { %v10634_v6 = vadd.f32 %v10633_v16, %v10423_v29  ;;  %v10651_v30 = vadd.f32 %v10593_v57, %v344_v4  ;;  %v10645_v38 = vadd.f32 %v10632_v1, %v339_v58  ;;  %v10660_v40 = vmax.f32 %v10644_v11, 0.0 }
 0x916   : > { %v10635_v14 = vpop.f32.mrf.mxu1  ;;  %v10666_v3 = vmax.f32 %v10650_v44, 0.0  ;;  %v10673_v39 = vmax.f32 %v10671_v0, %v10659_v18  ;;  %v10682_v43 = vmax.f32 %v10663_v45, %v10665_v27 }
 0x917   : > { %v10652_v5 = vadd.f32 %v10634_v6, %v344_v4  ;;  %v10636_v46 = vadd.f32 %v10635_v14, %v10425_v37  ;;  %v10667_v19 = vmax.f32 %v10651_v30, 0.0  ;;  %v10661_v54 = vmax.f32 %v10645_v38, 0.0 }
 0x918   : > { %v10674_v13 = vmax.f32 %v10672_v51, %v10660_v40  ;;  %v10683_v8 = vmax.f32 %v10681_v25, %v10666_v3 }
 0x919   : > { %v10653_v56 = vadd.f32 %v10636_v46, %v344_v4  ;;  %v10676_v29 = vsel %vm449_vm1, %v10661_v54, -inf  ;;  %v10668_v28 = vmax.f32 %v10652_v5, 0.0  ;;  %v10684_v55 = vmax.f32 %v10682_v43, %v10667_v19 }
 0x91a   : > { %v10677_v7 = vmax.f32 %v10673_v39, %v10676_v29 }
 0x91b   : > { %v10669_v58 = vmax.f32 %v10653_v56, 0.0  ;;  %v10685_v42 = vmax.f32 %v10683_v8, %v10668_v28 }
 0x91c   : > { %v10678_v61 = vmax.f32 %v10674_v13, %v10677_v7 }
 0x91d   : > { %v10686_v37 = vsel %vm449_vm1, %v10669_v58, -inf }
 0x91e   : > { %v10687_v63 = vmax.f32 %v10684_v55, %v10686_v37  ;;  %10679 = vmax.xlane.f32.xlu0 %v10678_v61 }
 0x920   : > { %v10688_v9 = vmax.f32 %v10685_v42, %v10687_v63 }
 0x922   : > { %10689 = vmax.xlane.f32.xlu1 %v10688_v9 }
 0x9a7   : > { %v10680_v4 = vpop.xlane.xlu0 %10679 }
 0x9a8   : > { %10692 = vst.msk [vmem:[%s278_s14] sm:$0xff] %vm8647_vm9, %v10680_v4 }
 0x9ab   : > { %v10690_v12 = vpop.xlane.xlu1 %10689 }
 0x9ac   : > { %10693 = vst.msk [vmem:[%s278_s14 + $0x8] sm:$0xff] %vm8647_vm9, %v10690_v12 }
 0x9ad PF: > { %s17_s24 = sadd.s32 1, %s11879_s24  }
 0x9ae   : > { %p14_p4 = scmp.ge.s32.totalorder %s17_s24, 4  }
 0x9b0   :  { %16 = sbr.rel (!%p14_p4) target bundleno = 1 (0x1), region = 78 }

</bundles_post_ra>
